<compile_context>
chip_gen: v5e
topology: v5e:2x2
jax: 0.10.0
libtpu: 0.0.40
codegen_flags: <defaults>
</compile_context>

<pallas_src>
import functools

import jax
import jax.numpy as jnp
from jax.experimental import pallas as pl
from jax.experimental.pallas import tpu as pltpu


def _pick_tile(dim, candidates, prefer_multiple_blocks=True):
    """Largest candidate that divides `dim`.  Prefer leaving >=2 grid blocks so
    the 'parallel' axis can be sharded across v7x's two TensorCores."""
    if prefer_multiple_blocks:
        for c in candidates:
            if c <= dim // 2 and dim % c == 0:
                return c
    for c in candidates:
        if c <= dim and dim % c == 0:
            return c
    return dim  # full-dim block (always a legal block shape)


# ----------------------------------------------------------------------------
# Fused conv (as matmul) + bias + ReLU + 2x2/2 max-pool kernel.
#   x_ref : (tm, K) bf16 im2col rows ordered (pool-row-pair g, v in {0,1}, w)
#   w_ref : (K, Cout) bf16 (resident, constant block index)
#   b_ref : (1, Cout) f32
#   o_ref : (tb, Wo*Cout) bf16  -- pooled rows (n, ho), minor order (wo, c),
#                                  lane-dense (512 lanes for both conv stages)
# ----------------------------------------------------------------------------
def _conv_relu_pool_kernel(x_ref, w_ref, b_ref, o_ref, *, w_pix, cout):
    r = jnp.dot(x_ref[...], w_ref[...], preferred_element_type=jnp.float32)
    r = jnp.maximum(r + b_ref[...], 0.0)          # bias + ReLU, f32 epilogue
    tm = r.shape[0]
    tb = tm // (2 * w_pix)
    wo = w_pix // 2
    # (tm, cout) -> (tb, 2, w_pix, cout): minor dim unchanged, w_pix % 8 == 0,
    # so this reshape is layout-trivial (no cross-lane relayout).
    r = r.reshape(tb, 2, w_pix, cout)
    vert = jnp.maximum(r[:, 0], r[:, 1])          # (tb, w_pix, cout) vertical max
    # Horizontal max + lane-dense packing: each pooled pixel's channel chunk is
    # written at a static lane offset of the 512-lane output row (unrolled,
    # wo <= 16 iterations; VPU/XLU work is tiny next to the matmul).
    for q in range(wo):
        p = jnp.maximum(vert[:, 2 * q, :], vert[:, 2 * q + 1, :])
        o_ref[:, q * cout:(q + 1) * cout] = p.astype(o_ref.dtype)


def _im2col(x_nhwc, kh, kw, pad):
    """bf16 patch matrix, rows (n, h, w), columns (dy, dx, c).  Exact K."""
    N, H, W, C = x_nhwc.shape
    xp = jnp.pad(x_nhwc, ((0, 0), (pad, pad), (pad, pad), (0, 0)))
    cols = []
    for dy in range(kh):
        for dx in range(kw):
            cols.append(xp[:, dy:dy + H, dx:dx + W, :])
    patches = jnp.stack(cols, axis=3)               # [N, H, W, kh*kw, C]
    return patches.reshape(N * H * W, kh * kw * C)


def conv2d_relu_pool(x_nhwc, w_mat, b, *, kh, kw, pad):
    """maxpool2x2(relu(conv2d(x))) in one pallas_call.  Returns NHWC bf16."""
    N, H, W, C = x_nhwc.shape
    K, Cout = w_mat.shape
    assert K == kh * kw * C and H % 2 == 0 and W % 2 == 0
    Ho, Wo = H // 2, W // 2

    patches = _im2col(x_nhwc.astype(jnp.bfloat16), kh, kw, pad)   # (N*H*W, K)
    R = N * Ho                                     # pooled output rows (n, ho)
    tb = _pick_tile(R, (64, 32, 16, 8))            # pooled rows per grid step
    tm = tb * 2 * W                                # patch rows per grid step

    out = pl.pallas_call(
        functools.partial(_conv_relu_pool_kernel, w_pix=W, cout=Cout),
        out_shape=jax.ShapeDtypeStruct((R, Wo * Cout), jnp.bfloat16),
        grid_spec=pltpu.PrefetchScalarGridSpec(
            num_scalar_prefetch=0,
            grid=(R // tb,),
            in_specs=[
                pl.BlockSpec((tm, K), lambda i: (i, 0)),       # full-K block
                pl.BlockSpec((K, Cout), lambda i: (0, 0)),     # resident weight
                pl.BlockSpec((1, Cout), lambda i: (0, 0)),
            ],
            out_specs=pl.BlockSpec((tb, Wo * Cout), lambda i: (i, 0)),
        ),
        compiler_params=pltpu.CompilerParams(
            dimension_semantics=("parallel",),
            vmem_limit_bytes=32 * 1024 * 1024,
        ),
    )(patches, w_mat, b.astype(jnp.float32).reshape(1, Cout))
    return out.reshape(N, Ho, Wo, Cout)


# ----------------------------------------------------------------------------
# Fully-connected layer: single-K fused matmul + bias + optional ReLU.
# ----------------------------------------------------------------------------
def _linear_kernel(x_ref, w_ref, b_ref, o_ref, *, apply_relu):
    r = jnp.dot(x_ref[...], w_ref[...], preferred_element_type=jnp.float32)
    r = r + b_ref[...]
    if apply_relu:
        r = jnp.maximum(r, 0.0)
    o_ref[...] = r.astype(o_ref.dtype)


def linear(x, w, b, *, relu, out_dtype=jnp.float32):
    """y = relu?(x @ w + b); x: [M, K], w: [K, N] bf16, b: [N] f32."""
    M, K = x.shape
    K2, Nout = w.shape
    assert K == K2
    x = x.astype(jnp.bfloat16)
    w = w.astype(jnp.bfloat16)
    b2 = b.astype(jnp.float32).reshape(1, Nout)

    tm = _pick_tile(M, (512, 256, 128, 64, 32, 16, 8))
    return pl.pallas_call(
        functools.partial(_linear_kernel, apply_relu=relu),
        out_shape=jax.ShapeDtypeStruct((M, Nout), out_dtype),
        grid_spec=pltpu.PrefetchScalarGridSpec(
            num_scalar_prefetch=0,
            grid=(M // tm,),
            in_specs=[
                pl.BlockSpec((tm, K), lambda i: (i, 0)),      # full-K block
                pl.BlockSpec((K, Nout), lambda i: (0, 0)),    # resident weight
                pl.BlockSpec((1, Nout), lambda i: (0, 0)),
            ],
            out_specs=pl.BlockSpec((tm, Nout), lambda i: (i, 0)),
        ),
        compiler_params=pltpu.CompilerParams(
            dimension_semantics=("parallel",),
            vmem_limit_bytes=32 * 1024 * 1024,
        ),
    )(x, w, b2)


# ----------------------------------------------------------------------------
# Parameter init (PyTorch layout) and one-time re-layout / bf16 cast.
# ----------------------------------------------------------------------------
def init_params(key):
    keys = jax.random.split(key, 8)

    def u(k, shape, fan_in):
        bound = 1.0 / jnp.sqrt(float(fan_in))
        return jax.random.uniform(k, shape, jnp.float32, -bound, bound)

    return {
        "conv1_w": u(keys[0], (32, 3, 5, 5), 3 * 5 * 5),
        "conv1_b": u(keys[1], (32,), 3 * 5 * 5),
        "conv2_w": u(keys[2], (64, 32, 3, 3), 32 * 3 * 3),
        "conv2_b": u(keys[3], (64,), 32 * 3 * 3),
        "fc1_w":  u(keys[4], (64 * 8 * 8, 512), 64 * 8 * 8),   # [in(NCHW-flat), out]
        "fc1_b":  u(keys[5], (512,), 64 * 8 * 8),
        "fc2_w":  u(keys[6], (512, 10), 512),                  # [in, out]
        "fc2_b":  u(keys[7], (10,), 512),
    }


def prepare_params(params):
    """One-time (outside the step) weight re-layout + bf16 cast."""
    def conv_w(w_oihw):
        cout, cin, kh, kw = w_oihw.shape
        w = jnp.transpose(w_oihw, (2, 3, 1, 0)).reshape(kh * kw * cin, cout)
        return w.astype(jnp.bfloat16)        # exact K (75 / 288), no zero pad

    # fc1 rows are indexed (c, h, w) in PyTorch's NCHW flatten; re-order them
    # to (h, w, c) so NHWC activations feed it directly (no runtime transpose).
    fc1 = params["fc1_w"].reshape(64, 8, 8, 512)
    fc1 = jnp.transpose(fc1, (1, 2, 0, 3)).reshape(64 * 8 * 8, 512)

    # fc2: pad 10 output columns to 128 so the last matmul stores a full lane
    # group; the wrapper slices the logits back (free).
    fc2_w = jnp.pad(params["fc2_w"], ((0, 0), (0, 118)))
    fc2_b = jnp.pad(params["fc2_b"], ((0, 118),))

    return {
        "conv1_w": conv_w(params["conv1_w"]),     # [75, 32]  bf16
        "conv1_b": params["conv1_b"],
        "conv2_w": conv_w(params["conv2_w"]),     # [288, 64] bf16
        "conv2_b": params["conv2_b"],
        "fc1_w":  fc1.astype(jnp.bfloat16),       # [4096, 512], NHWC row order
        "fc1_b":  params["fc1_b"],
        "fc2_w":  fc2_w.astype(jnp.bfloat16),     # [512, 128]
        "fc2_b":  fc2_b,
    }


# ----------------------------------------------------------------------------
# Full forward pass (bf16 activations; f32 accumulate / epilogue in kernels).
# ----------------------------------------------------------------------------
def expconvnet_forward(x_nchw, p):
    N = x_nchw.shape[0]
    x = jnp.transpose(x_nchw, (0, 2, 3, 1)).astype(jnp.bfloat16)          # NHWC bf16
    x = conv2d_relu_pool(x, p["conv1_w"], p["conv1_b"], kh=5, kw=5, pad=2)  # [N,16,16,32]
    x = conv2d_relu_pool(x, p["conv2_w"], p["conv2_b"], kh=3, kw=3, pad=1)  # [N, 8, 8,64]
    x = x.reshape(N, 8 * 8 * 64)          # NHWC flatten; fc1 rows pre-permuted
    x = linear(x, p["fc1_w"], p["fc1_b"], relu=True, out_dtype=jnp.bfloat16)  # [N,512]
    x = linear(x, p["fc2_w"], p["fc2_b"], relu=False, out_dtype=jnp.float32)  # [N,128]
    return x[:, :10]                                                          # [N, 10]


if __name__ == "__main__":
    key = jax.random.PRNGKey(0)
    kx, kp = jax.random.split(key)
    # fc1 expects 64*8*8 features after two 2x2 pools -> input spatial must be 32.
    x = jax.random.normal(kx, (2, 3, 32, 32), jnp.float32)
    params = init_params(kp)
    prepped = prepare_params(params)      # one-time weight re-layout / bf16

    fwd = jax.jit(expconvnet_forward)
    out = jax.block_until_ready(fwd(x, prepped))
    assert out.shape == (2, 10) and out.dtype == jnp.float32
    assert bool(jnp.all(jnp.isfinite(out)))
    print("KERNEL_OK")
</pallas_src>

<mosaic_0001>
module attributes {stable_mosaic.version = 11 : i64} {
  func.func @_conv_relu_pool_kernel(%arg0: i32, %arg1: memref<1024x75xbf16, #tpu.memory_space<vmem>>, %arg2: memref<75x32xbf16, #tpu.memory_space<vmem>>, %arg3: memref<1x32xf32, #tpu.memory_space<vmem>>, %arg4: memref<16x512xbf16, #tpu.memory_space<vmem>>) attributes {dimension_semantics = [#tpu.dimension_semantics<parallel>], iteration_bounds = array<i64: 2>, scalar_prefetch = 0 : i64, scratch_operands = 0 : i64, tpu.core_type = #tpu.core_type<tc>, window_params = [{transform_indices = @transform_0, window_bounds = array<i64: 1024, 75>}, {pipeline_mode = #tpu.pipeline_mode<synchronous>, transform_indices = @transform_1, window_bounds = array<i64: 75, 32>}, {pipeline_mode = #tpu.pipeline_mode<synchronous>, transform_indices = @transform_2, window_bounds = array<i64: 1, 32>}, {transform_indices = @transform_3, window_bounds = array<i64: 16, 512>}]} {
    %c0 = arith.constant 0 : index
    %c0_0 = arith.constant 0 : index
    %0 = vector.load %arg1[%c0, %c0_0] : memref<1024x75xbf16, #tpu.memory_space<vmem>>, vector<1024x75xbf16>
    %c0_1 = arith.constant 0 : index
    %c0_2 = arith.constant 0 : index
    %1 = vector.load %arg2[%c0_1, %c0_2] : memref<75x32xbf16, #tpu.memory_space<vmem>>, vector<75x32xbf16>
    %cst = arith.constant dense<0.000000e+00> : vector<1024x32xf32>
    %2 = tpu.matmul %0, %1, %cst {dimension_numbers = #tpu.dot_dimension_numbers<[1], [0], [0], [1], [0, 0, 1, 1], [], []>} : vector<1024x75xbf16>, vector<75x32xbf16>, vector<1024x32xf32> -> vector<1024x32xf32>
    %c0_3 = arith.constant 0 : index
    %c0_4 = arith.constant 0 : index
    %3 = vector.load %arg3[%c0_3, %c0_4] : memref<1x32xf32, #tpu.memory_space<vmem>>, vector<1x32xf32>
    %4 = vector.broadcast %3 : vector<1x32xf32> to vector<1024x32xf32>
    %5 = arith.addf %2, %4 : vector<1024x32xf32>
    %cst_5 = arith.constant 0.000000e+00 : f32
    %6 = vector.broadcast %cst_5 : f32 to vector<1024x32xf32>
    %7 = arith.maximumf %5, %6 : vector<1024x32xf32>
    %8 = vector.shape_cast %7 : vector<1024x32xf32> to vector<16x2x32x32xf32>
    %9 = vector.extract_strided_slice %8 {offsets = [0, 0, 0, 0], sizes = [16, 1, 32, 32], strides = [1, 1, 1, 1]} : vector<16x2x32x32xf32> to vector<16x1x32x32xf32>
    %10 = vector.shape_cast %9 : vector<16x1x32x32xf32> to vector<16x32x32xf32>
    %11 = vector.extract_strided_slice %8 {offsets = [0, 1, 0, 0], sizes = [16, 1, 32, 32], strides = [1, 1, 1, 1]} : vector<16x2x32x32xf32> to vector<16x1x32x32xf32>
    %12 = vector.shape_cast %11 : vector<16x1x32x32xf32> to vector<16x32x32xf32>
    %13 = arith.maximumf %10, %12 : vector<16x32x32xf32>
    %14 = vector.extract_strided_slice %13 {offsets = [0, 0, 0], sizes = [16, 1, 32], strides = [1, 1, 1]} : vector<16x32x32xf32> to vector<16x1x32xf32>
    %15 = vector.shape_cast %14 : vector<16x1x32xf32> to vector<16x32xf32>
    %16 = vector.extract_strided_slice %13 {offsets = [0, 1, 0], sizes = [16, 1, 32], strides = [1, 1, 1]} : vector<16x32x32xf32> to vector<16x1x32xf32>
    %17 = vector.shape_cast %16 : vector<16x1x32xf32> to vector<16x32xf32>
    %18 = arith.maximumf %15, %17 : vector<16x32xf32>
    %19 = arith.truncf %18 : vector<16x32xf32> to vector<16x32xbf16>
    %c0_6 = arith.constant 0 : index
    %c0_7 = arith.constant 0 : index
    %20 = vector.load %arg4[%c0_6, %c0_7] : memref<16x512xbf16, #tpu.memory_space<vmem>>, vector<16x32xbf16>
    tpu.vector_store %arg4[%c0_6, %c0_7], %19 {strides = array<i32>} : memref<16x512xbf16, #tpu.memory_space<vmem>>, vector<16x32xbf16>,
    %21 = vector.extract_strided_slice %13 {offsets = [0, 2, 0], sizes = [16, 1, 32], strides = [1, 1, 1]} : vector<16x32x32xf32> to vector<16x1x32xf32>
    %22 = vector.shape_cast %21 : vector<16x1x32xf32> to vector<16x32xf32>
    %23 = vector.extract_strided_slice %13 {offsets = [0, 3, 0], sizes = [16, 1, 32], strides = [1, 1, 1]} : vector<16x32x32xf32> to vector<16x1x32xf32>
    %24 = vector.shape_cast %23 : vector<16x1x32xf32> to vector<16x32xf32>
    %25 = arith.maximumf %22, %24 : vector<16x32xf32>
    %26 = arith.truncf %25 : vector<16x32xf32> to vector<16x32xbf16>
    %c0_8 = arith.constant 0 : index
    %c32 = arith.constant 32 : index
    %27 = vector.load %arg4[%c0_8, %c32] : memref<16x512xbf16, #tpu.memory_space<vmem>>, vector<16x32xbf16>
    tpu.vector_store %arg4[%c0_8, %c32], %26 {strides = array<i32>} : memref<16x512xbf16, #tpu.memory_space<vmem>>, vector<16x32xbf16>,
    %28 = vector.extract_strided_slice %13 {offsets = [0, 4, 0], sizes = [16, 1, 32], strides = [1, 1, 1]} : vector<16x32x32xf32> to vector<16x1x32xf32>
    %29 = vector.shape_cast %28 : vector<16x1x32xf32> to vector<16x32xf32>
    %30 = vector.extract_strided_slice %13 {offsets = [0, 5, 0], sizes = [16, 1, 32], strides = [1, 1, 1]} : vector<16x32x32xf32> to vector<16x1x32xf32>
    %31 = vector.shape_cast %30 : vector<16x1x32xf32> to vector<16x32xf32>
    %32 = arith.maximumf %29, %31 : vector<16x32xf32>
    %33 = arith.truncf %32 : vector<16x32xf32> to vector<16x32xbf16>
    %c0_9 = arith.constant 0 : index
    %c64 = arith.constant 64 : index
    %34 = vector.load %arg4[%c0_9, %c64] : memref<16x512xbf16, #tpu.memory_space<vmem>>, vector<16x32xbf16>
    tpu.vector_store %arg4[%c0_9, %c64], %33 {strides = array<i32>} : memref<16x512xbf16, #tpu.memory_space<vmem>>, vector<16x32xbf16>,
    %35 = vector.extract_strided_slice %13 {offsets = [0, 6, 0], sizes = [16, 1, 32], strides = [1, 1, 1]} : vector<16x32x32xf32> to vector<16x1x32xf32>
    %36 = vector.shape_cast %35 : vector<16x1x32xf32> to vector<16x32xf32>
    %37 = vector.extract_strided_slice %13 {offsets = [0, 7, 0], sizes = [16, 1, 32], strides = [1, 1, 1]} : vector<16x32x32xf32> to vector<16x1x32xf32>
    %38 = vector.shape_cast %37 : vector<16x1x32xf32> to vector<16x32xf32>
    %39 = arith.maximumf %36, %38 : vector<16x32xf32>
    %40 = arith.truncf %39 : vector<16x32xf32> to vector<16x32xbf16>
    %c0_10 = arith.constant 0 : index
    %c96 = arith.constant 96 : index
    %41 = vector.load %arg4[%c0_10, %c96] : memref<16x512xbf16, #tpu.memory_space<vmem>>, vector<16x32xbf16>
    tpu.vector_store %arg4[%c0_10, %c96], %40 {strides = array<i32>} : memref<16x512xbf16, #tpu.memory_space<vmem>>, vector<16x32xbf16>,
    %42 = vector.extract_strided_slice %13 {offsets = [0, 8, 0], sizes = [16, 1, 32], strides = [1, 1, 1]} : vector<16x32x32xf32> to vector<16x1x32xf32>
    %43 = vector.shape_cast %42 : vector<16x1x32xf32> to vector<16x32xf32>
    %44 = vector.extract_strided_slice %13 {offsets = [0, 9, 0], sizes = [16, 1, 32], strides = [1, 1, 1]} : vector<16x32x32xf32> to vector<16x1x32xf32>
    %45 = vector.shape_cast %44 : vector<16x1x32xf32> to vector<16x32xf32>
    %46 = arith.maximumf %43, %45 : vector<16x32xf32>
    %47 = arith.truncf %46 : vector<16x32xf32> to vector<16x32xbf16>
    %c0_11 = arith.constant 0 : index
    %c128 = arith.constant 128 : index
    %48 = vector.load %arg4[%c0_11, %c128] : memref<16x512xbf16, #tpu.memory_space<vmem>>, vector<16x32xbf16>
    tpu.vector_store %arg4[%c0_11, %c128], %47 {strides = array<i32>} : memref<16x512xbf16, #tpu.memory_space<vmem>>, vector<16x32xbf16>,
    %49 = vector.extract_strided_slice %13 {offsets = [0, 10, 0], sizes = [16, 1, 32], strides = [1, 1, 1]} : vector<16x32x32xf32> to vector<16x1x32xf32>
    %50 = vector.shape_cast %49 : vector<16x1x32xf32> to vector<16x32xf32>
    %51 = vector.extract_strided_slice %13 {offsets = [0, 11, 0], sizes = [16, 1, 32], strides = [1, 1, 1]} : vector<16x32x32xf32> to vector<16x1x32xf32>
    %52 = vector.shape_cast %51 : vector<16x1x32xf32> to vector<16x32xf32>
    %53 = arith.maximumf %50, %52 : vector<16x32xf32>
    %54 = arith.truncf %53 : vector<16x32xf32> to vector<16x32xbf16>
    %c0_12 = arith.constant 0 : index
    %c160 = arith.constant 160 : index
    %55 = vector.load %arg4[%c0_12, %c160] : memref<16x512xbf16, #tpu.memory_space<vmem>>, vector<16x32xbf16>
    tpu.vector_store %arg4[%c0_12, %c160], %54 {strides = array<i32>} : memref<16x512xbf16, #tpu.memory_space<vmem>>, vector<16x32xbf16>,
    %56 = vector.extract_strided_slice %13 {offsets = [0, 12, 0], sizes = [16, 1, 32], strides = [1, 1, 1]} : vector<16x32x32xf32> to vector<16x1x32xf32>
    %57 = vector.shape_cast %56 : vector<16x1x32xf32> to vector<16x32xf32>
    %58 = vector.extract_strided_slice %13 {offsets = [0, 13, 0], sizes = [16, 1, 32], strides = [1, 1, 1]} : vector<16x32x32xf32> to vector<16x1x32xf32>
    %59 = vector.shape_cast %58 : vector<16x1x32xf32> to vector<16x32xf32>
    %60 = arith.maximumf %57, %59 : vector<16x32xf32>
    %61 = arith.truncf %60 : vector<16x32xf32> to vector<16x32xbf16>
    %c0_13 = arith.constant 0 : index
    %c192 = arith.constant 192 : index
    %62 = vector.load %arg4[%c0_13, %c192] : memref<16x512xbf16, #tpu.memory_space<vmem>>, vector<16x32xbf16>
    tpu.vector_store %arg4[%c0_13, %c192], %61 {strides = array<i32>} : memref<16x512xbf16, #tpu.memory_space<vmem>>, vector<16x32xbf16>,
    %63 = vector.extract_strided_slice %13 {offsets = [0, 14, 0], sizes = [16, 1, 32], strides = [1, 1, 1]} : vector<16x32x32xf32> to vector<16x1x32xf32>
    %64 = vector.shape_cast %63 : vector<16x1x32xf32> to vector<16x32xf32>
    %65 = vector.extract_strided_slice %13 {offsets = [0, 15, 0], sizes = [16, 1, 32], strides = [1, 1, 1]} : vector<16x32x32xf32> to vector<16x1x32xf32>
    %66 = vector.shape_cast %65 : vector<16x1x32xf32> to vector<16x32xf32>
    %67 = arith.maximumf %64, %66 : vector<16x32xf32>
    %68 = arith.truncf %67 : vector<16x32xf32> to vector<16x32xbf16>
    %c0_14 = arith.constant 0 : index
    %c224 = arith.constant 224 : index
    %69 = vector.load %arg4[%c0_14, %c224] : memref<16x512xbf16, #tpu.memory_space<vmem>>, vector<16x32xbf16>
    tpu.vector_store %arg4[%c0_14, %c224], %68 {strides = array<i32>} : memref<16x512xbf16, #tpu.memory_space<vmem>>, vector<16x32xbf16>,
    %70 = vector.extract_strided_slice %13 {offsets = [0, 16, 0], sizes = [16, 1, 32], strides = [1, 1, 1]} : vector<16x32x32xf32> to vector<16x1x32xf32>
    %71 = vector.shape_cast %70 : vector<16x1x32xf32> to vector<16x32xf32>
    %72 = vector.extract_strided_slice %13 {offsets = [0, 17, 0], sizes = [16, 1, 32], strides = [1, 1, 1]} : vector<16x32x32xf32> to vector<16x1x32xf32>
    %73 = vector.shape_cast %72 : vector<16x1x32xf32> to vector<16x32xf32>
    %74 = arith.maximumf %71, %73 : vector<16x32xf32>
    %75 = arith.truncf %74 : vector<16x32xf32> to vector<16x32xbf16>
    %c0_15 = arith.constant 0 : index
    %c256 = arith.constant 256 : index
    %76 = vector.load %arg4[%c0_15, %c256] : memref<16x512xbf16, #tpu.memory_space<vmem>>, vector<16x32xbf16>
    tpu.vector_store %arg4[%c0_15, %c256], %75 {strides = array<i32>} : memref<16x512xbf16, #tpu.memory_space<vmem>>, vector<16x32xbf16>,
    %77 = vector.extract_strided_slice %13 {offsets = [0, 18, 0], sizes = [16, 1, 32], strides = [1, 1, 1]} : vector<16x32x32xf32> to vector<16x1x32xf32>
    %78 = vector.shape_cast %77 : vector<16x1x32xf32> to vector<16x32xf32>
    %79 = vector.extract_strided_slice %13 {offsets = [0, 19, 0], sizes = [16, 1, 32], strides = [1, 1, 1]} : vector<16x32x32xf32> to vector<16x1x32xf32>
    %80 = vector.shape_cast %79 : vector<16x1x32xf32> to vector<16x32xf32>
    %81 = arith.maximumf %78, %80 : vector<16x32xf32>
    %82 = arith.truncf %81 : vector<16x32xf32> to vector<16x32xbf16>
    %c0_16 = arith.constant 0 : index
    %c288 = arith.constant 288 : index
    %83 = vector.load %arg4[%c0_16, %c288] : memref<16x512xbf16, #tpu.memory_space<vmem>>, vector<16x32xbf16>
    tpu.vector_store %arg4[%c0_16, %c288], %82 {strides = array<i32>} : memref<16x512xbf16, #tpu.memory_space<vmem>>, vector<16x32xbf16>,
    %84 = vector.extract_strided_slice %13 {offsets = [0, 20, 0], sizes = [16, 1, 32], strides = [1, 1, 1]} : vector<16x32x32xf32> to vector<16x1x32xf32>
    %85 = vector.shape_cast %84 : vector<16x1x32xf32> to vector<16x32xf32>
    %86 = vector.extract_strided_slice %13 {offsets = [0, 21, 0], sizes = [16, 1, 32], strides = [1, 1, 1]} : vector<16x32x32xf32> to vector<16x1x32xf32>
    %87 = vector.shape_cast %86 : vector<16x1x32xf32> to vector<16x32xf32>
    %88 = arith.maximumf %85, %87 : vector<16x32xf32>
    %89 = arith.truncf %88 : vector<16x32xf32> to vector<16x32xbf16>
    %c0_17 = arith.constant 0 : index
    %c320 = arith.constant 320 : index
    %90 = vector.load %arg4[%c0_17, %c320] : memref<16x512xbf16, #tpu.memory_space<vmem>>, vector<16x32xbf16>
    tpu.vector_store %arg4[%c0_17, %c320], %89 {strides = array<i32>} : memref<16x512xbf16, #tpu.memory_space<vmem>>, vector<16x32xbf16>,
    %91 = vector.extract_strided_slice %13 {offsets = [0, 22, 0], sizes = [16, 1, 32], strides = [1, 1, 1]} : vector<16x32x32xf32> to vector<16x1x32xf32>
    %92 = vector.shape_cast %91 : vector<16x1x32xf32> to vector<16x32xf32>
    %93 = vector.extract_strided_slice %13 {offsets = [0, 23, 0], sizes = [16, 1, 32], strides = [1, 1, 1]} : vector<16x32x32xf32> to vector<16x1x32xf32>
    %94 = vector.shape_cast %93 : vector<16x1x32xf32> to vector<16x32xf32>
    %95 = arith.maximumf %92, %94 : vector<16x32xf32>
    %96 = arith.truncf %95 : vector<16x32xf32> to vector<16x32xbf16>
    %c0_18 = arith.constant 0 : index
    %c352 = arith.constant 352 : index
    %97 = vector.load %arg4[%c0_18, %c352] : memref<16x512xbf16, #tpu.memory_space<vmem>>, vector<16x32xbf16>
    tpu.vector_store %arg4[%c0_18, %c352], %96 {strides = array<i32>} : memref<16x512xbf16, #tpu.memory_space<vmem>>, vector<16x32xbf16>,
    %98 = vector.extract_strided_slice %13 {offsets = [0, 24, 0], sizes = [16, 1, 32], strides = [1, 1, 1]} : vector<16x32x32xf32> to vector<16x1x32xf32>
    %99 = vector.shape_cast %98 : vector<16x1x32xf32> to vector<16x32xf32>
    %100 = vector.extract_strided_slice %13 {offsets = [0, 25, 0], sizes = [16, 1, 32], strides = [1, 1, 1]} : vector<16x32x32xf32> to vector<16x1x32xf32>
    %101 = vector.shape_cast %100 : vector<16x1x32xf32> to vector<16x32xf32>
    %102 = arith.maximumf %99, %101 : vector<16x32xf32>
    %103 = arith.truncf %102 : vector<16x32xf32> to vector<16x32xbf16>
    %c0_19 = arith.constant 0 : index
    %c384 = arith.constant 384 : index
    %104 = vector.load %arg4[%c0_19, %c384] : memref<16x512xbf16, #tpu.memory_space<vmem>>, vector<16x32xbf16>
    tpu.vector_store %arg4[%c0_19, %c384], %103 {strides = array<i32>} : memref<16x512xbf16, #tpu.memory_space<vmem>>, vector<16x32xbf16>,
    %105 = vector.extract_strided_slice %13 {offsets = [0, 26, 0], sizes = [16, 1, 32], strides = [1, 1, 1]} : vector<16x32x32xf32> to vector<16x1x32xf32>
    %106 = vector.shape_cast %105 : vector<16x1x32xf32> to vector<16x32xf32>
    %107 = vector.extract_strided_slice %13 {offsets = [0, 27, 0], sizes = [16, 1, 32], strides = [1, 1, 1]} : vector<16x32x32xf32> to vector<16x1x32xf32>
    %108 = vector.shape_cast %107 : vector<16x1x32xf32> to vector<16x32xf32>
    %109 = arith.maximumf %106, %108 : vector<16x32xf32>
    %110 = arith.truncf %109 : vector<16x32xf32> to vector<16x32xbf16>
    %c0_20 = arith.constant 0 : index
    %c416 = arith.constant 416 : index
    %111 = vector.load %arg4[%c0_20, %c416] : memref<16x512xbf16, #tpu.memory_space<vmem>>, vector<16x32xbf16>
    tpu.vector_store %arg4[%c0_20, %c416], %110 {strides = array<i32>} : memref<16x512xbf16, #tpu.memory_space<vmem>>, vector<16x32xbf16>,
    %112 = vector.extract_strided_slice %13 {offsets = [0, 28, 0], sizes = [16, 1, 32], strides = [1, 1, 1]} : vector<16x32x32xf32> to vector<16x1x32xf32>
    %113 = vector.shape_cast %112 : vector<16x1x32xf32> to vector<16x32xf32>
    %114 = vector.extract_strided_slice %13 {offsets = [0, 29, 0], sizes = [16, 1, 32], strides = [1, 1, 1]} : vector<16x32x32xf32> to vector<16x1x32xf32>
    %115 = vector.shape_cast %114 : vector<16x1x32xf32> to vector<16x32xf32>
    %116 = arith.maximumf %113, %115 : vector<16x32xf32>
    %117 = arith.truncf %116 : vector<16x32xf32> to vector<16x32xbf16>
    %c0_21 = arith.constant 0 : index
    %c448 = arith.constant 448 : index
    %118 = vector.load %arg4[%c0_21, %c448] : memref<16x512xbf16, #tpu.memory_space<vmem>>, vector<16x32xbf16>
    tpu.vector_store %arg4[%c0_21, %c448], %117 {strides = array<i32>} : memref<16x512xbf16, #tpu.memory_space<vmem>>, vector<16x32xbf16>,
    %119 = vector.extract_strided_slice %13 {offsets = [0, 30, 0], sizes = [16, 1, 32], strides = [1, 1, 1]} : vector<16x32x32xf32> to vector<16x1x32xf32>
    %120 = vector.shape_cast %119 : vector<16x1x32xf32> to vector<16x32xf32>
    %121 = vector.extract_strided_slice %13 {offsets = [0, 31, 0], sizes = [16, 1, 32], strides = [1, 1, 1]} : vector<16x32x32xf32> to vector<16x1x32xf32>
    %122 = vector.shape_cast %121 : vector<16x1x32xf32> to vector<16x32xf32>
    %123 = arith.maximumf %120, %122 : vector<16x32xf32>
    %124 = arith.truncf %123 : vector<16x32xf32> to vector<16x32xbf16>
    %c0_22 = arith.constant 0 : index
    %c480 = arith.constant 480 : index
    %125 = vector.load %arg4[%c0_22, %c480] : memref<16x512xbf16, #tpu.memory_space<vmem>>, vector<16x32xbf16>
    tpu.vector_store %arg4[%c0_22, %c480], %124 {strides = array<i32>} : memref<16x512xbf16, #tpu.memory_space<vmem>>, vector<16x32xbf16>,
    return
  }
  func.func @transform_0(%arg0: i32) -> (i32, i32) {
    %c0_i32 = arith.constant 0 : i32
    %c0_i32_0 = arith.constant 0 : i32
    return %arg0, %c0_i32 : i32, i32
  }
  func.func @transform_1(%arg0: i32) -> (i32, i32) {
    %c0_i32 = arith.constant 0 : i32
    %c0_i32_0 = arith.constant 0 : i32
    %c0_i32_1 = arith.constant 0 : i32
    return %c0_i32, %c0_i32_0 : i32, i32
  }
  func.func @transform_2(%arg0: i32) -> (i32, i32) {
    %c0_i32 = arith.constant 0 : i32
    %c0_i32_0 = arith.constant 0 : i32
    %c0_i32_1 = arith.constant 0 : i32
    return %c0_i32, %c0_i32_0 : i32, i32
  }
  func.func @transform_3(%arg0: i32) -> (i32, i32) {
    %c0_i32 = arith.constant 0 : i32
    %c0_i32_0 = arith.constant 0 : i32
    return %arg0, %c0_i32 : i32, i32
  }
}

module attributes {stable_mosaic.version = 11 : i64} {
  func.func @_conv_relu_pool_kernel(%arg0: i32, %arg1: memref<256x288xbf16, #tpu.memory_space<vmem>>, %arg2: memref<288x64xbf16, #tpu.memory_space<vmem>>, %arg3: memref<1x64xf32, #tpu.memory_space<vmem>>, %arg4: memref<8x512xbf16, #tpu.memory_space<vmem>>) attributes {dimension_semantics = [#tpu.dimension_semantics<parallel>], iteration_bounds = array<i64: 2>, scalar_prefetch = 0 : i64, scratch_operands = 0 : i64, tpu.core_type = #tpu.core_type<tc>, window_params = [{transform_indices = @transform_0, window_bounds = array<i64: 256, 288>}, {pipeline_mode = #tpu.pipeline_mode<synchronous>, transform_indices = @transform_1, window_bounds = array<i64: 288, 64>}, {pipeline_mode = #tpu.pipeline_mode<synchronous>, transform_indices = @transform_2, window_bounds = array<i64: 1, 64>}, {transform_indices = @transform_3, window_bounds = array<i64: 8, 512>}]} {
    %c0 = arith.constant 0 : index
    %c0_0 = arith.constant 0 : index
    %0 = vector.load %arg1[%c0, %c0_0] : memref<256x288xbf16, #tpu.memory_space<vmem>>, vector<256x288xbf16>
    %c0_1 = arith.constant 0 : index
    %c0_2 = arith.constant 0 : index
    %1 = vector.load %arg2[%c0_1, %c0_2] : memref<288x64xbf16, #tpu.memory_space<vmem>>, vector<288x64xbf16>
    %cst = arith.constant dense<0.000000e+00> : vector<256x64xf32>
    %2 = tpu.matmul %0, %1, %cst {dimension_numbers = #tpu.dot_dimension_numbers<[1], [0], [0], [1], [0, 0, 1, 1], [], []>} : vector<256x288xbf16>, vector<288x64xbf16>, vector<256x64xf32> -> vector<256x64xf32>
    %c0_3 = arith.constant 0 : index
    %c0_4 = arith.constant 0 : index
    %3 = vector.load %arg3[%c0_3, %c0_4] : memref<1x64xf32, #tpu.memory_space<vmem>>, vector<1x64xf32>
    %4 = vector.broadcast %3 : vector<1x64xf32> to vector<256x64xf32>
    %5 = arith.addf %2, %4 : vector<256x64xf32>
    %cst_5 = arith.constant 0.000000e+00 : f32
    %6 = vector.broadcast %cst_5 : f32 to vector<256x64xf32>
    %7 = arith.maximumf %5, %6 : vector<256x64xf32>
    %8 = vector.shape_cast %7 : vector<256x64xf32> to vector<8x2x16x64xf32>
    %9 = vector.extract_strided_slice %8 {offsets = [0, 0, 0, 0], sizes = [8, 1, 16, 64], strides = [1, 1, 1, 1]} : vector<8x2x16x64xf32> to vector<8x1x16x64xf32>
    %10 = vector.shape_cast %9 : vector<8x1x16x64xf32> to vector<8x16x64xf32>
    %11 = vector.extract_strided_slice %8 {offsets = [0, 1, 0, 0], sizes = [8, 1, 16, 64], strides = [1, 1, 1, 1]} : vector<8x2x16x64xf32> to vector<8x1x16x64xf32>
    %12 = vector.shape_cast %11 : vector<8x1x16x64xf32> to vector<8x16x64xf32>
    %13 = arith.maximumf %10, %12 : vector<8x16x64xf32>
    %14 = vector.extract_strided_slice %13 {offsets = [0, 0, 0], sizes = [8, 1, 64], strides = [1, 1, 1]} : vector<8x16x64xf32> to vector<8x1x64xf32>
    %15 = vector.shape_cast %14 : vector<8x1x64xf32> to vector<8x64xf32>
    %16 = vector.extract_strided_slice %13 {offsets = [0, 1, 0], sizes = [8, 1, 64], strides = [1, 1, 1]} : vector<8x16x64xf32> to vector<8x1x64xf32>
    %17 = vector.shape_cast %16 : vector<8x1x64xf32> to vector<8x64xf32>
    %18 = arith.maximumf %15, %17 : vector<8x64xf32>
    %19 = arith.truncf %18 : vector<8x64xf32> to vector<8x64xbf16>
    %c0_6 = arith.constant 0 : index
    %c0_7 = arith.constant 0 : index
    %20 = vector.load %arg4[%c0_6, %c0_7] : memref<8x512xbf16, #tpu.memory_space<vmem>>, vector<8x64xbf16>
    tpu.vector_store %arg4[%c0_6, %c0_7], %19 {strides = array<i32>} : memref<8x512xbf16, #tpu.memory_space<vmem>>, vector<8x64xbf16>,
    %21 = vector.extract_strided_slice %13 {offsets = [0, 2, 0], sizes = [8, 1, 64], strides = [1, 1, 1]} : vector<8x16x64xf32> to vector<8x1x64xf32>
    %22 = vector.shape_cast %21 : vector<8x1x64xf32> to vector<8x64xf32>
    %23 = vector.extract_strided_slice %13 {offsets = [0, 3, 0], sizes = [8, 1, 64], strides = [1, 1, 1]} : vector<8x16x64xf32> to vector<8x1x64xf32>
    %24 = vector.shape_cast %23 : vector<8x1x64xf32> to vector<8x64xf32>
    %25 = arith.maximumf %22, %24 : vector<8x64xf32>
    %26 = arith.truncf %25 : vector<8x64xf32> to vector<8x64xbf16>
    %c0_8 = arith.constant 0 : index
    %c64 = arith.constant 64 : index
    %27 = vector.load %arg4[%c0_8, %c64] : memref<8x512xbf16, #tpu.memory_space<vmem>>, vector<8x64xbf16>
    tpu.vector_store %arg4[%c0_8, %c64], %26 {strides = array<i32>} : memref<8x512xbf16, #tpu.memory_space<vmem>>, vector<8x64xbf16>,
    %28 = vector.extract_strided_slice %13 {offsets = [0, 4, 0], sizes = [8, 1, 64], strides = [1, 1, 1]} : vector<8x16x64xf32> to vector<8x1x64xf32>
    %29 = vector.shape_cast %28 : vector<8x1x64xf32> to vector<8x64xf32>
    %30 = vector.extract_strided_slice %13 {offsets = [0, 5, 0], sizes = [8, 1, 64], strides = [1, 1, 1]} : vector<8x16x64xf32> to vector<8x1x64xf32>
    %31 = vector.shape_cast %30 : vector<8x1x64xf32> to vector<8x64xf32>
    %32 = arith.maximumf %29, %31 : vector<8x64xf32>
    %33 = arith.truncf %32 : vector<8x64xf32> to vector<8x64xbf16>
    %c0_9 = arith.constant 0 : index
    %c128 = arith.constant 128 : index
    %34 = vector.load %arg4[%c0_9, %c128] : memref<8x512xbf16, #tpu.memory_space<vmem>>, vector<8x64xbf16>
    tpu.vector_store %arg4[%c0_9, %c128], %33 {strides = array<i32>} : memref<8x512xbf16, #tpu.memory_space<vmem>>, vector<8x64xbf16>,
    %35 = vector.extract_strided_slice %13 {offsets = [0, 6, 0], sizes = [8, 1, 64], strides = [1, 1, 1]} : vector<8x16x64xf32> to vector<8x1x64xf32>
    %36 = vector.shape_cast %35 : vector<8x1x64xf32> to vector<8x64xf32>
    %37 = vector.extract_strided_slice %13 {offsets = [0, 7, 0], sizes = [8, 1, 64], strides = [1, 1, 1]} : vector<8x16x64xf32> to vector<8x1x64xf32>
    %38 = vector.shape_cast %37 : vector<8x1x64xf32> to vector<8x64xf32>
    %39 = arith.maximumf %36, %38 : vector<8x64xf32>
    %40 = arith.truncf %39 : vector<8x64xf32> to vector<8x64xbf16>
    %c0_10 = arith.constant 0 : index
    %c192 = arith.constant 192 : index
    %41 = vector.load %arg4[%c0_10, %c192] : memref<8x512xbf16, #tpu.memory_space<vmem>>, vector<8x64xbf16>
    tpu.vector_store %arg4[%c0_10, %c192], %40 {strides = array<i32>} : memref<8x512xbf16, #tpu.memory_space<vmem>>, vector<8x64xbf16>,
    %42 = vector.extract_strided_slice %13 {offsets = [0, 8, 0], sizes = [8, 1, 64], strides = [1, 1, 1]} : vector<8x16x64xf32> to vector<8x1x64xf32>
    %43 = vector.shape_cast %42 : vector<8x1x64xf32> to vector<8x64xf32>
    %44 = vector.extract_strided_slice %13 {offsets = [0, 9, 0], sizes = [8, 1, 64], strides = [1, 1, 1]} : vector<8x16x64xf32> to vector<8x1x64xf32>
    %45 = vector.shape_cast %44 : vector<8x1x64xf32> to vector<8x64xf32>
    %46 = arith.maximumf %43, %45 : vector<8x64xf32>
    %47 = arith.truncf %46 : vector<8x64xf32> to vector<8x64xbf16>
    %c0_11 = arith.constant 0 : index
    %c256 = arith.constant 256 : index
    %48 = vector.load %arg4[%c0_11, %c256] : memref<8x512xbf16, #tpu.memory_space<vmem>>, vector<8x64xbf16>
    tpu.vector_store %arg4[%c0_11, %c256], %47 {strides = array<i32>} : memref<8x512xbf16, #tpu.memory_space<vmem>>, vector<8x64xbf16>,
    %49 = vector.extract_strided_slice %13 {offsets = [0, 10, 0], sizes = [8, 1, 64], strides = [1, 1, 1]} : vector<8x16x64xf32> to vector<8x1x64xf32>
    %50 = vector.shape_cast %49 : vector<8x1x64xf32> to vector<8x64xf32>
    %51 = vector.extract_strided_slice %13 {offsets = [0, 11, 0], sizes = [8, 1, 64], strides = [1, 1, 1]} : vector<8x16x64xf32> to vector<8x1x64xf32>
    %52 = vector.shape_cast %51 : vector<8x1x64xf32> to vector<8x64xf32>
    %53 = arith.maximumf %50, %52 : vector<8x64xf32>
    %54 = arith.truncf %53 : vector<8x64xf32> to vector<8x64xbf16>
    %c0_12 = arith.constant 0 : index
    %c320 = arith.constant 320 : index
    %55 = vector.load %arg4[%c0_12, %c320] : memref<8x512xbf16, #tpu.memory_space<vmem>>, vector<8x64xbf16>
    tpu.vector_store %arg4[%c0_12, %c320], %54 {strides = array<i32>} : memref<8x512xbf16, #tpu.memory_space<vmem>>, vector<8x64xbf16>,
    %56 = vector.extract_strided_slice %13 {offsets = [0, 12, 0], sizes = [8, 1, 64], strides = [1, 1, 1]} : vector<8x16x64xf32> to vector<8x1x64xf32>
    %57 = vector.shape_cast %56 : vector<8x1x64xf32> to vector<8x64xf32>
    %58 = vector.extract_strided_slice %13 {offsets = [0, 13, 0], sizes = [8, 1, 64], strides = [1, 1, 1]} : vector<8x16x64xf32> to vector<8x1x64xf32>
    %59 = vector.shape_cast %58 : vector<8x1x64xf32> to vector<8x64xf32>
    %60 = arith.maximumf %57, %59 : vector<8x64xf32>
    %61 = arith.truncf %60 : vector<8x64xf32> to vector<8x64xbf16>
    %c0_13 = arith.constant 0 : index
    %c384 = arith.constant 384 : index
    %62 = vector.load %arg4[%c0_13, %c384] : memref<8x512xbf16, #tpu.memory_space<vmem>>, vector<8x64xbf16>
    tpu.vector_store %arg4[%c0_13, %c384], %61 {strides = array<i32>} : memref<8x512xbf16, #tpu.memory_space<vmem>>, vector<8x64xbf16>,
    %63 = vector.extract_strided_slice %13 {offsets = [0, 14, 0], sizes = [8, 1, 64], strides = [1, 1, 1]} : vector<8x16x64xf32> to vector<8x1x64xf32>
    %64 = vector.shape_cast %63 : vector<8x1x64xf32> to vector<8x64xf32>
    %65 = vector.extract_strided_slice %13 {offsets = [0, 15, 0], sizes = [8, 1, 64], strides = [1, 1, 1]} : vector<8x16x64xf32> to vector<8x1x64xf32>
    %66 = vector.shape_cast %65 : vector<8x1x64xf32> to vector<8x64xf32>
    %67 = arith.maximumf %64, %66 : vector<8x64xf32>
    %68 = arith.truncf %67 : vector<8x64xf32> to vector<8x64xbf16>
    %c0_14 = arith.constant 0 : index
    %c448 = arith.constant 448 : index
    %69 = vector.load %arg4[%c0_14, %c448] : memref<8x512xbf16, #tpu.memory_space<vmem>>, vector<8x64xbf16>
    tpu.vector_store %arg4[%c0_14, %c448], %68 {strides = array<i32>} : memref<8x512xbf16, #tpu.memory_space<vmem>>, vector<8x64xbf16>,
    return
  }
  func.func @transform_0(%arg0: i32) -> (i32, i32) {
    %c0_i32 = arith.constant 0 : i32
    %c0_i32_0 = arith.constant 0 : i32
    return %arg0, %c0_i32 : i32, i32
  }
  func.func @transform_1(%arg0: i32) -> (i32, i32) {
    %c0_i32 = arith.constant 0 : i32
    %c0_i32_0 = arith.constant 0 : i32
    %c0_i32_1 = arith.constant 0 : i32
    return %c0_i32, %c0_i32_0 : i32, i32
  }
  func.func @transform_2(%arg0: i32) -> (i32, i32) {
    %c0_i32 = arith.constant 0 : i32
    %c0_i32_0 = arith.constant 0 : i32
    %c0_i32_1 = arith.constant 0 : i32
    return %c0_i32, %c0_i32_0 : i32, i32
  }
  func.func @transform_3(%arg0: i32) -> (i32, i32) {
    %c0_i32 = arith.constant 0 : i32
    %c0_i32_0 = arith.constant 0 : i32
    return %arg0, %c0_i32 : i32, i32
  }
}

module attributes {stable_mosaic.version = 11 : i64} {
  func.func @_linear_kernel(%arg0: i32, %arg1: memref<2x4096xbf16, #tpu.memory_space<vmem>>, %arg2: memref<4096x512xbf16, #tpu.memory_space<vmem>>, %arg3: memref<1x512xf32, #tpu.memory_space<vmem>>, %arg4: memref<2x512xbf16, #tpu.memory_space<vmem>>) attributes {dimension_semantics = [#tpu.dimension_semantics<parallel>], iteration_bounds = array<i64: 1>, scalar_prefetch = 0 : i64, scratch_operands = 0 : i64, tpu.core_type = #tpu.core_type<tc>, window_params = [{transform_indices = @transform_0, window_bounds = array<i64: 2, 4096>}, {pipeline_mode = #tpu.pipeline_mode<synchronous>, transform_indices = @transform_1, window_bounds = array<i64: 4096, 512>}, {pipeline_mode = #tpu.pipeline_mode<synchronous>, transform_indices = @transform_2, window_bounds = array<i64: 1, 512>}, {transform_indices = @transform_3, window_bounds = array<i64: 2, 512>}]} {
    %c0 = arith.constant 0 : index
    %c0_0 = arith.constant 0 : index
    %0 = vector.load %arg1[%c0, %c0_0] : memref<2x4096xbf16, #tpu.memory_space<vmem>>, vector<2x4096xbf16>
    %c0_1 = arith.constant 0 : index
    %c0_2 = arith.constant 0 : index
    %1 = vector.load %arg2[%c0_1, %c0_2] : memref<4096x512xbf16, #tpu.memory_space<vmem>>, vector<4096x512xbf16>
    %cst = arith.constant dense<0.000000e+00> : vector<2x512xf32>
    %2 = tpu.matmul %0, %1, %cst {dimension_numbers = #tpu.dot_dimension_numbers<[1], [0], [0], [1], [0, 0, 1, 1], [], []>} : vector<2x4096xbf16>, vector<4096x512xbf16>, vector<2x512xf32> -> vector<2x512xf32>
    %c0_3 = arith.constant 0 : index
    %c0_4 = arith.constant 0 : index
    %3 = vector.load %arg3[%c0_3, %c0_4] : memref<1x512xf32, #tpu.memory_space<vmem>>, vector<1x512xf32>
    %4 = vector.broadcast %3 : vector<1x512xf32> to vector<2x512xf32>
    %5 = arith.addf %2, %4 : vector<2x512xf32>
    %cst_5 = arith.constant 0.000000e+00 : f32
    %6 = vector.broadcast %cst_5 : f32 to vector<2x512xf32>
    %7 = arith.maximumf %5, %6 : vector<2x512xf32>
    %8 = arith.truncf %7 : vector<2x512xf32> to vector<2x512xbf16>
    %c0_6 = arith.constant 0 : index
    %c0_7 = arith.constant 0 : index
    %9 = vector.load %arg4[%c0_6, %c0_7] : memref<2x512xbf16, #tpu.memory_space<vmem>>, vector<2x512xbf16>
    tpu.vector_store %arg4[%c0_6, %c0_7], %8 {strides = array<i32>} : memref<2x512xbf16, #tpu.memory_space<vmem>>, vector<2x512xbf16>,
    return
  }
  func.func @transform_0(%arg0: i32) -> (i32, i32) {
    %c0_i32 = arith.constant 0 : i32
    %c0_i32_0 = arith.constant 0 : i32
    return %arg0, %c0_i32 : i32, i32
  }
  func.func @transform_1(%arg0: i32) -> (i32, i32) {
    %c0_i32 = arith.constant 0 : i32
    %c0_i32_0 = arith.constant 0 : i32
    %c0_i32_1 = arith.constant 0 : i32
    return %c0_i32, %c0_i32_0 : i32, i32
  }
  func.func @transform_2(%arg0: i32) -> (i32, i32) {
    %c0_i32 = arith.constant 0 : i32
    %c0_i32_0 = arith.constant 0 : i32
    %c0_i32_1 = arith.constant 0 : i32
    return %c0_i32, %c0_i32_0 : i32, i32
  }
  func.func @transform_3(%arg0: i32) -> (i32, i32) {
    %c0_i32 = arith.constant 0 : i32
    %c0_i32_0 = arith.constant 0 : i32
    return %arg0, %c0_i32 : i32, i32
  }
}

module attributes {stable_mosaic.version = 11 : i64} {
  func.func @_linear_kernel(%arg0: i32, %arg1: memref<2x512xbf16, #tpu.memory_space<vmem>>, %arg2: memref<512x128xbf16, #tpu.memory_space<vmem>>, %arg3: memref<1x128xf32, #tpu.memory_space<vmem>>, %arg4: memref<2x128xf32, #tpu.memory_space<vmem>>) attributes {dimension_semantics = [#tpu.dimension_semantics<parallel>], iteration_bounds = array<i64: 1>, scalar_prefetch = 0 : i64, scratch_operands = 0 : i64, tpu.core_type = #tpu.core_type<tc>, window_params = [{transform_indices = @transform_0, window_bounds = array<i64: 2, 512>}, {pipeline_mode = #tpu.pipeline_mode<synchronous>, transform_indices = @transform_1, window_bounds = array<i64: 512, 128>}, {pipeline_mode = #tpu.pipeline_mode<synchronous>, transform_indices = @transform_2, window_bounds = array<i64: 1, 128>}, {transform_indices = @transform_3, window_bounds = array<i64: 2, 128>}]} {
    %c0 = arith.constant 0 : index
    %c0_0 = arith.constant 0 : index
    %0 = vector.load %arg1[%c0, %c0_0] : memref<2x512xbf16, #tpu.memory_space<vmem>>, vector<2x512xbf16>
    %c0_1 = arith.constant 0 : index
    %c0_2 = arith.constant 0 : index
    %1 = vector.load %arg2[%c0_1, %c0_2] : memref<512x128xbf16, #tpu.memory_space<vmem>>, vector<512x128xbf16>
    %cst = arith.constant dense<0.000000e+00> : vector<2x128xf32>
    %2 = tpu.matmul %0, %1, %cst {dimension_numbers = #tpu.dot_dimension_numbers<[1], [0], [0], [1], [0, 0, 1, 1], [], []>} : vector<2x512xbf16>, vector<512x128xbf16>, vector<2x128xf32> -> vector<2x128xf32>
    %c0_3 = arith.constant 0 : index
    %c0_4 = arith.constant 0 : index
    %3 = vector.load %arg3[%c0_3, %c0_4] : memref<1x128xf32, #tpu.memory_space<vmem>>, vector<1x128xf32>
    %4 = vector.broadcast %3 : vector<1x128xf32> to vector<2x128xf32>
    %5 = arith.addf %2, %4 : vector<2x128xf32>
    %c0_5 = arith.constant 0 : index
    %c0_6 = arith.constant 0 : index
    %6 = vector.load %arg4[%c0_5, %c0_6] : memref<2x128xf32, #tpu.memory_space<vmem>>, vector<2x128xf32>
    tpu.vector_store %arg4[%c0_5, %c0_6], %5 {strides = array<i32>} : memref<2x128xf32, #tpu.memory_space<vmem>>, vector<2x128xf32>,
    return
  }
  func.func @transform_0(%arg0: i32) -> (i32, i32) {
    %c0_i32 = arith.constant 0 : i32
    %c0_i32_0 = arith.constant 0 : i32
    return %arg0, %c0_i32 : i32, i32
  }
  func.func @transform_1(%arg0: i32) -> (i32, i32) {
    %c0_i32 = arith.constant 0 : i32
    %c0_i32_0 = arith.constant 0 : i32
    %c0_i32_1 = arith.constant 0 : i32
    return %c0_i32, %c0_i32_0 : i32, i32
  }
  func.func @transform_2(%arg0: i32) -> (i32, i32) {
    %c0_i32 = arith.constant 0 : i32
    %c0_i32_0 = arith.constant 0 : i32
    %c0_i32_1 = arith.constant 0 : i32
    return %c0_i32, %c0_i32_0 : i32, i32
  }
  func.func @transform_3(%arg0: i32) -> (i32, i32) {
    %c0_i32 = arith.constant 0 : i32
    %c0_i32_0 = arith.constant 0 : i32
    return %arg0, %c0_i32 : i32, i32
  }
}

</mosaic_0001>

<bundles_post_ra>
// kernel: expconvnet_forward.4
= control target key start
LH: loop header
LB: loop body
LE: loop exit
PB: predicated region body
PF: predicated region fallthrough
CT: control target
= control target key end

     0   :  { %s2982_s12 = smov 0   ;;  %s4865_s0 = inlined_call_operand.vmem [shape: bf16[2048,75], index: 0, kind: input, shape index: {}]   ;;  %s4866_s1 = inlined_call_operand.vmem [shape: bf16[75,32], index: 1, kind: input, shape index: {}]   ;;  %s4867_s2 = inlined_call_operand.vmem [shape: f32[1,32], index: 2, kind: input, shape index: {}]   ;;  %s4868_s3 = inlined_call_operand.vmem [shape: bf16[32,512], index: 3, kind: output, shape index: {}]  }
   0x1 LB: > { %s2498_s13 = sadd.s32 4294967295, %s2956_s12   ;;  %p2502_p0 = scmp.ge.s32.totalorder %s2956_s12, 1  ;;  %s2956_s12 = sphi %s2982_s12, %s13_s12  }
   0x2   : > { %p138_p1 = scmp.lt.s32.totalorder %s2956_s12, 3 }
   0x4   : > { %p139_p2 = pnand %p2502_p0, %p138_p1 }
   0x6   : > { %142 = sbr.rel (%p139_p2) target bundleno = 631 (0x277), region = 32 }
   0xb   : > { %v2782_v0 = vld [vmem:[%s4866_s1 + $0x20] sm:$0xf]  ;;  %v2919_v1 = vld [vmem:[%s4866_s1 + $0x20] sm:$0x30]  ;;  %vm861_vm0 = vcmask 1044480   ;;  %vm862_vm1 = vcmask 1045504  }
   0xc   : > { %v2783_v2 = vor.u32 %v2919_v1, %v2782_v0  ;;  %v2958_v3 = vmov 65535   ;;  %s2503_s18 = sshll.u32 %s2498_s13, 7  ;;  %v2918_v7 = vld [vmem:[%s4866_s1 + $0x18] sm:$0xff]  ;;  %v2917_v8 = vld [vmem:[%s4866_s1 + $0x10] sm:$0xff]  ;;  %v2916_v9 = vld [vmem:[%s4866_s1 + $0x8] sm:$0xff]  ;;  %vm668_vm2 = vcmask 613376  }
   0xd   : > { %v863_v4 = vsel %vm861_vm0, 4294967295, %v2958_v3  ;;  %p164_p3 = scmp.lt.s32.totalorder %s2503_s18, 255  ;;  %v2915_v10 = vld [vmem:[%s4866_s1] sm:$0xff]  ;;  %vm1502_vm3 = vcmask 1041409   ;;  %vm1505_vm4 = vcmask 1042434   ;;  %vm1508_vm5 = vcmask 1043459  }
   0xe   : > { %v864_v5 = vsel %vm862_vm1, %v863_v4, 0  ;;  %v3110_v1 = vld [vmem:[%s4867_s2] ss:$0 sm:$0xff]  ;;  %vm1511_vm6 = vcmask 1044484   ;;  %vm1514_vm7 = vcmask 1045509   ;;  %vm1517_vm8 = vcmask 1046534  }
   0xf   : > { %v866_v6 = vand.u32 %v2783_v2, %v864_v5  ;;  %s5116_s18 = smov (!%p164_p3, %s2503_s18), 255  ;;  %vm1520_vm9 = vcmask 1047559   ;;  %s2959_s8 = smov 96   ;;  %vm1540_vm10 = vcmask 257024   ;;  %vm1579_vm11 = vcmask 519424  }
  0x10   : > { %s2504_s25 = sshll.u32 %s5116_s18, 2  ;;  %s2960_s9 = smov 64   ;;  %vm1618_vm12 = vcmask 781824   ;;  %vm1657_vm13 = vcmask 1044224  }
  0x11   : > { %871 = vmatpush.bf16.msra.mxu0 %v866_v6  ;;  %2920 = vmatpush.bf16.msra.mxu1 %v866_v6  ;;  %s3013_s30 = scalar_lea.vmem %s4865_s0, %s2504_s25  ;;  %s2961_s14 = smov 32  }
  0x12   : > { %2921 = vmatpush.bf16.msra.mxu2 %v866_v6  ;;  %2922 = vmatpush.bf16.msra.mxu3 %v866_v6  ;;  %v2851_v11 = vld [vmem:[%s3013_s30] sm:$0xff]  ;;  %v2852_v15 = vld [vmem:[%s3013_s30 + $0x8] sm:$0xff]  ;;  %v2853_v19 = vld [vmem:[%s3013_s30 + $0x10] sm:$0xff]  ;;  %s4618_s15 = sshll.u32 %s2498_s13, 1 }
  0x13   : > { %v2867_v12 = vld [vmem:[%s3013_s30 + $0x80] sm:$0xff]  ;;  %v2868_v16 = vld [vmem:[%s3013_s30 + $0x88] sm:$0xff]  ;;  %v2869_v20 = vld [vmem:[%s3013_s30 + $0x90] sm:$0xff]  ;;  %p170_p4 = scmp.lt.s32.totalorder %s4618_s15, 3 }
  0x14   : > { %v2883_v13 = vld [vmem:[%s3013_s30 + $0x100] sm:$0xff]  ;;  %v2884_v17 = vld [vmem:[%s3013_s30 + $0x108] sm:$0xff]  ;;  %v2885_v21 = vld [vmem:[%s3013_s30 + $0x110] sm:$0xff] }
  0x15   : > { %872 = vmatpush.bf16.msra.mxu0 %v2918_v7  ;;  %2923 = vmatpush.bf16.msra.mxu1 %v2918_v7  ;;  %v2899_v14 = vld [vmem:[%s3013_s30 + $0x180] sm:$0xff]  ;;  %v2900_v18 = vld [vmem:[%s3013_s30 + $0x188] sm:$0xff]  ;;  %v2901_v22 = vld [vmem:[%s3013_s30 + $0x190] sm:$0xff]  ;;  %s5118_s15 = smov (!%p170_p4, %s4618_s15), 3 }
  0x16   : > { %2924 = vmatpush.bf16.msra.mxu2 %v2918_v7  ;;  %2925 = vmatpush.bf16.msra.mxu3 %v2918_v7  ;;  %v2854_v23 = vld [vmem:[%s3013_s30 + $0x18] sm:$0xff]  ;;  %v2855_v27 = vld [vmem:[%s3013_s30 + $0x20] sm:$0xff]  ;;  %v2856_v31 = vld [vmem:[%s3013_s30 + $0x28] sm:$0xff]  ;;  %s2850_s13 = sshll.u32 %s5118_s15, 4 }
  0x17   : > { %v2870_v24 = vld [vmem:[%s3013_s30 + $0x98] sm:$0xff]  ;;  %v2871_v28 = vld [vmem:[%s3013_s30 + $0xa0] sm:$0xff]  ;;  %v2872_v32 = vld [vmem:[%s3013_s30 + $0xa8] sm:$0xff]  ;;  %s4749_s18 = scalar_lea.vmem %s4868_s3, %s2850_s13 }
  0x18   : > { %v2886_v25 = vld [vmem:[%s3013_s30 + $0x118] sm:$0xff]  ;;  %v2887_v29 = vld [vmem:[%s3013_s30 + $0x120] sm:$0xff]  ;;  %v2888_v33 = vld [vmem:[%s3013_s30 + $0x128] sm:$0xff] }
  0x19   : > { %873 = vmatpush.bf16.msra.mxu0 %v2917_v8  ;;  %2926 = vmatpush.bf16.msra.mxu1 %v2917_v8  ;;  %v2902_v26 = vld [vmem:[%s3013_s30 + $0x198] sm:$0xff]  ;;  %v2903_v30 = vld [vmem:[%s3013_s30 + $0x1a0] sm:$0xff]  ;;  %v2904_v34 = vld [vmem:[%s3013_s30 + $0x1a8] sm:$0xff] }
  0x1a   : > { %2927 = vmatpush.bf16.msra.mxu2 %v2917_v8  ;;  %2928 = vmatpush.bf16.msra.mxu3 %v2917_v8  ;;  %v2857_v35 = vld [vmem:[%s3013_s30 + $0x30] sm:$0xff]  ;;  %v2858_v39 = vld [vmem:[%s3013_s30 + $0x38] sm:$0xff]  ;;  %v2859_v43 = vld [vmem:[%s3013_s30 + $0x40] sm:$0xff] }
  0x1b   : > { %v2873_v36 = vld [vmem:[%s3013_s30 + $0xb0] sm:$0xff]  ;;  %v2874_v40 = vld [vmem:[%s3013_s30 + $0xb8] sm:$0xff]  ;;  %v2875_v44 = vld [vmem:[%s3013_s30 + $0xc0] sm:$0xff] }
  0x1c   : > { %v2889_v37 = vld [vmem:[%s3013_s30 + $0x130] sm:$0xff]  ;;  %v2890_v41 = vld [vmem:[%s3013_s30 + $0x138] sm:$0xff]  ;;  %v2891_v47 = vld [vmem:[%s3013_s30 + $0x140] sm:$0xff] }
  0x1d   : > { %874 = vmatpush.bf16.msra.mxu0 %v2916_v9  ;;  %2929 = vmatpush.bf16.msra.mxu1 %v2916_v9  ;;  %v2905_v38 = vld [vmem:[%s3013_s30 + $0x1b0] sm:$0xff]  ;;  %v2906_v42 = vld [vmem:[%s3013_s30 + $0x1b8] sm:$0xff]  ;;  %v2907_v48 = vld [vmem:[%s3013_s30 + $0x1c0] sm:$0xff] }
  0x1e   : > { %2930 = vmatpush.bf16.msra.mxu2 %v2916_v9  ;;  %2931 = vmatpush.bf16.msra.mxu3 %v2916_v9  ;;  %v2860_v55 = vld [vmem:[%s3013_s30 + $0x48] sm:$0xff]  ;;  %v2861_v6 = vld [vmem:[%s3013_s30 + $0x50] sm:$0xff] }
  0x1f   : > { %v2876_v56 = vld [vmem:[%s3013_s30 + $0xc8] sm:$0xff]  ;;  %v2877_v7 = vld [vmem:[%s3013_s30 + $0xd0] sm:$0xff] }
  0x20   : > { %v2892_v59 = vld [vmem:[%s3013_s30 + $0x148] sm:$0xff] }
  0x21   : > { %875 = vmatpush.bf16.msra.mxu0 %v2915_v10  ;;  %2932 = vmatpush.bf16.msra.mxu1 %v2915_v10  ;;  %v2908_v60 = vld [vmem:[%s3013_s30 + $0x1c8] sm:$0xff] }
  0x22   : > { %2933 = vmatpush.bf16.msra.mxu2 %v2915_v10  ;;  %2934 = vmatpush.bf16.msra.mxu3 %v2915_v10  ;;  %v2893_v10 = vld [vmem:[%s3013_s30 + $0x150] sm:$0xff] }
  0x24   : > { %2784 = vmatmul.msk.bf16.vlgmr.msra.gmra.mxu0 %vm668_vm2, %v2851_v11  ;;  %2800 = vmatmul.msk.bf16.vlgmr.msra.gmra.mxu1 %vm668_vm2, %v2867_v12  ;;  %v2909_v11 = vld [vmem:[%s3013_s30 + $0x1d0] sm:$0xff] }
  0x25   : > { %2816 = vmatmul.msk.bf16.vlgmr.msra.gmra.mxu2 %vm668_vm2, %v2883_v13  ;;  %2832 = vmatmul.msk.bf16.vlgmr.msra.gmra.mxu3 %vm668_vm2, %v2899_v14 }
  0x34   : > { %2785 = vmatmul.msk.bf16.gmra.mxu0 %vm668_vm2, %v2852_v15  ;;  %2801 = vmatmul.msk.bf16.gmra.mxu1 %vm668_vm2, %v2868_v16 }
  0x35   : > { %2817 = vmatmul.msk.bf16.gmra.mxu2 %vm668_vm2, %v2884_v17  ;;  %2833 = vmatmul.msk.bf16.gmra.mxu3 %vm668_vm2, %v2900_v18 }
  0x44   : > { %2786 = vmatmul.msk.bf16.gmra.mxu0 %vm668_vm2, %v2853_v19  ;;  %2802 = vmatmul.msk.bf16.gmra.mxu1 %vm668_vm2, %v2869_v20 }
  0x45   : > { %2818 = vmatmul.msk.bf16.gmra.mxu2 %vm668_vm2, %v2885_v21  ;;  %2834 = vmatmul.msk.bf16.gmra.mxu3 %vm668_vm2, %v2901_v22 }
  0x54   : > { %2787 = vmatmul.msk.bf16.gmra.mxu0 %vm668_vm2, %v2854_v23  ;;  %2803 = vmatmul.msk.bf16.gmra.mxu1 %vm668_vm2, %v2870_v24 }
  0x55   : > { %2819 = vmatmul.msk.bf16.gmra.mxu2 %vm668_vm2, %v2886_v25  ;;  %2835 = vmatmul.msk.bf16.gmra.mxu3 %vm668_vm2, %v2902_v26 }
  0x64   : > { %2788 = vmatmul.msk.bf16.gmra.mxu0 %vm668_vm2, %v2855_v27  ;;  %2804 = vmatmul.msk.bf16.gmra.mxu1 %vm668_vm2, %v2871_v28 }
  0x65   : > { %2820 = vmatmul.msk.bf16.gmra.mxu2 %vm668_vm2, %v2887_v29  ;;  %2836 = vmatmul.msk.bf16.gmra.mxu3 %vm668_vm2, %v2903_v30 }
  0x74   : > { %2789 = vmatmul.msk.bf16.gmra.mxu0 %vm668_vm2, %v2856_v31  ;;  %2805 = vmatmul.msk.bf16.gmra.mxu1 %vm668_vm2, %v2872_v32 }
  0x75   : > { %2821 = vmatmul.msk.bf16.gmra.mxu2 %vm668_vm2, %v2888_v33  ;;  %2837 = vmatmul.msk.bf16.gmra.mxu3 %vm668_vm2, %v2904_v34 }
  0x84   : > { %2790 = vmatmul.msk.bf16.gmra.mxu0 %vm668_vm2, %v2857_v35  ;;  %2806 = vmatmul.msk.bf16.gmra.mxu1 %vm668_vm2, %v2873_v36 }
  0x85   : > { %2822 = vmatmul.msk.bf16.gmra.mxu2 %vm668_vm2, %v2889_v37  ;;  %2838 = vmatmul.msk.bf16.gmra.mxu3 %vm668_vm2, %v2905_v38 }
  0x94   : > { %2791 = vmatmul.msk.bf16.gmra.mxu0 %vm668_vm2, %v2858_v39  ;;  %2807 = vmatmul.msk.bf16.gmra.mxu1 %vm668_vm2, %v2874_v40 }
  0x95   : > { %2823 = vmatmul.msk.bf16.gmra.mxu2 %vm668_vm2, %v2890_v41  ;;  %2839 = vmatmul.msk.bf16.gmra.mxu3 %vm668_vm2, %v2906_v42 }
  0xa1   : > { %v877_v45 = vpop.f32.mrf.mxu0  ;;  %v957_v46 = vpop.f32.mrf.mxu1 }
  0xa2   : > { %v878_v2 = vadd.f32 %v3110_v1, %v877_v45  ;;  %v958_v3 = vadd.f32 %v3110_v1, %v957_v46 }
  0xa4   : > { %2792 = vmatmul.msk.bf16.gmra.mxu0 %vm668_vm2, %v2859_v43  ;;  %2808 = vmatmul.msk.bf16.gmra.mxu1 %vm668_vm2, %v2875_v44  ;;  %v1197_v14 = vmax.f32 %v878_v2, 0.0  ;;  %v1229_v15 = vmax.f32 %v958_v3, 0.0 }
  0xa5   : > { %2824 = vmatmul.msk.bf16.gmra.mxu2 %vm668_vm2, %v2891_v47  ;;  %2840 = vmatmul.msk.bf16.gmra.mxu3 %vm668_vm2, %v2907_v48 }
  0xa8   : > { %v1037_v49 = vpop.f32.mrf.mxu2  ;;  %v1117_v50 = vpop.f32.mrf.mxu3 }
  0xa9   : > { %v879_v51 = vpop.f32.mrf.mxu0  ;;  %v959_v52 = vpop.f32.mrf.mxu1  ;;  %v1038_v20 = vadd.f32 %v3110_v1, %v1037_v49  ;;  %v1118_v21 = vadd.f32 %v3110_v1, %v1117_v50  ;;  %v2862_v50 = vld [vmem:[%s3013_s30 + $0x58] sm:$0xff] }
  0xaa   : > { %v880_v22 = vadd.f32 %v3110_v1, %v879_v51  ;;  %v960_v23 = vadd.f32 %v3110_v1, %v959_v52  ;;  %v2878_v51 = vld [vmem:[%s3013_s30 + $0xd8] sm:$0xff] }
  0xab   : > { %v1261_v32 = vmax.f32 %v1038_v20, 0.0  ;;  %v1293_v33 = vmax.f32 %v1118_v21, 0.0 }
  0xac   : > { %v1198_v36 = vmax.f32 %v880_v22, 0.0  ;;  %v1230_v37 = vmax.f32 %v960_v23, 0.0 }
  0xb0   : > { %v3087_v53 = vpop.f32.mrf.mxu2  ;;  %v3089_v54 = vpop.f32.mrf.mxu3 }
  0xb1   : > { %v882_v57 = vpop.f32.mrf.mxu0  ;;  %v962_v58 = vpop.f32.mrf.mxu1  ;;  %v1040_v44 = vadd.f32 %v3110_v1, %v3087_v53  ;;  %v1120_v45 = vadd.f32 %v3110_v1, %v3089_v54 }
  0xb2   : > { %v883_v46 = vadd.f32 %v3110_v1, %v882_v57  ;;  %v963_v47 = vadd.f32 %v3110_v1, %v962_v58 }
  0xb3   : > { %v1262_v3 = vmax.f32 %v1040_v44, 0.0  ;;  %v1294_v57 = vmax.f32 %v1120_v45, 0.0 }
  0xb4   : > { %2793 = vmatmul.msk.bf16.gmra.mxu0 %vm668_vm2, %v2860_v55  ;;  %2809 = vmatmul.msk.bf16.gmra.mxu1 %vm668_vm2, %v2876_v56  ;;  %v2894_v56 = vld [vmem:[%s3013_s30 + $0x158] sm:$0xff]  ;;  %v1231_v58 = vmax.f32 %v963_v47, 0.0 }
  0xb5   : > { %2825 = vmatmul.msk.bf16.gmra.mxu2 %vm668_vm2, %v2892_v59  ;;  %2841 = vmatmul.msk.bf16.gmra.mxu3 %vm668_vm2, %v2908_v60  ;;  %v2910_v59 = vld [vmem:[%s3013_s30 + $0x1d8] sm:$0xff] }
  0xb8   : > { %v3099_v61 = vpop.f32.mrf.mxu2  ;;  %v3101_v62 = vpop.f32.mrf.mxu3 }
  0xb9   : > { %v3103_v63 = vpop.f32.mrf.mxu0  ;;  %v3105_v0 = vpop.f32.mrf.mxu1  ;;  %v1043_v21 = vadd.f32 %v3110_v1, %v3099_v61  ;;  %v1123_v22 = vadd.f32 %v3110_v1, %v3101_v62 }
  0xc0   : > { %v3114_v4 = vpop.f32.mrf.mxu2  ;;  %v3116_v5 = vpop.f32.mrf.mxu3 }
  0xc1   : > { %v887_v8 = vpop.f32.mrf.mxu0  ;;  %v967_v9 = vpop.f32.mrf.mxu1  ;;  %v1045_v47 = vadd.f32 %v3110_v1, %v3114_v4 }
  0xc2   : > { %v888_v12 = vadd.f32 %v3110_v1, %v887_v8  ;;  %v968_v13 = vadd.f32 %v3110_v1, %v967_v9 }
  0xc3   : > { %v1264_v4 = vmax.f32 %v1045_v47, 0.0 }
  0xc4   : > { %v1201_v16 = vmax.f32 %v888_v12, 0.0  ;;  %v1233_v17 = vmax.f32 %v968_v13, 0.0  ;;  %2794 = vmatmul.msk.bf16.gmra.mxu0 %vm668_vm2, %v2861_v6  ;;  %2810 = vmatmul.msk.bf16.gmra.mxu1 %vm668_vm2, %v2877_v7  ;;  %v1199_v6 = vmax.f32 %v883_v46, 0.0  ;;  %v2911_v46 = vld [vmem:[%s3013_s30 + $0x1e0] sm:$0xff] }
  0xc5   : > { %2826 = vmatmul.msk.bf16.gmra.mxu2 %vm668_vm2, %v2893_v10  ;;  %2842 = vmatmul.msk.bf16.gmra.mxu3 %vm668_vm2, %v2909_v11 }
  0xc6   : > { %v3128_v18 = vmax.f32 %v1197_v14, %v1201_v16  ;;  %v3130_v19 = vmax.f32 %v1229_v15, %v1233_v17 }
  0xc8   : > { %v1047_v24 = vpop.f32.mrf.mxu2  ;;  %v1127_v25 = vpop.f32.mrf.mxu3 }
  0xc9   : > { %v1048_v26 = vadd.f32 %v3110_v1, %v1047_v24  ;;  %v1128_v27 = vadd.f32 %v3110_v1, %v1127_v25  ;;  %v889_v28 = vpop.f32.mrf.mxu0  ;;  %v969_v29 = vpop.f32.mrf.mxu1  ;;  %v885_v25 = vadd.f32 %v3110_v1, %v3103_v63 }
  0xca   : > { %v890_v30 = vadd.f32 %v3110_v1, %v889_v28  ;;  %v970_v31 = vadd.f32 %v3110_v1, %v969_v29  ;;  %v1263_v28 = vmax.f32 %v1043_v21, 0.0  ;;  %v1295_v29 = vmax.f32 %v1123_v22, 0.0 }
  0xcb   : > { %v1265_v34 = vmax.f32 %v1048_v26, 0.0  ;;  %v1297_v35 = vmax.f32 %v1128_v27, 0.0  ;;  %v965_v26 = vadd.f32 %v3110_v1, %v3105_v0  ;;  %v2879_v0 = vld [vmem:[%s3013_s30 + $0xe0] sm:$0xff]  ;;  %v1200_v44 = vmax.f32 %v885_v25, 0.0  ;;  %v2896_v25 = vld [vmem:[%s3013_s30 + $0x168] sm:$0xff] }
  0xcc   : > { %v1202_v38 = vmax.f32 %v890_v30, 0.0  ;;  %v1234_v39 = vmax.f32 %v970_v31, 0.0 }
  0xcd   : > { %v3140_v40 = vmax.f32 %v1261_v32, %v1265_v34  ;;  %v3142_v41 = vmax.f32 %v1293_v33, %v1297_v35  ;;  %v1232_v45 = vmax.f32 %v965_v26, 0.0  ;;  %v2912_v26 = vld [vmem:[%s3013_s30 + $0x1e8] sm:$0xff] }
  0xce   : > { %v3144_v42 = vmax.f32 %v1198_v36, %v1202_v38  ;;  %v3146_v43 = vmax.f32 %v1230_v37, %v1234_v39  ;;  %v2863_v36 = vld [vmem:[%s3013_s30 + $0x60] sm:$0xff] }
  0xcf   : > { %v2895_v39 = vld [vmem:[%s3013_s30 + $0x160] sm:$0xff] }
  0xd0   : > { %v1049_v48 = vpop.f32.mrf.mxu2  ;;  %v1129_v49 = vpop.f32.mrf.mxu3  ;;  %v1680_v22 = vrot.slane %v3146_v43, 1 }
  0xd1   : > { %v892_v52 = vpop.f32.mrf.mxu0  ;;  %v972_v55 = vpop.f32.mrf.mxu1  ;;  %v1050_v60 = vadd.f32 %v3110_v1, %v1049_v48  ;;  %v1130_v2 = vadd.f32 %v3110_v1, %v1129_v49  ;;  %v1125_v48 = vadd.f32 %v3110_v1, %v3116_v5 }
  0xd2   : > { %v893_v53 = vadd.f32 %v3110_v1, %v892_v52  ;;  %v973_v54 = vadd.f32 %v3110_v1, %v972_v55 }
  0xd3   : > { %v1266_v7 = vmax.f32 %v1050_v60, 0.0  ;;  %v1298_v8 = vmax.f32 %v1130_v2, 0.0  ;;  %v1296_v55 = vmax.f32 %v1125_v48, 0.0 }
  0xd4   : > { %v1203_v9 = vmax.f32 %v893_v53, 0.0  ;;  %v1235_v10 = vmax.f32 %v973_v54, 0.0  ;;  %2795 = vmatmul.msk.bf16.gmra.mxu0 %vm668_vm2, %v2862_v50  ;;  %2811 = vmatmul.msk.bf16.gmra.mxu1 %vm668_vm2, %v2878_v51 }
  0xd5   : > { %2827 = vmatmul.msk.bf16.gmra.mxu2 %vm668_vm2, %v2894_v56  ;;  %2843 = vmatmul.msk.bf16.gmra.mxu3 %vm668_vm2, %v2910_v59  ;;  %v3166_v11 = vmax.f32 %v1262_v3, %v1266_v7  ;;  %v3168_v12 = vmax.f32 %v1294_v57, %v1298_v8  ;;  %v1405_v57 = vrot.slane %v3128_v18, 1  ;;  %v1417_v7 = vrot.slane %v3142_v41, 1 }
  0xd6   : > { %v3170_v13 = vmax.f32 %v1199_v6, %v1203_v9  ;;  %v3172_v14 = vmax.f32 %v1231_v58, %v1235_v10  ;;  %v1409_v6 = vrot.slane %v3130_v19, 1  ;;  %v1413_v58 = vrot.slane %v3140_v40, 1 }
  0xd7   : > { %v1437_v8 = vmax.f32 %v3128_v18, %v1405_v57  ;;  %v1676_v9 = vrot.slane %v3144_v42, 1  ;;  %v1449_v18 = vmax.f32 %v3142_v41, %v1417_v7 }
  0xd8   : > { %v1052_v15 = vpop.f32.mrf.mxu2  ;;  %v1132_v16 = vpop.f32.mrf.mxu3  ;;  %v1445_v21 = vmax.f32 %v3140_v40, %v1413_v58  ;;  %v1936_v41 = vrot.slane %v3170_v13, 1 }
  0xd9   : > { %v894_v17 = vpop.f32.mrf.mxu0  ;;  %v974_v20 = vpop.f32.mrf.mxu1  ;;  %v1053_v23 = vadd.f32 %v3110_v1, %v1052_v15  ;;  %v1133_v24 = vadd.f32 %v3110_v1, %v1132_v16  ;;  %v2864_v16 = vld [vmem:[%s3013_s30 + $0x68] sm:$0xff] }
  0xda   : > { %v895_v27 = vadd.f32 %v3110_v1, %v894_v17  ;;  %v975_v61 = vadd.f32 %v3110_v1, %v974_v20  ;;  %v2880_v17 = vld [vmem:[%s3013_s30 + $0xe8] sm:$0xff]  ;;  %v1441_v20 = vmax.f32 %v3130_v19, %v1409_v6  ;;  %v1461_v40 = vpack.c.bf16 %v1445_v21, %v1445_v21 }
  0xdb   : > { %v1267_v62 = vmax.f32 %v1053_v23, 0.0  ;;  %v1299_v30 = vmax.f32 %v1133_v24, 0.0  ;;  %v1968_v47 = vmax.f32 %v3170_v13, %v1936_v41 }
  0xdc   : > { %v1204_v33 = vmax.f32 %v895_v27, 0.0  ;;  %v1236_v34 = vmax.f32 %v975_v61, 0.0  ;;  %v1684_v27 = vrot.slane %v3166_v11, 1  ;;  %v1453_v61 = vpack.c.bf16 %v1437_v8, %v1437_v8 }
  0xdd   : > { %v3186_v31 = vmax.f32 %v1263_v28, %v1267_v62  ;;  %v3188_v32 = vmax.f32 %v1295_v29, %v1299_v30  ;;  %v1708_v28 = vmax.f32 %v3144_v42, %v1676_v9  ;;  %v1457_v19 = vpack.c.bf16 %v1441_v20, %v1441_v20 }
  0xde   : > { %v3202_v49 = vmax.f32 %v1200_v44, %v1204_v33  ;;  %v3204_v50 = vmax.f32 %v1232_v45, %v1236_v34  ;;  %v1712_v29 = vmax.f32 %v3146_v43, %v1680_v22  ;;  %v1688_v62 = vrot.slane %v3168_v12, 1 }
  0xdf   : > { %v1465_v30 = vpack.c.bf16 %v1449_v18, %v1449_v18  ;;  %v1716_v33 = vmax.f32 %v3166_v11, %v1684_v27  ;;  %v1940_v42 = vrot.slane %v3172_v14, 1  ;;  %v3257_v34 = vunpack.c.l.b16 %v1453_v61  ;;  %v2865_v27 = vld [vmem:[%s3013_s30 + $0x70] sm:$0xff] }
  0xe0   : > { %v1054_v63 = vpop.f32.mrf.mxu2  ;;  %v1134_v35 = vpop.f32.mrf.mxu3  ;;  %v3263_v43 = vunpack.c.l.b16 %v1457_v19  ;;  %v1720_v44 = vmax.f32 %v3168_v12, %v1688_v62  ;;  %v1984_v7 = vpack.c.bf16 %v1968_v47, %v1968_v47  ;;  %v2881_v61 = vld [vmem:[%s3013_s30 + $0xf0] sm:$0xff] }
  0xe1   : > { %v3192_v37 = vpop.f32.mrf.mxu0  ;;  %v3194_v38 = vpop.f32.mrf.mxu1  ;;  %v1055_v51 = vadd.f32 %v3110_v1, %v1054_v63  ;;  %v1135_v52 = vadd.f32 %v3110_v1, %v1134_v35  ;;  %v1724_v63 = vpack.c.bf16 %v1708_v28, %v1708_v28  ;;  %v3272_v11 = vunpack.c.l.b16 %v1465_v30  ;;  %v2897_v30 = vld [vmem:[%s3013_s30 + $0x170] sm:$0xff] }
  0xe2   : > { %4897 = vst [vmem:[#allocation2_spill] sm:$0xff] %v3263_v43  ;;  %v1732_v48 = vpack.c.bf16 %v1716_v33, %v1716_v33  ;;  %v1736_v6 = vpack.c.bf16 %v1720_v44, %v1720_v44  ;;  %v898_v22 = vadd.f32 %v3110_v1, %v3192_v37  ;;  %v3311_v41 = vunpack.c.l.b16 %v1984_v7 }
  0xe3   : > { %v1268_v56 = vmax.f32 %v1055_v51, 0.0  ;;  %v1300_v5 = vmax.f32 %v1135_v52, 0.0  ;;  %4898 = vst [vmem:[#allocation3_spill] sm:$0xff] %v3272_v11  ;;  %v1972_v51 = vmax.f32 %v3172_v14, %v1940_v42 }
  0xe4   : > { %2796 = vmatmul.msk.bf16.gmra.mxu0 %vm668_vm2, %v2863_v36  ;;  %2812 = vmatmul.msk.bf16.gmra.mxu1 %vm668_vm2, %v2879_v0  ;;  %v3265_v0 = vunpack.c.l.b16 %v1461_v40 }
  0xe5   : > { %2828 = vmatmul.msk.bf16.gmra.mxu2 %vm668_vm2, %v2895_v39  ;;  %2844 = vmatmul.msk.bf16.gmra.mxu3 %vm668_vm2, %v2911_v46  ;;  %v3216_v2 = vmax.f32 %v1264_v4, %v1268_v56  ;;  %v3218_v53 = vmax.f32 %v1296_v55, %v1300_v5  ;;  %v1728_v39 = vpack.c.bf16 %v1712_v29, %v1712_v29  ;;  %v3279_v56 = vunpack.c.l.b16 %v1724_v63  ;;  %v2913_v63 = vld [vmem:[%s3013_s30 + $0x1f0] sm:$0xff] }
  0xe6   : > { %v1557_v5 = vrot.slane %v3265_v0, 2  ;;  %v3307_v29 = vunpack.c.l.b16 %v1736_v6 }
  0xe7   : > { %v3283_v57 = vunpack.c.l.b16 %v1728_v39 }
  0xe8   : > { %v3212_v59 = vpop.f32.mrf.mxu2  ;;  %v3214_v60 = vpop.f32.mrf.mxu3  ;;  %4900 = vst [vmem:[#allocation5_spill] sm:$0xff] %v3307_v29 }
  0xe9   : > { %v3220_v54 = vpop.f32.mrf.mxu0  ;;  %v3222_v3 = vpop.f32.mrf.mxu1  ;;  %4899 = vst [vmem:[#allocation4_spill] sm:$0xff] %v3283_v57  ;;  %v4906_v57 = vrot.slane %v3279_v56, 2 }
  0xf0   : > { %v3230_v10 = vpop.f32.mrf.mxu2  ;;  %v3232_v15 = vpop.f32.mrf.mxu3 }
  0xf1   : > { %v3239_v23 = vpop.f32.mrf.mxu0  ;;  %v3241_v24 = vpop.f32.mrf.mxu1 }
  0xf4   : > { %2797 = vmatmul.msk.bf16.gmra.mxu0 %vm668_vm2, %v2864_v16  ;;  %2813 = vmatmul.msk.bf16.gmra.mxu1 %vm668_vm2, %v2880_v17  ;;  %v3290_v16 = vunpack.c.l.b16 %v1732_v48  ;;  %v1988_v17 = vpack.c.bf16 %v1972_v51, %v1972_v51  ;;  %v1944_v48 = vrot.slane %v3186_v31, 1  ;;  %v1205_v51 = vmax.f32 %v898_v22, 0.0 }
  0xf5   : > { %2829 = vmatmul.msk.bf16.gmra.mxu2 %vm668_vm2, %v2896_v25  ;;  %2845 = vmatmul.msk.bf16.gmra.mxu3 %vm668_vm2, %v2912_v26  ;;  %v978_v25 = vadd.f32 %v3110_v1, %v3194_v38  ;;  %v1948_v38 = vrot.slane %v3188_v32, 1  ;;  %v1058_v22 = vadd.f32 %v3110_v1, %v3212_v59  ;;  %v980_v59 = vadd.f32 %v3110_v1, %v3222_v3 }
  0xf6   : > { %v3318_v47 = vunpack.c.l.b16 %v1988_v17 }
  0xf7   : > { %v1237_v6 = vmax.f32 %v978_v25, 0.0  ;;  %v1269_v19 = vmax.f32 %v1058_v22, 0.0 }
  0xf8   : > { %v3259_v35 = vpop.f32.mrf.mxu2  ;;  %v3261_v36 = vpop.f32.mrf.mxu3  ;;  %4901 = vst [vmem:[#allocation6_spill] sm:$0xff] %v3318_v47 }
  0xf9   : > { %v3268_v45 = vpop.f32.mrf.mxu0  ;;  %v3270_v46 = vpop.f32.mrf.mxu1 }
 0x100   : > { %v3298_v18 = vpop.f32.mrf.mxu2  ;;  %v3300_v26 = vpop.f32.mrf.mxu3 }
 0x101   : > { %v907_v62 = vpop.f32.mrf.mxu0  ;;  %v987_v37 = vpop.f32.mrf.mxu1 }
 0x102   : > { %v908_v33 = vadd.f32 %v3110_v1, %v907_v62  ;;  %v988_v42 = vadd.f32 %v3110_v1, %v987_v37  ;;  %v3342_v37 = vmax.f32 %v3186_v31, %v1944_v48 }
 0x104   : > { %v1209_v40 = vmax.f32 %v908_v33, 0.0  ;;  %v1241_v8 = vmax.f32 %v988_v42, 0.0  ;;  %2798 = vmatmul.msk.bf16.gmra.mxu0 %vm668_vm2, %v2865_v27  ;;  %2814 = vmatmul.msk.bf16.gmra.mxu1 %vm668_vm2, %v2881_v61  ;;  %v1138_v42 = vadd.f32 %v3110_v1, %v3214_v60 }
 0x105   : > { %2830 = vmatmul.msk.bf16.gmra.mxu2 %vm668_vm2, %v2897_v30  ;;  %2846 = vmatmul.msk.bf16.gmra.mxu3 %vm668_vm2, %v2913_v63  ;;  %v900_v30 = vadd.f32 %v3110_v1, %v3220_v54 }
 0x106   : > { %v1329_v25 = vmax.f32 %v1205_v51, %v1209_v40  ;;  %v3331_v33 = vmax.f32 %v1237_v6, %v1241_v8  ;;  %v3347_v51 = vmax.f32 %v3188_v32, %v1948_v38  ;;  %v2196_v6 = vrot.slane %v3202_v49, 1 }
 0x107   : > { %v1301_v58 = vmax.f32 %v1138_v42, 0.0  ;;  %v1206_v12 = vmax.f32 %v900_v30, 0.0  ;;  %v1238_v32 = vmax.f32 %v980_v59, 0.0  ;;  %v1992_v30 = vpack.c.bf16 %v3342_v37, %v3342_v37 }
 0x108   : > { %v1406_v8 = vrot.slane %v1329_v25, 1  ;;  %v1067_v40 = vpop.f32.mrf.mxu2  ;;  %v1147_v63 = vpop.f32.mrf.mxu3  ;;  %v1060_v59 = vadd.f32 %v3110_v1, %v3230_v10 }
 0x109   : > { %v1068_v60 = vadd.f32 %v3110_v1, %v1067_v40  ;;  %v1148_v54 = vadd.f32 %v3110_v1, %v1147_v63  ;;  %v909_v9 = vpop.f32.mrf.mxu0  ;;  %v989_v62 = vpop.f32.mrf.mxu1  ;;  %v2200_v63 = vrot.slane %v3204_v50, 1 }
 0x10a   : > { %v1438_v31 = vmax.f32 %v1329_v25, %v1406_v8  ;;  %v910_v48 = vadd.f32 %v3110_v1, %v909_v9  ;;  %v990_v3 = vadd.f32 %v3110_v1, %v989_v62  ;;  %v2882_v8 = vld [vmem:[%s3013_s30 + $0xf8] sm:$0xff] }
 0x10b   : > { %v1273_v7 = vmax.f32 %v1068_v60, 0.0  ;;  %v1305_v44 = vmax.f32 %v1148_v54, 0.0  ;;  %v3378_v10 = vmax.f32 %v3204_v50, %v2200_v63  ;;  %v903_v60 = vadd.f32 %v3110_v1, %v3239_v23 }
 0x10c   : > { %v1454_v38 = vpack.c.bf16 %v1438_v31, %v1438_v31  ;;  %v1210_v17 = vmax.f32 %v910_v48, 0.0  ;;  %v1242_v28 = vmax.f32 %v990_v3, 0.0  ;;  %v2898_v31 = vld [vmem:[%s3013_s30 + $0x178] sm:$0xff] }
 0x10d   : > { %v1361_v61 = vmax.f32 %v1269_v19, %v1273_v7  ;;  %v3356_v22 = vmax.f32 %v1301_v58, %v1305_v44  ;;  %v1996_v58 = vpack.c.bf16 %v3347_v51, %v3347_v51  ;;  %v3370_v44 = vmax.f32 %v3202_v49, %v2196_v6 }
 0x10e   : > { %v3359_v62 = vunpack.c.l.b16 %v1454_v38  ;;  %v1330_v25 = vmax.f32 %v1206_v12, %v1210_v17  ;;  %v3361_v42 = vmax.f32 %v1238_v32, %v1242_v28  ;;  %v1140_v12 = vadd.f32 %v3110_v1, %v3232_v15  ;;  %v2866_v17 = vld [vmem:[%s3013_s30 + $0x78] sm:$0xff] }
 0x10f   : > { %v1414_v19 = vrot.slane %v1361_v61, 1  ;;  %v983_v15 = vadd.f32 %v3110_v1, %v3241_v24  ;;  %v2914_v32 = vld [vmem:[%s3013_s30 + $0x1f8] sm:$0xff]  ;;  %v1270_v38 = vmax.f32 %v1060_v59, 0.0 }
 0x110   : > { %v1501_v28 = vrot.slane %v3359_v62, 7  ;;  %v1069_v7 = vpop.f32.mrf.mxu2  ;;  %v1149_v37 = vpop.f32.mrf.mxu3  ;;  %v1677_v54 = vrot.slane %v1330_v25, 1  ;;  %v1583_v27 = vrot.slane %v3359_v62, 3  ;;  %v1622_v39 = vrot.slane %v3359_v62, 5 }
 0x111   : > { %v1446_v51 = vmax.f32 %v1361_v61, %v1414_v19  ;;  %v912_v49 = vpop.f32.mrf.mxu0  ;;  %v992_v6 = vpop.f32.mrf.mxu1  ;;  %v1070_v3 = vadd.f32 %v3110_v1, %v1069_v7  ;;  %v1150_v50 = vadd.f32 %v3110_v1, %v1149_v37  ;;  %v1302_v19 = vmax.f32 %v1140_v12, 0.0 }
 0x112   : > { %v3387_v48 = vsel %vm1502_vm3, %v1501_v28, %v3257_v34  ;;  %v1709_v23 = vmax.f32 %v1330_v25, %v1677_v54  ;;  %v913_v61 = vadd.f32 %v3110_v1, %v912_v49  ;;  %v993_v21 = vadd.f32 %v3110_v1, %v992_v6 }
 0x113   : > { %v1462_v63 = vpack.c.bf16 %v1446_v51, %v1446_v51  ;;  %v1274_v9 = vmax.f32 %v1070_v3, 0.0  ;;  %v1306_v40 = vmax.f32 %v1150_v50, 0.0  ;;  %v3400_v25 = vunpack.c.l.b16 %v1992_v30 }
 0x114   : > { %2799 = vmatmul.msk.bf16.gmra.mxu0 %vm668_vm2, %v2866_v17  ;;  %2815 = vmatmul.msk.bf16.gmra.mxu1 %vm668_vm2, %v2882_v8  ;;  %v1725_v7 = vpack.c.bf16 %v1709_v23, %v1709_v23  ;;  %v1211_v37 = vmax.f32 %v913_v61, 0.0  ;;  %v1243_v51 = vmax.f32 %v993_v21, 0.0  ;;  %v3405_v54 = vunpack.c.l.b16 %v1996_v58 }
 0x115   : > { %v3397_v28 = vunpack.c.l.b16 %v1462_v63  ;;  %2831 = vmatmul.msk.bf16.gmra.mxu2 %vm668_vm2, %v2898_v31  ;;  %v1362_v59 = vmax.f32 %v1270_v38, %v1274_v9  ;;  %v3402_v12 = vmax.f32 %v1302_v19, %v1306_v40  ;;  %2847 = vmatmul.msk.bf16.gmra.mxu3 %vm668_vm2, %v2914_v32  ;;  %v1207_v17 = vmax.f32 %v903_v60, 0.0 }
 0x116   : > { %4902 = vst [vmem:[#allocation7_spill] sm:$0xff] %v3405_v54  ;;  %v1239_v8 = vmax.f32 %v983_v15, 0.0  ;;  %v2244_v6 = vpack.c.bf16 %v3370_v44, %v3370_v44  ;;  %v2248_v31 = vpack.c.bf16 %v3378_v10, %v3378_v10  ;;  %v3412_v30 = vunpack.c.l.b16 %v1725_v7 }
 0x117   : > { %v1522_v49 = vrot.slane %v3397_v28, 7  ;;  %v1685_v9 = vrot.slane %v1362_v59, 1  ;;  %v1063_v21 = vadd.f32 %v3110_v1, %v3259_v35  ;;  %v1331_v60 = vmax.f32 %v1207_v17, %v1211_v37 }
 0x118   : > { %v1072_v40 = vpop.f32.mrf.mxu2  ;;  %v1152_v3 = vpop.f32.mrf.mxu3  ;;  %v3420_v15 = vmax.f32 %v1239_v8, %v1243_v51  ;;  %v2204_v32 = vrot.slane %v3216_v2, 1  ;;  %v2208_v38 = vrot.slane %v3218_v53, 1  ;;  %v1143_v63 = vadd.f32 %v3110_v1, %v3261_v36 }
 0x119   : > { %v3418_v58 = vsel %vm1502_vm3, %v1522_v49, %v3265_v0  ;;  %v914_v50 = vpop.f32.mrf.mxu0  ;;  %v994_v44 = vpop.f32.mrf.mxu1  ;;  %v1772_v23 = vrot.slane %v3412_v30, 7  ;;  %v905_v61 = vadd.f32 %v3110_v1, %v3268_v45  ;;  %v1717_v19 = vmax.f32 %v1362_v59, %v1685_v9 }
 0x11a   : > { %v1937_v7 = vrot.slane %v1331_v60, 1  ;;  %v985_v37 = vadd.f32 %v3110_v1, %v3270_v46  ;;  %v1073_v17 = vadd.f32 %v3110_v1, %v1072_v40  ;;  %v1153_v36 = vadd.f32 %v3110_v1, %v1152_v3 }
 0x11b   : > { %v3434_v51 = vsel %vm1502_vm3, %v1772_v23, %v3279_v56  ;;  %v1271_v8 = vmax.f32 %v1063_v21, 0.0  ;;  %v1733_v49 = vpack.c.bf16 %v1717_v19, %v1717_v19  ;;  %v915_v13 = vadd.f32 %v3110_v1, %v914_v50 }
 0x11c   : > { %v1969_v24 = vmax.f32 %v1331_v60, %v1937_v7  ;;  %v1303_v14 = vmax.f32 %v1143_v63, 0.0  ;;  %v1275_v45 = vmax.f32 %v1073_v17, 0.0  ;;  %v1307_v59 = vmax.f32 %v1153_v36, 0.0 }
 0x11d   : > { %v995_v9 = vadd.f32 %v3110_v1, %v994_v44  ;;  %v3441_v52 = vunpack.c.l.b16 %v1733_v49  ;;  %v1212_v4 = vmax.f32 %v915_v13, 0.0  ;;  %v1208_v63 = vmax.f32 %v905_v61, 0.0 }
 0x11e   : > { %v1985_v23 = vpack.c.bf16 %v1969_v24, %v1969_v24  ;;  %v1363_v55 = vmax.f32 %v1271_v8, %v1275_v45  ;;  %v3444_v3 = vmax.f32 %v1303_v14, %v1307_v59  ;;  %v1240_v7 = vmax.f32 %v985_v37, 0.0 }
 0x11f   : > { %v1244_v21 = vmax.f32 %v995_v9, 0.0  ;;  %v1786_v44 = vrot.slane %v3441_v52, 7  ;;  %v2236_v24 = vmax.f32 %v3216_v2, %v2204_v32  ;;  %v2240_v49 = vmax.f32 %v3218_v53, %v2208_v38 }
 0x120   : > { %v1074_v60 = vpop.f32.mrf.mxu2  ;;  %v1154_v19 = vpop.f32.mrf.mxu3  ;;  %v3454_v8 = vunpack.c.l.b16 %v1985_v23  ;;  %v1945_v14 = vrot.slane %v1363_v55, 1  ;;  %v1332_v61 = vmax.f32 %v1208_v63, %v1212_v4  ;;  %v1065_v9 = vadd.f32 %v3110_v1, %v3298_v18 }
 0x121   : > { %v3448_v17 = vpop.f32.mrf.mxu0  ;;  %v3450_v36 = vpop.f32.mrf.mxu1  ;;  %v3459_v45 = vsel %vm1502_vm3, %v1786_v44, %v3290_v16  ;;  %v3461_v37 = vmax.f32 %v1240_v7, %v1244_v21  ;;  %v1145_v2 = vadd.f32 %v3110_v1, %v3300_v26  ;;  %v3469_v23 = vunpack.c.l.b16 %v2244_v6 }
 0x122   : > { %v2032_v32 = vrot.slane %v3454_v8, 7  ;;  %v1410_v53 = vrot.slane %v3331_v33, 1  ;;  %v1977_v38 = vmax.f32 %v1363_v55, %v1945_v14  ;;  %v2197_v44 = vrot.slane %v1332_v61, 1 }
 0x123   : > { %v2252_v13 = vpack.c.bf16 %v2236_v24, %v2236_v24  ;;  %v1075_v21 = vadd.f32 %v3110_v1, %v1074_v60  ;;  %v1155_v18 = vadd.f32 %v3110_v1, %v1154_v19  ;;  %v3481_v26 = vunpack.c.l.b16 %v2248_v31 }
 0x124   : > { %v3474_v4 = vsel %vm1502_vm3, %v2032_v32, %v3311_v41  ;;  %v2256_v6 = vpack.c.bf16 %v2240_v49, %v2240_v49  ;;  %v1993_v63 = vpack.c.bf16 %v1977_v38, %v1977_v38  ;;  %v2229_v7 = vmax.f32 %v1332_v61, %v2197_v44 }
 0x125   : > { %4903 = vst [vmem:[#allocation8_spill] sm:$0xff] %v3481_v26  ;;  %v1272_v59 = vmax.f32 %v1065_v9, 0.0  ;;  %v1304_v55 = vmax.f32 %v1145_v2, 0.0  ;;  %v1276_v14 = vmax.f32 %v1075_v21, 0.0  ;;  %v1308_v24 = vmax.f32 %v1155_v18, 0.0 }
 0x126   : > { %v1442_v19 = vmax.f32 %v3331_v33, %v1410_v53  ;;  %v3489_v40 = vunpack.c.l.b16 %v1993_v63  ;;  %v2245_v10 = vpack.c.bf16 %v2229_v7, %v2229_v7  ;;  %v3496_v9 = vunpack.c.l.b16 %v2252_v13 }
 0x127   : > { %v1364_v2 = vmax.f32 %v1272_v59, %v1276_v14  ;;  %v3498_v38 = vmax.f32 %v1304_v55, %v1308_v24  ;;  %v3502_v18 = vunpack.c.l.b16 %v2256_v6  ;;  %v1418_v53 = vrot.slane %v3356_v22, 1 }
 0x128   : > { %v3483_v50 = vpop.f32.mrf.mxu2  ;;  %v3485_v32 = vpop.f32.mrf.mxu3  ;;  %v2046_v33 = vrot.slane %v3489_v40, 7  ;;  %v1681_v63 = vrot.slane %v3361_v42, 1  ;;  %v3507_v7 = vunpack.c.l.b16 %v2245_v10  ;;  %v1458_v55 = vpack.c.bf16 %v1442_v19, %v1442_v19 }
 0x129   : > { %v3491_v31 = vpop.f32.mrf.mxu0  ;;  %v3493_v49 = vpop.f32.mrf.mxu1  ;;  %4904 = vst [vmem:[#allocation9_spill] sm:$0xff] %v3502_v18  ;;  %v2205_v61 = vrot.slane %v1364_v2, 1  ;;  %v2340_v6 = vrot.slane %v3496_v9, 2  ;;  %v1558_v19 = vrot.slane %v3397_v28, 1  ;;  %v1597_v26 = vrot.slane %v3397_v28, 3 }
 0x12a   : > { %v3513_v14 = vsel %vm1502_vm3, %v2046_v33, %v3400_v25  ;;  %v2292_v21 = vrot.slane %v3507_v7, 7  ;;  %v1450_v33 = vmax.f32 %v3356_v22, %v1418_v53  ;;  %v1713_v60 = vmax.f32 %v3361_v42, %v1681_v63 }
 0x12b   : > { %v2237_v59 = vmax.f32 %v1364_v2, %v2205_v61  ;;  %v3534_v44 = vunpack.c.l.b16 %v1458_v55  ;;  %v1544_v42 = vrot.slane %v3359_v62, 1  ;;  %v1821_v53 = vrot.slane %v3441_v52, 1 }
 0x12c   : > { %v3527_v24 = vsel %vm1502_vm3, %v2292_v21, %v3469_v23  ;;  %v1807_v21 = vrot.slane %v3412_v30, 1  ;;  %v2067_v63 = vrot.slane %v3454_v8, 1  ;;  %v2081_v55 = vrot.slane %v3489_v40, 1 }
 0x12d   : > { %4905 = vst [vmem:[#allocation10_spill] sm:$0xff] %v3527_v24  ;;  %v2253_v13 = vpack.c.bf16 %v2237_v59, %v2237_v59  ;;  %v2327_v59 = vrot.slane %v3507_v7, 1  ;;  %v1466_v20 = vpack.c.bf16 %v1450_v33, %v1450_v33  ;;  %v1729_v22 = vpack.c.bf16 %v1713_v60, %v1713_v60 }
 0x12e   : > { %v3554_v18 = vsel %vm1502_vm3, %v1558_v19, %v1557_v5  ;;  %v1689_v54 = vrot.slane %v3402_v12, 1  ;;  %v3564_v62 = vsel %vm1502_vm3, %v1807_v21, %v4906_v57  ;;  %v4907_v60 = vrot.slane %v3290_v16, 2 }
 0x12f   : > { %v3548_v10 = vunpack.c.l.b16 %v2253_v13  ;;  %v1636_v13 = vrot.slane %v3397_v28, 5  ;;  %v4908_v19 = vrot.slane %v3311_v41, 2  ;;  %v4910_v28 = vrot.slane %v3400_v25, 2 }
 0x130   : > { %v3529_v35 = vpop.f32.mrf.mxu2  ;;  %v3531_v46 = vpop.f32.mrf.mxu3  ;;  %v3569_v5 = vsel %vm1502_vm3, %v1821_v53, %v4907_v60  ;;  %v4911_v57 = vrot.slane %v3469_v23, 2  ;;  %v1941_v60 = vrot.slane %v3420_v15, 1 }
 0x131   : > { %v3536_v61 = vpop.f32.mrf.mxu0  ;;  %v3538_v2 = vpop.f32.mrf.mxu1  ;;  %v2306_v47 = vrot.slane %v3548_v10, 7  ;;  %v2341_v29 = vrot.slane %v3548_v10, 1  ;;  %v3574_v33 = vsel %vm1502_vm3, %v2067_v63, %v4908_v19  ;;  %v3583_v43 = vsel %vm1502_vm3, %v2081_v55, %v4910_v28 }
 0x132   : > { %v3588_v21 = vsel %vm1502_vm3, %v2327_v59, %v4911_v57  ;;  %v1845_v63 = vrot.slane %v3412_v30, 3  ;;  %v4916_v28 = vrot.slane %v3257_v34, 4  ;;  %v1949_v57 = vrot.slane %v3444_v3, 1 }
 0x133   : > { %v3578_v11 = vsel %vm1502_vm3, %v2306_v47, %v3496_v9  ;;  %4912 = vst [vmem:[#allocation12_spill] sm:$0xff] %v3588_v21  ;;  %v3591_v53 = vsel %vm1502_vm3, %v2341_v29, %v2340_v6  ;;  %v1721_v29 = vmax.f32 %v3402_v12, %v1689_v54  ;;  %v2105_v6 = vrot.slane %v3454_v8, 3 }
 0x134   : > { %4909 = vst [vmem:[#allocation11_spill] sm:$0xff] %v3578_v11  ;;  %v4914_v11 = vrot.slane %v3257_v34, 6  ;;  %v3607_v59 = vsel %vm1502_vm3, %v1583_v27, %v4916_v28  ;;  %v4918_v21 = vrot.slane %v3257_v34, 2  ;;  %v1883_v27 = vrot.slane %v3412_v30, 5 }
 0x135   : > { %4913 = vst [vmem:[#allocation13_spill] sm:$0xff] %v3591_v53  ;;  %v2201_v28 = vrot.slane %v3461_v37, 1  ;;  %v4920_v12 = vrot.slane %v3265_v0, 6  ;;  %v2143_v34 = vrot.slane %v3454_v8, 5  ;;  %v1973_v30 = vmax.f32 %v3420_v15, %v1941_v60 }
 0x136   : > { %v3602_v55 = vsel %vm1502_vm3, %v1622_v39, %v4914_v11  ;;  %4917 = vst [vmem:[#allocation15_spill] sm:$0xff] %v3607_v59  ;;  %v3619_v11 = vsel %vm1502_vm3, %v1544_v42, %v4918_v21  ;;  %v3629_v59 = vunpack.c.l.b16 %v1466_v20  ;;  %v4922_v42 = vrot.slane %v3265_v0, 4 }
 0x137   : > { %4915 = vst [vmem:[#allocation14_spill] sm:$0xff] %v3602_v55  ;;  %v3627_v54 = vsel %vm1502_vm3, %v1636_v13, %v4920_v12  ;;  %v1859_v55 = vrot.slane %v3441_v52, 3  ;;  %v2119_v39 = vrot.slane %v3489_v40, 3  ;;  %v4923_v13 = vrot.slane %v3279_v56, 4 }
 0x138   : > { %v3595_v19 = vpop.f32.mrf.mxu2  ;;  %v3597_v47 = vpop.f32.mrf.mxu3  ;;  %4919 = vst [vmem:[#allocation16_spill] sm:$0xff] %v3619_v11  ;;  %v3636_v21 = vsel %vm1502_vm3, %v1597_v26, %v4922_v42  ;;  %v2403_v11 = vrot.slane %v3507_v7, 5  ;;  %v3646_v12 = vunpack.c.l.b16 %v1729_v22  ;;  %v1981_v8 = vmax.f32 %v3444_v3, %v1949_v57 }
 0x139   : > { %v3612_v53 = vpop.f32.mrf.mxu0  ;;  %v3614_v24 = vpop.f32.mrf.mxu1  ;;  %4921 = vst [vmem:[#allocation17_spill] sm:$0xff] %v3627_v54  ;;  %v3644_v20 = vsel %vm1502_vm3, %v1845_v63, %v4923_v13  ;;  %v1737_v54 = vpack.c.bf16 %v1721_v29, %v1721_v29  ;;  %v4925_v0 = vrot.slane %v3311_v41, 4  ;;  %v2233_v15 = vmax.f32 %v3461_v37, %v2201_v28 }
 0x13a   : > { %4924 = vst [vmem:[#allocation18_spill] sm:$0xff] %v3646_v12  ;;  %v2379_v60 = vrot.slane %v3548_v10, 3  ;;  %v918_v42 = vadd.f32 %v3110_v1, %v3448_v17  ;;  %v4926_v63 = vrot.slane %v3279_v56, 6  ;;  %v2365_v29 = vrot.slane %v3507_v7, 3 }
 0x13b   : > { %v3652_v26 = vsel %vm1502_vm3, %v2105_v6, %v4925_v0  ;;  %v998_v3 = vadd.f32 %v3110_v1, %v3450_v36  ;;  %v4927_v6 = vrot.slane %v3311_v41, 6  ;;  %v4928_v37 = vrot.slane %v3290_v16, 4 }
 0x13c   : > { %v3661_v22 = vsel %vm1502_vm3, %v1883_v27, %v4926_v63  ;;  %v1989_v17 = vpack.c.bf16 %v1973_v30, %v1973_v30  ;;  %v2417_v56 = vrot.slane %v3548_v10, 5  ;;  %v4930_v7 = vrot.slane %v3469_v23, 6 }
 0x13d   : > { %v3669_v57 = vsel %vm1502_vm3, %v2143_v34, %v4927_v6  ;;  %v3674_v28 = vsel %vm1502_vm3, %v1859_v55, %v4928_v37  ;;  %v4932_v41 = vrot.slane %v3400_v25, 4  ;;  %v1897_v55 = vrot.slane %v3441_v52, 5  ;;  %v3704_v52 = vld [vmem:[%s4867_s2] ss:$0 sm:$0xff] }
 0x13e   : > { %4929 = vst [vmem:[#allocation19_spill] sm:$0xff] %v3674_v28  ;;  %v3684_v36 = vsel %vm1502_vm3, %v2403_v11, %v4930_v7  ;;  %v2157_v30 = vrot.slane %v3489_v40, 5  ;;  %v1997_v0 = vpack.c.bf16 %v1981_v8, %v1981_v8  ;;  %v2209_v10 = vrot.slane %v3498_v38, 1 }
 0x13f   : > { %4931 = vst [vmem:[#allocation20_spill] sm:$0xff] %v3684_v36  ;;  %v3689_v34 = vsel %vm1502_vm3, %v2119_v39, %v4932_v41  ;;  %v1213_v37 = vmax.f32 %v918_v42, 0.0  ;;  %v4933_v7 = vrot.slane %v3496_v9, 4  ;;  %v2249_v39 = vpack.c.bf16 %v2233_v15, %v2233_v15 }
 0x140   : > { %v3677_v27 = vpop.f32.mrf.mxu2  ;;  %v3679_v13 = vpop.f32.mrf.mxu3  ;;  %v1245_v41 = vmax.f32 %v998_v3, 0.0  ;;  %v1078_v40 = vadd.f32 %v3704_v52, %v3483_v50  ;;  %v4934_v8 = vrot.slane %v3469_v23, 4  ;;  %v4935_v15 = vrot.slane %v3496_v9, 6 }
 0x141   : > { %v927_v63 = vpop.f32.mrf.mxu0  ;;  %v1007_v6 = vpop.f32.mrf.mxu1  ;;  %v3699_v36 = vsel %vm1502_vm3, %v2379_v60, %v4933_v7  ;;  %v2241_v7 = vmax.f32 %v3498_v38, %v2209_v10  ;;  %v4937_v50 = vrot.slane %v3400_v25, 6  ;;  %v3733_v9 = vunpack.c.l.b16 %v1737_v54 }
 0x142   : > { %v928_v28 = vadd.f32 %v3110_v1, %v927_v63  ;;  %v1008_v11 = vadd.f32 %v3110_v1, %v1007_v6  ;;  %v3711_v42 = vsel %vm1502_vm3, %v2365_v29, %v4934_v8  ;;  %v1158_v1 = vadd.f32 %v3704_v52, %v3485_v32 }
 0x143   : > { %v3718_v3 = vsel %vm1502_vm3, %v2417_v56, %v4935_v15  ;;  %v3725_v23 = vsel %vm1502_vm3, %v2157_v30, %v4937_v50  ;;  %v4938_v29 = vrot.slane %v3290_v16, 6  ;;  %v3737_v8 = vunpack.c.l.b16 %v1989_v17 }
 0x144   : > { %v1217_v60 = vmax.f32 %v928_v28, 0.0  ;;  %v1249_v63 = vmax.f32 %v1008_v11, 0.0  ;;  %4936 = vst [vmem:[#allocation21_spill] sm:$0xff] %v3718_v3  ;;  %v3739_v38 = vunpack.c.l.b16 %v1997_v0  ;;  %v920_v25 = vadd.f32 %v3704_v52, %v3491_v31 }
 0x145   : > { %v3730_v32 = vsel %vm1502_vm3, %v1897_v55, %v4938_v29  ;;  %4939 = vst [vmem:[#allocation22_spill] sm:$0xff] %v3737_v8  ;;  %v1000_v16 = vadd.f32 %v3704_v52, %v3493_v49  ;;  %v3745_v30 = vunpack.c.l.b16 %v2249_v39  ;;  %v1277_v55 = vmax.f32 %v1078_v40, 0.0 }
 0x146   : > { %v1333_v56 = vmax.f32 %v1213_v37, %v1217_v60  ;;  %v3735_v11 = vmax.f32 %v1245_v41, %v1249_v63  ;;  %4940 = vst [vmem:[#allocation23_spill] sm:$0xff] %v3739_v38  ;;  %v1309_v10 = vmax.f32 %v1158_v1, 0.0  ;;  %v2257_v37 = vpack.c.bf16 %v2241_v7, %v2241_v7 }
 0x147   : > { %4941 = vst [vmem:[#allocation24_spill] sm:$0xff] %v3745_v30  ;;  %v1080_v17 = vadd.f32 %v3704_v52, %v3529_v35  ;;  %v1160_v49 = vadd.f32 %v3704_v52, %v3531_v46  ;;  %v1214_v63 = vmax.f32 %v920_v25, 0.0  ;;  %v1246_v29 = vmax.f32 %v1000_v16, 0.0 }
 0x148   : > { %v1407_v15 = vrot.slane %v1333_v56, 1  ;;  %v1087_v54 = vpop.f32.mrf.mxu2  ;;  %v1167_v50 = vpop.f32.mrf.mxu3  ;;  %v923_v35 = vadd.f32 %v3704_v52, %v3536_v61  ;;  %v1003_v46 = vadd.f32 %v3704_v52, %v3538_v2 }
 0x149   : > { %v1088_v0 = vadd.f32 %v3704_v52, %v1087_v54  ;;  %v1168_v41 = vadd.f32 %v3704_v52, %v1167_v50  ;;  %v929_v60 = vpop.f32.mrf.mxu0  ;;  %v1009_v31 = vpop.f32.mrf.mxu1 }
 0x14a   : > { %v1439_v39 = vmax.f32 %v1333_v56, %v1407_v15  ;;  %v930_v40 = vadd.f32 %v3704_v52, %v929_v60  ;;  %v1010_v1 = vadd.f32 %v3704_v52, %v1009_v31  ;;  %v3769_v31 = vunpack.c.l.b16 %v2257_v37 }
 0x14b   : > { %v1281_v7 = vmax.f32 %v1088_v0, 0.0  ;;  %v1313_v28 = vmax.f32 %v1168_v41, 0.0  ;;  %v1215_v2 = vmax.f32 %v923_v35, 0.0 }
 0x14c   : > { %v1455_v54 = vpack.c.bf16 %v1439_v39, %v1439_v39  ;;  %v1218_v6 = vmax.f32 %v930_v40, 0.0  ;;  %v1250_v50 = vmax.f32 %v1010_v1, 0.0  ;;  %4942 = vst [vmem:[#allocation25_spill] sm:$0xff] %v3769_v31  ;;  %v1278_v40 = vmax.f32 %v1080_v17, 0.0 }
 0x14d   : > { %v1365_v56 = vmax.f32 %v1277_v55, %v1281_v7  ;;  %v3760_v15 = vmax.f32 %v1309_v10, %v1313_v28  ;;  %v1310_v1 = vmax.f32 %v1160_v49, 0.0  ;;  %v1247_v7 = vmax.f32 %v1003_v46, 0.0 }
 0x14e   : > { %v3763_v25 = vunpack.c.l.b16 %v1455_v54  ;;  %v1334_v16 = vmax.f32 %v1214_v63, %v1218_v6  ;;  %v3765_v0 = vmax.f32 %v1246_v29, %v1250_v50 }
 0x14f   : > { %v1415_v39 = vrot.slane %v1365_v56, 1 }
 0x150   : > { %v1504_v28 = vrot.slane %v3763_v25, 6  ;;  %v1089_v55 = vpop.f32.mrf.mxu2  ;;  %v1169_v10 = vpop.f32.mrf.mxu3  ;;  %v1678_v6 = vrot.slane %v1334_v16, 1 }
 0x151   : > { %v1447_v54 = vmax.f32 %v1365_v56, %v1415_v39  ;;  %v932_v63 = vpop.f32.mrf.mxu0  ;;  %v1012_v29 = vpop.f32.mrf.mxu1  ;;  %v1090_v37 = vadd.f32 %v3704_v52, %v1089_v55  ;;  %v1170_v17 = vadd.f32 %v3704_v52, %v1169_v10 }
 0x152   : > { %v3774_v50 = vsel %vm1505_vm4, %v1504_v28, %v3387_v48  ;;  %v933_v49 = vadd.f32 %v3704_v52, %v932_v63  ;;  %v1710_v41 = vmax.f32 %v1334_v16, %v1678_v6  ;;  %v1013_v3 = vadd.f32 %v3704_v52, %v1012_v29 }
 0x153   : > { %v1463_v60 = vpack.c.bf16 %v1447_v54, %v1447_v54  ;;  %v1282_v56 = vmax.f32 %v1090_v37, 0.0  ;;  %v1314_v39 = vmax.f32 %v1170_v17, 0.0  ;;  %v1083_v48 = vadd.f32 %v3704_v52, %v3595_v19 }
 0x154   : > { %v1219_v61 = vmax.f32 %v933_v49, 0.0  ;;  %v1163_v28 = vadd.f32 %v3704_v52, %v3597_v47  ;;  %v1726_v10 = vpack.c.bf16 %v1710_v41, %v1710_v41  ;;  %v1251_v54 = vmax.f32 %v1013_v3, 0.0 }
 0x155   : > { %v3786_v55 = vunpack.c.l.b16 %v1463_v60  ;;  %v1366_v63 = vmax.f32 %v1278_v40, %v1282_v56  ;;  %v3788_v35 = vmax.f32 %v1310_v1, %v1314_v39  ;;  %v925_v6 = vadd.f32 %v3704_v52, %v3612_v53 }
 0x156   : > { %v1335_v16 = vmax.f32 %v1215_v2, %v1219_v61  ;;  %v1005_v60 = vadd.f32 %v3704_v52, %v3614_v24  ;;  %v3801_v41 = vunpack.c.l.b16 %v1726_v10  ;;  %v3808_v29 = vmax.f32 %v1247_v7, %v1251_v54 }
 0x157   : > { %v1524_v37 = vrot.slane %v3786_v55, 6  ;;  %v3796_v19 = vsel %vm1505_vm4, %v3786_v55, %v3554_v18  ;;  %v1686_v40 = vrot.slane %v1366_v63, 1  ;;  %v1279_v56 = vmax.f32 %v1083_v48, 0.0 }
 0x158   : > { %4943 = vst [vmem:[#allocation26_spill] sm:$0xff] %v3796_v19  ;;  %v1092_v61 = vpop.f32.mrf.mxu2  ;;  %v1172_v3 = vpop.f32.mrf.mxu3  ;;  %v1938_v2 = vrot.slane %v1335_v16, 1  ;;  %v1311_v24 = vmax.f32 %v1163_v28, 0.0  ;;  %v1774_v39 = vrot.slane %v3801_v41, 6  ;;  %v3815_v10 = vsel %vm1505_vm4, %v3801_v41, %v3564_v62 }
 0x159   : > { %v3806_v53 = vsel %vm1505_vm4, %v1524_v37, %v3418_v58  ;;  %v934_v18 = vpop.f32.mrf.mxu0  ;;  %v1014_v17 = vpop.f32.mrf.mxu1  ;;  %4944 = vst [vmem:[#allocation27_spill] sm:$0xff] %v3815_v10  ;;  %v1216_v1 = vmax.f32 %v925_v6, 0.0  ;;  %v1718_v47 = vmax.f32 %v1366_v63, %v1686_v40  ;;  %v1248_v7 = vmax.f32 %v1005_v60, 0.0 }
 0x15a   : > { %v1970_v58 = vmax.f32 %v1335_v16, %v1938_v2  ;;  %v3820_v54 = vsel %vm1505_vm4, %v1774_v39, %v3434_v51  ;;  %v1093_v48 = vadd.f32 %v3704_v52, %v1092_v61  ;;  %v1173_v28 = vadd.f32 %v3704_v52, %v1172_v3 }
 0x15b   : > { %v1734_v49 = vpack.c.bf16 %v1718_v47, %v1718_v47  ;;  %v935_v19 = vadd.f32 %v3704_v52, %v934_v18  ;;  %v1015_v16 = vadd.f32 %v3704_v52, %v1014_v17  ;;  %v1885_v12 = vrot.slane %v3801_v41, 4 }
 0x15c   : > { %v1986_v46 = vpack.c.bf16 %v1970_v58, %v1970_v58  ;;  %v1283_v6 = vmax.f32 %v1093_v48, 0.0  ;;  %v1315_v63 = vmax.f32 %v1173_v28, 0.0  ;;  %v1411_v28 = vrot.slane %v3735_v11, 1 }
 0x15d   : > { %v3828_v40 = vunpack.c.l.b16 %v1734_v49  ;;  %v1220_v18 = vmax.f32 %v935_v19, 0.0  ;;  %v1252_v39 = vmax.f32 %v1015_v16, 0.0  ;;  %v1085_v19 = vadd.f32 %v3704_v52, %v3677_v27 }
 0x15e   : > { %v3830_v51 = vunpack.c.l.b16 %v1986_v46  ;;  %v1367_v47 = vmax.f32 %v1279_v56, %v1283_v6  ;;  %v3834_v2 = vmax.f32 %v1311_v24, %v1315_v63  ;;  %v1165_v24 = vadd.f32 %v3704_v52, %v3679_v13 }
 0x15f   : > { %v1788_v17 = vrot.slane %v3828_v40, 6  ;;  %v3841_v46 = vsel %vm1505_vm4, %v3828_v40, %v3569_v5  ;;  %v1419_v5 = vrot.slane %v3760_v15, 1  ;;  %v1336_v13 = vmax.f32 %v1216_v1, %v1220_v18 }
 0x160   : > { %v1094_v58 = vpop.f32.mrf.mxu2  ;;  %v1174_v48 = vpop.f32.mrf.mxu3  ;;  %4945 = vst [vmem:[#allocation28_spill] sm:$0xff] %v3841_v46  ;;  %v2034_v6 = vrot.slane %v3830_v51, 6  ;;  %v3856_v63 = vsel %vm1505_vm4, %v3830_v51, %v3574_v33  ;;  %v1946_v56 = vrot.slane %v1367_v47, 1  ;;  %v3868_v60 = vmax.f32 %v1248_v7, %v1252_v39 }
 0x161   : > { %v3843_v49 = vpop.f32.mrf.mxu0  ;;  %v3845_v61 = vpop.f32.mrf.mxu1  ;;  %4946 = vst [vmem:[#allocation29_spill] sm:$0xff] %v3856_v63  ;;  %v3861_v16 = vsel %vm1505_vm4, %v1788_v17, %v3459_v45  ;;  %v1443_v33 = vmax.f32 %v3735_v11, %v1411_v28  ;;  %v1095_v63 = vadd.f32 %v3704_v52, %v1094_v58  ;;  %v1175_v45 = vadd.f32 %v3704_v52, %v1174_v48  ;;  %v4948_v11 = vld [vmem:[#allocation12_spill] sm:$0xff] }
 0x162   : > { %v3866_v27 = vsel %vm1505_vm4, %v2034_v6, %v3474_v4  ;;  %v1978_v37 = vmax.f32 %v1367_v47, %v1946_v56  ;;  %v1280_v17 = vmax.f32 %v1085_v19, 0.0  ;;  %v1312_v10 = vmax.f32 %v1165_v24, 0.0 }
 0x163   : > { %v2198_v46 = vrot.slane %v1336_v13, 1  ;;  %v1451_v4 = vmax.f32 %v3760_v15, %v1419_v5  ;;  %v1284_v1 = vmax.f32 %v1095_v63, 0.0  ;;  %v1316_v7 = vmax.f32 %v1175_v45, 0.0 }
 0x164   : > { %v1994_v6 = vpack.c.bf16 %v1978_v37, %v1978_v37  ;;  %v1459_v48 = vpack.c.bf16 %v1443_v33, %v1443_v33  ;;  %v1682_v37 = vrot.slane %v3765_v0, 1  ;;  %v1624_v58 = vrot.slane %v3763_v25, 4 }
 0x165   : > { %v2230_v18 = vmax.f32 %v1336_v13, %v2198_v46  ;;  %v1368_v56 = vmax.f32 %v1280_v17, %v1284_v1  ;;  %v3883_v19 = vmax.f32 %v1312_v10, %v1316_v7  ;;  %v1690_v46 = vrot.slane %v3788_v35, 1 }
 0x166   : > { %v3881_v28 = vunpack.c.l.b16 %v1994_v6  ;;  %v1467_v45 = vpack.c.bf16 %v1451_v4, %v1451_v4  ;;  %v1942_v6 = vrot.slane %v3808_v29, 1  ;;  %v3906_v13 = vunpack.c.l.b16 %v1459_v48 }
 0x167   : > { %v2246_v63 = vpack.c.bf16 %v2230_v18, %v2230_v18  ;;  %v2206_v7 = vrot.slane %v1368_v56, 1  ;;  %v1714_v47 = vmax.f32 %v3765_v0, %v1682_v37  ;;  %v1722_v17 = vmax.f32 %v3788_v35, %v1690_v46  ;;  %v4950_v37 = vld [vmem:[#allocation10_spill] sm:$0xff] }
 0x168   : > { %v3876_v39 = vpop.f32.mrf.mxu2  ;;  %v3885_v24 = vpop.f32.mrf.mxu3  ;;  %v2048_v33 = vrot.slane %v3881_v28, 6  ;;  %v3898_v10 = vsel %vm1505_vm4, %v3881_v28, %v3583_v43  ;;  %v3921_v3 = vunpack.c.l.b16 %v1467_v45  ;;  %v1974_v0 = vmax.f32 %v3808_v29, %v1942_v6  ;;  %v4953_v6 = vld [vmem:[#allocation15_spill] sm:$0xff] }
 0x169   : > { %v3887_v15 = vpop.f32.mrf.mxu0  ;;  %v3891_v5 = vpop.f32.mrf.mxu1  ;;  %4947 = vst [vmem:[#allocation30_spill] sm:$0xff] %v3898_v10  ;;  %v3902_v1 = vunpack.c.l.b16 %v2246_v63  ;;  %v2238_v48 = vmax.f32 %v1368_v56, %v2206_v7  ;;  %v1950_v45 = vrot.slane %v3834_v2, 1  ;;  %v1738_v10 = vpack.c.bf16 %v1722_v17, %v1722_v17 }
 0x16a   : > { %v3910_v4 = vsel %vm1505_vm4, %v2048_v33, %v3513_v14  ;;  %v1585_v33 = vrot.slane %v3763_v25, 2  ;;  %v4952_v14 = vld [vmem:[#allocation14_spill] sm:$0xff]  ;;  %v1990_v29 = vpack.c.bf16 %v1974_v0, %v1974_v0 }
 0x16b   : > { %v2294_v63 = vrot.slane %v3902_v1, 6  ;;  %v3919_v18 = vsel %vm1505_vm4, %v3902_v1, %v4948_v11  ;;  %v2254_v43 = vpack.c.bf16 %v2238_v48, %v2238_v48  ;;  %v3941_v62 = vsel %vm1505_vm4, %v1624_v58, %v4952_v14 }
 0x16c   : > { %4949 = vst [vmem:[#allocation12_spill] sm:$0xff] %v3919_v18  ;;  %v1638_v48 = vrot.slane %v3786_v55, 4  ;;  %v2202_v18 = vrot.slane %v3868_v60, 1  ;;  %v1847_v58 = vrot.slane %v3801_v41, 2  ;;  %v2107_v14 = vrot.slane %v3830_v51, 2 }
 0x16d   : > { %v3929_v35 = vsel %vm1505_vm4, %v2294_v63, %v4950_v37  ;;  %v1599_v63 = vrot.slane %v3786_v55, 2  ;;  %v1730_v37 = vpack.c.bf16 %v1714_v47, %v1714_v47  ;;  %v3951_v31 = vunpack.c.l.b16 %v2254_v43  ;;  %v4954_v55 = vld [vmem:[#allocation13_spill] sm:$0xff] }
 0x16e   : > { %4951 = vst [vmem:[#allocation10_spill] sm:$0xff] %v3929_v35  ;;  %v3957_v8 = vsel %vm1505_vm4, %v1585_v33, %v4953_v6  ;;  %v1982_v47 = vmax.f32 %v3834_v2, %v1950_v45  ;;  %v2210_v43 = vrot.slane %v3883_v19, 1  ;;  %v3970_v0 = vunpack.c.l.b16 %v1738_v10  ;;  %v4956_v35 = vld [vmem:[#allocation16_spill] sm:$0xff]  ;;  %v4957_v45 = vld [vmem:[#allocation11_spill] sm:$0xff] }
 0x16f   : > { %v2308_v17 = vrot.slane %v3951_v31, 6  ;;  %v3964_v30 = vsel %vm1505_vm4, %v3951_v31, %v4954_v55  ;;  %v3968_v38 = vunpack.c.l.b16 %v1730_v37  ;;  %v3975_v33 = vsel %vm1505_vm4, %v3763_v25, %v4956_v35  ;;  %v4959_v55 = vld [vmem:[#allocation17_spill] sm:$0xff] }
 0x170   : > { %v3931_v46 = vpop.f32.mrf.mxu2  ;;  %v3935_v56 = vpop.f32.mrf.mxu3  ;;  %4955 = vst [vmem:[#allocation14_spill] sm:$0xff] %v3964_v30  ;;  %v2234_v2 = vmax.f32 %v3868_v60, %v2202_v18  ;;  %v3984_v30 = vsel %vm1505_vm4, %v1638_v48, %v4959_v55  ;;  %v3988_v41 = vsel %vm1505_vm4, %v1599_v63, %v3636_v21  ;;  %v1861_v10 = vrot.slane %v3828_v40, 2 }
 0x171   : > { %v3937_v7 = vpop.f32.mrf.mxu0  ;;  %v3946_v11 = vpop.f32.mrf.mxu1  ;;  %v3980_v6 = vsel %vm1505_vm4, %v2308_v17, %v4957_v45  ;;  %v3991_v37 = vunpack.c.l.b16 %v1990_v29  ;;  %v3995_v25 = vadd.f32 %v3704_v52, %v3843_v49  ;;  %v4001_v18 = vsel %vm1505_vm4, %v1847_v58, %v3644_v20 }
 0x172   : > { %4958 = vst [vmem:[#allocation15_spill] sm:$0xff] %v3980_v6  ;;  %v2145_v35 = vrot.slane %v3830_v51, 4  ;;  %v1998_v48 = vpack.c.bf16 %v1982_v47, %v1982_v47  ;;  %v2242_v21 = vmax.f32 %v3883_v19, %v2210_v43  ;;  %v4011_v29 = vsel %vm1505_vm4, %v2107_v14, %v3652_v26 }
 0x173   : > { %4960 = vst [vmem:[#allocation13_spill] sm:$0xff] %v4011_v29  ;;  %v1899_v45 = vrot.slane %v3828_v40, 4  ;;  %v2121_v20 = vrot.slane %v3881_v28, 2  ;;  %v2405_v58 = vrot.slane %v3902_v1, 4  ;;  %v2159_v47 = vrot.slane %v3881_v28, 4 }
 0x174   : > { %v2367_v43 = vrot.slane %v3902_v1, 2  ;;  %v2250_v55 = vpack.c.bf16 %v2234_v2, %v2234_v2  ;;  %v1221_v14 = vmax.f32 %v3995_v25, 0.0  ;;  %v1018_v40 = vadd.f32 %v3704_v52, %v3845_v61  ;;  %v4961_v1 = vld [vmem:[#allocation19_spill] sm:$0xff]  ;;  %v4962_v61 = vld [vmem:[#allocation20_spill] sm:$0xff] }
 0x175   : > { %v4028_v49 = vsel %vm1505_vm4, %v1885_v12, %v3661_v22  ;;  %v4030_v6 = vunpack.c.l.b16 %v1998_v48  ;;  %v2258_v29 = vpack.c.bf16 %v2242_v21, %v2242_v21  ;;  %v4034_v28 = vsel %vm1505_vm4, %v2145_v35, %v3669_v57 }
 0x176   : > { %v4038_v2 = vsel %vm1505_vm4, %v1861_v10, %v4961_v1  ;;  %v2381_v25 = vrot.slane %v3951_v31, 2  ;;  %v2419_v26 = vrot.slane %v3951_v31, 4  ;;  %v4044_v19 = vsel %vm1505_vm4, %v2405_v58, %v4962_v61 }
 0x177   : > { %4963 = vst [vmem:[#allocation16_spill] sm:$0xff] %v4044_v19  ;;  %v4048_v12 = vsel %vm1505_vm4, %v2121_v20, %v3689_v34  ;;  %v4050_v22 = vunpack.c.l.b16 %v2250_v55  ;;  %v4054_v57 = vadd.f32 %v3704_v52, %v3876_v39  ;;  %v4058_v10 = vsel %vm1505_vm4, %v2367_v43, %v3711_v42 }
 0x178   : > { %v3997_v60 = vpop.f32.mrf.mxu2  ;;  %v4005_v63 = vpop.f32.mrf.mxu3  ;;  %4964 = vst [vmem:[#allocation11_spill] sm:$0xff] %v4048_v12  ;;  %v4062_v31 = vsel %vm1505_vm4, %v2159_v47, %v3725_v23  ;;  %v4066_v35 = vadd.f32 %v3704_v52, %v3885_v24  ;;  %v4070_v34 = vadd.f32 %v3704_v52, %v3887_v15  ;;  %v4074_v39 = vadd.f32 %v3704_v52, %v3891_v5 }
 0x179   : > { %v4007_v17 = vpop.f32.mrf.mxu0  ;;  %v4017_v51 = vpop.f32.mrf.mxu1  ;;  %4965 = vst [vmem:[#allocation17_spill] sm:$0xff] %v4058_v10  ;;  %v4080_v42 = vsel %vm1505_vm4, %v1899_v45, %v3730_v32  ;;  %v4082_v23 = vunpack.c.l.b16 %v2258_v29  ;;  %v4086_v24 = vadd.f32 %v3704_v52, %v3931_v46  ;;  %v4090_v15 = vadd.f32 %v3704_v52, %v3935_v56  ;;  %v4969_v56 = vld [vmem:[#allocation21_spill] sm:$0xff] }
 0x17a   : > { %4966 = vst [vmem:[#allocation19_spill] sm:$0xff] %v4062_v31  ;;  %v4094_v5 = vadd.f32 %v3704_v52, %v3937_v7  ;;  %v4100_v32 = vadd.f32 %v3704_v52, %v3946_v11  ;;  %v4105_v46 = vsel %vm1505_vm4, %v2381_v25, %v3699_v36  ;;  %v4109_v58 = vsel %vm1505_vm4, %v2419_v26, %v4969_v56 }
 0x17b   : > { %4967 = vst [vmem:[#allocation20_spill] sm:$0xff] %v4080_v42  ;;  %v1253_v47 = vmax.f32 %v1018_v40, 0.0  ;;  %v1285_v43 = vmax.f32 %v4054_v57, 0.0  ;;  %v1317_v1 = vmax.f32 %v4066_v35, 0.0  ;;  %v1222_v61 = vmax.f32 %v4070_v34, 0.0 }
 0x17c   : > { %4968 = vst [vmem:[#allocation31_spill] sm:$0xff] %v4105_v46  ;;  %v4125_v35 = vadd.f32 %v3704_v52, %v3997_v60  ;;  %v4135_v60 = vadd.f32 %v3704_v52, %v4005_v63  ;;  %v4148_v42 = vadd.f32 %v3704_v52, %v4017_v51 }
 0x17d   : > { %4970 = vst [vmem:[#allocation21_spill] sm:$0xff] %v4109_v58 }
 0x180   : > { %v4076_v48 = vpop.f32.mrf.mxu2  ;;  %v4096_v21 = vpop.f32.mrf.mxu3 }
 0x181   : > { %v947_v20 = vpop.f32.mrf.mxu0  ;;  %v1027_v45 = vpop.f32.mrf.mxu1 }
 0x182   : > { %v948_v29 = vadd.f32 %v3704_v52, %v947_v20  ;;  %v1028_v55 = vadd.f32 %v3704_v52, %v1027_v45 }
 0x184   : > { %v1225_v20 = vmax.f32 %v948_v29, 0.0  ;;  %v1257_v56 = vmax.f32 %v1028_v55, 0.0 }
 0x186   : > { %v1337_v7 = vmax.f32 %v1221_v14, %v1225_v20  ;;  %v4139_v20 = vadd.f32 %v3704_v52, %v4007_v17  ;;  %v1353_v29 = vmax.f32 %v1253_v47, %v1257_v56 }
 0x188   : > { %v1408_v26 = vrot.slane %v1337_v7, 1  ;;  %v1107_v55 = vpop.f32.mrf.mxu2  ;;  %v1187_v34 = vpop.f32.mrf.mxu3 }
 0x189   : > { %v1108_v11 = vadd.f32 %v3704_v52, %v1107_v55  ;;  %v949_v45 = vpop.f32.mrf.mxu0  ;;  %v1188_v40 = vadd.f32 %v3704_v52, %v1187_v34  ;;  %v1029_v36 = vpop.f32.mrf.mxu1  ;;  %v1412_v34 = vrot.slane %v1353_v29, 1 }
 0x18a   : > { %v1440_v25 = vmax.f32 %v1337_v7, %v1408_v26  ;;  %v950_v57 = vadd.f32 %v3704_v52, %v949_v45  ;;  %v1030_v47 = vadd.f32 %v3704_v52, %v1029_v36 }
 0x18b   : > { %v1289_v17 = vmax.f32 %v1108_v11, 0.0  ;;  %v1321_v55 = vmax.f32 %v1188_v40, 0.0  ;;  %v4972_v11 = vld [vmem:[#allocation2_spill] sm:$0xff] }
 0x18c   : > { %v1456_v56 = vpack.c.bf16 %v1440_v25, %v1440_v25  ;;  %v1226_v31 = vmax.f32 %v950_v57, 0.0  ;;  %v1258_v10 = vmax.f32 %v1030_v47, 0.0 }
 0x18d   : > { %v1369_v14 = vmax.f32 %v1285_v43, %v1289_v17  ;;  %v1385_v25 = vmax.f32 %v1317_v1, %v1321_v55  ;;  %v1444_v17 = vmax.f32 %v1353_v29, %v1412_v34  ;;  %v4971_v55 = vmax.f32 %v4074_v39, 0.0 }
 0x18e   : > { %v4154_v58 = vunpack.c.l.b16 %v1456_v56  ;;  %v1338_v63 = vmax.f32 %v1222_v61, %v1226_v31  ;;  %v4973_v43 = vrot.slane %v4972_v11, 4 }
 0x18f   : > { %v1416_v36 = vrot.slane %v1369_v14, 1  ;;  %v1354_v40 = vmax.f32 %v4971_v55, %v1258_v10  ;;  %v1420_v34 = vrot.slane %v1385_v25, 1  ;;  %v4181_v10 = vadd.f32 %v3704_v52, %v4096_v21 }
 0x190   : > { %v1507_v57 = vrot.slane %v4154_v58, 5  ;;  %v1109_v7 = vpop.f32.mrf.mxu2  ;;  %v1679_v61 = vrot.slane %v1338_v63, 1  ;;  %v1189_v47 = vpop.f32.mrf.mxu3 }
 0x191   : > { %v1448_v31 = vmax.f32 %v1369_v14, %v1416_v36  ;;  %v952_v56 = vpop.f32.mrf.mxu0  ;;  %v1110_v26 = vadd.f32 %v3704_v52, %v1109_v7  ;;  %v1190_v45 = vadd.f32 %v3704_v52, %v1189_v47  ;;  %v1032_v51 = vpop.f32.mrf.mxu1  ;;  %v1452_v46 = vmax.f32 %v1385_v25, %v1420_v34 }
 0x192   : > { %v1509_v1 = vsel %vm1508_vm5, %v1507_v57, %v3774_v50  ;;  %v1711_v36 = vmax.f32 %v1338_v63, %v1679_v61  ;;  %v4177_v50 = vadd.f32 %v3704_v52, %v4076_v48  ;;  %v953_v7 = vadd.f32 %v3704_v52, %v952_v56 }
 0x193   : > { %v4173_v29 = vsel %vm1511_vm6, %v4973_v43, %v1509_v1  ;;  %v1464_v14 = vpack.c.bf16 %v1448_v31, %v1448_v31  ;;  %v1290_v39 = vmax.f32 %v1110_v26, 0.0  ;;  %v1460_v57 = vpack.c.bf16 %v1444_v17, %v1444_v17 }
 0x194   : > { %4974 = vst [vmem:[#allocation2_spill] sm:$0xff] %v4173_v29  ;;  %v1727_v43 = vpack.c.bf16 %v1711_v36, %v1711_v36  ;;  %v1322_v31 = vmax.f32 %v1190_v45, 0.0  ;;  %v1683_v1 = vrot.slane %v1354_v40, 1  ;;  %v4975_v63 = vmax.f32 %v4086_v24, 0.0 }
 0x195   : > { %v4184_v47 = vunpack.c.l.b16 %v1464_v14  ;;  %v1227_v55 = vmax.f32 %v953_v7, 0.0  ;;  %v1033_v48 = vadd.f32 %v3704_v52, %v1032_v51  ;;  %v4196_v36 = vunpack.c.l.b16 %v1460_v57  ;;  %v4978_v7 = vld [vmem:[#allocation3_spill] sm:$0xff] }
 0x196   : > { %v1370_v61 = vmax.f32 %v4975_v63, %v1290_v39  ;;  %v4194_v14 = vunpack.c.l.b16 %v1727_v43  ;;  %v4976_v51 = vmax.f32 %v4090_v15, 0.0  ;;  %v4977_v25 = vmax.f32 %v4094_v5, 0.0 }
 0x197   : > { %v1526_v29 = vrot.slane %v4184_v47, 5  ;;  %v4979_v63 = vrot.slane %v4978_v7, 4  ;;  %v1715_v43 = vmax.f32 %v1354_v40, %v1683_v1  ;;  %v1259_v56 = vmax.f32 %v1033_v48, 0.0 }
 0x198   : > { %v1687_v45 = vrot.slane %v1370_v61, 1  ;;  %v1386_v39 = vmax.f32 %v4976_v51, %v1322_v31  ;;  %v1339_v34 = vmax.f32 %v4977_v25, %v1227_v55  ;;  %v1776_v21 = vrot.slane %v4194_v14, 5  ;;  %v1192_v48 = vpop.f32.mrf.mxu3 }
 0x199   : > { %v1527_v24 = vsel %vm1508_vm5, %v1526_v29, %v3806_v53  ;;  %v1468_v12 = vpack.c.bf16 %v1452_v46, %v1452_v46  ;;  %v4980_v53 = vrot.slane %v3629_v59, 3  ;;  %v1112_v29 = vpop.f32.mrf.mxu2  ;;  %v4981_v31 = vrot.slane %v3921_v3, 2  ;;  %v4982_v46 = vld [vmem:[#allocation4_spill] sm:$0xff] }
 0x19a   : > { %v1529_v26 = vsel %vm1511_vm6, %v4979_v63, %v1527_v24  ;;  %v1777_v40 = vsel %vm1508_vm5, %v1776_v21, %v3820_v54  ;;  %v1719_v1 = vmax.f32 %v1370_v61, %v1687_v45  ;;  %v954_v24 = vpop.f32.mrf.mxu0  ;;  %v4983_v25 = vrot.slane %v4982_v46, 4 }
 0x19b   : > { %v1531_v15 = vsel %vm1514_vm7, %v4980_v53, %v1529_v26  ;;  %v1691_v63 = vrot.slane %v1386_v39, 1  ;;  %v1939_v53 = vrot.slane %v1339_v34, 1  ;;  %v1731_v57 = vpack.c.bf16 %v1715_v43, %v1715_v43 }
 0x19c   : > { %v1533_v55 = vsel %vm1517_vm8, %v4981_v31, %v1531_v15  ;;  %v4223_v26 = vsel %vm1511_vm6, %v4983_v25, %v1777_v40  ;;  %v1735_v17 = vpack.c.bf16 %v1719_v1, %v1719_v1  ;;  %v4985_v15 = vmax.f32 %v4100_v32, 0.0 }
 0x19d   : > { %4984 = vst [vmem:[#allocation3_spill] sm:$0xff] %v4223_v26  ;;  %v1113_v54 = vadd.f32 %v3704_v52, %v1112_v29  ;;  %v4228_v61 = vunpack.c.l.b16 %v1468_v12  ;;  %v1971_v21 = vmax.f32 %v1339_v34, %v1939_v53  ;;  %v1193_v45 = vadd.f32 %v3704_v52, %v1192_v48  ;;  %v4989_v12 = vld [vmem:[#allocation5_spill] sm:$0xff] }
 0x19e   : > { %v1355_v31 = vmax.f32 %v4985_v15, %v1259_v56  ;;  %v955_v51 = vadd.f32 %v3704_v52, %v954_v24  ;;  %v4234_v25 = vunpack.c.l.b16 %v1735_v17  ;;  %v1723_v1 = vmax.f32 %v1386_v39, %v1691_v63  ;;  %v1034_v15 = vpop.f32.mrf.mxu1 }
 0x19f   : > { %v1291_v43 = vmax.f32 %v1113_v54, 0.0  ;;  %v1987_v26 = vpack.c.bf16 %v1971_v21, %v1971_v21  ;;  %v1323_v32 = vmax.f32 %v1193_v45, 0.0  ;;  %v4237_v29 = vunpack.c.l.b16 %v1731_v57 }
 0x1a0   : > { %v1228_v56 = vmax.f32 %v955_v51, 0.0  ;;  %v1790_v34 = vrot.slane %v4234_v25, 5  ;;  %v1943_v48 = vrot.slane %v1355_v31, 1  ;;  %v1534_v24 = vrot.slane %v4228_v61, 1 }
 0x1a1   : > { %v4242_v5 = vunpack.c.l.b16 %v1987_v26  ;;  %v4986_v17 = vmax.f32 %v4125_v35, 0.0  ;;  %v4987_v63 = vmax.f32 %v4135_v60, 0.0  ;;  %v4988_v57 = vmax.f32 %v4139_v20, 0.0 }
 0x1a2   : > { %v1791_v51 = vsel %vm1508_vm5, %v1790_v34, %v3861_v16  ;;  %v1035_v45 = vadd.f32 %v3704_v52, %v1034_v15  ;;  %v4990_v53 = vrot.slane %v4989_v12, 4  ;;  %v1739_v19 = vpack.c.bf16 %v1723_v1, %v1723_v1 }
 0x1a3   : > { %v1371_v39 = vmax.f32 %v4986_v17, %v1291_v43  ;;  %v1387_v54 = vmax.f32 %v4987_v63, %v1323_v32  ;;  %v1340_v21 = vmax.f32 %v4988_v57, %v1228_v56  ;;  %v2036_v35 = vrot.slane %v4242_v5, 5  ;;  %v5003_v17 = vld [vmem:[#allocation10_spill] sm:$0xff] }
 0x1a4   : > { %v1793_v26 = vsel %vm1511_vm6, %v4990_v53, %v1791_v51  ;;  %v4259_v43 = vsel %vm1520_vm9, %v1534_v24, %v1533_v55  ;;  %v4992_v16 = vrot.slane %v3733_v9, 3  ;;  %v1975_v20 = vmax.f32 %v1355_v31, %v1943_v48  ;;  %v4994_v51 = vld [vmem:[#allocation6_spill] sm:$0xff] }
 0x1a5   : > { %4991 = vst [vmem:[#allocation4_spill] sm:$0xff] %v4259_v43  ;;  %v1947_v32 = vrot.slane %v1371_v39, 1  ;;  %v4993_v56 = vrot.slane %v3970_v0, 2  ;;  %v2037_v34 = vsel %vm1508_vm5, %v2036_v35, %v3866_v27  ;;  %v1951_v53 = vrot.slane %v1387_v54, 1 }
 0x1a6   : > { %v1795_v60 = vsel %vm1514_vm7, %v4992_v16, %v1793_v26  ;;  %v2199_v1 = vrot.slane %v1340_v21, 1  ;;  %v4995_v55 = vrot.slane %v4994_v51, 4  ;;  %v1260_v57 = vmax.f32 %v1035_v45, 0.0 }
 0x1a7   : > { %v1797_v15 = vsel %vm1517_vm8, %v4993_v56, %v1795_v60  ;;  %v1979_v63 = vmax.f32 %v1371_v39, %v1947_v32  ;;  %v4278_v26 = vunpack.c.l.b16 %v1739_v19  ;;  %v4996_v60 = vrot.slane %v4154_v58, 3 }
 0x1a8   : > { %v4273_v24 = vsel %vm1511_vm6, %v4995_v55, %v2037_v34  ;;  %v2231_v16 = vmax.f32 %v1340_v21, %v2199_v1  ;;  %v4997_v39 = vrot.slane %v4154_v58, 1  ;;  %v1991_v32 = vpack.c.bf16 %v1975_v20, %v1975_v20 }
 0x1a9   : > { %v1995_v35 = vpack.c.bf16 %v1979_v63, %v1979_v63  ;;  %v1627_v56 = vsel %vm1508_vm5, %v4996_v60, %v3941_v62  ;;  %v1983_v34 = vmax.f32 %v1387_v54, %v1951_v53  ;;  %v4998_v19 = vrot.slane %v4972_v11, 2 }
 0x1aa   : > { %v1588_v45 = vsel %vm1508_vm5, %v4997_v39, %v3957_v8  ;;  %v2247_v55 = vpack.c.bf16 %v2231_v16, %v2231_v16  ;;  %v4999_v63 = vmax.f32 %v4148_v42, 0.0  ;;  %v5000_v48 = vrot.slane %v3534_v44, 1 }
 0x1ab   : > { %v1629_v21 = vsel %vm1511_vm6, %v4998_v19, %v1627_v56  ;;  %v4292_v1 = vunpack.c.l.b16 %v1995_v35  ;;  %v1589_v60 = vsel %vm1511_vm6, %v4972_v11, %v1588_v45  ;;  %v1798_v16 = vrot.slane %v4278_v26, 1 }
 0x1ac   : > { %v1356_v31 = vmax.f32 %v4999_v63, %v1260_v57  ;;  %v1631_v62 = vsel %vm1514_vm7, %v5000_v48, %v1629_v21  ;;  %v4303_v20 = vunpack.c.l.b16 %v2247_v55  ;;  %v1633_v48 = vrot.slane %v4196_v36, 7 }
 0x1ad   : > { %v1632_v53 = vsel %vm1517_vm8, %v3906_v13, %v1631_v62  ;;  %v2050_v57 = vrot.slane %v4292_v1, 5  ;;  %v4312_v56 = vunpack.c.l.b16 %v1991_v32  ;;  %v1999_v39 = vpack.c.bf16 %v1983_v34, %v1983_v34  ;;  %v5001_v62 = vld [vmem:[#allocation7_spill] sm:$0xff] }
 0x1ae   : > { %v2296_v45 = vrot.slane %v4303_v20, 5  ;;  %v2203_v19 = vrot.slane %v1356_v31, 1  ;;  %v1634_v21 = vsel %vm1520_vm9, %v1633_v48, %v1632_v53  ;;  %v1594_v63 = vrot.slane %v4196_v36, 5  ;;  %v5007_v48 = vld [vmem:[#allocation8_spill] sm:$0xff] }
 0x1af   : > { %v2051_v55 = vsel %vm1508_vm5, %v2050_v57, %v3910_v4  ;;  %v5002_v54 = vrot.slane %v5001_v62, 4  ;;  %v1649_v32 = vpack.c.b16 %v1634_v21, %v1634_v21  ;;  %v5004_v34 = vrot.slane %v3534_v44, 7  ;;  %v5005_v4 = vld [vmem:[#allocation23_spill] sm:$0xff] }
 0x1b0   : > { %v2297_v42 = vsel %vm1508_vm5, %v2296_v45, %v5003_v17  ;;  %v2147_v27 = vrot.slane %v4242_v5, 3  ;;  %v5006_v57 = vrot.slane %v5005_v4, 3  ;;  %v5008_v40 = vrot.slane %v5007_v48, 4  ;;  %v1114_v45 = vpop.f32.mrf.mxu2 }
 0x1b1   : > { %v2053_v8 = vsel %vm1511_vm6, %v5002_v54, %v2051_v55  ;;  %v1591_v35 = vsel %vm1514_vm7, %v5004_v34, %v1589_v60  ;;  %v5009_v54 = vrot.slane %v3906_v13, 6  ;;  %v4340_v55 = vsel %vm1520_vm9, %v1798_v16, %v1797_v15  ;;  %1651 = vrot.lane.b32.xlu2 %v1649_v32, %s2959_s8 }
 0x1b2   : > { %v2055_v53 = vsel %vm1514_vm7, %v5006_v57, %v2053_v8  ;;  %v4334_v43 = vsel %vm1511_vm6, %v5008_v40, %v2297_v42  ;;  %v5010_v60 = vrot.slane %v4030_v6, 2  ;;  %v5011_v40 = vrot.slane %v4154_v58, 7 }
 0x1b3   : > { %v1593_v17 = vsel %vm1517_vm8, %v5009_v54, %v1591_v35  ;;  %v2044_v35 = vrot.slane %v4312_v56, 1  ;;  %v4354_v34 = vunpack.c.l.b16 %v1999_v39  ;;  %v5012_v16 = vrot.slane %v4972_v11, 6 }
 0x1b4   : > { %v4345_v21 = vsel %vm1517_vm8, %v5010_v60, %v2055_v53  ;;  %v1595_v8 = vsel %vm1520_vm9, %v1594_v63, %v1593_v17  ;;  %v1548_v42 = vsel %vm1508_vm5, %v5011_v40, %v3975_v33  ;;  %v1194_v53 = vpop.f32.mrf.mxu3  ;;  %v4359_v54 = vmax.f32 %v1356_v31, %v2203_v19  ;;  %v2949_v40 = vld [vmem:[%s4867_s2] ss:$0 sm:$0xff] }
 0x1b5   : > { %v1610_v15 = vpack.c.b16 %v1595_v8, %v1595_v8  ;;  %v1550_v57 = vsel %vm1511_vm6, %v5012_v16, %v1548_v42  ;;  %v5013_v32 = vrot.slane %v3534_v44, 5  ;;  %v1555_v58 = vrot.slane %v4196_v36, 3 }
 0x1b6   : > { %v1115_v33 = vadd.f32 %v3704_v52, %v1114_v45  ;;  %v2084_v17 = vrot.slane %v4292_v1, 7  ;;  %v5014_v11 = vrot.slane %v3906_v13, 4  ;;  %v5015_v31 = vrot.slane %v4184_v47, 3 }
 0x1b7   : > { %v1552_v63 = vsel %vm1514_vm7, %v5013_v32, %v1550_v57  ;;  %1612 = vrot.lane.b32.xlu1 %v1610_v15, %s2960_s9  ;;  %v5016_v60 = vrot.slane %v4184_v47, 1  ;;  %v1195_v42 = vadd.f32 %v2949_v40, %v1194_v53  ;;  %v5017_v15 = vrot.slane %v4978_v7, 2 }
 0x1b8   : > { %v1554_v39 = vsel %vm1517_vm8, %v5014_v11, %v1552_v63  ;;  %v1641_v19 = vsel %vm1508_vm5, %v5015_v31, %v3984_v30  ;;  %v1292_v45 = vmax.f32 %v1115_v33, 0.0  ;;  %v5018_v30 = vrot.slane %v3629_v59, 1 }
 0x1b9   : > { %v1602_v8 = vsel %vm1508_vm5, %v5016_v60, %v3988_v41  ;;  %v1556_v52 = vsel %vm1520_vm9, %v1555_v58, %v1554_v39  ;;  %v1643_v16 = vsel %vm1511_vm6, %v5017_v15, %v1641_v19  ;;  %v1647_v63 = vrot.slane %v4228_v61, 7 }
 0x1ba   : > { %v1571_v57 = vpack.c.b16 %v1556_v52, %v1556_v52  ;;  %v1645_v32 = vsel %vm1514_vm7, %v5018_v30, %v1643_v16  ;;  %v1603_v41 = vsel %vm1511_vm6, %v4978_v7, %v1602_v8  ;;  %v5019_v58 = vmax.f32 %v4177_v50, 0.0  ;;  %v5022_v52 = vld [vmem:[#allocation26_spill] sm:$0xff] }
 0x1bb   : > { %v1646_v53 = vsel %vm1517_vm8, %v3921_v3, %v1645_v32  ;;  %v5020_v11 = vrot.slane %v3629_v59, 7  ;;  %v1608_v31 = vrot.slane %v4228_v61, 5  ;;  %v2123_v19 = vrot.slane %v4292_v1, 1 }
 0x1bc   : > { %v1372_v33 = vmax.f32 %v5019_v58, %v1292_v45  ;;  %1573 = vrot.lane.b32.xlu0 %v1571_v57, %s2961_s14  ;;  %v1648_v60 = vsel %vm1520_vm9, %v1647_v63, %v1646_v53  ;;  %v5021_v8 = vrot.slane %v3921_v3, 6  ;;  %v5023_v45 = vrot.slane %v4184_v47, 7 }
 0x1bd   : > { %v1605_v39 = vsel %vm1514_vm7, %v5020_v11, %v1603_v41  ;;  %v1324_v16 = vmax.f32 %v1195_v42, 0.0  ;;  %v1650_v30 = vpack.c.b16 %v1648_v60, %v1648_v60  ;;  %v2161_v41 = vrot.slane %v4292_v1, 3 }
 0x1be   : > { %v1607_v50 = vsel %vm1517_vm8, %v5021_v8, %v1605_v39  ;;  %v1562_v40 = vsel %vm1508_vm5, %v5023_v45, %v5022_v52  ;;  %v2207_v15 = vrot.slane %v1372_v33, 1  ;;  %v5024_v57 = vrot.slane %v4978_v7, 6 }
 0x1bf   : > { %v1609_v32 = vsel %vm1520_vm9, %v1608_v31, %v1607_v50  ;;  %v5025_v53 = vrot.slane %v4194_v14, 1  ;;  %1653 = vrot.lane.b32.xlu2 %v1650_v30, %s2959_s8  ;;  %v5026_v42 = vrot.slane %v3629_v59, 5  ;;  %v1569_v31 = vrot.slane %v4228_v61, 3  ;;  %v5028_v50 = vld [vmem:[#allocation18_spill] sm:$0xff]  ;;  %v5030_v59 = vld [vmem:[#allocation28_spill] sm:$0xff] }
 0x1c0   : > { %v1611_v58 = vpack.c.b16 %v1609_v32, %v1609_v32  ;;  %v1564_v63 = vsel %vm1511_vm6, %v5024_v57, %v1562_v40  ;;  %v2239_v47 = vmax.f32 %v1372_v33, %v2207_v15  ;;  %v5027_v7 = vrot.slane %v3921_v3, 4 }
 0x1c1   : > { %v1850_v11 = vsel %vm1508_vm5, %v5025_v53, %v4001_v18  ;;  %v1566_v39 = vsel %vm1514_vm7, %v5026_v42, %v1564_v63  ;;  %v5029_v18 = vrot.slane %v5028_v50, 7  ;;  %v1856_v52 = vrot.slane %v4237_v29, 5  ;;  %v5035_v42 = vld [vmem:[#allocation27_spill] sm:$0xff] }
 0x1c2   : > { %v1851_v60 = vsel %vm1511_vm6, %v4982_v46, %v1850_v11  ;;  %1614 = vrot.lane.b32.xlu1 %v1611_v58, %s2960_s9  ;;  %v1568_v8 = vsel %vm1517_vm8, %v5027_v7, %v1566_v39  ;;  %v5031_v45 = vrot.slane %v4234_v25, 7  ;;  %v2255_v40 = vpack.c.bf16 %v2239_v47, %v2239_v47 }
 0x1c3   : > { %v1853_v33 = vsel %vm1514_vm7, %v5029_v18, %v1851_v60  ;;  %v5032_v15 = vmax.f32 %v4181_v10, 0.0  ;;  %v1570_v32 = vsel %vm1520_vm9, %v1569_v31, %v1568_v8  ;;  %v5033_v3 = vrot.slane %v3968_v38, 6 }
 0x1c4   : > { %v1825_v61 = vsel %vm1508_vm5, %v5031_v45, %v5030_v59  ;;  %v1572_v57 = vpack.c.b16 %v1570_v32, %v1570_v32  ;;  %v5034_v53 = vrot.slane %v4989_v12, 6  ;;  %v5036_v39 = vrot.slane %v4194_v14, 7  ;;  %v5040_v45 = vld [vmem:[#allocation13_spill] sm:$0xff] }
 0x1c5   : > { %v1388_v30 = vmax.f32 %v5032_v15, %v1324_v16  ;;  %v1855_v58 = vsel %vm1517_vm8, %v5033_v3, %v1853_v33  ;;  %v2058_v10 = vrot.slane %v4354_v34, 1  ;;  %v2330_v16 = vrot.slane %v4303_v20, 7 }
 0x1c6   : > { %v1857_v63 = vsel %vm1520_vm9, %v1856_v52, %v1855_v58  ;;  %v1827_v11 = vsel %vm1511_vm6, %v5034_v53, %v1825_v61  ;;  %v1811_v47 = vsel %vm1508_vm5, %v5036_v39, %v5035_v42  ;;  %v4454_v31 = vunpack.c.l.b16 %v2255_v40  ;;  %1575 = vrot.lane.b32.xlu0 %v1572_v57, %s2961_s14 }
 0x1c7   : > { %v5037_v60 = vrot.slane %v3733_v9, 5  ;;  %v5038_v8 = vrot.slane %v3970_v0, 4  ;;  %v1832_v33 = vrot.slane %v4278_v26, 3  ;;  %v5039_v52 = vrot.slane %v4982_v46, 6 }
 0x1c8   : > { %v5041_v61 = vrot.slane %v4242_v5, 1  ;;  %v2251_v15 = vpack.c.bf16 %v4359_v54, %v4359_v54  ;;  %v2310_v32 = vrot.slane %v4454_v31, 5  ;;  %v2211_v3 = vrot.slane %v1388_v30, 1 }
 0x1c9   : > { %v1829_v7 = vsel %vm1514_vm7, %v5037_v60, %v1827_v11  ;;  %v1813_v59 = vsel %vm1511_vm6, %v5039_v52, %v1811_v47  ;;  %v1872_v58 = vpack.c.b16 %v1857_v63, %v1857_v63  ;;  %v5042_v53 = vrot.slane %v5028_v50, 5  ;;  %v5043_v47 = vld [vmem:[#allocation15_spill] sm:$0xff]  ;;  %v5047_v52 = vld [vmem:[#allocation9_spill] sm:$0xff] }
 0x1ca   : > { %v1831_v18 = vsel %vm1517_vm8, %v5038_v8, %v1829_v7  ;;  %v2110_v40 = vsel %vm1508_vm5, %v5041_v61, %v5040_v45  ;;  %v1818_v42 = vrot.slane %v4237_v29, 3  ;;  %v2311_v60 = vsel %vm1508_vm5, %v2310_v32, %v5043_v47  ;;  %v5045_v8 = vld [vmem:[#allocation22_spill] sm:$0xff] }
 0x1cb   : > { %v1833_v57 = vsel %vm1520_vm9, %v1832_v33, %v1831_v18  ;;  %v1815_v11 = vsel %vm1514_vm7, %v5042_v53, %v1813_v59  ;;  %v2111_v39 = vsel %vm1511_vm6, %v4994_v51, %v2110_v40  ;;  %1874 = vrot.lane.b32.xlu2 %v1872_v58, %s2960_s9  ;;  %v5044_v7 = vrot.slane %v3968_v38, 4  ;;  %v5050_v53 = vld [vmem:[#allocation25_spill] sm:$0xff] }
 0x1cc   : > { %v1835_v54 = vpack.c.b16 %v1833_v57, %v1833_v57  ;;  %v5046_v18 = vrot.slane %v5045_v8, 7  ;;  %v5048_v59 = vrot.slane %v5047_v52, 4  ;;  %v5049_v40 = vrot.slane %v3991_v37, 6 }
 0x1cd   : > { %v1817_v63 = vsel %vm1517_vm8, %v5044_v7, %v1815_v11  ;;  %v2116_v58 = vrot.slane %v4312_v56, 5  ;;  %v2243_v57 = vmax.f32 %v1388_v30, %v2211_v3  ;;  %v5051_v47 = vrot.slane %v5050_v53, 3  ;;  %v5052_v7 = vld [vmem:[#allocation29_spill] sm:$0xff] }
 0x1ce   : > { %v2113_v33 = vsel %vm1514_vm7, %v5046_v18, %v2111_v39  ;;  %v2313_v45 = vsel %vm1511_vm6, %v5048_v59, %v2311_v60  ;;  %v1819_v61 = vsel %vm1520_vm9, %v1818_v42, %v1817_v63  ;;  %1838 = vrot.lane.b32.xlu1 %v1835_v54, %s2961_s14  ;;  %v5053_v18 = vrot.slane %v4242_v5, 7 }
 0x1cf   : > { %v2115_v32 = vsel %vm1517_vm8, %v5049_v40, %v2113_v33  ;;  %v2315_v11 = vsel %vm1514_vm7, %v5051_v47, %v2313_v45  ;;  %v1834_v39 = vpack.c.b16 %v1819_v61, %v1819_v61  ;;  %v5054_v42 = vrot.slane %v4082_v23, 2 }
 0x1d0   : > { %v2071_v60 = vsel %vm1508_vm5, %v5053_v18, %v5052_v7  ;;  %v2117_v33 = vsel %vm1520_vm9, %v2116_v58, %v2115_v32  ;;  %v5055_v30 = vrot.slane %v4994_v51, 6  ;;  %v5056_v54 = vrot.slane %v4194_v14, 3 }
 0x1d1   : > { %v4509_v63 = vsel %vm1517_vm8, %v5054_v42, %v2315_v11  ;;  %v2407_v45 = vrot.slane %v4303_v20, 3  ;;  %v5057_v61 = vrot.slane %v5045_v8, 5  ;;  %v2078_v47 = vrot.slane %v4312_v56, 3  ;;  %1836 = vrot.lane.b32.xlu0 %v1834_v39, %s2961_s14 }
 0x1d2   : > { %v2073_v3 = vsel %vm1511_vm6, %v5055_v30, %v2071_v60  ;;  %v1888_v59 = vsel %vm1508_vm5, %v5056_v54, %v4028_v49  ;;  %v5058_v11 = vrot.slane %v4982_v46, 2  ;;  %v4527_v58 = vunpack.c.l.b16 %v2251_v15  ;;  %v5061_v15 = vld [vmem:[#allocation12_spill] sm:$0xff] }
 0x1d3   : > { %v2075_v40 = vsel %vm1514_vm7, %v5057_v61, %v2073_v3  ;;  %v2132_v7 = vpack.c.b16 %v2117_v33, %v2117_v33  ;;  %v5059_v14 = vrot.slane %v3991_v37, 4  ;;  %v5060_v18 = vrot.slane %v5028_v50, 1 }
 0x1d4   : > { %v1890_v32 = vsel %vm1511_vm6, %v5058_v11, %v1888_v59  ;;  %v1894_v30 = vrot.slane %v4237_v29, 7  ;;  %v2331_v3 = vsel %vm1508_vm5, %v2330_v16, %v5061_v15  ;;  %v2369_v39 = vrot.slane %v4303_v20, 1  ;;  %v5063_v11 = vld [vmem:[#allocation24_spill] sm:$0xff] }
 0x1d5   : > { %v2077_v49 = vsel %vm1517_vm8, %v5059_v14, %v2075_v40  ;;  %v1892_v60 = vsel %vm1514_vm7, %v5060_v18, %v1890_v32  ;;  %v2259_v33 = vpack.c.bf16 %v2243_v57, %v2243_v57  ;;  %v5062_v54 = vrot.slane %v5007_v48, 6  ;;  %2134 = vrot.lane.b32.xlu2 %v2132_v7, %s2960_s9 }
 0x1d6   : > { %v2079_v42 = vsel %vm1520_vm9, %v2078_v47, %v2077_v49  ;;  %v1893_v46 = vsel %vm1517_vm8, %v3968_v38, %v1892_v60  ;;  %v2148_v61 = vsel %vm1508_vm5, %v2147_v27, %v4034_v28  ;;  %v5064_v32 = vrot.slane %v5063_v11, 5 }
 0x1d7   : > { %v2333_v59 = vsel %vm1511_vm6, %v5062_v54, %v2331_v3  ;;  %v2094_v40 = vpack.c.b16 %v2079_v42, %v2079_v42  ;;  %v1895_v47 = vsel %vm1520_vm9, %v1894_v30, %v1893_v46  ;;  %v5065_v57 = vrot.slane %v4994_v51, 2  ;;  %v5069_v30 = vld [vmem:[#allocation16_spill] sm:$0xff] }
 0x1d8   : > { %v2335_v16 = vsel %vm1514_vm7, %v5064_v32, %v2333_v59  ;;  %v5066_v49 = vrot.slane %v4050_v22, 4  ;;  %v2338_v5 = vrot.slane %v4527_v58, 3  ;;  %v5067_v28 = vrot.slane %v5045_v8, 1 }
 0x1d9   : > { %v2150_v14 = vsel %vm1511_vm6, %v5065_v57, %v2148_v61  ;;  %v5068_v7 = vrot.slane %v4234_v25, 1  ;;  %2096 = vrot.lane.b32.xlu1 %v2094_v40, %s2961_s14  ;;  %v2154_v42 = vrot.slane %v4312_v56, 7  ;;  %v2408_v15 = vsel %vm1508_vm5, %v2407_v45, %v5069_v30 }
 0x1da   : > { %v2337_v18 = vsel %vm1517_vm8, %v5066_v49, %v2335_v16  ;;  %v2152_v27 = vsel %vm1514_vm7, %v5067_v28, %v2150_v14  ;;  %v1910_v3 = vpack.c.b16 %v1895_v47, %v1895_v47  ;;  %v5070_v59 = vrot.slane %v3733_v9, 7  ;;  %v5074_v28 = vld [vmem:[#allocation11_spill] sm:$0xff] }
 0x1db   : > { %v1864_v60 = vsel %vm1508_vm5, %v5068_v7, %v4038_v2  ;;  %v2153_v51 = vsel %vm1517_vm8, %v3991_v37, %v2152_v27  ;;  %v2339_v54 = vsel %vm1520_vm9, %v2338_v5, %v2337_v18  ;;  %v5071_v61 = vrot.slane %v5007_v48, 2 }
 0x1dc   : > { %v1865_v46 = vsel %vm1511_vm6, %v4989_v12, %v1864_v60  ;;  %v2383_v32 = vrot.slane %v4454_v31, 1  ;;  %v2155_v16 = vsel %vm1520_vm9, %v2154_v42, %v2153_v51  ;;  %v5072_v57 = vrot.slane %v3970_v0, 6  ;;  %1912 = vrot.lane.b32.xlu0 %v1910_v3, %s2959_s8  ;;  %v5075_v42 = vld [vmem:[#allocation30_spill] sm:$0xff] }
 0x1dd   : > { %v1867_v2 = vsel %vm1514_vm7, %v5070_v59, %v1865_v46  ;;  %v2410_v40 = vsel %vm1511_vm6, %v5071_v61, %v2408_v15  ;;  %v5073_v47 = vrot.slane %v5063_v11, 1  ;;  %v2344_v49 = vrot.slane %v4454_v31, 7 }
 0x1de   : > { %v1869_v45 = vsel %vm1517_vm8, %v5072_v57, %v1867_v2  ;;  %v4593_v18 = vunpack.c.l.b16 %v2259_v33  ;;  %v2124_v27 = vsel %vm1508_vm5, %v2123_v19, %v5074_v28  ;;  %v2354_v7 = vpack.c.b16 %v2339_v54, %v2339_v54 }
 0x1df   : > { %v2412_v14 = vsel %vm1514_vm7, %v5073_v47, %v2410_v40  ;;  %v1870_v60 = vrot.slane %v4278_v26, 5  ;;  %v2125_v51 = vsel %vm1511_vm6, %v5001_v62, %v2124_v27  ;;  %v2085_v33 = vsel %vm1508_vm5, %v2084_v17, %v5075_v42  ;;  %v5082_v27 = vld [vmem:[#allocation14_spill] sm:$0xff] }
 0x1e0   : > { %v2413_v5 = vsel %vm1517_vm8, %v4050_v22, %v2412_v14  ;;  %v2170_v46 = vpack.c.b16 %v2155_v16, %v2155_v16  ;;  %v2414_v30 = vrot.slane %v4527_v58, 7  ;;  %v5076_v15 = vrot.slane %v5005_v4, 7  ;;  %2356 = vrot.lane.b32.xlu2 %v2354_v7, %s2961_s14  ;;  %v5080_v16 = vld [vmem:[#allocation31_spill] sm:$0xff] }
 0x1e1   : > { %v5077_v19 = vrot.slane %v5001_v62, 6  ;;  %v1871_v59 = vsel %vm1520_vm9, %v1870_v60, %v1869_v45  ;;  %v5078_v17 = vrot.slane %v4030_v6, 6  ;;  %v5079_v61 = vrot.slane %v5005_v4, 5 }
 0x1e2   : > { %v2127_v3 = vsel %vm1514_vm7, %v5076_v15, %v2125_v51  ;;  %v2384_v57 = vsel %vm1508_vm5, %v2383_v32, %v5080_v16  ;;  %v2421_v47 = vrot.slane %v4454_v31, 3  ;;  %v5081_v14 = vrot.slane %v4030_v6, 4  ;;  %2172 = vrot.lane.b32.xlu1 %v2170_v46, %s2959_s8 }
 0x1e3   : > { %v2087_v54 = vsel %vm1511_vm6, %v5077_v19, %v2085_v33  ;;  %v2129_v2 = vsel %vm1517_vm8, %v5078_v17, %v2127_v3  ;;  %v2385_v45 = vsel %vm1511_vm6, %v5047_v52, %v2384_v57  ;;  %v2345_v7 = vsel %vm1508_vm5, %v2344_v49, %v5082_v27 }
 0x1e4   : > { %v2089_v40 = vsel %vm1514_vm7, %v5079_v61, %v2087_v54  ;;  %v2415_v60 = vsel %vm1520_vm9, %v2414_v30, %v2413_v5  ;;  %v2130_v51 = vrot.slane %v4354_v34, 5  ;;  %v5083_v32 = vrot.slane %v5050_v53, 7  ;;  %v5088_v61 = vld [vmem:[#allocation17_spill] sm:$0xff] }
 0x1e5   : > { %v2091_v28 = vsel %vm1517_vm8, %v5081_v14, %v2089_v40  ;;  %v5084_v42 = vrot.slane %v5047_v52, 6  ;;  %v2318_v15 = vrot.slane %v4593_v18, 1  ;;  %v1873_v3 = vpack.c.b16 %v1871_v59, %v1871_v59 }
 0x1e6   : > { %v2387_v31 = vsel %vm1514_vm7, %v5083_v32, %v2385_v45  ;;  %v5085_v49 = vrot.slane %v4082_v23, 6  ;;  %v5086_v46 = vrot.slane %v5050_v53, 5  ;;  %v4659_v19 = vsel %vm1520_vm9, %v2058_v10, %v4345_v21  ;;  %v5089_v10 = vld [vmem:[#allocation21_spill] sm:$0xff]  ;;  %v5094_v32 = vld [vmem:[#allocation19_spill] sm:$0xff] }
 0x1e7   : > { %v2347_v33 = vsel %vm1511_vm6, %v5084_v42, %v2345_v7  ;;  %v2131_v54 = vsel %vm1520_vm9, %v2130_v51, %v2129_v2  ;;  %v5087_v59 = vrot.slane %v4082_v23, 4  ;;  %v2370_v40 = vsel %vm1508_vm5, %v2369_v39, %v5088_v61  ;;  %1876 = vrot.lane.b32.xlu0 %v1873_v3, %s2960_s9 }
 0x1e8   : > { %v2389_v5 = vsel %vm1517_vm8, %v5085_v49, %v2387_v31  ;;  %v2349_v30 = vsel %vm1514_vm7, %v5086_v46, %v2347_v33  ;;  %v4671_v16 = vsel %vm1520_vm9, %v2318_v15, %v4509_v63  ;;  %v2430_v57 = vpack.c.b16 %v2415_v60, %v2415_v60 }
 0x1e9   : > { %v2351_v17 = vsel %vm1517_vm8, %v5087_v59, %v2349_v30  ;;  %v2371_v21 = vsel %vm1511_vm6, %v5007_v48, %v2370_v40  ;;  %v2422_v2 = vsel %vm1508_vm5, %v2421_v47, %v5089_v10  ;;  %v2092_v14 = vrot.slane %v4354_v34, 3  ;;  %v5101_v40 = vld [vmem:[#allocation2_spill] sm:$0xff] }
 0x1ea   : > { %v2390_v45 = vrot.slane %v4593_v18, 5  ;;  %v5090_v20 = vrot.slane %v5063_v11, 7  ;;  %v5091_v63 = vrot.slane %v5047_v52, 2  ;;  %v2133_v7 = vpack.c.b16 %v2131_v54, %v2131_v54  ;;  %2432 = vrot.lane.b32.xlu2 %v2430_v57, %s2959_s8 }
 0x1eb   : > { %v5092_v48 = vrot.slane %v4050_v22, 6  ;;  %v5093_v60 = vrot.slane %v5050_v53, 1  ;;  %v2162_v52 = vsel %vm1508_vm5, %v2161_v41, %v5094_v32  ;;  %v2093_v31 = vsel %vm1520_vm9, %v2092_v14, %v2091_v28  ;;  %v5096_v53 = vld [vmem:[#allocation20_spill] sm:$0xff] }
 0x1ec   : > { %v2373_v39 = vsel %vm1514_vm7, %v5090_v20, %v2371_v21  ;;  %v2424_v27 = vsel %vm1511_vm6, %v5091_v63, %v2422_v2  ;;  %v5095_v33 = vrot.slane %v5001_v62, 2  ;;  %v5097_v3 = vrot.slane %v4234_v25, 3  ;;  %2136 = vrot.lane.b32.xlu1 %v2133_v7, %s2960_s9  ;;  %v5113_v32 = vld [vmem:[#allocation4_spill] sm:$0xff] }
 0x1ed   : > { %v2375_v47 = vsel %vm1517_vm8, %v5092_v48, %v2373_v39  ;;  %v2426_v51 = vsel %vm1514_vm7, %v5093_v60, %v2424_v27  ;;  %v2304_v1 = vrot.slane %v4527_v58, 1  ;;  %v2391_v41 = vsel %vm1520_vm9, %v2390_v45, %v2389_v5 }
 0x1ee   : > { %v2427_v42 = vsel %vm1517_vm8, %v4082_v23, %v2426_v51  ;;  %v2164_v15 = vsel %vm1511_vm6, %v5095_v33, %v2162_v52  ;;  %v1902_v49 = vsel %vm1508_vm5, %v5097_v3, %v5096_v53  ;;  %v5098_v46 = vrot.slane %v5005_v4, 1 }
 0x1ef   : > { %v5099_v30 = vrot.slane %v4989_v12, 2  ;;  %v2321_v62 = vpack.c.b16 %v4671_v16, %v4671_v16  ;;  %v2352_v25 = vrot.slane %v4593_v18, 3  ;;  %v5100_v5 = vrot.slane %v3733_v9, 1 }
 0x1f0   : > { %v2166_v28 = vsel %vm1514_vm7, %v5098_v46, %v2164_v15  ;;  %v2095_v59 = vpack.c.b16 %v2093_v31, %v2093_v31  ;;  %v2376_v12 = vrot.slane %v4527_v58, 5  ;;  %v5102_v16 = vrot.slane %v3534_v44, 3 }
 0x1f1   : > { %v1904_v23 = vsel %vm1511_vm6, %v5099_v30, %v1902_v49  ;;  %v2167_v54 = vsel %vm1517_vm8, %v4030_v6, %v2166_v28  ;;  %v2393_v21 = vpack.c.b16 %v2391_v41, %v2391_v41  ;;  %v2353_v10 = vsel %vm1520_vm9, %v2352_v25, %v2351_v17  ;;  %2325 = vst.msk [vmem:[%s4749_s18 + $0x1c] sm:$0xf] %vm1540_vm10, %v2321_v62 }
 0x1f2   : > { %v1906_v4 = vsel %vm1514_vm7, %v5100_v5, %v1904_v23  ;;  %v1515_v57 = vsel %vm1514_vm7, %v5102_v16, %v5101_v40  ;;  %v5103_v6 = vrot.slane %v3906_v13, 2  ;;  %v5104_v2 = vrot.slane %v5063_v11, 3  ;;  %2098 = vrot.lane.b32.xlu0 %v2095_v59, %s2961_s14  ;;  %v5107_v11 = vld [vmem:[#allocation3_spill] sm:$0xff] }
 0x1f3   : > { %v1907_v61 = vsel %vm1517_vm8, %v3970_v0, %v1906_v4  ;;  %v5105_v44 = vrot.slane %v4196_v36, 1  ;;  %v5106_v0 = vrot.slane %v4050_v22, 2  ;;  %v5109_v39 = vrot.slane %v3968_v38, 2  ;;  %2396 = vrot.lane.b32.xlu2 %v2393_v21, %s2960_s9 }
 0x1f4   : > { %v1518_v9 = vsel %vm1517_vm8, %v5103_v6, %v1515_v57  ;;  %v2301_v58 = vsel %vm1514_vm7, %v5104_v2, %v4334_v43  ;;  %v5108_v43 = vrot.slane %v5028_v50, 3  ;;  %v5110_v63 = vrot.slane %v5045_v8, 3 }
 0x1f5   : > { %v1521_v13 = vsel %vm1520_vm9, %v5105_v44, %v1518_v9  ;;  %v2303_v17 = vsel %vm1517_vm8, %v5106_v0, %v2301_v58  ;;  %v2355_v27 = vpack.c.b16 %v2353_v10, %v2353_v10  ;;  %v5111_v50 = vrot.slane %v4237_v29, 1 }
 0x1f6   : > { %v1781_v14 = vsel %vm1514_vm7, %v5108_v43, %v5107_v11  ;;  %v1536_v45 = vpack.c.b16 %v1521_v13, %v1521_v13  ;;  %v2305_v20 = vsel %vm1520_vm9, %v2304_v1, %v2303_v17  ;;  %v2041_v22 = vsel %vm1514_vm7, %v5110_v63, %v4273_v24 }
 0x1f7   : > { %v1783_v36 = vsel %vm1517_vm8, %v5109_v39, %v1781_v14  ;;  %v2320_v7 = vpack.c.b16 %v2305_v20, %v2305_v20  ;;  %v5112_v60 = vrot.slane %v3991_v37, 2  ;;  %v2377_v38 = vsel %vm1520_vm9, %v2376_v12, %v2375_v47  ;;  %2358 = vrot.lane.b32.xlu1 %v2355_v27, %s2961_s14 }
 0x1f8   : > { %v1785_v48 = vsel %vm1520_vm9, %v5111_v50, %v1783_v36  ;;  %1541 = vst.msk [vmem:[%s4749_s18] sm:$0xf] %vm1540_vm10, %v1536_v45  ;;  %v1801_v24 = vpack.c.b16 %v4340_v55, %v4340_v55  ;;  %v2428_v37 = vrot.slane %v4593_v18, 7  ;;  %v5114_v52 = vpack.c.b16 %v5113_v32, %v5113_v32 }
 0x1f9   : > { %v2043_v51 = vsel %vm1517_vm8, %v5112_v60, %v2041_v22  ;;  %v1800_v8 = vpack.c.b16 %v1785_v48, %v1785_v48  ;;  %2324 = vst.msk [vmem:[%s4749_s18 + $0xc] sm:$0xf] %vm1540_vm10, %v2320_v7  ;;  %v2392_v47 = vpack.c.b16 %v2377_v38, %v2377_v38  ;;  %v2168_v18 = vrot.slane %v4354_v34, 7 }
 0x1fa   : > { %v2045_v29 = vsel %vm1520_vm9, %v2044_v35, %v2043_v51  ;;  %1542 = vst.msk [vmem:[%s4749_s18 + $0x10] sm:$0xf] %vm1540_vm10, %v5114_v52  ;;  %v2061_v35 = vpack.c.b16 %v4659_v19, %v4659_v19  ;;  %v2429_v55 = vsel %vm1520_vm9, %v2428_v37, %v2427_v42  ;;  %v1908_v15 = vrot.slane %v4278_v26, 7 }
 0x1fb   : > { %v2060_v56 = vpack.c.b16 %v2045_v29, %v2045_v29  ;;  %1804 = vst.msk [vmem:[%s4749_s18 + $0x4] sm:$0xf] %vm1540_vm10, %v1800_v8  ;;  %2394 = vrot.lane.b32.xlu0 %v2392_v47, %s2960_s9  ;;  %v2169_v31 = vsel %vm1520_vm9, %v2168_v18, %v2167_v54  ;;  %v2431_v33 = vpack.c.b16 %v2429_v55, %v2429_v55 }
 0x1fc   : > { %1805 = vst.msk [vmem:[%s4749_s18 + $0x14] sm:$0xf] %vm1540_vm10, %v1801_v24  ;;  %v2171_v34 = vpack.c.b16 %v2169_v31, %v2169_v31  ;;  %v1909_v19 = vsel %vm1520_vm9, %v1908_v15, %v1907_v61 }
 0x1fd   : > { %2064 = vst.msk [vmem:[%s4749_s18 + $0x8] sm:$0xf] %vm1540_vm10, %v2060_v56  ;;  %2434 = vrot.lane.b32.xlu2 %v2431_v33, %s2959_s8  ;;  %v1911_v42 = vpack.c.b16 %v1909_v19, %v1909_v19 }
 0x1fe   : > { %2065 = vst.msk [vmem:[%s4749_s18 + $0x18] sm:$0xf] %vm1540_vm10, %v2061_v35 }
 0x1ff   : > { %2174 = vrot.lane.b32.xlu1 %v2171_v34, %s2959_s8 }
 0x203   : > { %1914 = vrot.lane.b32.xlu0 %v1911_v42, %s2959_s8 }
 0x20b   : > { %v1652_v53 = vpop.permute.xlu2 %1651 }
 0x219   : > { %v1654_v26 = vpop.permute.xlu2 %1653 }
 0x225   : > { %v1875_v3 = vpop.permute.xlu2 %1874 }
 0x229   : > { %v1613_v1 = vpop.permute.xlu1 %1612 }
 0x22e   : > { %v1574_v41 = vpop.permute.xlu0 %1573 }
 0x22f   : > { %v2135_v49 = vpop.permute.xlu2 %2134  ;;  %1580 = vst.msk [vmem:[%s4749_s18] sm:$0xf] %vm1579_vm11, %v1574_v41 }
 0x230   : > { %1619 = vst.msk [vmem:[%s4749_s18] sm:$0xf] %vm1618_vm12, %v1613_v1 }
 0x231   : > { %1658 = vst.msk [vmem:[%s4749_s18] sm:$0xf] %vm1657_vm13, %v1652_v53 }
 0x234   : > { %v1615_v28 = vpop.permute.xlu1 %1614 }
 0x238   : > { %v1576_v30 = vpop.permute.xlu0 %1575 }
 0x239   : > { %1581 = vst.msk [vmem:[%s4749_s18 + $0x10] sm:$0xf] %vm1579_vm11, %v1576_v30 }
 0x23a   : > { %v2357_v46 = vpop.permute.xlu2 %2356  ;;  %1620 = vst.msk [vmem:[%s4749_s18 + $0x10] sm:$0xf] %vm1618_vm12, %v1615_v28 }
 0x23b   : > { %2362 = vst.msk [vmem:[%s4749_s18 + $0xc] sm:$0xf] %vm1579_vm11, %v2357_v46 }
 0x23c   : > { %1659 = vst.msk [vmem:[%s4749_s18 + $0x10] sm:$0xf] %vm1657_vm13, %v1654_v26 }
 0x240   : > { %v1839_v23 = vpop.permute.xlu1 %1838 }
 0x241   : > { %1843 = vst.msk [vmem:[%s4749_s18 + $0x14] sm:$0xf] %vm1579_vm11, %v1839_v23 }
 0x243   : > { %v1837_v62 = vpop.permute.xlu0 %1836 }
 0x244   : > { %1842 = vst.msk [vmem:[%s4749_s18 + $0x4] sm:$0xf] %vm1579_vm11, %v1837_v62  ;;  %v2433_v4 = vpop.permute.xlu2 %2432 }
 0x245   : > { %1880 = vst.msk [vmem:[%s4749_s18 + $0x4] sm:$0xf] %vm1618_vm12, %v1875_v3 }
 0x24b   : > { %v2097_v25 = vpop.permute.xlu1 %2096 }
 0x24c   : > { %2102 = vst.msk [vmem:[%s4749_s18 + $0x8] sm:$0xf] %vm1579_vm11, %v2097_v25 }
 0x24d   : > { %v2397_v40 = vpop.permute.xlu2 %2396  ;;  %2140 = vst.msk [vmem:[%s4749_s18 + $0x8] sm:$0xf] %vm1618_vm12, %v2135_v49 }
 0x24e   : > { %v1913_v54 = vpop.permute.xlu0 %1912 }
 0x24f   : > { %1918 = vst.msk [vmem:[%s4749_s18 + $0x4] sm:$0xf] %vm1657_vm13, %v1913_v54 }
 0x254   : > { %v2173_v5 = vpop.permute.xlu1 %2172 }
 0x255   : > { %2178 = vst.msk [vmem:[%s4749_s18 + $0x8] sm:$0xf] %vm1657_vm13, %v2173_v5 }
 0x257   : > { %v2435_v21 = vpop.permute.xlu2 %2434 }
 0x259   : > { %v1877_v59 = vpop.permute.xlu0 %1876 }
 0x25a   : > { %1881 = vst.msk [vmem:[%s4749_s18 + $0x14] sm:$0xf] %vm1618_vm12, %v1877_v59 }
 0x25e   : > { %v2137_v12 = vpop.permute.xlu1 %2136 }
 0x264   : > { %v2099_v61 = vpop.permute.xlu0 %2098 }
 0x265   : > { %2103 = vst.msk [vmem:[%s4749_s18 + $0x18] sm:$0xf] %vm1579_vm11, %v2099_v61 }
 0x266   : > { %2141 = vst.msk [vmem:[%s4749_s18 + $0x18] sm:$0xf] %vm1618_vm12, %v2137_v12 }
 0x269   : > { %v2359_v16 = vpop.permute.xlu1 %2358 }
 0x26a   : > { %2363 = vst.msk [vmem:[%s4749_s18 + $0x1c] sm:$0xf] %vm1579_vm11, %v2359_v16 }
 0x26b   : > { %2401 = vst.msk [vmem:[%s4749_s18 + $0x1c] sm:$0xf] %vm1618_vm12, %v2397_v40 }
 0x26c   : > { %2439 = vst.msk [vmem:[%s4749_s18 + $0x1c] sm:$0xf] %vm1657_vm13, %v2435_v21 }
 0x26d   : > { %v2395_v57 = vpop.permute.xlu0 %2394 }
 0x26e   : > { %2400 = vst.msk [vmem:[%s4749_s18 + $0xc] sm:$0xf] %vm1618_vm12, %v2395_v57 }
 0x26f   : > { %2438 = vst.msk [vmem:[%s4749_s18 + $0xc] sm:$0xf] %vm1657_vm13, %v2433_v4 }
 0x271   : > { %v2175_v10 = vpop.permute.xlu1 %2174 }
 0x272   : > { %2179 = vst.msk [vmem:[%s4749_s18 + $0x18] sm:$0xf] %vm1657_vm13, %v2175_v10 }
 0x275   : > { %v1915_v6 = vpop.permute.xlu0 %1914 }
 0x276   : > { %1919 = vst.msk [vmem:[%s4749_s18 + $0x14] sm:$0xf] %vm1657_vm13, %v1915_v6 }
 0x277 PF: > { %s13_s12 = sadd.s32 1, %s2956_s12  }
 0x278   : > { %p10_p5 = scmp.ge.s32.totalorder %s13_s12, 4  }
 0x27a   :  { %12 = sbr.rel (!%p10_p5) target bundleno = 1 (0x1), region = 62 }

// kernel: expconvnet_forward.5
= control target key start
LH: loop header
LB: loop body
LE: loop exit
PB: predicated region body
PF: predicated region fallthrough
CT: control target
= control target key end

     0   :  { %s1729_s12 = smov 0   ;;  %s2165_s0 = inlined_call_operand.vmem [shape: bf16[512,288], index: 0, kind: input, shape index: {}]   ;;  %s2166_s1 = inlined_call_operand.vmem [shape: bf16[288,64], index: 1, kind: input, shape index: {}]   ;;  %s2167_s2 = inlined_call_operand.vmem [shape: f32[1,64], index: 2, kind: input, shape index: {}]   ;;  %s2168_s3 = inlined_call_operand.vmem [shape: bf16[16,512], index: 3, kind: output, shape index: {}]  }
   0x1 LB: > { %s1735_s13 = sadd.s32 4294967295, %s1706_s12   ;;  %p1317_p0 = scmp.ge.s32.totalorder %s1706_s12, 1  ;;  %s1706_s12 = sphi %s1729_s12, %s13_s12  }
   0x2   : > { %p139_p1 = scmp.lt.s32.totalorder %s1706_s12, 3 }
   0x4   : > { %p140_p2 = pnand %p1317_p0, %p139_p1 }
   0x5   : > { %s1318_s20 = sshll.u32 (!%p140_p2), %s1735_s13, 5  ;;  %p171_p4 = scmp.lt.s32.totalorder (!%p140_p2), %s1735_s13, 1 }
   0x6   : > { %143 = sbr.rel (%p140_p2) target bundleno = 513 (0x201), region = 32  ;;  %p165_p3 = scmp.lt.s32.totalorder (!%p140_p2), %s1318_s20, 63 }
   0x7   : > { %s1708_s8 = smov (!%p140_p2), 64  }
   0xb   : > { %v1660_v0 = vld [vmem:[%s2166_s1 + $0x38] sm:$0xff]  ;;  %v1745_v1 = vld [vmem:[%s2166_s1 + $0x88] sm:$0xff]  ;;  %v1659_v3 = vld [vmem:[%s2166_s1 + $0x30] sm:$0xff]  ;;  %s2170_s20 = smov (!%p165_p3, %s1318_s20), 63  ;;  %vm629_vm0 = vcmask 261120   ;;  %vm1050_vm1 = vcmask 1041409  }
   0xc   : > { %v1750_v2 = vld [vmem:[%s2166_s1 + $0x78] sm:$0xff]  ;;  %678 = vmatpush.bf16.msra.mxu0 %v1660_v0  ;;  %1671 = vmatpush.bf16.msra.mxu3 %v1660_v0  ;;  %v1761_v4 = vld [vmem:[%s2166_s1 + $0x80] sm:$0xff]  ;;  %v1667_v5 = vld [vmem:[%s2166_s1 + $0x70] sm:$0xff]  ;;  %s1689_s27 = smul.u32 12, %s2170_s20  ;;  %vm1053_vm2 = vcmask 1042434   ;;  %vm1056_vm3 = vcmask 1043459  }
   0xd   : > { %862 = vmatpush.bf16.msra.mxu2 %v1745_v1  ;;  %767 = vmatpush.bf16.msra.mxu1 %v1750_v2  ;;  %v1658_v6 = vld [vmem:[%s2166_s1 + $0x28] sm:$0xff]  ;;  %v1657_v11 = vld [vmem:[%s2166_s1 + $0x20] sm:$0xff]  ;;  %v1656_v13 = vld [vmem:[%s2166_s1 + $0x18] sm:$0xff]  ;;  %vm1059_vm4 = vcmask 1044484   ;;  %vm1062_vm5 = vcmask 1045509   ;;  %s2172_s13 = smov (!%p171_p4, %s1735_s13), 1 }
   0xe   : > { %s1773_s5 = scalar_lea.vmem %s2165_s0, %s1689_s27  ;;  %v1666_v7 = vld [vmem:[%s2166_s1 + $0x68] sm:$0xff]  ;;  %v1665_v12 = vld [vmem:[%s2166_s1 + $0x60] sm:$0xff]  ;;  %v1664_v14 = vld [vmem:[%s2166_s1 + $0x58] sm:$0xff]  ;;  %vm1065_vm6 = vcmask 1046534   ;;  %vm1068_vm7 = vcmask 1047559   ;;  %vm1072_vm8 = vcmask 519168  }
   0xf   : > { %v1332_v8 = vld [vmem:[%s1773_s5 + $0x8] sm:$0xf]  ;;  %v1607_v9 = vld [vmem:[%s1773_s5 + $0x10] sm:$0xf0]  ;;  %v1344_v17 = vld [vmem:[%s1773_s5 + $0x20] sm:$0xf] }
  0x10   : > { %679 = vmatpush.bf16.msra.mxu0 %v1659_v3  ;;  %1672 = vmatpush.bf16.msra.mxu3 %v1659_v3  ;;  %v1333_v10 = vor.u32 %v1607_v9, %v1332_v8  ;;  %v1655_v15 = vld [vmem:[%s2166_s1 + $0x10] sm:$0xff]  ;;  %v1610_v18 = vld [vmem:[%s1773_s5 + $0x28] sm:$0xf0]  ;;  %v1653_v22 = vld [vmem:[%s2166_s1] sm:$0xff]  ;;  %vm1092_vm9 = vcmask 1043968  }
  0x11   : > { %863 = vmatpush.bf16.msra.mxu2 %v1761_v4  ;;  %768 = vmatpush.bf16.msra.mxu1 %v1667_v5  ;;  %v1663_v16 = vld [vmem:[%s2166_s1 + $0x50] sm:$0xff]  ;;  %v1654_v19 = vld [vmem:[%s2166_s1 + $0x8] sm:$0xff]  ;;  %v1345_v20 = vor.u32 %v1610_v18, %v1344_v17  ;;  %v1324_v23 = vld [vmem:[%s1773_s5] sm:$0xf] }
  0x12   : > { %v1662_v21 = vld [vmem:[%s2166_s1 + $0x48] sm:$0xff]  ;;  %v1468_v25 = vld [vmem:[%s1773_s5 + $0x120] sm:$0xf]  ;;  %v1605_v28 = vld [vmem:[%s1773_s5 + $0x4] sm:$0xf] }
  0x13   : > { %v1606_v24 = vld [vmem:[%s1773_s5 + $0x8] sm:$0xf0]  ;;  %v1661_v27 = vld [vmem:[%s2166_s1 + $0x40] sm:$0xff]  ;;  %v1326_v29 = vld [vmem:[%s1773_s5 + $0xc] sm:$0xf0] }
  0x14   : > { %680 = vmatpush.bf16.msra.mxu0 %v1658_v6  ;;  %1673 = vmatpush.bf16.msra.mxu3 %v1658_v6  ;;  %v1642_v26 = vld [vmem:[%s1773_s5 + $0x128] sm:$0xf0]  ;;  %v1325_v30 = vor.u32 %v1606_v24, %v1324_v23  ;;  %v1329_v32 = vor.u32 %v1605_v28, %v1326_v29  ;;  %v1356_v33 = vld [vmem:[%s1773_s5 + $0x38] sm:$0xf]  ;;  %v1613_v34 = vld [vmem:[%s1773_s5 + $0x40] sm:$0xf0] }
  0x15   : > { %1586 = vmatmul.msk.bf16.vlgmr.msra.gmra.mxu2 %vm629_vm0, %v1333_v10  ;;  %769 = vmatpush.bf16.msra.mxu1 %v1666_v7  ;;  %v1469_v31 = vor.u32 %v1642_v26, %v1468_v25  ;;  %v1357_v35 = vor.u32 %v1613_v34, %v1356_v33  ;;  %v1336_v36 = vld [vmem:[%s1773_s5 + $0x18] sm:$0xf]  ;;  %v1609_v37 = vld [vmem:[%s1773_s5 + $0x20] sm:$0xf0]  ;;  %v1608_v40 = vld [vmem:[%s1773_s5 + $0x1c] sm:$0xf] }
  0x16   : > { %v1480_v38 = vld [vmem:[%s1773_s5 + $0x138] sm:$0xf]  ;;  %v1645_v39 = vld [vmem:[%s1773_s5 + $0x140] sm:$0xf0]  ;;  %v1338_v41 = vld [vmem:[%s1773_s5 + $0x24] sm:$0xf0]  ;;  %v1337_v42 = vor.u32 %v1609_v37, %v1336_v36 }
  0x17   : > { %v1481_v43 = vor.u32 %v1645_v39, %v1480_v38  ;;  %v1341_v44 = vor.u32 %v1608_v40, %v1338_v41  ;;  %v1368_v45 = vld [vmem:[%s1773_s5 + $0x50] sm:$0xf]  ;;  %v1616_v46 = vld [vmem:[%s1773_s5 + $0x58] sm:$0xf0]  ;;  %v1611_v52 = vld [vmem:[%s1773_s5 + $0x34] sm:$0xf] }
  0x18   : > { %681 = vmatpush.bf16.msra.mxu0 %v1657_v11  ;;  %1674 = vmatpush.bf16.msra.mxu3 %v1657_v11  ;;  %v1369_v47 = vor.u32 %v1616_v46, %v1368_v45  ;;  %v1348_v48 = vld [vmem:[%s1773_s5 + $0x30] sm:$0xf]  ;;  %v1612_v49 = vld [vmem:[%s1773_s5 + $0x38] sm:$0xf0]  ;;  %v1350_v53 = vld [vmem:[%s1773_s5 + $0x3c] sm:$0xf0] }
  0x19   : > { %770 = vmatpush.bf16.msra.mxu1 %v1665_v12  ;;  %v1492_v50 = vld [vmem:[%s1773_s5 + $0x150] sm:$0xf]  ;;  %v1648_v51 = vld [vmem:[%s1773_s5 + $0x158] sm:$0xf0]  ;;  %v1349_v54 = vor.u32 %v1612_v49, %v1348_v48  ;;  %v1353_v56 = vor.u32 %v1611_v52, %v1350_v53  ;;  %v1380_v57 = vld [vmem:[%s1773_s5 + $0x68] sm:$0xf] }
  0x1a   : > { %v1493_v55 = vor.u32 %v1648_v51, %v1492_v50  ;;  %v1619_v58 = vld [vmem:[%s1773_s5 + $0x70] sm:$0xf0]  ;;  %v1360_v60 = vld [vmem:[%s1773_s5 + $0x48] sm:$0xf]  ;;  %v1614_v0 = vld [vmem:[%s1773_s5 + $0x4c] sm:$0xf] }
  0x1b   : > { %v1381_v59 = vor.u32 %v1619_v58, %v1380_v57  ;;  %v1615_v61 = vld [vmem:[%s1773_s5 + $0x50] sm:$0xf0]  ;;  %v1504_v62 = vld [vmem:[%s1773_s5 + $0x168] sm:$0xf]  ;;  %v1622_v6 = vld [vmem:[%s1773_s5 + $0x88] sm:$0xf0] }
  0x1c   : > { %682 = vmatpush.bf16.msra.mxu0 %v1656_v13  ;;  %1675 = vmatpush.bf16.msra.mxu3 %v1656_v13  ;;  %v1651_v63 = vld [vmem:[%s1773_s5 + $0x170] sm:$0xf0]  ;;  %v1372_v8 = vld [vmem:[%s1773_s5 + $0x60] sm:$0xf]  ;;  %v1618_v9 = vld [vmem:[%s1773_s5 + $0x68] sm:$0xf0] }
  0x1d   : > { %771 = vmatpush.bf16.msra.mxu1 %v1664_v14  ;;  %v1505_v3 = vor.u32 %v1651_v63, %v1504_v62  ;;  %v1641_v10 = vld [vmem:[%s1773_s5 + $0x124] sm:$0xf]  ;;  %v1470_v11 = vld [vmem:[%s1773_s5 + $0x12c] sm:$0xf0]  ;;  %v1404_v17 = vld [vmem:[%s1773_s5 + $0x98] sm:$0xf] }
  0x1e   : > { %v1374_v13 = vld [vmem:[%s1773_s5 + $0x6c] sm:$0xf0]  ;;  %v1625_v18 = vld [vmem:[%s1773_s5 + $0xa0] sm:$0xf0]  ;;  %v1482_v23 = vld [vmem:[%s1773_s5 + $0x144] sm:$0xf0] }
  0x1f   : > { %v1620_v24 = vld [vmem:[%s1773_s5 + $0x7c] sm:$0xf]  ;;  %v1386_v25 = vld [vmem:[%s1773_s5 + $0x84] sm:$0xf0]  ;;  %v1416_v29 = vld [vmem:[%s1773_s5 + $0xb0] sm:$0xf] }
  0x20   : > { %683 = vmatpush.bf16.msra.mxu0 %v1655_v15  ;;  %1676 = vmatpush.bf16.msra.mxu3 %v1655_v15  ;;  %v1473_v15 = vor.u32 %v1641_v10, %v1470_v11  ;;  %v1389_v28 = vor.u32 %v1620_v24, %v1386_v25  ;;  %v1624_v33 = vld [vmem:[%s1773_s5 + $0x98] sm:$0xf0]  ;;  %v1647_v34 = vld [vmem:[%s1773_s5 + $0x154] sm:$0xf]  ;;  %v1398_v37 = vld [vmem:[%s1773_s5 + $0x9c] sm:$0xf0] }
  0x21   : > { %772 = vmatpush.bf16.msra.mxu1 %v1663_v16  ;;  %v1623_v36 = vld [vmem:[%s1773_s5 + $0x94] sm:$0xf]  ;;  %v1428_v41 = vld [vmem:[%s1773_s5 + $0xc8] sm:$0xf]  ;;  %v1650_v46 = vld [vmem:[%s1773_s5 + $0x16c] sm:$0xf] }
  0x22   : > { %v1401_v40 = vor.u32 %v1623_v36, %v1398_v37  ;;  %v1627_v45 = vld [vmem:[%s1773_s5 + $0xb0] sm:$0xf0]  ;;  %v1626_v48 = vld [vmem:[%s1773_s5 + $0xac] sm:$0xf]  ;;  %v1410_v49 = vld [vmem:[%s1773_s5 + $0xb4] sm:$0xf0] }
  0x23   : > { %v1413_v53 = vor.u32 %v1626_v48, %v1410_v49  ;;  %v1420_v58 = vld [vmem:[%s1773_s5 + $0xc0] sm:$0xf]  ;;  %v1629_v63 = vld [vmem:[%s1773_s5 + $0xc4] sm:$0xf]  ;;  %v1452_v11 = vld [vmem:[%s1773_s5 + $0xf8] sm:$0xf] }
  0x24   : > { %684 = vmatpush.bf16.msra.mxu0 %v1654_v19  ;;  %1677 = vmatpush.bf16.msra.mxu3 %v1654_v19  ;;  %v1405_v19 = vor.u32 %v1625_v18, %v1404_v17  ;;  %v1896_v62 = vld [vmem:[%s2167_s2] ss:$0 sm:$0xff]  ;;  %v1632_v24 = vld [vmem:[%s1773_s5 + $0xdc] sm:$0xf]  ;;  %v1434_v25 = vld [vmem:[%s1773_s5 + $0xe4] sm:$0xf0] }
  0x25   : > { %1587 = vmatmul.msk.bf16.gmra.mxu2 %vm629_vm0, %v1345_v20  ;;  %773 = vmatpush.bf16.msra.mxu1 %v1662_v21  ;;  %v1384_v20 = vld [vmem:[%s1773_s5 + $0x78] sm:$0xf]  ;;  %v1464_v37 = vld [vmem:[%s1773_s5 + $0x110] sm:$0xf]  ;;  %v1636_v49 = vld [vmem:[%s1773_s5 + $0xf8] sm:$0xf0] }
  0x26   : > { %v1444_v48 = vld [vmem:[%s1773_s5 + $0xf0] sm:$0xf] }
  0x28   : > { %685 = vmatpush.bf16.msra.mxu0 %v1653_v22  ;;  %1678 = vmatpush.bf16.msra.mxu3 %v1653_v22  ;;  %v1644_v22 = vld [vmem:[%s1773_s5 + $0x13c] sm:$0xf] }
  0x29   : > { %774 = vmatpush.bf16.msra.mxu1 %v1661_v27 }
  0x2b   : > { %686 = vmatmul.bf16.vlgmr.msra.gmra.mxu0 %v1325_v30  ;;  %746 = vmatmul.bf16.vlgmr.msra.gmra.mxu3 %v1469_v31  ;;  %v1628_v30 = vld [vmem:[%s1773_s5 + $0xb8] sm:$0xf0] }
  0x2c   : > { %1679 = vmatpush.bf16.msrb.mxu3 %v1750_v2  ;;  %775 = vmatmul.bf16.vlgmr.msra.gmra.mxu1 %v1329_v32  ;;  %v1361_v2 = vor.u32 %v1615_v61, %v1360_v60  ;;  %v1417_v31 = vor.u32 %v1628_v30, %v1416_v29  ;;  %v1396_v32 = vld [vmem:[%s1773_s5 + $0x90] sm:$0xf]  ;;  %v1500_v60 = vld [vmem:[%s1773_s5 + $0x158] sm:$0xf]  ;;  %v1649_v61 = vld [vmem:[%s1773_s5 + $0x160] sm:$0xf0] }
  0x2d   : > { %v1397_v38 = vor.u32 %v1624_v33, %v1396_v32 }
  0x30   : > { %1680 = vmatpush.bf16.msrb.mxu3 %v1667_v5  ;;  %v1392_v5 = vld [vmem:[%s1773_s5 + $0x80] sm:$0xf] }
  0x34   : > { %1681 = vmatpush.bf16.msrb.mxu3 %v1666_v7  ;;  %v1393_v7 = vor.u32 %v1622_v6, %v1392_v5 }
  0x35   : > { %1588 = vmatmul.msk.bf16.gmra.mxu2 %vm629_vm0, %v1357_v35  ;;  %v1494_v35 = vld [vmem:[%s1773_s5 + $0x15c] sm:$0xf0] }
  0x36   : > { %v1497_v39 = vor.u32 %v1647_v34, %v1494_v35 }
  0x38   : > { %1682 = vmatpush.bf16.msrb.mxu3 %v1665_v12  ;;  %v1617_v12 = vld [vmem:[%s1773_s5 + $0x64] sm:$0xf] }
  0x3b   : > { %691 = vmatmul.bf16.gmra.mxu0 %v1337_v42  ;;  %751 = vmatmul.bf16.gmra.mxu3 %v1481_v43  ;;  %v1631_v42 = vld [vmem:[%s1773_s5 + $0xd0] sm:$0xf0] }
  0x3c   : > { %1683 = vmatpush.bf16.msrb.mxu3 %v1664_v14  ;;  %780 = vmatmul.bf16.gmra.mxu1 %v1341_v44  ;;  %v1373_v14 = vor.u32 %v1618_v9, %v1372_v8  ;;  %v1429_v43 = vor.u32 %v1631_v42, %v1428_v41  ;;  %v1408_v44 = vld [vmem:[%s1773_s5 + $0xa8] sm:$0xf] }
  0x3d   : > { %v1409_v50 = vor.u32 %v1627_v45, %v1408_v44 }
  0x40   : > { %1684 = vmatpush.bf16.msrb.mxu3 %v1663_v16  ;;  %v1377_v16 = vor.u32 %v1617_v12, %v1374_v13  ;;  %v1637_v12 = vld [vmem:[%s1773_s5 + $0x100] sm:$0xf0] }
  0x41   : > { %v1453_v17 = vor.u32 %v1637_v12, %v1452_v11  ;;  %v1456_v12 = vld [vmem:[%s1773_s5 + $0x108] sm:$0xf] }
  0x44   : > { %1685 = vmatpush.bf16.msrb.mxu3 %v1662_v21  ;;  %v1621_v21 = vld [vmem:[%s1773_s5 + $0x80] sm:$0xf0] }
  0x45   : > { %1589 = vmatmul.msk.bf16.gmra.mxu2 %vm629_vm0, %v1369_v47  ;;  %v1385_v26 = vor.u32 %v1621_v21, %v1384_v20  ;;  %v1506_v47 = vld [vmem:[%s1773_s5 + $0x174] sm:$0xf0]  ;;  %v1633_v20 = vld [vmem:[%s1773_s5 + $0xe0] sm:$0xf0]  ;;  %v1512_v21 = vld [vmem:[%s1773_s5 + $0x170] sm:$0xf] }
  0x46   : > { %v1509_v51 = vor.u32 %v1650_v46, %v1506_v47 }
  0x48   : > { %1686 = vmatpush.bf16.msrb.mxu3 %v1661_v27  ;;  %v1485_v27 = vor.u32 %v1644_v22, %v1482_v23  ;;  %v1652_v22 = vld [vmem:[%s1773_s5 + $0x178] sm:$0xf0] }
  0x4b   : > { %696 = vmatmul.bf16.gmra.mxu0 %v1349_v54  ;;  %756 = vmatmul.bf16.gmra.mxu3 %v1493_v55  ;;  %v1440_v54 = vld [vmem:[%s1773_s5 + $0xe0] sm:$0xf]  ;;  %v1634_v55 = vld [vmem:[%s1773_s5 + $0xe8] sm:$0xf0] }
  0x4c   : > { %1687 = vmatpush.bf16.msra.mxu3 %v1745_v1  ;;  %785 = vmatmul.bf16.gmra.mxu1 %v1353_v56  ;;  %v1362_v1 = vld [vmem:[%s1773_s5 + $0x54] sm:$0xf0]  ;;  %v1441_v57 = vor.u32 %v1634_v55, %v1440_v54 }
  0x50   : > { %1688 = vmatpush.bf16.msra.mxu3 %v1761_v4  ;;  %v1365_v4 = vor.u32 %v1614_v0, %v1362_v1  ;;  %v1422_v0 = vld [vmem:[%s1773_s5 + $0xcc] sm:$0xf0] }
  0x51   : > { %v1425_v5 = vor.u32 %v1629_v63, %v1422_v0 }
  0x55   : > { %1590 = vmatmul.msk.bf16.gmra.mxu2 %vm629_vm0, %v1381_v59  ;;  %v1630_v59 = vld [vmem:[%s1773_s5 + $0xc8] sm:$0xf0] }
  0x56   : > { %v1421_v1 = vor.u32 %v1630_v59, %v1420_v58 }
  0x5b   : > { %701 = vmatmul.bf16.gmra.mxu0 %v1361_v2  ;;  %761 = vmatmul.bf16.gmra.mxu3 %v1505_v3  ;;  %v1501_v2 = vor.u32 %v1649_v61, %v1500_v60 }
  0x5c   : > { %790 = vmatmul.bf16.gmra.mxu1 %v1365_v4 }
  0x65   : > { %1591 = vmatmul.msk.bf16.gmra.mxu2 %vm629_vm0, %v1393_v7 }
  0x6b   : > { %706 = vmatmul.bf16.gmra.mxu0 %v1373_v14  ;;  %835 = vmatmul.bf16.vlgmr.msrb.gmra.mxu3 %v1473_v15 }
  0x6c   : > { %795 = vmatmul.bf16.gmra.mxu1 %v1377_v16 }
  0x75   : > { %1592 = vmatmul.msk.bf16.gmra.mxu2 %vm629_vm0, %v1405_v19  ;;  %v1432_v19 = vld [vmem:[%s1773_s5 + $0xd8] sm:$0xf] }
  0x7b   : > { %711 = vmatmul.bf16.gmra.mxu0 %v1385_v26  ;;  %840 = vmatmul.bf16.gmra.mxu3 %v1485_v27  ;;  %v1433_v27 = vor.u32 %v1633_v20, %v1432_v19 }
  0x7c   : > { %800 = vmatmul.bf16.gmra.mxu1 %v1389_v28  ;;  %v1513_v28 = vor.u32 %v1652_v22, %v1512_v21 }
  0x85   : > { %1593 = vmatmul.msk.bf16.gmra.mxu2 %vm629_vm0, %v1417_v31  ;;  %v1437_v31 = vor.u32 %v1632_v24, %v1434_v25 }
  0x8b   : > { %716 = vmatmul.bf16.gmra.mxu0 %v1397_v38  ;;  %845 = vmatmul.bf16.gmra.mxu3 %v1497_v39  ;;  %v1640_v38 = vld [vmem:[%s1773_s5 + $0x118] sm:$0xf0] }
  0x8c   : > { %805 = vmatmul.bf16.gmra.mxu1 %v1401_v40  ;;  %v1465_v46 = vor.u32 %v1640_v38, %v1464_v37 }
  0x95   : > { %1594 = vmatmul.msk.bf16.gmra.mxu2 %vm629_vm0, %v1429_v43 }
  0x98   : > { %v865_v52 = vpop.f32.mrf.mxu2 }
  0x9b   : > { %721 = vmatmul.bf16.gmra.mxu0 %v1409_v50  ;;  %850 = vmatmul.bf16.gmra.mxu3 %v1509_v51  ;;  %v1635_v51 = vld [vmem:[%s1773_s5 + $0xf4] sm:$0xf] }
  0x9c   : > { %810 = vmatmul.bf16.gmra.mxu1 %v1413_v53 }
  0xa0   : > { %v867_v56 = vpop.f32.mrf.mxu2 }
  0xa5   : > { %1595 = vmatmul.msk.bf16.gmra.mxu2 %vm629_vm0, %v1441_v57 }
  0xa8   : > { %v870_v3 = vpop.f32.mrf.mxu2  ;;  %v687_v4 = vpop.f32.mrf.mxu0 }
  0xa9   : > { %v688_v6 = vadd.f32 %v1896_v62, %v687_v4  ;;  %v776_v7 = vpop.f32.mrf.mxu1  ;;  %v1643_v4 = vld [vmem:[%s1773_s5 + $0x130] sm:$0xf0] }
  0xab   : > { %v777_v8 = vadd.f32 %v776_v7, %v688_v6  ;;  %726 = vmatmul.bf16.gmra.mxu0 %v1421_v1  ;;  %1600 = vmatmul.msk.bf16.vlgmr.msra.gmra.mxu3 %vm629_vm0, %v1501_v2 }
  0xac   : > { %815 = vmatmul.bf16.gmra.mxu1 %v1425_v5 }
  0xad   : > { %v866_v9 = vadd.f32 %v865_v52, %v777_v8  ;;  %v1446_v52 = vld [vmem:[%s1773_s5 + $0xfc] sm:$0xf0] }
  0xae   : > { %v1902_v10 = vpop.f32.mrf.mxu3  ;;  %v1449_v59 = vor.u32 %v1635_v51, %v1446_v52 }
  0xaf   : > { %v945_v39 = vmax.f32 %v866_v9, 0.0 }
  0xb0   : > { %v872_v13 = vpop.f32.mrf.mxu2  ;;  %v689_v14 = vpop.f32.mrf.mxu0 }
  0xb1   : > { %v690_v15 = vadd.f32 %v1896_v62, %v689_v14  ;;  %v778_v16 = vpop.f32.mrf.mxu1 }
  0xb3   : > { %v779_v18 = vadd.f32 %v778_v16, %v690_v15  ;;  %v1638_v15 = vld [vmem:[%s1773_s5 + $0x10c] sm:$0xf]  ;;  %v1458_v16 = vld [vmem:[%s1773_s5 + $0x114] sm:$0xf0] }
  0xb4   : > { %v1461_v21 = vor.u32 %v1638_v15, %v1458_v16 }
  0xb5   : > { %v868_v23 = vadd.f32 %v867_v56, %v779_v18  ;;  %1596 = vmatmul.msk.bf16.gmra.mxu2 %vm629_vm0, %v1453_v17  ;;  %v1445_v56 = vor.u32 %v1636_v49, %v1444_v48 }
  0xb6   : > { %v1914_v26 = vpop.f32.mrf.mxu3 }
  0xb7   : > { %v946_v54 = vmax.f32 %v868_v23, 0.0 }
  0xb8   : > { %v875_v29 = vpop.f32.mrf.mxu2  ;;  %v692_v30 = vpop.f32.mrf.mxu0 }
  0xb9   : > { %v693_v32 = vadd.f32 %v1896_v62, %v692_v30  ;;  %v781_v33 = vpop.f32.mrf.mxu1  ;;  %v1488_v30 = vld [vmem:[%s1773_s5 + $0x140] sm:$0xf] }
  0xbb   : > { %v782_v34 = vadd.f32 %v781_v33, %v693_v32  ;;  %731 = vmatmul.bf16.gmra.mxu0 %v1433_v27  ;;  %1601 = vmatmul.msk.bf16.gmra.mxu3 %vm629_vm0, %v1513_v28 }
  0xbc   : > { %820 = vmatmul.bf16.gmra.mxu1 %v1437_v31  ;;  %v1646_v31 = vld [vmem:[%s1773_s5 + $0x148] sm:$0xf0] }
  0xbd   : > { %v871_v35 = vadd.f32 %v870_v3, %v782_v34  ;;  %v1476_v3 = vld [vmem:[%s1773_s5 + $0x128] sm:$0xf] }
  0xbe   : > { %v1918_v36 = vpop.f32.mrf.mxu3  ;;  %v1477_v9 = vor.u32 %v1643_v4, %v1476_v3 }
  0xbf   : > { %v947_v40 = vmax.f32 %v871_v35, 0.0 }
  0xc0   : > { %v877_v41 = vpop.f32.mrf.mxu2  ;;  %v694_v42 = vpop.f32.mrf.mxu0 }
  0xc1   : > { %v977_v43 = vmax.f32 %v945_v39, %v947_v40  ;;  %v695_v44 = vadd.f32 %v1896_v62, %v694_v42  ;;  %v783_v45 = vpop.f32.mrf.mxu1 }
  0xc3   : > { %v784_v47 = vadd.f32 %v783_v45, %v695_v44  ;;  %v1001_v22 = vrot.slane %v977_v43, 1 }
  0xc5   : > { %v873_v50 = vadd.f32 %v872_v13, %v784_v47  ;;  %1597 = vmatmul.msk.bf16.gmra.mxu2 %vm629_vm0, %v1465_v46  ;;  %v1639_v13 = vld [vmem:[%s1773_s5 + $0x110] sm:$0xf0]  ;;  %v1017_v27 = vmax.f32 %v977_v43, %v1001_v22  ;;  %s1604_s5 = sshll.u32 %s2172_s13, 4 }
  0xc6   : > { %v1928_v53 = vpop.f32.mrf.mxu3  ;;  %v1457_v18 = vor.u32 %v1639_v13, %v1456_v12  ;;  %s2125_s7 = scalar_lea.vmem %s2168_s3, %s1604_s5 }
  0xc7   : > { %v948_v55 = vmax.f32 %v873_v50, 0.0  ;;  %v1025_v37 = vpack.c.bf16 %v1017_v27, %v1017_v27 }
  0xc8   : > { %v880_v57 = vpop.f32.mrf.mxu2  ;;  %v697_v58 = vpop.f32.mrf.mxu0 }
  0xc9   : > { %v978_v60 = vmax.f32 %v946_v54, %v948_v55  ;;  %v698_v61 = vadd.f32 %v1896_v62, %v697_v58  ;;  %v786_v63 = vpop.f32.mrf.mxu1  ;;  %v1041_v46 = vunpack.c.l.b16 %v1025_v37 }
  0xcb   : > { %736 = vmatmul.bf16.gmra.mxu0 %v1445_v56  ;;  %v787_v0 = vadd.f32 %v786_v63, %v698_v61  ;;  %v1138_v42 = vrot.slane %v978_v60, 1  ;;  %v1074_v56 = vrot.slane %v1041_v46, 2  ;;  %v1094_v63 = vrot.slane %v1041_v46, 4 }
  0xcc   : > { %825 = vmatmul.bf16.gmra.mxu1 %v1449_v59 }
  0xcd   : > { %v876_v1 = vadd.f32 %v875_v29, %v787_v0  ;;  %v1154_v48 = vmax.f32 %v978_v60, %v1138_v42  ;;  %v1111_v0 = vrot.slane %v1041_v46, 6 }
  0xce   : > { %v1931_v2 = vpop.f32.mrf.mxu3 }
  0xcf   : > { %v949_v32 = vmax.f32 %v876_v1, 0.0  ;;  %v1162_v1 = vpack.c.bf16 %v1154_v48, %v1154_v48 }
  0xd0   : > { %v882_v5 = vpop.f32.mrf.mxu2  ;;  %v699_v6 = vpop.f32.mrf.mxu0 }
  0xd1   : > { %v700_v7 = vadd.f32 %v1896_v62, %v699_v6  ;;  %v788_v8 = vpop.f32.mrf.mxu1  ;;  %v748_v6 = vadd.f32 %v1896_v62, %v1902_v10 }
  0xd3   : > { %v789_v11 = vadd.f32 %v788_v8, %v700_v7 }
  0xd5   : > { %v878_v14 = vadd.f32 %v877_v41, %v789_v11  ;;  %1598 = vmatmul.msk.bf16.gmra.mxu2 %vm629_vm0, %v1477_v9  ;;  %v1489_v41 = vor.u32 %v1646_v31, %v1488_v30 }
  0xd6   : > { %v1941_v17 = vpop.f32.mrf.mxu3 }
  0xd7   : > { %v950_v50 = vmax.f32 %v878_v14, 0.0 }
  0xd8   : > { %v885_v19 = vpop.f32.mrf.mxu2  ;;  %v702_v20 = vpop.f32.mrf.mxu0 }
  0xd9   : > { %v703_v23 = vadd.f32 %v1896_v62, %v702_v20  ;;  %v791_v24 = vpop.f32.mrf.mxu1 }
  0xdb   : > { %v792_v25 = vadd.f32 %v791_v24, %v703_v23  ;;  %741 = vmatmul.bf16.gmra.mxu0 %v1457_v18  ;;  %v1178_v18 = vunpack.c.l.b16 %v1162_v1 }
  0xdc   : > { %830 = vmatmul.bf16.gmra.mxu1 %v1461_v21 }
  0xdd   : > { %v881_v28 = vadd.f32 %v880_v57, %v792_v25  ;;  %v1203_v27 = vrot.slane %v1178_v18, 2  ;;  %v1239_v30 = vrot.slane %v1178_v18, 6 }
  0xde   : > { %v1944_v29 = vpop.f32.mrf.mxu3 }
  0xdf   : > { %v951_v33 = vmax.f32 %v881_v28, 0.0  ;;  %v1222_v28 = vrot.slane %v1178_v18, 4 }
  0xe0   : > { %v887_v34 = vpop.f32.mrf.mxu2  ;;  %v704_v35 = vpop.f32.mrf.mxu0 }
  0xe1   : > { %v979_v38 = vmax.f32 %v949_v32, %v951_v33  ;;  %v705_v39 = vadd.f32 %v1896_v62, %v704_v35  ;;  %v793_v40 = vpop.f32.mrf.mxu1 }
  0xe3   : > { %v1002_v44 = vrot.slane %v979_v38, 1  ;;  %v794_v45 = vadd.f32 %v793_v40, %v705_v39 }
  0xe5   : > { %v1018_v43 = vmax.f32 %v979_v38, %v1002_v44  ;;  %v883_v47 = vadd.f32 %v882_v5, %v794_v45  ;;  %1599 = vmatmul.msk.bf16.gmra.mxu2 %vm629_vm0, %v1489_v41 }
  0xe6   : > { %v1950_v49 = vpop.f32.mrf.mxu3 }
  0xe7   : > { %v1026_v51 = vpack.c.bf16 %v1018_v43, %v1018_v43  ;;  %v952_v52 = vmax.f32 %v883_v47, 0.0 }
  0xe8   : > { %v890_v54 = vpop.f32.mrf.mxu2  ;;  %v707_v55 = vpop.f32.mrf.mxu0 }
  0xe9   : > { %v1042_v57 = vunpack.c.l.b16 %v1026_v51  ;;  %v980_v58 = vmax.f32 %v950_v50, %v952_v52  ;;  %v708_v59 = vadd.f32 %v1896_v62, %v707_v55  ;;  %v796_v61 = vpop.f32.mrf.mxu1 }
  0xeb   : > { %v1049_v3 = vrot.slane %v1042_v57, 7  ;;  %v1075_v4 = vrot.slane %v1042_v57, 1  ;;  %v1095_v60 = vrot.slane %v1042_v57, 3  ;;  %v1112_v5 = vrot.slane %v1042_v57, 5 }
  0xec   : > { %v1139_v7 = vrot.slane %v980_v58, 1  ;;  %v797_v8 = vadd.f32 %v796_v61, %v708_v59 }
  0xed   : > { %v1956_v9 = vsel %vm1050_vm1, %v1049_v3, %v1041_v46  ;;  %v1959_v11 = vsel %vm1050_vm1, %v1095_v60, %v1094_v63  ;;  %v1962_v12 = vsel %vm1050_vm1, %v1075_v4, %v1074_v56  ;;  %v1965_v13 = vsel %vm1050_vm1, %v1112_v5, %v1111_v0 }
  0xee   : > { %v1155_v14 = vmax.f32 %v980_v58, %v1139_v7  ;;  %v886_v15 = vadd.f32 %v885_v19, %v797_v8  ;;  %v836_v16 = vpop.f32.mrf.mxu3  ;;  %v750_v19 = vadd.f32 %v1896_v62, %v1914_v26 }
  0xef   : > { %v1967_v20 = vadd.f32 %v836_v16, %v748_v6 }
  0xf0   : > { %v1163_v10 = vpack.c.bf16 %v1155_v14, %v1155_v14  ;;  %v892_v21 = vpop.f32.mrf.mxu2  ;;  %v709_v22 = vpop.f32.mrf.mxu0 }
  0xf1   : > { %v710_v23 = vadd.f32 %v1896_v62, %v709_v22  ;;  %v798_v24 = vpop.f32.mrf.mxu1 }
  0xf2   : > { %v1179_v25 = vunpack.c.l.b16 %v1163_v10 }
  0xf3   : > { %v799_v31 = vadd.f32 %v798_v24, %v710_v23 }
  0xf4   : > { %v1186_v32 = vrot.slane %v1179_v25, 7  ;;  %v1204_v33 = vrot.slane %v1179_v25, 1  ;;  %v1223_v35 = vrot.slane %v1179_v25, 3  ;;  %v1240_v37 = vrot.slane %v1179_v25, 5 }
  0xf5   : > { %v888_v38 = vadd.f32 %v887_v34, %v799_v31  ;;  %v953_v34 = vmax.f32 %v886_v15, 0.0 }
  0xf6   : > { %v1187_v39 = vsel %vm1050_vm1, %v1186_v32, %v1178_v18  ;;  %v1224_v40 = vsel %vm1050_vm1, %v1223_v35, %v1222_v28  ;;  %v838_v41 = vpop.f32.mrf.mxu3  ;;  %v1205_v42 = vsel %vm1050_vm1, %v1204_v33, %v1203_v27  ;;  %v1241_v44 = vsel %vm1050_vm1, %v1240_v37, %v1239_v30 }
  0xf7   : > { %v1976_v45 = vadd.f32 %v838_v41, %v750_v19  ;;  %v954_v4 = vmax.f32 %v888_v38, 0.0 }
  0xf8   : > { %v895_v46 = vpop.f32.mrf.mxu2  ;;  %v712_v43 = vpop.f32.mrf.mxu0 }
  0xf9   : > { %v713_v47 = vadd.f32 %v1896_v62, %v712_v43  ;;  %v801_v48 = vpop.f32.mrf.mxu1 }
  0xfb   : > { %v802_v50 = vadd.f32 %v801_v48, %v713_v47 }
  0xfd   : > { %v891_v51 = vadd.f32 %v890_v54, %v802_v50 }
  0xfe   : > { %v1979_v26 = vpop.f32.mrf.mxu3 }
  0xff   : > { %v955_v52 = vmax.f32 %v891_v51, 0.0 }
 0x100   : > { %v897_v55 = vpop.f32.mrf.mxu2  ;;  %v714_v56 = vpop.f32.mrf.mxu0 }
 0x101   : > { %v981_v57 = vmax.f32 %v953_v34, %v955_v52  ;;  %v715_v58 = vadd.f32 %v1896_v62, %v714_v56  ;;  %v803_v59 = vpop.f32.mrf.mxu1 }
 0x103   : > { %v1003_v61 = vrot.slane %v981_v57, 1  ;;  %v804_v63 = vadd.f32 %v803_v59, %v715_v58 }
 0x105   : > { %v1019_v0 = vmax.f32 %v981_v57, %v1003_v61  ;;  %v893_v1 = vadd.f32 %v892_v21, %v804_v63 }
 0x106   : > { %v1982_v3 = vpop.f32.mrf.mxu3 }
 0x107   : > { %v1027_v60 = vpack.c.bf16 %v1019_v0, %v1019_v0  ;;  %v956_v5 = vmax.f32 %v893_v1, 0.0 }
 0x108   : > { %v900_v54 = vpop.f32.mrf.mxu2  ;;  %v717_v6 = vpop.f32.mrf.mxu0 }
 0x109   : > { %v1043_v7 = vunpack.c.l.b16 %v1027_v60  ;;  %v982_v8 = vmax.f32 %v954_v4, %v956_v5  ;;  %v718_v14 = vadd.f32 %v1896_v62, %v717_v6  ;;  %v806_v15 = vpop.f32.mrf.mxu1 }
 0x10b   : > { %v1052_v16 = vrot.slane %v1043_v7, 6  ;;  %v1097_v18 = vrot.slane %v1043_v7, 2  ;;  %v1114_v10 = vrot.slane %v1043_v7, 4  ;;  %v1140_v22 = vrot.slane %v982_v8, 1 }
 0x10c   : > { %v807_v23 = vadd.f32 %v806_v15, %v718_v14  ;;  %v1077_v21 = vsel %vm1053_vm2, %v1043_v7, %v1962_v12 }
 0x10d   : > { %v1054_v24 = vsel %vm1053_vm2, %v1052_v16, %v1956_v9  ;;  %v1156_v25 = vmax.f32 %v982_v8, %v1140_v22  ;;  %v1098_v27 = vsel %vm1053_vm2, %v1097_v18, %v1959_v11  ;;  %v1115_v28 = vsel %vm1053_vm2, %v1114_v10, %v1965_v13 }
 0x10e   : > { %v896_v30 = vadd.f32 %v895_v46, %v807_v23  ;;  %v1993_v31 = vpop.f32.mrf.mxu3 }
 0x10f   : > { %v1164_v32 = vpack.c.bf16 %v1156_v25, %v1156_v25 }
 0x110   : > { %v902_v33 = vpop.f32.mrf.mxu2  ;;  %v719_v35 = vpop.f32.mrf.mxu0  ;;  %v957_v61 = vmax.f32 %v896_v30, 0.0 }
 0x111   : > { %v1180_v37 = vunpack.c.l.b16 %v1164_v32  ;;  %v720_v19 = vadd.f32 %v1896_v62, %v719_v35  ;;  %v808_v12 = vpop.f32.mrf.mxu1 }
 0x113   : > { %v1188_v38 = vrot.slane %v1180_v37, 6  ;;  %v1225_v41 = vrot.slane %v1180_v37, 2  ;;  %v1242_v9 = vrot.slane %v1180_v37, 4  ;;  %v809_v43 = vadd.f32 %v808_v12, %v720_v19 }
 0x114   : > { %v1206_v47 = vsel %vm1053_vm2, %v1180_v37, %v1205_v42 }
 0x115   : > { %v1189_v11 = vsel %vm1053_vm2, %v1188_v38, %v1187_v39  ;;  %v898_v48 = vadd.f32 %v897_v55, %v809_v43  ;;  %v1226_v13 = vsel %vm1053_vm2, %v1225_v41, %v1224_v40  ;;  %v1243_v46 = vsel %vm1053_vm2, %v1242_v9, %v1241_v44 }
 0x116   : > { %v2000_v50 = vpop.f32.mrf.mxu3 }
 0x117   : > { %v958_v6 = vmax.f32 %v898_v48, 0.0 }
 0x118   : > { %v905_v51 = vpop.f32.mrf.mxu2  ;;  %v722_v34 = vpop.f32.mrf.mxu0 }
 0x119   : > { %v723_v52 = vadd.f32 %v1896_v62, %v722_v34  ;;  %v811_v56 = vpop.f32.mrf.mxu1 }
 0x11b   : > { %v812_v57 = vadd.f32 %v811_v56, %v723_v52 }
 0x11d   : > { %v901_v58 = vadd.f32 %v900_v54, %v812_v57 }
 0x11e   : > { %v851_v59 = vpop.f32.mrf.mxu3 }
 0x11f   : > { %v959_v63 = vmax.f32 %v901_v58, 0.0 }
 0x120   : > { %v2003_v42 = vpop.f32.mrf.mxu2  ;;  %v724_v39 = vpop.f32.mrf.mxu0 }
 0x121   : > { %v983_v55 = vmax.f32 %v957_v61, %v959_v63  ;;  %v725_v40 = vadd.f32 %v1896_v62, %v724_v39  ;;  %v813_v0 = vpop.f32.mrf.mxu1 }
 0x123   : > { %v1004_v44 = vrot.slane %v983_v55, 1  ;;  %v814_v1 = vadd.f32 %v813_v0, %v725_v40  ;;  %v758_v40 = vadd.f32 %v1896_v62, %v1931_v2 }
 0x125   : > { %v1020_v4 = vmax.f32 %v983_v55, %v1004_v44  ;;  %v903_v60 = vadd.f32 %v902_v33, %v814_v1 }
 0x126   : > { %v2006_v5 = vpop.f32.mrf.mxu3 }
 0x127   : > { %v1028_v7 = vpack.c.bf16 %v1020_v4, %v1020_v4  ;;  %v960_v8 = vmax.f32 %v903_v60, 0.0 }
 0x128   : > { %v910_v54 = vpop.f32.mrf.mxu2  ;;  %v727_v14 = vpop.f32.mrf.mxu0 }
 0x129   : > { %v1044_v15 = vunpack.c.l.b16 %v1028_v7  ;;  %v984_v16 = vmax.f32 %v958_v6, %v960_v8  ;;  %v816_v18 = vpop.f32.mrf.mxu1  ;;  %v728_v56 = vadd.f32 %v1896_v62, %v727_v14 }
 0x12b   : > { %v1055_v10 = vrot.slane %v1044_v15, 5  ;;  %v1099_v22 = vrot.slane %v1044_v15, 1  ;;  %v1116_v23 = vrot.slane %v1044_v15, 3  ;;  %v1141_v25 = vrot.slane %v984_v16, 1 }
 0x12c   : > { %v1078_v30 = vrot.slane %v1044_v15, 7  ;;  %v817_v63 = vadd.f32 %v816_v18, %v728_v56 }
 0x12d   : > { %v2009_v32 = vsel %vm1056_vm3, %v1055_v10, %v1054_v24  ;;  %v1157_v33 = vmax.f32 %v984_v16, %v1141_v25  ;;  %v2012_v35 = vsel %vm1056_vm3, %v1099_v22, %v1098_v27  ;;  %v2015_v37 = vsel %vm1056_vm3, %v1116_v23, %v1115_v28 }
 0x12e   : > { %v935_v19 = vpop.f32.mrf.mxu3  ;;  %v2018_v12 = vsel %vm1056_vm3, %v1078_v30, %v1077_v21  ;;  %v906_v44 = vadd.f32 %v905_v51, %v817_v63  ;;  %v760_v23 = vadd.f32 %v1896_v62, %v1941_v17 }
 0x12f   : > { %v1165_v38 = vpack.c.bf16 %v1157_v33, %v1157_v33 }
 0x130   : > { %v912_v41 = vpop.f32.mrf.mxu2  ;;  %v729_v9 = vpop.f32.mrf.mxu0  ;;  %v961_v8 = vmax.f32 %v906_v44, 0.0 }
 0x131   : > { %v1181_v43 = vunpack.c.l.b16 %v1165_v38  ;;  %v818_v48 = vpop.f32.mrf.mxu1  ;;  %v730_v1 = vadd.f32 %v1896_v62, %v729_v9 }
 0x133   : > { %v1190_v34 = vrot.slane %v1181_v43, 5  ;;  %v1227_v52 = vrot.slane %v1181_v43, 1  ;;  %v1244_v24 = vrot.slane %v1181_v43, 3  ;;  %v1207_v57 = vrot.slane %v1181_v43, 7 }
 0x134   : > { %v819_v14 = vadd.f32 %v818_v48, %v730_v1 }
 0x135   : > { %v2022_v27 = vsel %vm1056_vm3, %v1190_v34, %v1189_v11  ;;  %v2025_v28 = vsel %vm1056_vm3, %v1227_v52, %v1226_v13  ;;  %v2028_v21 = vsel %vm1056_vm3, %v1244_v24, %v1243_v46  ;;  %v2031_v61 = vsel %vm1056_vm3, %v1207_v57, %v1206_v47 }
 0x136   : > { %v937_v58 = vpop.f32.mrf.mxu3  ;;  %v763_v13 = vadd.f32 %v1896_v62, %v1944_v29  ;;  %v847_v46 = vadd.f32 %v1993_v31, %v758_v40 }
 0x138   : > { %v2033_v39 = vpop.f32.mrf.mxu2  ;;  %v732_v55 = vpop.f32.mrf.mxu0  ;;  %v852_v4 = vadd.f32 %v851_v59, %v763_v13  ;;  %v936_v60 = vadd.f32 %v935_v19, %v847_v46  ;;  %v765_v59 = vadd.f32 %v1896_v62, %v1950_v49  ;;  %v849_v19 = vadd.f32 %v2000_v50, %v760_v23 }
 0x139   : > { %v733_v11 = vadd.f32 %v1896_v62, %v732_v55  ;;  %v821_v0 = vpop.f32.mrf.mxu1 }
 0x13a   : > { %v973_v10 = vmax.f32 %v936_v60, 0.0  ;;  %v854_v38 = vadd.f32 %v2006_v5, %v765_v59  ;;  %v938_v48 = vadd.f32 %v937_v58, %v849_v19 }
 0x13b   : > { %v822_v47 = vadd.f32 %v821_v0, %v733_v11 }
 0x13c   : > { %v974_v11 = vmax.f32 %v938_v48, 0.0 }
 0x13d   : > { %v911_v6 = vadd.f32 %v910_v54, %v822_v47  ;;  %v908_v54 = vadd.f32 %v2003_v42, %v819_v14 }
 0x13e   : > { %v940_v7 = vpop.f32.mrf.mxu3 }
 0x13f   : > { %v963_v15 = vmax.f32 %v911_v6, 0.0  ;;  %v941_v2 = vadd.f32 %v940_v7, %v852_v4  ;;  %v962_v52 = vmax.f32 %v908_v54, 0.0 }
 0x140   : > { %v2042_v16 = vpop.f32.mrf.mxu2  ;;  %v734_v18 = vpop.f32.mrf.mxu0 }
 0x141   : > { %v985_v22 = vmax.f32 %v961_v8, %v963_v15  ;;  %v975_v29 = vmax.f32 %v941_v2, 0.0  ;;  %v735_v31 = vadd.f32 %v1896_v62, %v734_v18  ;;  %v823_v51 = vpop.f32.mrf.mxu1 }
 0x143   : > { %v1005_v25 = vrot.slane %v985_v22, 1  ;;  %v2050_v30 = vmax.f32 %v973_v10, %v975_v29  ;;  %v824_v33 = vadd.f32 %v823_v51, %v735_v31 }
 0x145   : > { %v1021_v9 = vmax.f32 %v985_v22, %v1005_v25  ;;  %v913_v43 = vadd.f32 %v912_v41, %v824_v33 }
 0x146   : > { %v942_v34 = vpop.f32.mrf.mxu3 }
 0x147   : > { %v1029_v24 = vpack.c.bf16 %v1021_v9, %v1021_v9  ;;  %v964_v17 = vmax.f32 %v913_v43, 0.0  ;;  %v943_v56 = vadd.f32 %v942_v34, %v854_v38 }
 0x148   : > { %v920_v49 = vpop.f32.mrf.mxu2  ;;  %v737_v57 = vpop.f32.mrf.mxu0 }
 0x149   : > { %v1045_v42 = vunpack.c.l.b16 %v1029_v24  ;;  %v986_v63 = vmax.f32 %v962_v52, %v964_v17  ;;  %v976_v55 = vmax.f32 %v943_v56, 0.0  ;;  %v826_v40 = vpop.f32.mrf.mxu1 }
 0x14b   : > { %v1058_v0 = vrot.slane %v1045_v42, 4  ;;  %v2056_v50 = vsel %vm1059_vm4, %v1045_v42, %v2012_v35  ;;  %v1142_v5 = vrot.slane %v986_v63, 1  ;;  %v992_v41 = vmax.f32 %v974_v11, %v976_v55 }
 0x14c   : > { %v1080_v58 = vrot.slane %v1045_v42, 6  ;;  %v1118_v13 = vrot.slane %v1045_v42, 2 }
 0x14d   : > { %v1158_v46 = vmax.f32 %v986_v63, %v1142_v5  ;;  %v2068_v4 = vsel %vm1059_vm4, %v1058_v0, %v2009_v32  ;;  %v1145_v11 = vrot.slane %v992_v41, 1 }
 0x14e   : > { %v2060_v44 = vsel %vm1059_vm4, %v1080_v58, %v2018_v12  ;;  %v2064_v47 = vsel %vm1059_vm4, %v1118_v13, %v2015_v37  ;;  %v738_v12 = vadd.f32 %v1896_v62, %v737_v57 }
 0x14f   : > { %v1166_v1 = vpack.c.bf16 %v1158_v46, %v1158_v46 }
 0x150   : > { %v922_v35 = vpop.f32.mrf.mxu2  ;;  %v739_v60 = vpop.f32.mrf.mxu0  ;;  %v827_v10 = vadd.f32 %v826_v40, %v738_v12 }
 0x151   : > { %v1182_v6 = vunpack.c.l.b16 %v1166_v1  ;;  %v828_v7 = vpop.f32.mrf.mxu1  ;;  %v740_v23 = vadd.f32 %v1896_v62, %v739_v60  ;;  %v1161_v1 = vmax.f32 %v992_v41, %v1145_v11 }
 0x152   : > { %v916_v51 = vadd.f32 %v2033_v39, %v827_v10  ;;  %v753_v39 = vadd.f32 %v1896_v62, %v1918_v36 }
 0x153   : > { %v1192_v8 = vrot.slane %v1182_v6, 4  ;;  %v2072_v14 = vsel %vm1059_vm4, %v1182_v6, %v2025_v28  ;;  %v1209_v15 = vrot.slane %v1182_v6, 6  ;;  %v1246_v2 = vrot.slane %v1182_v6, 2 }
 0x154   : > { %v965_v54 = vmax.f32 %v916_v51, 0.0  ;;  %v829_v25 = vadd.f32 %v828_v7, %v740_v23 }
 0x155   : > { %v2077_v37 = vsel %vm1059_vm4, %v1209_v15, %v2031_v61  ;;  %v2081_v32 = vsel %vm1059_vm4, %v1192_v8, %v2022_v27  ;;  %v2085_v18 = vsel %vm1059_vm4, %v1246_v2, %v2028_v21  ;;  %v1008_v21 = vrot.slane %v2050_v30, 1 }
 0x156   : > { %v918_v48 = vadd.f32 %v2042_v16, %v829_v25  ;;  %v1169_v15 = vpack.c.bf16 %v1161_v1, %v1161_v1 }
 0x157   : > { %v1024_v24 = vmax.f32 %v2050_v30, %v1008_v21  ;;  %v755_v30 = vadd.f32 %v1896_v62, %v1928_v53 }
 0x158   : > { %v925_v22 = vpop.f32.mrf.mxu2  ;;  %v742_v28 = vpop.f32.mrf.mxu0  ;;  %v966_v57 = vmax.f32 %v918_v48, 0.0 }
 0x159   : > { %v743_v29 = vadd.f32 %v1896_v62, %v742_v28  ;;  %v831_v31 = vpop.f32.mrf.mxu1  ;;  %v926_v42 = vadd.f32 %v925_v22, %v1967_v20  ;;  %v1032_v40 = vpack.c.bf16 %v1024_v24, %v1024_v24  ;;  %v844_v20 = vadd.f32 %v1982_v3, %v755_v30 }
 0x15b   : > { %v832_v61 = vadd.f32 %v831_v31, %v743_v29  ;;  %v969_v58 = vmax.f32 %v926_v42, 0.0  ;;  %v1048_v46 = vunpack.c.l.b16 %v1032_v40 }
 0x15d   : > { %v921_v59 = vadd.f32 %v920_v49, %v832_v61  ;;  %v842_v49 = vadd.f32 %v1979_v26, %v753_v39  ;;  %v1067_v12 = vrot.slane %v1048_v46, 1  ;;  %v1106_v22 = vrot.slane %v1048_v46, 5 }
 0x15e   : > { %v1086_v31 = vrot.slane %v1048_v46, 3  ;;  %v1123_v23 = vrot.slane %v1048_v46, 7  ;;  %v1185_v61 = vunpack.c.l.b16 %v1169_v15 }
 0x15f   : > { %v967_v27 = vmax.f32 %v921_v59, 0.0 }
 0x160   : > { %v927_v33 = vpop.f32.mrf.mxu2  ;;  %v744_v19 = vpop.f32.mrf.mxu0 }
 0x161   : > { %v987_v38 = vmax.f32 %v965_v54, %v967_v27  ;;  %v745_v9 = vadd.f32 %v1896_v62, %v744_v19  ;;  %v833_v43 = vpop.f32.mrf.mxu1  ;;  %v928_v6 = vadd.f32 %v927_v33, %v1976_v45 }
 0x163   : > { %v1006_v34 = vrot.slane %v987_v38, 1  ;;  %v834_v52 = vadd.f32 %v833_v43, %v745_v9  ;;  %v970_v41 = vmax.f32 %v928_v6, 0.0 }
 0x165   : > { %v923_v17 = vadd.f32 %v922_v35, %v834_v52  ;;  %v1022_v56 = vmax.f32 %v987_v38, %v1006_v34 }
 0x167   : > { %v968_v63 = vmax.f32 %v923_v17, 0.0  ;;  %v1030_v5 = vpack.c.bf16 %v1022_v56, %v1022_v56 }
 0x168   : > { %v930_v55 = vpop.f32.mrf.mxu2 }
 0x169   : > { %v988_v16 = vmax.f32 %v966_v57, %v968_v63  ;;  %v931_v0 = vadd.f32 %v930_v55, %v842_v49  ;;  %v1046_v35 = vunpack.c.l.b16 %v1030_v5  ;;  %v1234_v5 = vrot.slane %v1185_v61, 5 }
 0x16b   : > { %v1143_v13 = vrot.slane %v988_v16, 1  ;;  %v971_v36 = vmax.f32 %v931_v0, 0.0  ;;  %v1120_v53 = vrot.slane %v1046_v35, 1  ;;  %v1061_v45 = vrot.slane %v1046_v35, 3 }
 0x16c   : > { %v1102_v3 = vrot.slane %v1046_v35, 7  ;;  %v1082_v51 = vrot.slane %v1046_v35, 5 }
 0x16d   : > { %v989_v26 = vmax.f32 %v969_v58, %v971_v36  ;;  %v1159_v60 = vmax.f32 %v988_v16, %v1143_v13  ;;  %v1121_v27 = vsel %vm1062_vm5, %v1120_v53, %v2064_v47  ;;  %v1063_v48 = vsel %vm1062_vm5, %v1061_v45, %v2068_v4 }
 0x16e   : > { %v1083_v9 = vsel %vm1062_vm5, %v1082_v51, %v2060_v44  ;;  %v1103_v34 = vsel %vm1062_vm5, %v1102_v3, %v2056_v50  ;;  %v1198_v16 = vrot.slane %v1185_v61, 1  ;;  %v1215_v58 = vrot.slane %v1185_v61, 3 }
 0x16f   : > { %v1007_v7 = vrot.slane %v989_v26, 1  ;;  %v1167_v62 = vpack.c.bf16 %v1159_v60, %v1159_v60  ;;  %v1251_v36 = vrot.slane %v1185_v61, 7 }
 0x170   : > { %v932_v8 = vpop.f32.mrf.mxu2 }
 0x171   : > { %v1023_v2 = vmax.f32 %v989_v26, %v1007_v7  ;;  %v933_v10 = vadd.f32 %v932_v8, %v844_v20  ;;  %v1183_v25 = vunpack.c.l.b16 %v1167_v62 }
 0x173   : > { %v1031_v28 = vpack.c.bf16 %v1023_v2, %v1023_v2  ;;  %v972_v29 = vmax.f32 %v933_v10, 0.0  ;;  %v1248_v56 = vrot.slane %v1183_v25, 1  ;;  %v1194_v63 = vrot.slane %v1183_v25, 3 }
 0x174   : > { %v1230_v55 = vrot.slane %v1183_v25, 7  ;;  %v1211_v40 = vrot.slane %v1183_v25, 5 }
 0x175   : > { %v1047_v59 = vunpack.c.l.b16 %v1031_v28  ;;  %v990_v54 = vmax.f32 %v970_v41, %v972_v29  ;;  %v1249_v13 = vsel %vm1062_vm5, %v1248_v56, %v2085_v18  ;;  %v1195_v20 = vsel %vm1062_vm5, %v1194_v63, %v2081_v32 }
 0x176   : > { %v1212_v35 = vsel %vm1062_vm5, %v1211_v40, %v2077_v37  ;;  %v1231_v18 = vsel %vm1062_vm5, %v1230_v55, %v2072_v14 }
 0x177   : > { %v1064_v33 = vrot.slane %v1047_v59, 2  ;;  %v1104_v19 = vrot.slane %v1047_v59, 6  ;;  %v1144_v21 = vrot.slane %v990_v54, 1  ;;  %v1084_v38 = vrot.slane %v1047_v59, 4 }
 0x178   : > { %v1122_v43 = vsel %vm1065_vm6, %v1047_v59, %v1121_v27 }
 0x179   : > { %v1160_v52 = vmax.f32 %v990_v54, %v1144_v21  ;;  %v1085_v47 = vsel %vm1065_vm6, %v1084_v38, %v1083_v9  ;;  %v1124_v39 = vsel %vm1068_vm7, %v1123_v23, %v1122_v43  ;;  %v1066_v24 = vsel %vm1065_vm6, %v1064_v33, %v1063_v48 }
 0x17a   : > { %v1087_v17 = vsel %vm1068_vm7, %v1086_v31, %v1085_v47  ;;  %v1069_v44 = vsel %vm1068_vm7, %v1067_v12, %v1066_v24  ;;  %v1105_v50 = vsel %vm1065_vm6, %v1104_v19, %v1103_v34  ;;  %v1125_v32 = vpack.c.b16 %v1124_v39, %v1124_v39 }
 0x17b   : > { %v1168_v4 = vpack.c.bf16 %v1160_v52, %v1160_v52  ;;  %v1088_v49 = vpack.c.b16 %v1087_v17, %v1087_v17  ;;  %v1070_v57 = vpack.c.b16 %v1069_v44, %v1069_v44  ;;  %v1107_v42 = vsel %vm1068_vm7, %v1106_v22, %v1105_v50 }
 0x17c   : > { %v1108_v11 = vpack.c.b16 %v1107_v42, %v1107_v42 }
 0x17d   : > { %v1184_v0 = vunpack.c.l.b16 %v1168_v4  ;;  %1089 = vrot.lane.b32.xlu0 %v1088_v49, %s1708_s8  ;;  %1073 = vst.msk [vmem:[%s2125_s7] sm:$0xf] %vm1072_vm8, %v1070_v57 }
 0x17e   : > { %1110 = vst.msk [vmem:[%s2125_s7 + $0x4] sm:$0xf] %vm1072_vm8, %v1108_v11 }
 0x17f   : > { %v1196_v30 = vrot.slane %v1184_v0, 2  ;;  %v1232_v46 = vrot.slane %v1184_v0, 6  ;;  %v1213_v1 = vrot.slane %v1184_v0, 4  ;;  %v1250_v26 = vsel %vm1065_vm6, %v1184_v0, %v1249_v13 }
 0x180   : > { %v1252_v60 = vsel %vm1068_vm7, %v1251_v36, %v1250_v26 }
 0x181   : > { %v1214_v6 = vsel %vm1065_vm6, %v1213_v1, %v1212_v35  ;;  %v1197_v7 = vsel %vm1065_vm6, %v1196_v30, %v1195_v20  ;;  %v1233_v8 = vsel %vm1065_vm6, %v1232_v46, %v1231_v18  ;;  %v1253_v22 = vpack.c.b16 %v1252_v60, %v1252_v60 }
 0x182   : > { %v1216_v12 = vsel %vm1068_vm7, %v1215_v58, %v1214_v6  ;;  %v1199_v37 = vsel %vm1068_vm7, %v1198_v16, %v1197_v7  ;;  %v1235_v15 = vsel %vm1068_vm7, %v1234_v5, %v1233_v8 }
 0x183   : > { %v1217_v2 = vpack.c.b16 %v1216_v12, %v1216_v12  ;;  %v1200_v10 = vpack.c.b16 %v1199_v37, %v1199_v37  ;;  %v1236_v14 = vpack.c.b16 %v1235_v15, %v1235_v15 }
 0x185   : > { %1218 = vrot.lane.b32.xlu1 %v1217_v2, %s1708_s8  ;;  %1126 = vrot.lane.b32.xlu0 %v1125_v32, %s1708_s8  ;;  %1202 = vst.msk [vmem:[%s2125_s7 + $0x8] sm:$0xf] %vm1072_vm8, %v1200_v10 }
 0x186   : > { %1238 = vst.msk [vmem:[%s2125_s7 + $0xc] sm:$0xf] %vm1072_vm8, %v1236_v14 }
 0x18d   : > { %1254 = vrot.lane.b32.xlu1 %v1253_v22, %s1708_s8 }
 0x1ef   : > { %v1090_v62 = vpop.permute.xlu0 %1089 }
 0x1f0   : > { %1093 = vst.msk [vmem:[%s2125_s7] sm:$0xf] %vm1092_vm9, %v1090_v62 }
 0x1f7   : > { %v1219_v53 = vpop.permute.xlu1 %1218  ;;  %v1127_v41 = vpop.permute.xlu0 %1126 }
 0x1f8   : > { %1221 = vst.msk [vmem:[%s2125_s7 + $0x8] sm:$0xf] %vm1092_vm9, %v1219_v53 }
 0x1f9   : > { %1129 = vst.msk [vmem:[%s2125_s7 + $0x4] sm:$0xf] %vm1092_vm9, %v1127_v41 }
 0x1ff   : > { %v1255_v28 = vpop.permute.xlu1 %1254 }
 0x200   : > { %1257 = vst.msk [vmem:[%s2125_s7 + $0xc] sm:$0xf] %vm1092_vm9, %v1255_v28 }
 0x201 PF: > { %s13_s12 = sadd.s32 1, %s1706_s12  }
 0x202   : > { %p10_p5 = scmp.ge.s32.totalorder %s13_s12, 4  }
 0x204   :  { %12 = sbr.rel (!%p10_p5) target bundleno = 1 (0x1), region = 62 }

// kernel: expconvnet_forward.7
= control target key start
LH: loop header
LB: loop body
LE: loop exit
PB: predicated region body
PF: predicated region fallthrough
CT: control target
= control target key end

     0   :  { %s669_s0 = inlined_call_operand.vmem [shape: bf16[2,512], index: 0, kind: input, shape index: {}]   ;;  %s670_s1 = inlined_call_operand.vmem [shape: bf16[512,128], index: 1, kind: input, shape index: {}]   ;;  %s671_s2 = inlined_call_operand.vmem [shape: f32[1,128], index: 2, kind: input, shape index: {}]   ;;  %s672_s3 = inlined_call_operand.hbm [shape: f32[2,128], index: 3, kind: output, shape index: {}]  }
   0x1   :  { %v490_v0 = vld [vmem:[%s670_s1 + $0x38] sm:$0xff]  ;;  %v489_v4 = vld [vmem:[%s670_s1 + $0x30] sm:$0xff]  ;;  %v488_v8 = vld [vmem:[%s670_s1 + $0x28] sm:$0xff] }
   0x2   :  { %v498_v1 = vld [vmem:[%s670_s1 + $0x78] sm:$0xff]  ;;  %286 = vmatpush.bf16.msra.mxu0 %v490_v0  ;;  %v497_v5 = vld [vmem:[%s670_s1 + $0x70] sm:$0xff]  ;;  %v496_v9 = vld [vmem:[%s670_s1 + $0x68] sm:$0xff] }
   0x3   :  { %v506_v2 = vld [vmem:[%s670_s1 + $0xb8] sm:$0xff]  ;;  %299 = vmatpush.bf16.msra.mxu1 %v498_v1  ;;  %v505_v6 = vld [vmem:[%s670_s1 + $0xb0] sm:$0xff]  ;;  %v504_v10 = vld [vmem:[%s670_s1 + $0xa8] sm:$0xff] }
   0x4   :  { %v514_v3 = vld [vmem:[%s670_s1 + $0xf8] sm:$0xff]  ;;  %312 = vmatpush.bf16.msra.mxu2 %v506_v2  ;;  %v513_v7 = vld [vmem:[%s670_s1 + $0xf0] sm:$0xff]  ;;  %v512_v11 = vld [vmem:[%s670_s1 + $0xe8] sm:$0xff] }
   0x5   :  { %325 = vmatpush.bf16.msra.mxu3 %v514_v3  ;;  %v487_v12 = vld [vmem:[%s670_s1 + $0x20] sm:$0xff] }
   0x6   :  { %287 = vmatpush.bf16.msra.mxu0 %v489_v4  ;;  %v495_v13 = vld [vmem:[%s670_s1 + $0x60] sm:$0xff] }
   0x7   :  { %300 = vmatpush.bf16.msra.mxu1 %v497_v5  ;;  %v15_v14 = vld [vmem:[%s669_s0] sm:$0xf] }
   0x8   :  { %313 = vmatpush.bf16.msra.mxu2 %v505_v6  ;;  %v503_v15 = vld [vmem:[%s670_s1 + $0xa0] sm:$0xff]  ;;  %85 = vst [vmem:[#allocation1] ss:$9 sm:$0xff] %v15_v14 }
   0x9   :  { %326 = vmatpush.bf16.msra.mxu3 %v513_v7  ;;  %v511_v16 = vld [vmem:[%s670_s1 + $0xe0] sm:$0xff] }
   0xa   :  { %288 = vmatpush.bf16.msra.mxu0 %v488_v8 }
   0xb   :  { %301 = vmatpush.bf16.msra.mxu1 %v496_v9 }
   0xc   :  { %314 = vmatpush.bf16.msra.mxu2 %v504_v10 }
   0xd   :  { %327 = vmatpush.bf16.msra.mxu3 %v512_v11 }
   0xe   :  { %8 = vsyncpa [#allocation3], 0  ;;  %289 = vmatpush.bf16.msra.mxu0 %v487_v12  ;;  %v486_v17 = vld [vmem:[%s670_s1 + $0x18] sm:$0xff]  ;;  %v485_v21 = vld [vmem:[%s670_s1 + $0x10] sm:$0xff]  ;;  %s346_s27 = sshll.u32 %s672_s3, 4  ;;  %s347_s27 = int_to_ptr.hbm [resolvable:$true] %s346_s27 }
   0xf   :  { %302 = vmatpush.bf16.msra.mxu1 %v495_v13  ;;  %v494_v18 = vld [vmem:[%s670_s1 + $0x58] sm:$0xff]  ;;  %v493_v22 = vld [vmem:[%s670_s1 + $0x50] sm:$0xff]  ;;  %v484_v25 = vld [vmem:[%s670_s1 + $0x8] sm:$0xff] }
  0x10   :  { %315 = vmatpush.bf16.msra.mxu2 %v503_v15  ;;  %v502_v19 = vld [vmem:[%s670_s1 + $0x98] sm:$0xff]  ;;  %v501_v23 = vld [vmem:[%s670_s1 + $0x90] sm:$0xff]  ;;  %v492_v26 = vld [vmem:[%s670_s1 + $0x48] sm:$0xff] }
  0x11   :  { %328 = vmatpush.bf16.msra.mxu3 %v511_v16  ;;  %v510_v20 = vld [vmem:[%s670_s1 + $0xd8] sm:$0xff]  ;;  %v509_v24 = vld [vmem:[%s670_s1 + $0xd0] sm:$0xff]  ;;  %v500_v27 = vld [vmem:[%s670_s1 + $0x88] sm:$0xff] }
  0x12   :  { %290 = vmatpush.bf16.msra.mxu0 %v486_v17  ;;  %v508_v28 = vld [vmem:[%s670_s1 + $0xc8] sm:$0xff]  ;;  %v483_v29 = vld [vmem:[%s670_s1] sm:$0xff]  ;;  %v88_v35 = vld [vmem:[#allocation1 + $0x12] sm:$0xff] }
  0x13   :  { %303 = vmatpush.bf16.msra.mxu1 %v494_v18  ;;  %v491_v30 = vld [vmem:[%s670_s1 + $0x40] sm:$0xff]  ;;  %v87_v34 = vld [vmem:[#allocation1 + $0x9] sm:$0xff] }
  0x14   :  { %316 = vmatpush.bf16.msra.mxu2 %v502_v19  ;;  %v499_v31 = vld [vmem:[%s670_s1 + $0x80] sm:$0xff] }
  0x15   :  { %329 = vmatpush.bf16.msra.mxu3 %v510_v20  ;;  %v507_v32 = vld [vmem:[%s670_s1 + $0xc0] sm:$0xff]  ;;  %s543_s1 = smov [#allocation2]  }
  0x16   :  { %291 = vmatpush.bf16.msra.mxu0 %v485_v21  ;;  %v86_v33 = vld [vmem:[#allocation1] sm:$0xff]  ;;  %s344_s24 = sshll.u32 %s543_s1, 4  ;;  %s345_s24 = int_to_ptr.vmem [resolvable:$true] %s344_s24 }
  0x17   :  { %304 = vmatpush.bf16.msra.mxu1 %v493_v22  ;;  %v89_v36 = vld [vmem:[#allocation1 + $0x1b] sm:$0xff] }
  0x18   :  { %317 = vmatpush.bf16.msra.mxu2 %v501_v23  ;;  %v516_v37 = vld [vmem:[%s671_s2] ss:$0 sm:$0xff] }
  0x19   :  { %330 = vmatpush.bf16.msra.mxu3 %v509_v24 }
  0x1a   :  { %292 = vmatpush.bf16.msra.mxu0 %v484_v25 }
  0x1b   :  { %305 = vmatpush.bf16.msra.mxu1 %v492_v26 }
  0x1c   :  { %318 = vmatpush.bf16.msra.mxu2 %v500_v27 }
  0x1d   :  { %331 = vmatpush.bf16.msra.mxu3 %v508_v28 }
  0x1e   :  { %293 = vmatpush.bf16.msra.mxu0 %v483_v29 }
  0x1f   :  { %306 = vmatpush.bf16.msra.mxu1 %v491_v30 }
  0x20   :  { %319 = vmatpush.bf16.msra.mxu2 %v499_v31 }
  0x21   :  { %332 = vmatpush.bf16.msra.mxu3 %v507_v32  ;;  %294 = vmatmul.bf16.vlgmr.msra.gmra.mxu0 %v86_v33 }
  0x22   :  { %307 = vmatmul.bf16.vlgmr.msra.gmra.mxu1 %v87_v34 }
  0x23   :  { %320 = vmatmul.bf16.vlgmr.msra.gmra.mxu2 %v88_v35 }
  0x24   :  { %333 = vmatmul.bf16.vlgmr.msra.gmra.mxu3 %v89_v36 }
  0x9e   :  { %v295_v38 = vpop.f32.mrf.mxu0 }
  0x9f   :  { %v308_v39 = vpop.f32.mrf.mxu1  ;;  %v296_v40 = vadd.f32 %v516_v37, %v295_v38 }
  0xa1   :  { %v309_v41 = vadd.f32 %v308_v39, %v296_v40 }
  0xa6   :  { %v321_v42 = vpop.f32.mrf.mxu2  ;;  %v297_v45 = vpop.f32.mrf.mxu0 }
  0xa7   :  { %v334_v43 = vpop.f32.mrf.mxu3  ;;  %v322_v44 = vadd.f32 %v321_v42, %v309_v41  ;;  %v310_v46 = vpop.f32.mrf.mxu1 }
  0xa9   :  { %v335_v47 = vadd.f32 %v334_v43, %v322_v44 }
  0xab   :  { %338 = vst [vmem:[#allocation2] sm:$0x3] %v335_v47 }
  0xac   :  { %349 = dma.vmem_to_hbm [thread:$0]  %s345_s24, 32, %s347_s27, [#allocation3]  }
  0xae   :  { %v323_v48 = vpop.f32.mrf.mxu2 }
  0xaf   :  { %v336_v49 = vpop.f32.mrf.mxu3 }
  0xb0   :  { %541 = dma.done.wait [#allocation3], 32  }
  0xb1   :  { %542 = vsyncadd [#allocation3], 4294967264 }
  0xb2   :  { %354 = vsyncpa [#allocation3], 1 }

// kernel: expconvnet_forward.6
= control target key start
LH: loop header
LB: loop body
LE: loop exit
PB: predicated region body
PF: predicated region fallthrough
CT: control target
= control target key end

     0   :  { %vm7919_vm0 = vcmask 1040384   ;;  %vm7923_vm1 = vcmask 1042434   ;;  %vm7927_vm2 = vcmask 1041408   ;;  %s19493_s1 = inlined_call_operand.vmem [shape: bf16[4096,512], index: 1, kind: input, shape index: {}]   ;;  %s19494_s0 = inlined_call_operand.vmem [shape: bf16[2,4096], index: 0, kind: input, shape index: {}]   ;;  %s19495_s2 = inlined_call_operand.vmem [shape: f32[1,512], index: 2, kind: input, shape index: {}]   ;;  %s19496_s3 = inlined_call_operand.vmem [shape: bf16[2,512], index: 3, kind: output, shape index: {}]  }
   0x1   :  { %v8049_v0 = vld [vmem:[%s19493_s1 + $0xe0] sm:$0xf]  ;;  %v12061_v1 = vld [vmem:[%s19493_s1 + $0xec] sm:$0xf0] }
   0x2   :  { %v8177_v2 = vld [vmem:[%s19493_s1 + $0x1e0] sm:$0xf]  ;;  %v8050_v3 = vor.u32 %v12061_v1, %v8049_v0  ;;  %v12093_v4 = vld [vmem:[%s19493_s1 + $0x1ec] sm:$0xf0] }
   0x3   :  { %v8305_v5 = vld [vmem:[%s19493_s1 + $0x2e0] sm:$0xf]  ;;  %v12125_v6 = vld [vmem:[%s19493_s1 + $0x2ec] sm:$0xf0]  ;;  %v8178_v7 = vor.u32 %v12093_v4, %v8177_v2 }
   0x4   :  { %v8306_v8 = vor.u32 %v12125_v6, %v8305_v5  ;;  %v8433_v9 = vld [vmem:[%s19493_s1 + $0x3e0] sm:$0xf]  ;;  %v12157_v10 = vld [vmem:[%s19493_s1 + $0x3ec] sm:$0xf0]  ;;  %6244 = vmatpush.bf16.msra.mxu0 %v8050_v3 }
   0x5   :  { %v8033_v11 = vld [vmem:[%s19493_s1 + $0xc0] sm:$0xf]  ;;  %v8434_v12 = vor.u32 %v12157_v10, %v8433_v9  ;;  %v12057_v13 = vld [vmem:[%s19493_s1 + $0xcc] sm:$0xf0]  ;;  %6257 = vmatpush.bf16.msra.mxu1 %v8178_v7 }
   0x6   :  { %v8161_v14 = vld [vmem:[%s19493_s1 + $0x1c0] sm:$0xf]  ;;  %v12089_v15 = vld [vmem:[%s19493_s1 + $0x1cc] sm:$0xf0]  ;;  %6270 = vmatpush.bf16.msra.mxu2 %v8306_v8  ;;  %v8034_v16 = vor.u32 %v12057_v13, %v8033_v11 }
   0x7   :  { %v8162_v17 = vor.u32 %v12089_v15, %v8161_v14  ;;  %v8289_v18 = vld [vmem:[%s19493_s1 + $0x2c0] sm:$0xf]  ;;  %v12121_v19 = vld [vmem:[%s19493_s1 + $0x2cc] sm:$0xf0]  ;;  %6283 = vmatpush.bf16.msra.mxu3 %v8434_v12 }
   0x8   :  { %v8417_v20 = vld [vmem:[%s19493_s1 + $0x3c0] sm:$0xf]  ;;  %v8290_v21 = vor.u32 %v12121_v19, %v8289_v18  ;;  %v12153_v22 = vld [vmem:[%s19493_s1 + $0x3cc] sm:$0xf0]  ;;  %6245 = vmatpush.bf16.msra.mxu0 %v8034_v16 }
   0x9   :  { %v8017_v23 = vld [vmem:[%s19493_s1 + $0xa0] sm:$0xf]  ;;  %v12053_v24 = vld [vmem:[%s19493_s1 + $0xac] sm:$0xf0]  ;;  %v8418_v25 = vor.u32 %v12153_v22, %v8417_v20  ;;  %6258 = vmatpush.bf16.msra.mxu1 %v8162_v17 }
   0xa   :  { %v8145_v26 = vld [vmem:[%s19493_s1 + $0x1a0] sm:$0xf]  ;;  %v12085_v27 = vld [vmem:[%s19493_s1 + $0x1ac] sm:$0xf0]  ;;  %v8018_v29 = vor.u32 %v12053_v24, %v8017_v23  ;;  %6271 = vmatpush.bf16.msra.mxu2 %v8290_v21 }
   0xb   :  { %v8273_v28 = vld [vmem:[%s19493_s1 + $0x2a0] sm:$0xf]  ;;  %v12117_v30 = vld [vmem:[%s19493_s1 + $0x2ac] sm:$0xf0]  ;;  %v8146_v33 = vor.u32 %v12085_v27, %v8145_v26  ;;  %6284 = vmatpush.bf16.msra.mxu3 %v8418_v25 }
   0xc   :  { %v8401_v31 = vld [vmem:[%s19493_s1 + $0x3a0] sm:$0xf]  ;;  %v12149_v32 = vld [vmem:[%s19493_s1 + $0x3ac] sm:$0xf0]  ;;  %v8274_v34 = vor.u32 %v12117_v30, %v8273_v28  ;;  %6246 = vmatpush.bf16.msra.mxu0 %v8018_v29 }
   0xd   :  { %v8001_v35 = vld [vmem:[%s19493_s1 + $0x80] sm:$0xf]  ;;  %v12049_v36 = vld [vmem:[%s19493_s1 + $0x8c] sm:$0xf0]  ;;  %v8402_v38 = vor.u32 %v12149_v32, %v8401_v31  ;;  %6259 = vmatpush.bf16.msra.mxu1 %v8146_v33 }
   0xe   :  { %v8129_v37 = vld [vmem:[%s19493_s1 + $0x180] sm:$0xf]  ;;  %v12081_v39 = vld [vmem:[%s19493_s1 + $0x18c] sm:$0xf0]  ;;  %v8002_v44 = vor.u32 %v12049_v36, %v8001_v35  ;;  %6272 = vmatpush.bf16.msra.mxu2 %v8274_v34 }
   0xf   :  { %v8257_v40 = vld [vmem:[%s19493_s1 + $0x280] sm:$0xf]  ;;  %v12113_v41 = vld [vmem:[%s19493_s1 + $0x28c] sm:$0xf0]  ;;  %v8130_v45 = vor.u32 %v12081_v39, %v8129_v37  ;;  %6285 = vmatpush.bf16.msra.mxu3 %v8402_v38 }
  0x10   :  { %v8385_v42 = vld [vmem:[%s19493_s1 + $0x380] sm:$0xf]  ;;  %v12145_v43 = vld [vmem:[%s19493_s1 + $0x38c] sm:$0xf0]  ;;  %v8258_v46 = vor.u32 %v12113_v41, %v8257_v40  ;;  %6247 = vmatpush.bf16.msra.mxu0 %v8002_v44 }
  0x11   :  { %v7985_v47 = vld [vmem:[%s19493_s1 + $0x60] sm:$0xf]  ;;  %v12045_v48 = vld [vmem:[%s19493_s1 + $0x6c] sm:$0xf0]  ;;  %v8386_v50 = vor.u32 %v12145_v43, %v8385_v42  ;;  %6260 = vmatpush.bf16.msra.mxu1 %v8130_v45 }
  0x12   :  { %v8113_v49 = vld [vmem:[%s19493_s1 + $0x160] sm:$0xf]  ;;  %v12077_v51 = vld [vmem:[%s19493_s1 + $0x16c] sm:$0xf0]  ;;  %v7986_v56 = vor.u32 %v12045_v48, %v7985_v47  ;;  %6273 = vmatpush.bf16.msra.mxu2 %v8258_v46 }
  0x13   :  { %v8241_v52 = vld [vmem:[%s19493_s1 + $0x260] sm:$0xf]  ;;  %v12109_v53 = vld [vmem:[%s19493_s1 + $0x26c] sm:$0xf0]  ;;  %v8114_v57 = vor.u32 %v12077_v51, %v8113_v49  ;;  %6286 = vmatpush.bf16.msra.mxu3 %v8386_v50 }
  0x14   :  { %v8369_v54 = vld [vmem:[%s19493_s1 + $0x360] sm:$0xf]  ;;  %v12141_v55 = vld [vmem:[%s19493_s1 + $0x36c] sm:$0xf0]  ;;  %v8242_v58 = vor.u32 %v12109_v53, %v8241_v52  ;;  %6248 = vmatpush.bf16.msra.mxu0 %v7986_v56 }
  0x15   :  { %v7969_v59 = vld [vmem:[%s19493_s1 + $0x40] sm:$0xf]  ;;  %v12041_v60 = vld [vmem:[%s19493_s1 + $0x4c] sm:$0xf0]  ;;  %v8370_v62 = vor.u32 %v12141_v55, %v8369_v54  ;;  %6261 = vmatpush.bf16.msra.mxu1 %v8114_v57 }
  0x16   :  { %v8097_v61 = vld [vmem:[%s19493_s1 + $0x140] sm:$0xf]  ;;  %v12073_v63 = vld [vmem:[%s19493_s1 + $0x14c] sm:$0xf0]  ;;  %v7970_v4 = vor.u32 %v12041_v60, %v7969_v59  ;;  %6274 = vmatpush.bf16.msra.mxu2 %v8242_v58 }
  0x17   :  { %v8225_v0 = vld [vmem:[%s19493_s1 + $0x240] sm:$0xf]  ;;  %v12105_v1 = vld [vmem:[%s19493_s1 + $0x24c] sm:$0xf0]  ;;  %v8098_v5 = vor.u32 %v12073_v63, %v8097_v61  ;;  %6287 = vmatpush.bf16.msra.mxu3 %v8370_v62 }
  0x18   :  { %v8353_v2 = vld [vmem:[%s19493_s1 + $0x340] sm:$0xf]  ;;  %v12137_v3 = vld [vmem:[%s19493_s1 + $0x34c] sm:$0xf0]  ;;  %v8226_v6 = vor.u32 %v12105_v1, %v8225_v0  ;;  %6249 = vmatpush.bf16.msra.mxu0 %v7970_v4 }
  0x19   :  { %v7953_v7 = vld [vmem:[%s19493_s1 + $0x20] sm:$0xf]  ;;  %v12037_v8 = vld [vmem:[%s19493_s1 + $0x2c] sm:$0xf0]  ;;  %v8354_v10 = vor.u32 %v12137_v3, %v8353_v2  ;;  %6262 = vmatpush.bf16.msra.mxu1 %v8098_v5 }
  0x1a   :  { %v8081_v9 = vld [vmem:[%s19493_s1 + $0x120] sm:$0xf]  ;;  %v12069_v11 = vld [vmem:[%s19493_s1 + $0x12c] sm:$0xf0]  ;;  %v7954_v16 = vor.u32 %v12037_v8, %v7953_v7  ;;  %6275 = vmatpush.bf16.msra.mxu2 %v8226_v6 }
  0x1b   :  { %v8209_v12 = vld [vmem:[%s19493_s1 + $0x220] sm:$0xf]  ;;  %v12101_v13 = vld [vmem:[%s19493_s1 + $0x22c] sm:$0xf0]  ;;  %v8082_v19 = vor.u32 %v12069_v11, %v8081_v9  ;;  %6288 = vmatpush.bf16.msra.mxu3 %v8354_v10 }
  0x1c   :  { %v8337_v14 = vld [vmem:[%s19493_s1 + $0x320] sm:$0xf]  ;;  %v12133_v15 = vld [vmem:[%s19493_s1 + $0x32c] sm:$0xf0]  ;;  %v8210_v20 = vor.u32 %v12101_v13, %v8209_v12  ;;  %6250 = vmatpush.bf16.msra.mxu0 %v7954_v16 }
  0x1d   :  { %v7937_v17 = vld [vmem:[%s19493_s1] sm:$0xf]  ;;  %v12033_v18 = vld [vmem:[%s19493_s1 + $0xc] sm:$0xf0]  ;;  %v8338_v24 = vor.u32 %v12133_v15, %v8337_v14  ;;  %6263 = vmatpush.bf16.msra.mxu1 %v8082_v19 }
  0x1e   :  { %v8065_v21 = vld [vmem:[%s19493_s1 + $0x100] sm:$0xf]  ;;  %v12065_v22 = vld [vmem:[%s19493_s1 + $0x10c] sm:$0xf0]  ;;  %v7938_v31 = vor.u32 %v12033_v18, %v7937_v17  ;;  %6276 = vmatpush.bf16.msra.mxu2 %v8210_v20 }
  0x1f   :  { %v8193_v23 = vld [vmem:[%s19493_s1 + $0x200] sm:$0xf]  ;;  %v12097_v25 = vld [vmem:[%s19493_s1 + $0x20c] sm:$0xf0]  ;;  %v8066_v35 = vor.u32 %v12065_v22, %v8065_v21  ;;  %6289 = vmatpush.bf16.msra.mxu3 %v8338_v24 }
  0x20   :  { %v8321_v26 = vld [vmem:[%s19493_s1 + $0x300] sm:$0xf]  ;;  %v12129_v27 = vld [vmem:[%s19493_s1 + $0x30c] sm:$0xf0]  ;;  %v8194_v36 = vor.u32 %v12097_v25, %v8193_v23  ;;  %6251 = vmatpush.bf16.msra.mxu0 %v7938_v31 }
  0x21   :  { %v8561_v28 = vld [vmem:[%s19493_s1 + $0x4e0] sm:$0xf]  ;;  %v12189_v29 = vld [vmem:[%s19493_s1 + $0x4ec] sm:$0xf0]  ;;  %v8322_v39 = vor.u32 %v12129_v27, %v8321_v26  ;;  %6264 = vmatpush.bf16.msra.mxu1 %v8066_v35 }
  0x22   :  { %v8689_v30 = vld [vmem:[%s19493_s1 + $0x5e0] sm:$0xf]  ;;  %v12221_v32 = vld [vmem:[%s19493_s1 + $0x5ec] sm:$0xf0]  ;;  %v8562_v40 = vor.u32 %v12189_v29, %v8561_v28  ;;  %6277 = vmatpush.bf16.msra.mxu2 %v8194_v36 }
  0x23   :  { %v8817_v33 = vld [vmem:[%s19493_s1 + $0x6e0] sm:$0xf]  ;;  %v12253_v34 = vld [vmem:[%s19493_s1 + $0x6ec] sm:$0xf0]  ;;  %v8690_v41 = vor.u32 %v12221_v32, %v8689_v30  ;;  %6290 = vmatpush.bf16.msra.mxu3 %v8322_v39 }
  0x24   :  { %v8945_v37 = vld [vmem:[%s19493_s1 + $0x7e0] sm:$0xf]  ;;  %v12285_v38 = vld [vmem:[%s19493_s1 + $0x7ec] sm:$0xf0]  ;;  %v8818_v42 = vor.u32 %v12253_v34, %v8817_v33  ;;  %6296 = vmatpush.bf16.msrb.mxu0 %v8562_v40 }
  0x25   :  { %v8545_v43 = vld [vmem:[%s19493_s1 + $0x4c0] sm:$0xf]  ;;  %v12185_v44 = vld [vmem:[%s19493_s1 + $0x4cc] sm:$0xf0]  ;;  %v8946_v46 = vor.u32 %v12285_v38, %v8945_v37  ;;  %6309 = vmatpush.bf16.msrb.mxu1 %v8690_v41 }
  0x26   :  { %v8673_v45 = vld [vmem:[%s19493_s1 + $0x5c0] sm:$0xf]  ;;  %v12217_v47 = vld [vmem:[%s19493_s1 + $0x5cc] sm:$0xf0]  ;;  %v8546_v52 = vor.u32 %v12185_v44, %v8545_v43  ;;  %6322 = vmatpush.bf16.msrb.mxu2 %v8818_v42 }
  0x27   :  { %v8801_v48 = vld [vmem:[%s19493_s1 + $0x6c0] sm:$0xf]  ;;  %v12249_v49 = vld [vmem:[%s19493_s1 + $0x6cc] sm:$0xf0]  ;;  %v8674_v53 = vor.u32 %v12217_v47, %v8673_v45  ;;  %6335 = vmatpush.bf16.msrb.mxu3 %v8946_v46  ;;  %v15_v45 = vld [vmem:[%s19494_s0 + $0x8] sm:$0xff] }
  0x28   :  { %v8929_v50 = vld [vmem:[%s19493_s1 + $0x7c0] sm:$0xf]  ;;  %v12281_v51 = vld [vmem:[%s19493_s1 + $0x7cc] sm:$0xf0]  ;;  %v8802_v54 = vor.u32 %v12249_v49, %v8801_v48  ;;  %6297 = vmatpush.bf16.msrb.mxu0 %v8546_v52 }
  0x29   :  { %v8529_v55 = vld [vmem:[%s19493_s1 + $0x4a0] sm:$0xf]  ;;  %v12181_v56 = vld [vmem:[%s19493_s1 + $0x4ac] sm:$0xf0]  ;;  %v8930_v58 = vor.u32 %v12281_v51, %v8929_v50  ;;  %6310 = vmatpush.bf16.msrb.mxu1 %v8674_v53 }
  0x2a   :  { %v8657_v57 = vld [vmem:[%s19493_s1 + $0x5a0] sm:$0xf]  ;;  %v12213_v59 = vld [vmem:[%s19493_s1 + $0x5ac] sm:$0xf0]  ;;  %v8530_v0 = vor.u32 %v12181_v56, %v8529_v55  ;;  %6323 = vmatpush.bf16.msrb.mxu2 %v8802_v54 }
  0x2b   :  { %v8785_v60 = vld [vmem:[%s19493_s1 + $0x6a0] sm:$0xf]  ;;  %v12245_v61 = vld [vmem:[%s19493_s1 + $0x6ac] sm:$0xf0]  ;;  %v8658_v3 = vor.u32 %v12213_v59, %v8657_v57  ;;  %6336 = vmatpush.bf16.msrb.mxu3 %v8930_v58 }
  0x2c   :  { %v8913_v62 = vld [vmem:[%s19493_s1 + $0x7a0] sm:$0xf]  ;;  %v12277_v63 = vld [vmem:[%s19493_s1 + $0x7ac] sm:$0xf0]  ;;  %v8786_v4 = vor.u32 %v12245_v61, %v8785_v60  ;;  %6298 = vmatpush.bf16.msrb.mxu0 %v8530_v0 }
  0x2d   :  { %v8513_v1 = vld [vmem:[%s19493_s1 + $0x480] sm:$0xf]  ;;  %v12177_v5 = vld [vmem:[%s19493_s1 + $0x48c] sm:$0xf0]  ;;  %v8914_v7 = vor.u32 %v12277_v63, %v8913_v62  ;;  %6311 = vmatpush.bf16.msrb.mxu1 %v8658_v3 }
  0x2e   :  { %v14_v2 = vld [vmem:[%s19494_s0] sm:$0xff]  ;;  %v12209_v8 = vld [vmem:[%s19493_s1 + $0x58c] sm:$0xf0]  ;;  %v8514_v13 = vor.u32 %v12177_v5, %v8513_v1  ;;  %6324 = vmatpush.bf16.msrb.mxu2 %v8786_v4 }
  0x2f   :  { %v8641_v6 = vld [vmem:[%s19493_s1 + $0x580] sm:$0xf]  ;;  %1053 = vst [vmem:[#allocation1] ss:$9 sm:$0xff] %v14_v2  ;;  %v12241_v10 = vld [vmem:[%s19493_s1 + $0x68c] sm:$0xf0]  ;;  %6337 = vmatpush.bf16.msrb.mxu3 %v8914_v7 }
  0x30   :  { %v8769_v9 = vld [vmem:[%s19493_s1 + $0x680] sm:$0xf]  ;;  %v12273_v12 = vld [vmem:[%s19493_s1 + $0x78c] sm:$0xf0]  ;;  %v8642_v14 = vor.u32 %v12209_v8, %v8641_v6  ;;  %6299 = vmatpush.bf16.msrb.mxu0 %v8514_v13 }
  0x31   :  { %v8897_v11 = vld [vmem:[%s19493_s1 + $0x780] sm:$0xf]  ;;  %v8770_v15 = vor.u32 %v12241_v10, %v8769_v9  ;;  %v12173_v17 = vld [vmem:[%s19493_s1 + $0x46c] sm:$0xf0] }
  0x32   :  { %v8497_v16 = vld [vmem:[%s19493_s1 + $0x460] sm:$0xf]  ;;  %v8898_v19 = vor.u32 %v12273_v12, %v8897_v11  ;;  %v12205_v20 = vld [vmem:[%s19493_s1 + $0x56c] sm:$0xf0]  ;;  %6312 = vmatpush.bf16.msrb.mxu1 %v8642_v14 }
  0x33   :  { %v8625_v18 = vld [vmem:[%s19493_s1 + $0x560] sm:$0xf]  ;;  %v12237_v22 = vld [vmem:[%s19493_s1 + $0x66c] sm:$0xf0]  ;;  %v8498_v26 = vor.u32 %v12173_v17, %v8497_v16  ;;  %6325 = vmatpush.bf16.msrb.mxu2 %v8770_v15 }
  0x34   :  { %v8753_v21 = vld [vmem:[%s19493_s1 + $0x660] sm:$0xf]  ;;  %v12269_v24 = vld [vmem:[%s19493_s1 + $0x76c] sm:$0xf0]  ;;  %v8626_v30 = vor.u32 %v12205_v20, %v8625_v18  ;;  %6338 = vmatpush.bf16.msrb.mxu3 %v8898_v19 }
  0x35   :  { %v8881_v23 = vld [vmem:[%s19493_s1 + $0x760] sm:$0xf]  ;;  %v8754_v31 = vor.u32 %v12237_v22, %v8753_v21  ;;  %v12169_v32 = vld [vmem:[%s19493_s1 + $0x44c] sm:$0xf0]  ;;  %6300 = vmatpush.bf16.msrb.mxu0 %v8498_v26 }
  0x36   :  { %v8481_v25 = vld [vmem:[%s19493_s1 + $0x440] sm:$0xf]  ;;  %v13420_v27 = vld [vmem:[#allocation1 + $0x12] sm:$0xff]  ;;  %v13432_v34 = vld [vmem:[#allocation1 + $0x9] sm:$0xff]  ;;  %v8882_v35 = vor.u32 %v12269_v24, %v8881_v23  ;;  %6313 = vmatpush.bf16.msrb.mxu1 %v8626_v30 }
  0x37   :  { %v13422_v28 = vld [vmem:[#allocation1] sm:$0xff]  ;;  %v12201_v36 = vld [vmem:[%s19493_s1 + $0x54c] sm:$0xf0]  ;;  %6278 = vmatmul.bf16.vlgmr.msra.gmra.mxu2 %v13420_v27  ;;  %v8482_v41 = vor.u32 %v12169_v32, %v8481_v25  ;;  %6265 = vmatmul.bf16.vlgmr.msra.gmra.mxu1 %v13432_v34  ;;  %v13498_v61 = vld [vmem:[#allocation1 + $0x36] sm:$0xff] }
  0x38   :  { %v13424_v29 = vld [vmem:[#allocation1 + $0x1b] sm:$0xff]  ;;  %v12233_v38 = vld [vmem:[%s19493_s1 + $0x64c] sm:$0xf0]  ;;  %6252 = vmatmul.bf16.vlgmr.msra.gmra.mxu0 %v13422_v28  ;;  %6326 = vmatpush.bf16.msrb.mxu2 %v8754_v31  ;;  %v13500_v0 = vld [vmem:[#allocation1 + $0x24] sm:$0xff] }
  0x39   :  { %v8609_v33 = vld [vmem:[%s19493_s1 + $0x540] sm:$0xf]  ;;  %v12265_v40 = vld [vmem:[%s19493_s1 + $0x74c] sm:$0xf0]  ;;  %6291 = vmatmul.bf16.vlgmr.msra.gmra.mxu3 %v13424_v29  ;;  %6301 = vmatpush.bf16.msrb.mxu0 %v8482_v41 }
  0x3a   :  { %v8737_v37 = vld [vmem:[%s19493_s1 + $0x640] sm:$0xf]  ;;  %v8610_v43 = vor.u32 %v12201_v36, %v8609_v33  ;;  %v12165_v46 = vld [vmem:[%s19493_s1 + $0x42c] sm:$0xf0]  ;;  %6339 = vmatpush.bf16.msrb.mxu3 %v8882_v35 }
  0x3b   :  { %v8865_v39 = vld [vmem:[%s19493_s1 + $0x740] sm:$0xf]  ;;  %v8738_v44 = vor.u32 %v12233_v38, %v8737_v37  ;;  %v12197_v48 = vld [vmem:[%s19493_s1 + $0x52c] sm:$0xf0] }
  0x3c   :  { %v8465_v42 = vld [vmem:[%s19493_s1 + $0x420] sm:$0xf]  ;;  %v8866_v49 = vor.u32 %v12265_v40, %v8865_v39  ;;  %v12229_v51 = vld [vmem:[%s19493_s1 + $0x62c] sm:$0xf0]  ;;  %6314 = vmatpush.bf16.msrb.mxu1 %v8610_v43 }
  0x3d   :  { %v8593_v47 = vld [vmem:[%s19493_s1 + $0x520] sm:$0xf]  ;;  %v12261_v53 = vld [vmem:[%s19493_s1 + $0x72c] sm:$0xf0]  ;;  %v8466_v56 = vor.u32 %v12165_v46, %v8465_v42  ;;  %6327 = vmatpush.bf16.msrb.mxu2 %v8738_v44 }
  0x3e   :  { %v8721_v50 = vld [vmem:[%s19493_s1 + $0x620] sm:$0xf]  ;;  %v12161_v55 = vld [vmem:[%s19493_s1 + $0x40c] sm:$0xf0]  ;;  %v8594_v62 = vor.u32 %v12197_v48, %v8593_v47  ;;  %6340 = vmatpush.bf16.msrb.mxu3 %v8866_v49 }
  0x3f   :  { %v8849_v52 = vld [vmem:[%s19493_s1 + $0x720] sm:$0xf]  ;;  %v12193_v58 = vld [vmem:[%s19493_s1 + $0x50c] sm:$0xf0]  ;;  %v8722_v63 = vor.u32 %v12229_v51, %v8721_v50  ;;  %6302 = vmatpush.bf16.msrb.mxu0 %v8466_v56 }
  0x40   :  { %v8449_v54 = vld [vmem:[%s19493_s1 + $0x400] sm:$0xf]  ;;  %v12225_v60 = vld [vmem:[%s19493_s1 + $0x60c] sm:$0xf0]  ;;  %v8850_v3 = vor.u32 %v12261_v53, %v8849_v52  ;;  %6315 = vmatpush.bf16.msrb.mxu1 %v8594_v62 }
  0x41   :  { %v8577_v57 = vld [vmem:[%s19493_s1 + $0x500] sm:$0xf]  ;;  %v13504_v2 = vld [vmem:[#allocation1 + $0x2d] sm:$0xff]  ;;  %v8450_v9 = vor.u32 %v12161_v55, %v8449_v54  ;;  %6328 = vmatpush.bf16.msrb.mxu2 %v8722_v63 }
  0x42   :  { %v8705_v59 = vld [vmem:[%s19493_s1 + $0x600] sm:$0xf]  ;;  %v12257_v5 = vld [vmem:[%s19493_s1 + $0x70c] sm:$0xf0]  ;;  %v8578_v13 = vor.u32 %v12193_v58, %v8577_v57  ;;  %6341 = vmatpush.bf16.msrb.mxu3 %v8850_v3 }
  0x43   :  { %v13502_v1 = vld [vmem:[#allocation1 + $0x3f] sm:$0xff]  ;;  %v12317_v7 = vld [vmem:[%s19493_s1 + $0x8ec] sm:$0xf0]  ;;  %v8706_v14 = vor.u32 %v12225_v60, %v8705_v59  ;;  %6303 = vmatpush.bf16.msrb.mxu0 %v8450_v9 }
  0x44   :  { %v8833_v4 = vld [vmem:[%s19493_s1 + $0x700] sm:$0xf]  ;;  %1063 = vst [vmem:[#allocation1] ss:$9 sm:$0xff] %v15_v45  ;;  %v12349_v10 = vld [vmem:[%s19493_s1 + $0x9ec] sm:$0xf0]  ;;  %6316 = vmatpush.bf16.msrb.mxu1 %v8578_v13 }
  0x45   :  { %v9073_v6 = vld [vmem:[%s19493_s1 + $0x8e0] sm:$0xf]  ;;  %v12381_v12 = vld [vmem:[%s19493_s1 + $0xaec] sm:$0xf0]  ;;  %v8834_v17 = vor.u32 %v12257_v5, %v8833_v4  ;;  %6329 = vmatpush.bf16.msrb.mxu2 %v8706_v14 }
  0x46   :  { %v9201_v8 = vld [vmem:[%s19493_s1 + $0x9e0] sm:$0xf]  ;;  %v12413_v16 = vld [vmem:[%s19493_s1 + $0xbec] sm:$0xf0]  ;;  %v9074_v18 = vor.u32 %v12317_v7, %v9073_v6 }
  0x47   :  { %v9329_v11 = vld [vmem:[%s19493_s1 + $0xae0] sm:$0xf]  ;;  %v9202_v19 = vor.u32 %v12349_v10, %v9201_v8  ;;  %v12313_v22 = vld [vmem:[%s19493_s1 + $0x8cc] sm:$0xf0]  ;;  %6342 = vmatpush.bf16.msrb.mxu3 %v8834_v17  ;;  %6317 = vmatmul.bf16.vlgmr.msrb.gmra.mxu1 %v13504_v2 }
  0x48   :  { %v9457_v15 = vld [vmem:[%s19493_s1 + $0xbe0] sm:$0xf]  ;;  %v9330_v20 = vor.u32 %v12381_v12, %v9329_v11  ;;  %v12345_v25 = vld [vmem:[%s19493_s1 + $0x9cc] sm:$0xf0]  ;;  %6348 = vmatpush.bf16.msra.mxu0 %v9074_v18  ;;  %6330 = vmatmul.bf16.vlgmr.msrb.gmra.mxu2 %v13498_v61 }
  0x49   :  { %v9057_v21 = vld [vmem:[%s19493_s1 + $0x8c0] sm:$0xf]  ;;  %v9458_v24 = vor.u32 %v12413_v16, %v9457_v15  ;;  %v12377_v30 = vld [vmem:[%s19493_s1 + $0xacc] sm:$0xf0]  ;;  %6361 = vmatpush.bf16.msra.mxu1 %v9202_v19  ;;  %6304 = vmatmul.bf16.vlgmr.msrb.gmra.mxu0 %v13500_v0 }
  0x4a   :  { %v9185_v23 = vld [vmem:[%s19493_s1 + $0x9c0] sm:$0xf]  ;;  %v12409_v32 = vld [vmem:[%s19493_s1 + $0xbcc] sm:$0xf0]  ;;  %v9058_v33 = vor.u32 %v12313_v22, %v9057_v21  ;;  %6374 = vmatpush.bf16.msra.mxu2 %v9330_v20  ;;  %6343 = vmatmul.bf16.vlgmr.msrb.gmra.mxu3 %v13502_v1 }
  0x4b   :  { %v9313_v26 = vld [vmem:[%s19493_s1 + $0xac0] sm:$0xf]  ;;  %v9186_v35 = vor.u32 %v12345_v25, %v9185_v23  ;;  %v12309_v38 = vld [vmem:[%s19493_s1 + $0x8ac] sm:$0xf0]  ;;  %6387 = vmatpush.bf16.msra.mxu3 %v9458_v24 }
  0x4c   :  { %v9441_v31 = vld [vmem:[%s19493_s1 + $0xbc0] sm:$0xf]  ;;  %v9314_v36 = vor.u32 %v12377_v30, %v9313_v26  ;;  %v12341_v41 = vld [vmem:[%s19493_s1 + $0x9ac] sm:$0xf0]  ;;  %6349 = vmatpush.bf16.msra.mxu0 %v9058_v33 }
  0x4d   :  { %v9041_v37 = vld [vmem:[%s19493_s1 + $0x8a0] sm:$0xf]  ;;  %v9442_v40 = vor.u32 %v12409_v32, %v9441_v31  ;;  %v12373_v43 = vld [vmem:[%s19493_s1 + $0xaac] sm:$0xf0]  ;;  %6362 = vmatpush.bf16.msra.mxu1 %v9186_v35 }
  0x4e   :  { %v9169_v39 = vld [vmem:[%s19493_s1 + $0x9a0] sm:$0xf]  ;;  %v12405_v45 = vld [vmem:[%s19493_s1 + $0xbac] sm:$0xf0]  ;;  %v9042_v46 = vor.u32 %v12309_v38, %v9041_v37  ;;  %6375 = vmatpush.bf16.msra.mxu2 %v9314_v36 }
  0x4f   :  { %v9297_v42 = vld [vmem:[%s19493_s1 + $0xaa0] sm:$0xf]  ;;  %v9170_v47 = vor.u32 %v12341_v41, %v9169_v39  ;;  %v12305_v50 = vld [vmem:[%s19493_s1 + $0x88c] sm:$0xf0]  ;;  %6388 = vmatpush.bf16.msra.mxu3 %v9442_v40 }
  0x50   :  { %v9425_v44 = vld [vmem:[%s19493_s1 + $0xba0] sm:$0xf]  ;;  %v9298_v48 = vor.u32 %v12373_v43, %v9297_v42  ;;  %v12337_v53 = vld [vmem:[%s19493_s1 + $0x98c] sm:$0xf0]  ;;  %6350 = vmatpush.bf16.msra.mxu0 %v9042_v46 }
  0x51   :  { %v9025_v49 = vld [vmem:[%s19493_s1 + $0x880] sm:$0xf]  ;;  %v9426_v52 = vor.u32 %v12405_v45, %v9425_v44  ;;  %v12369_v55 = vld [vmem:[%s19493_s1 + $0xa8c] sm:$0xf0]  ;;  %6363 = vmatpush.bf16.msra.mxu1 %v9170_v47 }
  0x52   :  { %v9153_v51 = vld [vmem:[%s19493_s1 + $0x980] sm:$0xf]  ;;  %v12401_v57 = vld [vmem:[%s19493_s1 + $0xb8c] sm:$0xf0]  ;;  %v9026_v58 = vor.u32 %v12305_v50, %v9025_v49  ;;  %6376 = vmatpush.bf16.msra.mxu2 %v9298_v48 }
  0x53   :  { %v9281_v54 = vld [vmem:[%s19493_s1 + $0xa80] sm:$0xf]  ;;  %v9154_v59 = vor.u32 %v12337_v53, %v9153_v51  ;;  %v12301_v63 = vld [vmem:[%s19493_s1 + $0x86c] sm:$0xf0]  ;;  %6389 = vmatpush.bf16.msra.mxu3 %v9426_v52 }
  0x54   :  { %v9409_v56 = vld [vmem:[%s19493_s1 + $0xb80] sm:$0xf]  ;;  %v9282_v60 = vor.u32 %v12369_v55, %v9281_v54  ;;  %v12333_v5 = vld [vmem:[%s19493_s1 + $0x96c] sm:$0xf0]  ;;  %6351 = vmatpush.bf16.msra.mxu0 %v9026_v58 }
  0x55   :  { %v9009_v62 = vld [vmem:[%s19493_s1 + $0x860] sm:$0xf]  ;;  %v9410_v4 = vor.u32 %v12401_v57, %v9409_v56  ;;  %v12365_v7 = vld [vmem:[%s19493_s1 + $0xa6c] sm:$0xf0]  ;;  %6364 = vmatpush.bf16.msra.mxu1 %v9154_v59 }
  0x56   :  { %v9137_v3 = vld [vmem:[%s19493_s1 + $0x960] sm:$0xf]  ;;  %v12397_v9 = vld [vmem:[%s19493_s1 + $0xb6c] sm:$0xf0]  ;;  %v9010_v10 = vor.u32 %v12301_v63, %v9009_v62  ;;  %6377 = vmatpush.bf16.msra.mxu2 %v9282_v60 }
  0x57   :  { %v9265_v6 = vld [vmem:[%s19493_s1 + $0xa60] sm:$0xf]  ;;  %v9138_v11 = vor.u32 %v12333_v5, %v9137_v3  ;;  %v12297_v14 = vld [vmem:[%s19493_s1 + $0x84c] sm:$0xf0]  ;;  %6390 = vmatpush.bf16.msra.mxu3 %v9410_v4 }
  0x58   :  { %v9393_v8 = vld [vmem:[%s19493_s1 + $0xb60] sm:$0xf]  ;;  %v9266_v12 = vor.u32 %v12365_v7, %v9265_v6  ;;  %v12329_v17 = vld [vmem:[%s19493_s1 + $0x94c] sm:$0xf0]  ;;  %6352 = vmatpush.bf16.msra.mxu0 %v9010_v10 }
  0x59   :  { %v8993_v13 = vld [vmem:[%s19493_s1 + $0x840] sm:$0xf]  ;;  %v9394_v16 = vor.u32 %v12397_v9, %v9393_v8  ;;  %v12361_v19 = vld [vmem:[%s19493_s1 + $0xa4c] sm:$0xf0]  ;;  %6365 = vmatpush.bf16.msra.mxu1 %v9138_v11 }
  0x5a   :  { %v9121_v15 = vld [vmem:[%s19493_s1 + $0x940] sm:$0xf]  ;;  %v12393_v21 = vld [vmem:[%s19493_s1 + $0xb4c] sm:$0xf0]  ;;  %v8994_v22 = vor.u32 %v12297_v14, %v8993_v13  ;;  %6378 = vmatpush.bf16.msra.mxu2 %v9266_v12 }
  0x5b   :  { %v9249_v18 = vld [vmem:[%s19493_s1 + $0xa40] sm:$0xf]  ;;  %v9122_v23 = vor.u32 %v12329_v17, %v9121_v15  ;;  %v12293_v26 = vld [vmem:[%s19493_s1 + $0x82c] sm:$0xf0]  ;;  %6391 = vmatpush.bf16.msra.mxu3 %v9394_v16 }
  0x5c   :  { %v9377_v20 = vld [vmem:[%s19493_s1 + $0xb40] sm:$0xf]  ;;  %v9250_v24 = vor.u32 %v12361_v19, %v9249_v18  ;;  %v12325_v32 = vld [vmem:[%s19493_s1 + $0x92c] sm:$0xf0]  ;;  %6353 = vmatpush.bf16.msra.mxu0 %v8994_v22 }
  0x5d   :  { %v8977_v25 = vld [vmem:[%s19493_s1 + $0x820] sm:$0xf]  ;;  %v9378_v31 = vor.u32 %v12393_v21, %v9377_v20  ;;  %v12357_v35 = vld [vmem:[%s19493_s1 + $0xa2c] sm:$0xf0]  ;;  %6366 = vmatpush.bf16.msra.mxu1 %v9122_v23 }
  0x5e   :  { %v9105_v30 = vld [vmem:[%s19493_s1 + $0x920] sm:$0xf]  ;;  %v12389_v37 = vld [vmem:[%s19493_s1 + $0xb2c] sm:$0xf0]  ;;  %v8978_v38 = vor.u32 %v12293_v26, %v8977_v25  ;;  %6379 = vmatpush.bf16.msra.mxu2 %v9250_v24  ;;  %v13779_v24 = vld [vmem:[#allocation1 + $0x24] sm:$0xff] }
  0x5f   :  { %v9233_v33 = vld [vmem:[%s19493_s1 + $0xa20] sm:$0xf]  ;;  %v12289_v40 = vld [vmem:[%s19493_s1 + $0x80c] sm:$0xf0]  ;;  %v9106_v41 = vor.u32 %v12325_v32, %v9105_v30  ;;  %6392 = vmatpush.bf16.msra.mxu3 %v9378_v31  ;;  %v13781_v30 = vld [vmem:[#allocation1 + $0x36] sm:$0xff] }
  0x60   :  { %v9361_v36 = vld [vmem:[%s19493_s1 + $0xb20] sm:$0xf]  ;;  %v9234_v42 = vor.u32 %v12357_v35, %v9233_v33  ;;  %v12321_v44 = vld [vmem:[%s19493_s1 + $0x90c] sm:$0xf0]  ;;  %6354 = vmatpush.bf16.msra.mxu0 %v8978_v38 }
  0x61   :  { %v8961_v39 = vld [vmem:[%s19493_s1 + $0x800] sm:$0xf]  ;;  %v9362_v46 = vor.u32 %v12389_v37, %v9361_v36  ;;  %v12353_v47 = vld [vmem:[%s19493_s1 + $0xa0c] sm:$0xf0]  ;;  %6367 = vmatpush.bf16.msra.mxu1 %v9106_v41 }
  0x62   :  { %v9089_v43 = vld [vmem:[%s19493_s1 + $0x900] sm:$0xf]  ;;  %v12385_v49 = vld [vmem:[%s19493_s1 + $0xb0c] sm:$0xf0]  ;;  %v8962_v53 = vor.u32 %v12289_v40, %v8961_v39  ;;  %6380 = vmatpush.bf16.msra.mxu2 %v9234_v42 }
  0x63   :  { %v9217_v45 = vld [vmem:[%s19493_s1 + $0xa00] sm:$0xf]  ;;  %v12445_v51 = vld [vmem:[%s19493_s1 + $0xcec] sm:$0xf0]  ;;  %v9090_v57 = vor.u32 %v12321_v44, %v9089_v43  ;;  %6393 = vmatpush.bf16.msra.mxu3 %v9362_v46 }
  0x64   :  { %v9345_v48 = vld [vmem:[%s19493_s1 + $0xb00] sm:$0xf]  ;;  %v12477_v54 = vld [vmem:[%s19493_s1 + $0xdec] sm:$0xf0]  ;;  %v9218_v58 = vor.u32 %v12353_v47, %v9217_v45  ;;  %6355 = vmatpush.bf16.msra.mxu0 %v8962_v53 }
  0x65   :  { %v9585_v50 = vld [vmem:[%s19493_s1 + $0xce0] sm:$0xf]  ;;  %v12509_v56 = vld [vmem:[%s19493_s1 + $0xeec] sm:$0xf0]  ;;  %v9346_v62 = vor.u32 %v12385_v49, %v9345_v48  ;;  %6368 = vmatpush.bf16.msra.mxu1 %v9090_v57 }
  0x66   :  { %v9713_v52 = vld [vmem:[%s19493_s1 + $0xde0] sm:$0xf]  ;;  %v12541_v60 = vld [vmem:[%s19493_s1 + $0xfec] sm:$0xf0]  ;;  %v9586_v63 = vor.u32 %v12445_v51, %v9585_v50  ;;  %6381 = vmatpush.bf16.msra.mxu2 %v9218_v58 }
  0x67   :  { %v9841_v55 = vld [vmem:[%s19493_s1 + $0xee0] sm:$0xf]  ;;  %v16_v4 = vld [vmem:[%s19494_s0 + $0x10] sm:$0xff]  ;;  %v9714_v5 = vor.u32 %v12477_v54, %v9713_v52  ;;  %6394 = vmatpush.bf16.msra.mxu3 %v9346_v62 }
  0x68   :  { %v9969_v59 = vld [vmem:[%s19493_s1 + $0xfe0] sm:$0xf]  ;;  %v9842_v6 = vor.u32 %v12509_v56, %v9841_v55  ;;  %v12441_v8 = vld [vmem:[%s19493_s1 + $0xccc] sm:$0xf0]  ;;  %6400 = vmatpush.bf16.msrb.mxu0 %v9586_v63 }
  0x69   :  { %v9569_v3 = vld [vmem:[%s19493_s1 + $0xcc0] sm:$0xf]  ;;  %v12473_v10 = vld [vmem:[%s19493_s1 + $0xdcc] sm:$0xf0]  ;;  %v9970_v11 = vor.u32 %v12541_v60, %v9969_v59  ;;  %6413 = vmatpush.bf16.msrb.mxu1 %v9714_v5 }
  0x6a   :  { %v13738_v7 = vld [vmem:[#allocation1] sm:$0xff]  ;;  %v13749_v12 = vld [vmem:[#allocation1 + $0x12] sm:$0xff]  ;;  %v13751_v13 = vld [vmem:[#allocation1 + $0x9] sm:$0xff]  ;;  %v9570_v21 = vor.u32 %v12441_v8, %v9569_v3  ;;  %6426 = vmatpush.bf16.msrb.mxu2 %v9842_v6 }
  0x6b   :  { %v9697_v9 = vld [vmem:[%s19493_s1 + $0xdc0] sm:$0xf]  ;;  %v12505_v15 = vld [vmem:[%s19493_s1 + $0xecc] sm:$0xf0]  ;;  %6439 = vmatpush.bf16.msrb.mxu3 %v9970_v11  ;;  %6356 = vmatmul.bf16.vlgmr.msra.gmra.mxu0 %v13738_v7 }
  0x6c   :  { %v9825_v14 = vld [vmem:[%s19493_s1 + $0xec0] sm:$0xf]  ;;  %v12537_v18 = vld [vmem:[%s19493_s1 + $0xfcc] sm:$0xf0]  ;;  %v9698_v25 = vor.u32 %v12473_v10, %v9697_v9  ;;  %6382 = vmatmul.bf16.vlgmr.msra.gmra.mxu2 %v13749_v12  ;;  %6369 = vmatmul.bf16.vlgmr.msra.gmra.mxu1 %v13751_v13 }
  0x6d   :  { %v9953_v16 = vld [vmem:[%s19493_s1 + $0xfc0] sm:$0xf]  ;;  %v12437_v20 = vld [vmem:[%s19493_s1 + $0xcac] sm:$0xf0]  ;;  %v9826_v26 = vor.u32 %v12505_v15, %v9825_v14  ;;  %6401 = vmatpush.bf16.msrb.mxu0 %v9570_v21 }
  0x6e   :  { %v13762_v17 = vld [vmem:[#allocation1 + $0x1b] sm:$0xff]  ;;  %v12469_v23 = vld [vmem:[%s19493_s1 + $0xdac] sm:$0xf0]  ;;  %v9954_v33 = vor.u32 %v12537_v18, %v9953_v16  ;;  %6414 = vmatpush.bf16.msrb.mxu1 %v9698_v25 }
  0x6f   :  { %v9553_v19 = vld [vmem:[%s19493_s1 + $0xca0] sm:$0xf]  ;;  %v13783_v31 = vld [vmem:[#allocation1 + $0x2d] sm:$0xff]  ;;  %6395 = vmatmul.bf16.vlgmr.msra.gmra.mxu3 %v13762_v17  ;;  %6427 = vmatpush.bf16.msrb.mxu2 %v9826_v26 }
  0x70   :  { %v9681_v22 = vld [vmem:[%s19493_s1 + $0xda0] sm:$0xf]  ;;  %v12501_v36 = vld [vmem:[%s19493_s1 + $0xeac] sm:$0xf0]  ;;  %v9554_v39 = vor.u32 %v12437_v20, %v9553_v19  ;;  %6440 = vmatpush.bf16.msrb.mxu3 %v9954_v33 }
  0x71   :  { %v13785_v32 = vld [vmem:[#allocation1 + $0x3f] sm:$0xff]  ;;  %v12533_v38 = vld [vmem:[%s19493_s1 + $0xfac] sm:$0xf0]  ;;  %v9682_v40 = vor.u32 %v12469_v23, %v9681_v22 }
  0x72   :  { %v9809_v35 = vld [vmem:[%s19493_s1 + $0xea0] sm:$0xf]  ;;  %1073 = vst [vmem:[#allocation1] ss:$9 sm:$0xff] %v16_v4  ;;  %v12433_v43 = vld [vmem:[%s19493_s1 + $0xc8c] sm:$0xf0]  ;;  %6402 = vmatpush.bf16.msrb.mxu0 %v9554_v39 }
  0x73   :  { %v9937_v37 = vld [vmem:[%s19493_s1 + $0xfa0] sm:$0xf]  ;;  %v9810_v41 = vor.u32 %v12501_v36, %v9809_v35  ;;  %v12465_v46 = vld [vmem:[%s19493_s1 + $0xd8c] sm:$0xf0]  ;;  %6415 = vmatpush.bf16.msrb.mxu1 %v9682_v40 }
  0x74   :  { %v9537_v42 = vld [vmem:[%s19493_s1 + $0xc80] sm:$0xf]  ;;  %v9938_v45 = vor.u32 %v12533_v38, %v9937_v37  ;;  %v12497_v48 = vld [vmem:[%s19493_s1 + $0xe8c] sm:$0xf0] }
  0x75   :  { %v9665_v44 = vld [vmem:[%s19493_s1 + $0xd80] sm:$0xf]  ;;  %v12529_v50 = vld [vmem:[%s19493_s1 + $0xf8c] sm:$0xf0]  ;;  %v9538_v51 = vor.u32 %v12433_v43, %v9537_v42  ;;  %6428 = vmatpush.bf16.msrb.mxu2 %v9810_v41 }
  0x76   :  { %v9793_v47 = vld [vmem:[%s19493_s1 + $0xe80] sm:$0xf]  ;;  %v9666_v52 = vor.u32 %v12465_v46, %v9665_v44  ;;  %v12429_v55 = vld [vmem:[%s19493_s1 + $0xc6c] sm:$0xf0]  ;;  %6441 = vmatpush.bf16.msrb.mxu3 %v9938_v45 }
  0x77   :  { %v9921_v49 = vld [vmem:[%s19493_s1 + $0xf80] sm:$0xf]  ;;  %v9794_v53 = vor.u32 %v12497_v48, %v9793_v47  ;;  %v12461_v58 = vld [vmem:[%s19493_s1 + $0xd6c] sm:$0xf0]  ;;  %6403 = vmatpush.bf16.msrb.mxu0 %v9538_v51 }
  0x78   :  { %v9521_v54 = vld [vmem:[%s19493_s1 + $0xc60] sm:$0xf]  ;;  %v9922_v57 = vor.u32 %v12529_v50, %v9921_v49  ;;  %v12493_v60 = vld [vmem:[%s19493_s1 + $0xe6c] sm:$0xf0]  ;;  %6416 = vmatpush.bf16.msrb.mxu1 %v9666_v52 }
  0x79   :  { %v9649_v56 = vld [vmem:[%s19493_s1 + $0xd60] sm:$0xf]  ;;  %v12525_v63 = vld [vmem:[%s19493_s1 + $0xf6c] sm:$0xf0]  ;;  %v9522_v3 = vor.u32 %v12429_v55, %v9521_v54  ;;  %6429 = vmatpush.bf16.msrb.mxu2 %v9794_v53 }
  0x7a   :  { %v9777_v59 = vld [vmem:[%s19493_s1 + $0xe60] sm:$0xf]  ;;  %v9650_v4 = vor.u32 %v12461_v58, %v9649_v56  ;;  %v12425_v8 = vld [vmem:[%s19493_s1 + $0xc4c] sm:$0xf0]  ;;  %6442 = vmatpush.bf16.msrb.mxu3 %v9922_v57 }
  0x7b   :  { %v9905_v62 = vld [vmem:[%s19493_s1 + $0xf60] sm:$0xf]  ;;  %v9778_v5 = vor.u32 %v12493_v60, %v9777_v59  ;;  %v12457_v11 = vld [vmem:[%s19493_s1 + $0xd4c] sm:$0xf0]  ;;  %6404 = vmatpush.bf16.msrb.mxu0 %v9522_v3 }
  0x7c   :  { %v9505_v6 = vld [vmem:[%s19493_s1 + $0xc40] sm:$0xf]  ;;  %v9906_v10 = vor.u32 %v12525_v63, %v9905_v62  ;;  %v12489_v15 = vld [vmem:[%s19493_s1 + $0xe4c] sm:$0xf0]  ;;  %6417 = vmatpush.bf16.msrb.mxu1 %v9650_v4 }
  0x7d   :  { %v9633_v9 = vld [vmem:[%s19493_s1 + $0xd40] sm:$0xf]  ;;  %v12521_v18 = vld [vmem:[%s19493_s1 + $0xf4c] sm:$0xf0]  ;;  %v9506_v19 = vor.u32 %v12425_v8, %v9505_v6  ;;  %6430 = vmatpush.bf16.msrb.mxu2 %v9778_v5 }
  0x7e   :  { %v9761_v14 = vld [vmem:[%s19493_s1 + $0xe40] sm:$0xf]  ;;  %v9634_v20 = vor.u32 %v12457_v11, %v9633_v9  ;;  %v12421_v23 = vld [vmem:[%s19493_s1 + $0xc2c] sm:$0xf0]  ;;  %6443 = vmatpush.bf16.msrb.mxu3 %v9906_v10 }
  0x7f   :  { %v9889_v16 = vld [vmem:[%s19493_s1 + $0xf40] sm:$0xf]  ;;  %v9762_v21 = vor.u32 %v12489_v15, %v9761_v14  ;;  %v12453_v33 = vld [vmem:[%s19493_s1 + $0xd2c] sm:$0xf0]  ;;  %6405 = vmatpush.bf16.msrb.mxu0 %v9506_v19 }
  0x80   :  { %v9489_v22 = vld [vmem:[%s19493_s1 + $0xc20] sm:$0xf]  ;;  %v9890_v26 = vor.u32 %v12521_v18, %v9889_v16  ;;  %v12485_v36 = vld [vmem:[%s19493_s1 + $0xe2c] sm:$0xf0]  ;;  %6418 = vmatpush.bf16.msrb.mxu1 %v9634_v20 }
  0x81   :  { %v9617_v25 = vld [vmem:[%s19493_s1 + $0xd20] sm:$0xf]  ;;  %v12517_v38 = vld [vmem:[%s19493_s1 + $0xf2c] sm:$0xf0]  ;;  %v9490_v39 = vor.u32 %v12421_v23, %v9489_v22  ;;  %6431 = vmatpush.bf16.msrb.mxu2 %v9762_v21 }
  0x82   :  { %v9745_v35 = vld [vmem:[%s19493_s1 + $0xe20] sm:$0xf]  ;;  %v12417_v41 = vld [vmem:[%s19493_s1 + $0xc0c] sm:$0xf0]  ;;  %v9618_v42 = vor.u32 %v12453_v33, %v9617_v25  ;;  %6444 = vmatpush.bf16.msrb.mxu3 %v9890_v26 }
  0x83   :  { %v9873_v37 = vld [vmem:[%s19493_s1 + $0xf20] sm:$0xf]  ;;  %v9746_v43 = vor.u32 %v12485_v36, %v9745_v35  ;;  %v12449_v45 = vld [vmem:[%s19493_s1 + $0xd0c] sm:$0xf0]  ;;  %6406 = vmatpush.bf16.msrb.mxu0 %v9490_v39 }
  0x84   :  { %v9473_v40 = vld [vmem:[%s19493_s1 + $0xc00] sm:$0xf]  ;;  %v9874_v47 = vor.u32 %v12517_v38, %v9873_v37  ;;  %v12481_v48 = vld [vmem:[%s19493_s1 + $0xe0c] sm:$0xf0]  ;;  %6419 = vmatpush.bf16.msrb.mxu1 %v9618_v42 }
  0x85   :  { %v9601_v44 = vld [vmem:[%s19493_s1 + $0xd00] sm:$0xf]  ;;  %v12513_v50 = vld [vmem:[%s19493_s1 + $0xf0c] sm:$0xf0]  ;;  %v9474_v54 = vor.u32 %v12417_v41, %v9473_v40  ;;  %6432 = vmatpush.bf16.msrb.mxu2 %v9746_v43 }
  0x86   :  { %v9729_v46 = vld [vmem:[%s19493_s1 + $0xe00] sm:$0xf]  ;;  %v12573_v52 = vld [vmem:[%s19493_s1 + $0x10ec] sm:$0xf0]  ;;  %v9602_v58 = vor.u32 %v12449_v45, %v9601_v44  ;;  %6445 = vmatpush.bf16.msrb.mxu3 %v9874_v47 }
  0x87   :  { %v9857_v49 = vld [vmem:[%s19493_s1 + $0xf00] sm:$0xf]  ;;  %v12605_v55 = vld [vmem:[%s19493_s1 + $0x11ec] sm:$0xf0]  ;;  %v9730_v59 = vor.u32 %v12481_v48, %v9729_v46  ;;  %6407 = vmatpush.bf16.msrb.mxu0 %v9474_v54 }
  0x88   :  { %v10097_v51 = vld [vmem:[%s19493_s1 + $0x10e0] sm:$0xf]  ;;  %v12637_v57 = vld [vmem:[%s19493_s1 + $0x12ec] sm:$0xf0]  ;;  %v9858_v63 = vor.u32 %v12513_v50, %v9857_v49  ;;  %6420 = vmatpush.bf16.msrb.mxu1 %v9602_v58 }
  0x89   :  { %v10225_v53 = vld [vmem:[%s19493_s1 + $0x11e0] sm:$0xf]  ;;  %v12669_v62 = vld [vmem:[%s19493_s1 + $0x13ec] sm:$0xf0]  ;;  %v10098_v3 = vor.u32 %v12573_v52, %v10097_v51  ;;  %6433 = vmatpush.bf16.msrb.mxu2 %v9730_v59 }
  0x8a   :  { %v10353_v56 = vld [vmem:[%s19493_s1 + $0x12e0] sm:$0xf]  ;;  %v10226_v4 = vor.u32 %v12605_v55, %v10225_v53  ;;  %v12569_v8 = vld [vmem:[%s19493_s1 + $0x10cc] sm:$0xf0]  ;;  %6446 = vmatpush.bf16.msrb.mxu3 %v9858_v63  ;;  %6408 = vmatmul.bf16.vlgmr.msrb.gmra.mxu0 %v13779_v24 }
  0x8b   :  { %v10481_v60 = vld [vmem:[%s19493_s1 + $0x13e0] sm:$0xf]  ;;  %v10354_v5 = vor.u32 %v12637_v57, %v10353_v56  ;;  %v12601_v11 = vld [vmem:[%s19493_s1 + $0x11cc] sm:$0xf0]  ;;  %6452 = vmatpush.bf16.msra.mxu0 %v10098_v3  ;;  %6421 = vmatmul.bf16.vlgmr.msrb.gmra.mxu1 %v13783_v31 }
  0x8c   :  { %v10081_v6 = vld [vmem:[%s19493_s1 + $0x10c0] sm:$0xf]  ;;  %v10482_v10 = vor.u32 %v12669_v62, %v10481_v60  ;;  %v12633_v15 = vld [vmem:[%s19493_s1 + $0x12cc] sm:$0xf0]  ;;  %6465 = vmatpush.bf16.msra.mxu1 %v10226_v4  ;;  %6434 = vmatmul.bf16.vlgmr.msrb.gmra.mxu2 %v13781_v30 }
  0x8d   :  { %v10209_v9 = vld [vmem:[%s19493_s1 + $0x11c0] sm:$0xf]  ;;  %v12665_v18 = vld [vmem:[%s19493_s1 + $0x13cc] sm:$0xf0]  ;;  %v10082_v19 = vor.u32 %v12569_v8, %v10081_v6  ;;  %6478 = vmatpush.bf16.msra.mxu2 %v10354_v5  ;;  %6447 = vmatmul.bf16.vlgmr.msrb.gmra.mxu3 %v13785_v32 }
  0x8e   :  { %v10337_v14 = vld [vmem:[%s19493_s1 + $0x12c0] sm:$0xf]  ;;  %v10210_v20 = vor.u32 %v12601_v11, %v10209_v9  ;;  %v12565_v23 = vld [vmem:[%s19493_s1 + $0x10ac] sm:$0xf0]  ;;  %6491 = vmatpush.bf16.msra.mxu3 %v10482_v10 }
  0x8f   :  { %v10465_v16 = vld [vmem:[%s19493_s1 + $0x13c0] sm:$0xf]  ;;  %v10338_v21 = vor.u32 %v12633_v15, %v10337_v14  ;;  %v12597_v33 = vld [vmem:[%s19493_s1 + $0x11ac] sm:$0xf0]  ;;  %6453 = vmatpush.bf16.msra.mxu0 %v10082_v19 }
  0x90   :  { %v10065_v22 = vld [vmem:[%s19493_s1 + $0x10a0] sm:$0xf]  ;;  %v10466_v26 = vor.u32 %v12665_v18, %v10465_v16  ;;  %v12629_v36 = vld [vmem:[%s19493_s1 + $0x12ac] sm:$0xf0]  ;;  %6466 = vmatpush.bf16.msra.mxu1 %v10210_v20 }
  0x91   :  { %v10193_v25 = vld [vmem:[%s19493_s1 + $0x11a0] sm:$0xf]  ;;  %v12661_v38 = vld [vmem:[%s19493_s1 + $0x13ac] sm:$0xf0]  ;;  %v10066_v39 = vor.u32 %v12565_v23, %v10065_v22  ;;  %6479 = vmatpush.bf16.msra.mxu2 %v10338_v21 }
  0x92   :  { %v10321_v35 = vld [vmem:[%s19493_s1 + $0x12a0] sm:$0xf]  ;;  %v10194_v40 = vor.u32 %v12597_v33, %v10193_v25  ;;  %v12561_v43 = vld [vmem:[%s19493_s1 + $0x108c] sm:$0xf0]  ;;  %6492 = vmatpush.bf16.msra.mxu3 %v10466_v26 }
  0x93   :  { %v10449_v37 = vld [vmem:[%s19493_s1 + $0x13a0] sm:$0xf]  ;;  %v10322_v41 = vor.u32 %v12629_v36, %v10321_v35  ;;  %v12593_v46 = vld [vmem:[%s19493_s1 + $0x118c] sm:$0xf0]  ;;  %6454 = vmatpush.bf16.msra.mxu0 %v10066_v39 }
  0x94   :  { %v10049_v42 = vld [vmem:[%s19493_s1 + $0x1080] sm:$0xf]  ;;  %v10450_v45 = vor.u32 %v12661_v38, %v10449_v37  ;;  %v12625_v48 = vld [vmem:[%s19493_s1 + $0x128c] sm:$0xf0]  ;;  %6467 = vmatpush.bf16.msra.mxu1 %v10194_v40 }
  0x95   :  { %v10177_v44 = vld [vmem:[%s19493_s1 + $0x1180] sm:$0xf]  ;;  %v12657_v50 = vld [vmem:[%s19493_s1 + $0x138c] sm:$0xf0]  ;;  %v10050_v51 = vor.u32 %v12561_v43, %v10049_v42  ;;  %6480 = vmatpush.bf16.msra.mxu2 %v10322_v41 }
  0x96   :  { %v10305_v47 = vld [vmem:[%s19493_s1 + $0x1280] sm:$0xf]  ;;  %v10178_v52 = vor.u32 %v12593_v46, %v10177_v44  ;;  %v12557_v55 = vld [vmem:[%s19493_s1 + $0x106c] sm:$0xf0]  ;;  %6493 = vmatpush.bf16.msra.mxu3 %v10450_v45 }
  0x97   :  { %v10433_v49 = vld [vmem:[%s19493_s1 + $0x1380] sm:$0xf]  ;;  %v10306_v53 = vor.u32 %v12625_v48, %v10305_v47  ;;  %v12589_v58 = vld [vmem:[%s19493_s1 + $0x116c] sm:$0xf0]  ;;  %6455 = vmatpush.bf16.msra.mxu0 %v10050_v51 }
  0x98   :  { %v10033_v54 = vld [vmem:[%s19493_s1 + $0x1060] sm:$0xf]  ;;  %v10434_v57 = vor.u32 %v12657_v50, %v10433_v49  ;;  %v12621_v60 = vld [vmem:[%s19493_s1 + $0x126c] sm:$0xf0]  ;;  %6468 = vmatpush.bf16.msra.mxu1 %v10178_v52 }
  0x99   :  { %v10161_v56 = vld [vmem:[%s19493_s1 + $0x1160] sm:$0xf]  ;;  %v12653_v63 = vld [vmem:[%s19493_s1 + $0x136c] sm:$0xf0]  ;;  %v10034_v3 = vor.u32 %v12557_v55, %v10033_v54  ;;  %6481 = vmatpush.bf16.msra.mxu2 %v10306_v53 }
  0x9a   :  { %v10289_v59 = vld [vmem:[%s19493_s1 + $0x1260] sm:$0xf]  ;;  %v10162_v4 = vor.u32 %v12589_v58, %v10161_v56  ;;  %v12553_v8 = vld [vmem:[%s19493_s1 + $0x104c] sm:$0xf0]  ;;  %6494 = vmatpush.bf16.msra.mxu3 %v10434_v57 }
  0x9b   :  { %v10417_v62 = vld [vmem:[%s19493_s1 + $0x1360] sm:$0xf]  ;;  %v10290_v5 = vor.u32 %v12621_v60, %v10289_v59  ;;  %v12585_v11 = vld [vmem:[%s19493_s1 + $0x114c] sm:$0xf0]  ;;  %6456 = vmatpush.bf16.msra.mxu0 %v10034_v3 }
  0x9c   :  { %v10017_v6 = vld [vmem:[%s19493_s1 + $0x1040] sm:$0xf]  ;;  %v10418_v10 = vor.u32 %v12653_v63, %v10417_v62  ;;  %v12617_v15 = vld [vmem:[%s19493_s1 + $0x124c] sm:$0xf0]  ;;  %6469 = vmatpush.bf16.msra.mxu1 %v10162_v4 }
  0x9d   :  { %v10145_v9 = vld [vmem:[%s19493_s1 + $0x1140] sm:$0xf]  ;;  %v12649_v18 = vld [vmem:[%s19493_s1 + $0x134c] sm:$0xf0]  ;;  %v10018_v19 = vor.u32 %v12553_v8, %v10017_v6  ;;  %6482 = vmatpush.bf16.msra.mxu2 %v10290_v5  ;;  %v17_v5 = vld [vmem:[%s19494_s0 + $0x18] sm:$0xff] }
  0x9e   :  { %v10273_v14 = vld [vmem:[%s19493_s1 + $0x1240] sm:$0xf]  ;;  %v10146_v20 = vor.u32 %v12585_v11, %v10145_v9  ;;  %v12549_v23 = vld [vmem:[%s19493_s1 + $0x102c] sm:$0xf0]  ;;  %6495 = vmatpush.bf16.msra.mxu3 %v10418_v10 }
  0x9f   :  { %v10401_v16 = vld [vmem:[%s19493_s1 + $0x1340] sm:$0xf]  ;;  %v10274_v21 = vor.u32 %v12617_v15, %v10273_v14  ;;  %v12581_v33 = vld [vmem:[%s19493_s1 + $0x112c] sm:$0xf0]  ;;  %6457 = vmatpush.bf16.msra.mxu0 %v10018_v19 }
  0xa0   :  { %v10001_v22 = vld [vmem:[%s19493_s1 + $0x1020] sm:$0xf]  ;;  %v10402_v26 = vor.u32 %v12649_v18, %v10401_v16  ;;  %v12613_v36 = vld [vmem:[%s19493_s1 + $0x122c] sm:$0xf0]  ;;  %6470 = vmatpush.bf16.msra.mxu1 %v10146_v20 }
  0xa1   :  { %v10129_v25 = vld [vmem:[%s19493_s1 + $0x1120] sm:$0xf]  ;;  %v12645_v38 = vld [vmem:[%s19493_s1 + $0x132c] sm:$0xf0]  ;;  %v10002_v39 = vor.u32 %v12549_v23, %v10001_v22  ;;  %6483 = vmatpush.bf16.msra.mxu2 %v10274_v21 }
  0xa2   :  { %v10257_v35 = vld [vmem:[%s19493_s1 + $0x1220] sm:$0xf]  ;;  %v12545_v41 = vld [vmem:[%s19493_s1 + $0x100c] sm:$0xf0]  ;;  %v10130_v42 = vor.u32 %v12581_v33, %v10129_v25  ;;  %6496 = vmatpush.bf16.msra.mxu3 %v10402_v26 }
  0xa3   :  { %v10385_v37 = vld [vmem:[%s19493_s1 + $0x1320] sm:$0xf]  ;;  %v10258_v43 = vor.u32 %v12613_v36, %v10257_v35  ;;  %v12577_v45 = vld [vmem:[%s19493_s1 + $0x110c] sm:$0xf0]  ;;  %6458 = vmatpush.bf16.msra.mxu0 %v10002_v39 }
  0xa4   :  { %v9985_v40 = vld [vmem:[%s19493_s1 + $0x1000] sm:$0xf]  ;;  %v10386_v47 = vor.u32 %v12645_v38, %v10385_v37  ;;  %v12609_v48 = vld [vmem:[%s19493_s1 + $0x120c] sm:$0xf0]  ;;  %6471 = vmatpush.bf16.msra.mxu1 %v10130_v42  ;;  %v14190_v37 = vld [vmem:[#allocation1 + $0x24] sm:$0xff] }
  0xa5   :  { %v10113_v44 = vld [vmem:[%s19493_s1 + $0x1100] sm:$0xf]  ;;  %v12641_v50 = vld [vmem:[%s19493_s1 + $0x130c] sm:$0xf0]  ;;  %v9986_v54 = vor.u32 %v12545_v41, %v9985_v40  ;;  %6484 = vmatpush.bf16.msra.mxu2 %v10258_v43  ;;  %v14192_v40 = vld [vmem:[#allocation1 + $0x36] sm:$0xff] }
  0xa6   :  { %v10241_v46 = vld [vmem:[%s19493_s1 + $0x1200] sm:$0xf]  ;;  %v12701_v52 = vld [vmem:[%s19493_s1 + $0x14ec] sm:$0xf0]  ;;  %v10114_v58 = vor.u32 %v12577_v45, %v10113_v44  ;;  %6497 = vmatpush.bf16.msra.mxu3 %v10386_v47 }
  0xa7   :  { %v10369_v49 = vld [vmem:[%s19493_s1 + $0x1300] sm:$0xf]  ;;  %v12733_v55 = vld [vmem:[%s19493_s1 + $0x15ec] sm:$0xf0]  ;;  %v10242_v59 = vor.u32 %v12609_v48, %v10241_v46  ;;  %6459 = vmatpush.bf16.msra.mxu0 %v9986_v54 }
  0xa8   :  { %v10609_v51 = vld [vmem:[%s19493_s1 + $0x14e0] sm:$0xf]  ;;  %v12765_v57 = vld [vmem:[%s19493_s1 + $0x16ec] sm:$0xf0]  ;;  %v10370_v63 = vor.u32 %v12641_v50, %v10369_v49  ;;  %6472 = vmatpush.bf16.msra.mxu1 %v10114_v58 }
  0xa9   :  { %v10737_v53 = vld [vmem:[%s19493_s1 + $0x15e0] sm:$0xf]  ;;  %v12797_v62 = vld [vmem:[%s19493_s1 + $0x17ec] sm:$0xf0]  ;;  %v10610_v3 = vor.u32 %v12701_v52, %v10609_v51  ;;  %6485 = vmatpush.bf16.msra.mxu2 %v10242_v59 }
  0xaa   :  { %v10865_v56 = vld [vmem:[%s19493_s1 + $0x16e0] sm:$0xf]  ;;  %v10738_v6 = vor.u32 %v12733_v55, %v10737_v53  ;;  %v12697_v10 = vld [vmem:[%s19493_s1 + $0x14cc] sm:$0xf0]  ;;  %6498 = vmatpush.bf16.msra.mxu3 %v10370_v63 }
  0xab   :  { %v10993_v60 = vld [vmem:[%s19493_s1 + $0x17e0] sm:$0xf]  ;;  %v10866_v8 = vor.u32 %v12765_v57, %v10865_v56  ;;  %v12729_v14 = vld [vmem:[%s19493_s1 + $0x15cc] sm:$0xf0]  ;;  %6504 = vmatpush.bf16.msrb.mxu0 %v10610_v3 }
  0xac   :  { %v10593_v4 = vld [vmem:[%s19493_s1 + $0x14c0] sm:$0xf]  ;;  %v10994_v15 = vor.u32 %v12797_v62, %v10993_v60  ;;  %v14160_v16 = vld [vmem:[#allocation1 + $0x12] sm:$0xff]  ;;  %v14162_v18 = vld [vmem:[#allocation1 + $0x9] sm:$0xff]  ;;  %6517 = vmatpush.bf16.msrb.mxu1 %v10738_v6 }
  0xad   :  { %v14149_v9 = vld [vmem:[#allocation1] sm:$0xff]  ;;  %v12761_v20 = vld [vmem:[%s19493_s1 + $0x16cc] sm:$0xf0]  ;;  %v10594_v33 = vor.u32 %v12697_v10, %v10593_v4  ;;  %6530 = vmatpush.bf16.msrb.mxu2 %v10866_v8  ;;  %6473 = vmatmul.bf16.vlgmr.msra.gmra.mxu1 %v14162_v18 }
  0xae   :  { %v10721_v11 = vld [vmem:[%s19493_s1 + $0x15c0] sm:$0xf]  ;;  %v12793_v23 = vld [vmem:[%s19493_s1 + $0x17cc] sm:$0xf0]  ;;  %6543 = vmatpush.bf16.msrb.mxu3 %v10994_v15  ;;  %6460 = vmatmul.bf16.vlgmr.msra.gmra.mxu0 %v14149_v9 }
  0xaf   :  { %v10849_v19 = vld [vmem:[%s19493_s1 + $0x16c0] sm:$0xf]  ;;  %v12693_v26 = vld [vmem:[%s19493_s1 + $0x14ac] sm:$0xf0]  ;;  %v10722_v38 = vor.u32 %v12729_v14, %v10721_v11  ;;  %6486 = vmatmul.bf16.vlgmr.msra.gmra.mxu2 %v14160_v16  ;;  %6505 = vmatpush.bf16.msrb.mxu0 %v10594_v33 }
  0xb0   :  { %v10977_v21 = vld [vmem:[%s19493_s1 + $0x17c0] sm:$0xf]  ;;  %v12725_v36 = vld [vmem:[%s19493_s1 + $0x15ac] sm:$0xf0]  ;;  %v10850_v39 = vor.u32 %v12761_v20, %v10849_v19 }
  0xb1   :  { %v14173_v22 = vld [vmem:[#allocation1 + $0x1b] sm:$0xff]  ;;  %v14194_v41 = vld [vmem:[#allocation1 + $0x2d] sm:$0xff]  ;;  %v10978_v43 = vor.u32 %v12793_v23, %v10977_v21  ;;  %6518 = vmatpush.bf16.msrb.mxu1 %v10722_v38 }
  0xb2   :  { %v10577_v25 = vld [vmem:[%s19493_s1 + $0x14a0] sm:$0xf]  ;;  %v12757_v45 = vld [vmem:[%s19493_s1 + $0x16ac] sm:$0xf0]  ;;  %6499 = vmatmul.bf16.vlgmr.msra.gmra.mxu3 %v14173_v22  ;;  %6531 = vmatpush.bf16.msrb.mxu2 %v10850_v39 }
  0xb3   :  { %v10705_v35 = vld [vmem:[%s19493_s1 + $0x15a0] sm:$0xf]  ;;  %v12789_v47 = vld [vmem:[%s19493_s1 + $0x17ac] sm:$0xf0]  ;;  %v10578_v48 = vor.u32 %v12693_v26, %v10577_v25  ;;  %6544 = vmatpush.bf16.msrb.mxu3 %v10978_v43 }
  0xb4   :  { %v14196_v42 = vld [vmem:[#allocation1 + $0x3f] sm:$0xff]  ;;  %v10706_v49 = vor.u32 %v12725_v36, %v10705_v35  ;;  %v12689_v52 = vld [vmem:[%s19493_s1 + $0x148c] sm:$0xf0] }
  0xb5   :  { %v10833_v44 = vld [vmem:[%s19493_s1 + $0x16a0] sm:$0xf]  ;;  %1083 = vst [vmem:[#allocation1] ss:$9 sm:$0xff] %v17_v5  ;;  %v12721_v55 = vld [vmem:[%s19493_s1 + $0x158c] sm:$0xf0]  ;;  %6506 = vmatpush.bf16.msrb.mxu0 %v10578_v48 }
  0xb6   :  { %v10961_v46 = vld [vmem:[%s19493_s1 + $0x17a0] sm:$0xf]  ;;  %v10834_v50 = vor.u32 %v12757_v45, %v10833_v44  ;;  %v12753_v57 = vld [vmem:[%s19493_s1 + $0x168c] sm:$0xf0]  ;;  %6519 = vmatpush.bf16.msrb.mxu1 %v10706_v49 }
  0xb7   :  { %v10561_v51 = vld [vmem:[%s19493_s1 + $0x1480] sm:$0xf]  ;;  %v10962_v54 = vor.u32 %v12789_v47, %v10961_v46  ;;  %v12785_v59 = vld [vmem:[%s19493_s1 + $0x178c] sm:$0xf0] }
  0xb8   :  { %v10689_v53 = vld [vmem:[%s19493_s1 + $0x1580] sm:$0xf]  ;;  %v10562_v60 = vor.u32 %v12689_v52, %v10561_v51  ;;  %6532 = vmatpush.bf16.msrb.mxu2 %v10834_v50  ;;  %v12685_v4 = vld [vmem:[%s19493_s1 + $0x146c] sm:$0xf0] }
  0xb9   :  { %v10817_v56 = vld [vmem:[%s19493_s1 + $0x1680] sm:$0xf]  ;;  %v10690_v62 = vor.u32 %v12721_v55, %v10689_v53  ;;  %6545 = vmatpush.bf16.msrb.mxu3 %v10962_v54  ;;  %v12717_v8 = vld [vmem:[%s19493_s1 + $0x156c] sm:$0xf0] }
  0xba   :  { %v10945_v58 = vld [vmem:[%s19493_s1 + $0x1780] sm:$0xf]  ;;  %v10818_v63 = vor.u32 %v12753_v57, %v10817_v56  ;;  %v12749_v11 = vld [vmem:[%s19493_s1 + $0x166c] sm:$0xf0]  ;;  %6507 = vmatpush.bf16.msrb.mxu0 %v10562_v60 }
  0xbb   :  { %v10545_v3 = vld [vmem:[%s19493_s1 + $0x1460] sm:$0xf]  ;;  %v10946_v6 = vor.u32 %v12785_v59, %v10945_v58  ;;  %v12781_v15 = vld [vmem:[%s19493_s1 + $0x176c] sm:$0xf0]  ;;  %6520 = vmatpush.bf16.msrb.mxu1 %v10690_v62  ;;  %v6253_v62 = vpop.f32.mrf.mxu0 }
  0xbc   :  { %v10673_v5 = vld [vmem:[%s19493_s1 + $0x1560] sm:$0xf]  ;;  %v10546_v19 = vor.u32 %v12685_v4, %v10545_v3  ;;  %6533 = vmatpush.bf16.msrb.mxu2 %v10818_v63  ;;  %v12681_v25 = vld [vmem:[%s19493_s1 + $0x144c] sm:$0xf0] }
  0xbd   :  { %v10801_v10 = vld [vmem:[%s19493_s1 + $0x1660] sm:$0xf]  ;;  %v10674_v21 = vor.u32 %v12717_v8, %v10673_v5  ;;  %v12713_v33 = vld [vmem:[%s19493_s1 + $0x154c] sm:$0xf0]  ;;  %6546 = vmatpush.bf16.msrb.mxu3 %v10946_v6 }
  0xbe   :  { %v10929_v14 = vld [vmem:[%s19493_s1 + $0x1760] sm:$0xf]  ;;  %v10802_v23 = vor.u32 %v12749_v11, %v10801_v10  ;;  %v12745_v38 = vld [vmem:[%s19493_s1 + $0x164c] sm:$0xf0]  ;;  %6508 = vmatpush.bf16.msrb.mxu0 %v10546_v19  ;;  %v6266_v10 = vpop.f32.mrf.mxu1 }
  0xbf   :  { %v10529_v20 = vld [vmem:[%s19493_s1 + $0x1440] sm:$0xf]  ;;  %v10930_v35 = vor.u32 %v12781_v15, %v10929_v14  ;;  %v12777_v44 = vld [vmem:[%s19493_s1 + $0x174c] sm:$0xf0]  ;;  %6521 = vmatpush.bf16.msrb.mxu1 %v10674_v21 }
  0xc0   :  { %v10657_v26 = vld [vmem:[%s19493_s1 + $0x1540] sm:$0xf]  ;;  %v10530_v45 = vor.u32 %v12681_v25, %v10529_v20  ;;  %6534 = vmatpush.bf16.msrb.mxu2 %v10802_v23  ;;  %v12677_v49 = vld [vmem:[%s19493_s1 + $0x142c] sm:$0xf0] }
  0xc1   :  { %v10785_v36 = vld [vmem:[%s19493_s1 + $0x1640] sm:$0xf]  ;;  %v10658_v47 = vor.u32 %v12713_v33, %v10657_v26  ;;  %6547 = vmatpush.bf16.msrb.mxu3 %v10930_v35  ;;  %v12709_v53 = vld [vmem:[%s19493_s1 + $0x152c] sm:$0xf0] }
  0xc2   :  { %v1042_v39 = vld [vmem:[%s19495_s2] sm:$0xf]  ;;  %v10786_v48 = vor.u32 %v12745_v38, %v10785_v36  ;;  %v12741_v55 = vld [vmem:[%s19493_s1 + $0x162c] sm:$0xf0]  ;;  %6509 = vmatpush.bf16.msrb.mxu0 %v10530_v45  ;;  %v6279_v45 = vpop.f32.mrf.mxu2 }
  0xc3   :  { %v10913_v43 = vld [vmem:[%s19493_s1 + $0x1740] sm:$0xf]  ;;  %v1044_v51 = vperm.slane %v1042_v39, 0  ;;  %v12773_v57 = vld [vmem:[%s19493_s1 + $0x172c] sm:$0xf0]  ;;  %6522 = vmatpush.bf16.msrb.mxu1 %v10658_v47 }
  0xc4   :  { %v10513_v46 = vld [vmem:[%s19493_s1 + $0x1420] sm:$0xf]  ;;  %v10914_v52 = vor.u32 %v12777_v44, %v10913_v43  ;;  %v12673_v60 = vld [vmem:[%s19493_s1 + $0x140c] sm:$0xf0]  ;;  %6535 = vmatpush.bf16.msrb.mxu2 %v10786_v48 }
  0xc5   :  { %v10641_v50 = vld [vmem:[%s19493_s1 + $0x1520] sm:$0xf]  ;;  %v10514_v58 = vor.u32 %v12677_v49, %v10513_v46  ;;  %v12705_v5 = vld [vmem:[%s19493_s1 + $0x150c] sm:$0xf0]  ;;  %v6254_v8 = vadd.f32 %v6253_v62, %v1044_v51  ;;  %v6292_v49 = vpop.f32.mrf.mxu3 }
  0xc6   :  { %v10769_v54 = vld [vmem:[%s19493_s1 + $0x1620] sm:$0xf]  ;;  %v10642_v63 = vor.u32 %v12709_v53, %v10641_v50  ;;  %6548 = vmatpush.bf16.msrb.mxu3 %v10914_v52  ;;  %v12737_v14 = vld [vmem:[%s19493_s1 + $0x160c] sm:$0xf0] }
  0xc7   :  { %v10897_v56 = vld [vmem:[%s19493_s1 + $0x1720] sm:$0xf]  ;;  %v10770_v3 = vor.u32 %v12741_v55, %v10769_v54  ;;  %v12769_v19 = vld [vmem:[%s19493_s1 + $0x170c] sm:$0xf0]  ;;  %v6267_v25 = vadd.f32 %v6266_v10, %v6254_v8  ;;  %6510 = vmatpush.bf16.msrb.mxu0 %v10514_v58 }
  0xc8   :  { %v10497_v59 = vld [vmem:[%s19493_s1 + $0x1400] sm:$0xf]  ;;  %v10898_v11 = vor.u32 %v12773_v57, %v10897_v56  ;;  %v12829_v21 = vld [vmem:[%s19493_s1 + $0x18ec] sm:$0xf0]  ;;  %6523 = vmatpush.bf16.msrb.mxu1 %v10642_v63 }
  0xc9   :  { %v10625_v4 = vld [vmem:[%s19493_s1 + $0x1500] sm:$0xf]  ;;  %v10498_v26 = vor.u32 %v12673_v60, %v10497_v59  ;;  %v12861_v33 = vld [vmem:[%s19493_s1 + $0x19ec] sm:$0xf0]  ;;  %6536 = vmatpush.bf16.msrb.mxu2 %v10770_v3  ;;  %v6280_v48 = vadd.f32 %v6279_v45, %v6267_v25  ;;  %v6255_v60 = vpop.f32.mrf.mxu0  ;;  %v6268_v3 = vpop.f32.mrf.mxu1 }
  0xca   :  { %v10753_v6 = vld [vmem:[%s19493_s1 + $0x1600] sm:$0xf]  ;;  %v12893_v36 = vld [vmem:[%s19493_s1 + $0x1aec] sm:$0xf0]  ;;  %v10626_v38 = vor.u32 %v12705_v5, %v10625_v4  ;;  %6549 = vmatpush.bf16.msrb.mxu3 %v10898_v11  ;;  %v6281_v25 = vpop.f32.mrf.mxu2 }
  0xcb   :  { %v10881_v15 = vld [vmem:[%s19493_s1 + $0x1700] sm:$0xf]  ;;  %v10754_v39 = vor.u32 %v12737_v14, %v10753_v6  ;;  %v12925_v44 = vld [vmem:[%s19493_s1 + $0x1bec] sm:$0xf0]  ;;  %6511 = vmatpush.bf16.msrb.mxu0 %v10498_v26  ;;  %v6293_v59 = vadd.f32 %v6292_v49, %v6280_v48 }
  0xcc   :  { %v11121_v20 = vld [vmem:[%s19493_s1 + $0x18e0] sm:$0xf]  ;;  %v10882_v46 = vor.u32 %v12769_v19, %v10881_v15  ;;  %v12825_v53 = vld [vmem:[%s19493_s1 + $0x18cc] sm:$0xf0]  ;;  %6524 = vmatpush.bf16.msrb.mxu1 %v10626_v38 }
  0xcd   :  { %v11249_v23 = vld [vmem:[%s19493_s1 + $0x19e0] sm:$0xf]  ;;  %v11122_v47 = vor.u32 %v12829_v21, %v11121_v20  ;;  %v12857_v56 = vld [vmem:[%s19493_s1 + $0x19cc] sm:$0xf0]  ;;  %6537 = vmatpush.bf16.msrb.mxu2 %v10754_v39 }
  0xce   :  { %v11377_v35 = vld [vmem:[%s19493_s1 + $0x1ae0] sm:$0xf]  ;;  %v11250_v50 = vor.u32 %v12861_v33, %v11249_v23  ;;  %v12889_v58 = vld [vmem:[%s19493_s1 + $0x1acc] sm:$0xf0]  ;;  %6550 = vmatpush.bf16.msrb.mxu3 %v10882_v46  ;;  %6512 = vmatmul.bf16.vlgmr.msrb.gmra.mxu0 %v14190_v37  ;;  %v6294_v33 = vpop.f32.mrf.mxu3 }
  0xcf   :  { %v11505_v43 = vld [vmem:[%s19493_s1 + $0x1be0] sm:$0xf]  ;;  %v11378_v51 = vor.u32 %v12893_v36, %v11377_v35  ;;  %v12921_v63 = vld [vmem:[%s19493_s1 + $0x1bcc] sm:$0xf0]  ;;  %6556 = vmatpush.bf16.msra.mxu0 %v11122_v47  ;;  %6525 = vmatmul.bf16.vlgmr.msrb.gmra.mxu1 %v14194_v41 }
  0xd0   :  { %v11105_v52 = vld [vmem:[%s19493_s1 + $0x18c0] sm:$0xf]  ;;  %v11506_v55 = vor.u32 %v12925_v44, %v11505_v43  ;;  %6569 = vmatpush.bf16.msra.mxu1 %v11250_v50  ;;  %v12821_v10 = vld [vmem:[%s19493_s1 + $0x18ac] sm:$0xf0]  ;;  %6538 = vmatmul.bf16.vlgmr.msrb.gmra.mxu2 %v14192_v40 }
  0xd1   :  { %v11233_v54 = vld [vmem:[%s19493_s1 + $0x19c0] sm:$0xf]  ;;  %v11106_v4 = vor.u32 %v12825_v53, %v11105_v52  ;;  %6582 = vmatpush.bf16.msra.mxu2 %v11378_v51  ;;  %v12853_v15 = vld [vmem:[%s19493_s1 + $0x19ac] sm:$0xf0]  ;;  %6551 = vmatmul.bf16.vlgmr.msrb.gmra.mxu3 %v14196_v42  ;;  %v6305_v51 = vpop.f32.mrf.mxu0 }
  0xd2   :  { %v11361_v57 = vld [vmem:[%s19493_s1 + $0x1ac0] sm:$0xf]  ;;  %v11234_v5 = vor.u32 %v12857_v56, %v11233_v54  ;;  %6595 = vmatpush.bf16.msra.mxu3 %v11506_v55  ;;  %v12885_v20 = vld [vmem:[%s19493_s1 + $0x1aac] sm:$0xf0] }
  0xd3   :  { %v11489_v62 = vld [vmem:[%s19493_s1 + $0x1bc0] sm:$0xf]  ;;  %v11362_v6 = vor.u32 %v12889_v58, %v11361_v57  ;;  %v12917_v23 = vld [vmem:[%s19493_s1 + $0x1bac] sm:$0xf0]  ;;  %6557 = vmatpush.bf16.msra.mxu0 %v11106_v4  ;;  %v6306_v57 = vadd.f32 %v6305_v51, %v6293_v59  ;;  %v6318_v58 = vpop.f32.mrf.mxu1 }
  0xd4   :  { %v11089_v8 = vld [vmem:[%s19493_s1 + $0x18a0] sm:$0xf]  ;;  %v11490_v14 = vor.u32 %v12921_v63, %v11489_v62  ;;  %6570 = vmatpush.bf16.msra.mxu1 %v11234_v5  ;;  %v12817_v39 = vld [vmem:[%s19493_s1 + $0x188c] sm:$0xf0] }
  0xd5   :  { %v11217_v11 = vld [vmem:[%s19493_s1 + $0x19a0] sm:$0xf]  ;;  %v11090_v26 = vor.u32 %v12821_v10, %v11089_v8  ;;  %6583 = vmatpush.bf16.msra.mxu2 %v11362_v6  ;;  %v12849_v45 = vld [vmem:[%s19493_s1 + $0x198c] sm:$0xf0]  ;;  %v6319_v5 = vadd.f32 %v6318_v58, %v6306_v57 }
  0xd6   :  { %v11345_v19 = vld [vmem:[%s19493_s1 + $0x1aa0] sm:$0xf]  ;;  %v11218_v35 = vor.u32 %v12853_v15, %v11217_v11  ;;  %6596 = vmatpush.bf16.msra.mxu3 %v11490_v14  ;;  %v12881_v47 = vld [vmem:[%s19493_s1 + $0x1a8c] sm:$0xf0]  ;;  %v6344_v33 = vpop.f32.mrf.mxu3 }
  0xd7   :  { %v11473_v21 = vld [vmem:[%s19493_s1 + $0x1ba0] sm:$0xf]  ;;  %v11346_v36 = vor.u32 %v12885_v20, %v11345_v19  ;;  %v12913_v49 = vld [vmem:[%s19493_s1 + $0x1b8c] sm:$0xf0]  ;;  %6558 = vmatpush.bf16.msra.mxu0 %v11090_v26  ;;  %v6331_v19 = vpop.f32.mrf.mxu2 }
  0xd8   :  { %v11073_v38 = vld [vmem:[%s19493_s1 + $0x1880] sm:$0xf]  ;;  %v11474_v44 = vor.u32 %v12917_v23, %v11473_v21  ;;  %6571 = vmatpush.bf16.msra.mxu1 %v11218_v35  ;;  %v12813_v55 = vld [vmem:[%s19493_s1 + $0x186c] sm:$0xf0]  ;;  %v6332_v26 = vadd.f32 %v6331_v19, %v6319_v5 }
  0xd9   :  { %v11201_v43 = vld [vmem:[%s19493_s1 + $0x1980] sm:$0xf]  ;;  %v11074_v50 = vor.u32 %v12817_v39, %v11073_v38  ;;  %6584 = vmatpush.bf16.msra.mxu2 %v11346_v36  ;;  %v12845_v62 = vld [vmem:[%s19493_s1 + $0x196c] sm:$0xf0] }
  0xda   :  { %v11329_v46 = vld [vmem:[%s19493_s1 + $0x1a80] sm:$0xf]  ;;  %v11202_v52 = vor.u32 %v12849_v45, %v11201_v43  ;;  %6597 = vmatpush.bf16.msra.mxu3 %v11474_v44  ;;  %v12877_v3 = vld [vmem:[%s19493_s1 + $0x1a6c] sm:$0xf0]  ;;  %v14485_v39 = vadd.f32 %v6344_v33, %v6332_v26  ;;  %v6307_v43 = vpop.f32.mrf.mxu0 }
  0xdb   :  { %v11457_v48 = vld [vmem:[%s19493_s1 + $0x1b80] sm:$0xf]  ;;  %v11330_v53 = vor.u32 %v12881_v47, %v11329_v46  ;;  %v12909_v59 = vld [vmem:[%s19493_s1 + $0x1b6c] sm:$0xf0]  ;;  %6559 = vmatpush.bf16.msra.mxu0 %v11074_v50 }
  0xdc   :  { %v11057_v54 = vld [vmem:[%s19493_s1 + $0x1860] sm:$0xf]  ;;  %v11458_v60 = vor.u32 %v12913_v49, %v11457_v48  ;;  %6572 = vmatpush.bf16.msra.mxu1 %v11202_v52  ;;  %v12809_v14 = vld [vmem:[%s19493_s1 + $0x184c] sm:$0xf0]  ;;  %v6320_v49 = vpop.f32.mrf.mxu1 }
  0xdd   :  { %v11185_v56 = vld [vmem:[%s19493_s1 + $0x1960] sm:$0xf]  ;;  %v11058_v6 = vor.u32 %v12813_v55, %v11057_v54  ;;  %6585 = vmatpush.bf16.msra.mxu2 %v11330_v53  ;;  %v12841_v21 = vld [vmem:[%s19493_s1 + $0x194c] sm:$0xf0] }
  0xde   :  { %v11313_v63 = vld [vmem:[%s19493_s1 + $0x1a60] sm:$0xf]  ;;  %v11186_v8 = vor.u32 %v12845_v62, %v11185_v56  ;;  %6598 = vmatpush.bf16.msra.mxu3 %v11458_v60  ;;  %v12873_v25 = vld [vmem:[%s19493_s1 + $0x1a4c] sm:$0xf0] }
  0xdf   :  { %v11441_v4 = vld [vmem:[%s19493_s1 + $0x1b60] sm:$0xf]  ;;  %v11314_v10 = vor.u32 %v12877_v3, %v11313_v63  ;;  %v12905_v36 = vld [vmem:[%s19493_s1 + $0x1b4c] sm:$0xf0]  ;;  %6560 = vmatpush.bf16.msra.mxu0 %v11058_v6 }
  0xe0   :  { %v11041_v11 = vld [vmem:[%s19493_s1 + $0x1840] sm:$0xf]  ;;  %v11442_v20 = vor.u32 %v12909_v59, %v11441_v4  ;;  %6573 = vmatpush.bf16.msra.mxu1 %v11186_v8  ;;  %v12805_v47 = vld [vmem:[%s19493_s1 + $0x182c] sm:$0xf0]  ;;  %v6333_v59 = vpop.f32.mrf.mxu2 }
  0xe1   :  { %v11169_v15 = vld [vmem:[%s19493_s1 + $0x1940] sm:$0xf]  ;;  %v11042_v38 = vor.u32 %v12809_v14, %v11041_v11  ;;  %6586 = vmatpush.bf16.msra.mxu2 %v11314_v10  ;;  %v12837_v51 = vld [vmem:[%s19493_s1 + $0x192c] sm:$0xf0]  ;;  %v6346_v11 = vpop.f32.mrf.mxu3 }
  0xe2   :  { %v11297_v23 = vld [vmem:[%s19493_s1 + $0x1a40] sm:$0xf]  ;;  %v11170_v44 = vor.u32 %v12841_v21, %v11169_v15  ;;  %6599 = vmatpush.bf16.msra.mxu3 %v11442_v20  ;;  %v12869_v53 = vld [vmem:[%s19493_s1 + $0x1a2c] sm:$0xf0] }
  0xe3   :  { %v11425_v35 = vld [vmem:[%s19493_s1 + $0x1b40] sm:$0xf]  ;;  %v11298_v45 = vor.u32 %v12873_v25, %v11297_v23  ;;  %v12901_v55 = vld [vmem:[%s19493_s1 + $0x1b2c] sm:$0xf0]  ;;  %6561 = vmatpush.bf16.msra.mxu0 %v11042_v38 }
  0xe4   :  { %v11025_v46 = vld [vmem:[%s19493_s1 + $0x1820] sm:$0xf]  ;;  %v11426_v50 = vor.u32 %v12905_v36, %v11425_v35  ;;  %v12801_v58 = vld [vmem:[%s19493_s1 + $0x180c] sm:$0xf0]  ;;  %6574 = vmatpush.bf16.msra.mxu1 %v11170_v44 }
  0xe5   :  { %v11153_v48 = vld [vmem:[%s19493_s1 + $0x1920] sm:$0xf]  ;;  %v11026_v56 = vor.u32 %v12805_v47, %v11025_v46  ;;  %6587 = vmatpush.bf16.msra.mxu2 %v11298_v45  ;;  %v12833_v3 = vld [vmem:[%s19493_s1 + $0x190c] sm:$0xf0] }
  0xe6   :  { %v11281_v52 = vld [vmem:[%s19493_s1 + $0x1a20] sm:$0xf]  ;;  %v11154_v60 = vor.u32 %v12837_v51, %v11153_v48  ;;  %6600 = vmatpush.bf16.msra.mxu3 %v11426_v50  ;;  %v12865_v6 = vld [vmem:[%s19493_s1 + $0x1a0c] sm:$0xf0] }
  0xe7   :  { %v11409_v54 = vld [vmem:[%s19493_s1 + $0x1b20] sm:$0xf]  ;;  %v11282_v62 = vor.u32 %v12869_v53, %v11281_v52  ;;  %v12897_v10 = vld [vmem:[%s19493_s1 + $0x1b0c] sm:$0xf0]  ;;  %6562 = vmatpush.bf16.msra.mxu0 %v11026_v56 }
  0xe8   :  { %v11009_v57 = vld [vmem:[%s19493_s1 + $0x1800] sm:$0xf]  ;;  %v11410_v5 = vor.u32 %v12901_v55, %v11409_v54  ;;  %v12957_v15 = vld [vmem:[%s19493_s1 + $0x1cec] sm:$0xf0]  ;;  %6575 = vmatpush.bf16.msra.mxu1 %v11154_v60 }
  0xe9   :  { %v11137_v63 = vld [vmem:[%s19493_s1 + $0x1900] sm:$0xf]  ;;  %v11010_v20 = vor.u32 %v12801_v58, %v11009_v57  ;;  %v12989_v21 = vld [vmem:[%s19493_s1 + $0x1dec] sm:$0xf0]  ;;  %6588 = vmatpush.bf16.msra.mxu2 %v11282_v62 }
  0xea   :  { %v11265_v4 = vld [vmem:[%s19493_s1 + $0x1a00] sm:$0xf]  ;;  %v13021_v25 = vld [vmem:[%s19493_s1 + $0x1eec] sm:$0xf0]  ;;  %v11138_v26 = vor.u32 %v12833_v3, %v11137_v63  ;;  %6601 = vmatpush.bf16.msra.mxu3 %v11410_v5 }
  0xeb   :  { %v11393_v8 = vld [vmem:[%s19493_s1 + $0x1b00] sm:$0xf]  ;;  %v11266_v33 = vor.u32 %v12865_v6, %v11265_v4  ;;  %v13053_v36 = vld [vmem:[%s19493_s1 + $0x1fec] sm:$0xf0]  ;;  %6563 = vmatpush.bf16.msra.mxu0 %v11010_v20 }
  0xec   :  { %v11633_v14 = vld [vmem:[%s19493_s1 + $0x1ce0] sm:$0xf]  ;;  %v11394_v38 = vor.u32 %v12897_v10, %v11393_v8  ;;  %v12953_v47 = vld [vmem:[%s19493_s1 + $0x1ccc] sm:$0xf0]  ;;  %6576 = vmatpush.bf16.msra.mxu1 %v11138_v26 }
  0xed   :  { %v11761_v19 = vld [vmem:[%s19493_s1 + $0x1de0] sm:$0xf]  ;;  %v11634_v43 = vor.u32 %v12957_v15, %v11633_v14  ;;  %v12985_v50 = vld [vmem:[%s19493_s1 + $0x1dcc] sm:$0xf0]  ;;  %6589 = vmatpush.bf16.msra.mxu2 %v11266_v33 }
  0xee   :  { %v11889_v23 = vld [vmem:[%s19493_s1 + $0x1ee0] sm:$0xf]  ;;  %v11762_v44 = vor.u32 %v12989_v21, %v11761_v19  ;;  %v13017_v52 = vld [vmem:[%s19493_s1 + $0x1ecc] sm:$0xf0]  ;;  %6602 = vmatpush.bf16.msra.mxu3 %v11394_v38  ;;  %v6357_v38 = vpop.f32.mrf.mxu0 }
  0xef   :  { %v12017_v35 = vld [vmem:[%s19493_s1 + $0x1fe0] sm:$0xf]  ;;  %v11890_v45 = vor.u32 %v13021_v25, %v11889_v23  ;;  %v13049_v55 = vld [vmem:[%s19493_s1 + $0x1fcc] sm:$0xf0]  ;;  %6608 = vmatpush.bf16.msrb.mxu0 %v11634_v43 }
  0xf0   :  { %v11617_v46 = vld [vmem:[%s19493_s1 + $0x1cc0] sm:$0xf]  ;;  %v12018_v49 = vor.u32 %v13053_v36, %v12017_v35  ;;  %v1086_v56 = vld [vmem:[#allocation1 + $0x12] sm:$0xff]  ;;  %v1085_v57 = vld [vmem:[#allocation1 + $0x9] sm:$0xff]  ;;  %6621 = vmatpush.bf16.msrb.mxu1 %v11762_v44 }
  0xf1   :  { %v11745_v48 = vld [vmem:[%s19493_s1 + $0x1dc0] sm:$0xf]  ;;  %v11618_v60 = vor.u32 %v12953_v47, %v11617_v46  ;;  %6634 = vmatpush.bf16.msrb.mxu2 %v11890_v45  ;;  %v12949_v4 = vld [vmem:[%s19493_s1 + $0x1cac] sm:$0xf0]  ;;  %6577 = vmatmul.bf16.vlgmr.msra.gmra.mxu1 %v1085_v57  ;;  %v6358_v45 = vadd.f32 %v6357_v38, %v14485_v39  ;;  %v6370_v47 = vpop.f32.mrf.mxu1 }
  0xf2   :  { %v11873_v51 = vld [vmem:[%s19493_s1 + $0x1ec0] sm:$0xf]  ;;  %v11746_v62 = vor.u32 %v12985_v50, %v11745_v48  ;;  %6647 = vmatpush.bf16.msrb.mxu3 %v12018_v49  ;;  %v12981_v6 = vld [vmem:[%s19493_s1 + $0x1dac] sm:$0xf0]  ;;  %6590 = vmatmul.bf16.vlgmr.msra.gmra.mxu2 %v1086_v56 }
  0xf3   :  { %v1084_v53 = vld [vmem:[#allocation1] sm:$0xff]  ;;  %v11874_v63 = vor.u32 %v13017_v52, %v11873_v51  ;;  %v13013_v10 = vld [vmem:[%s19493_s1 + $0x1eac] sm:$0xf0]  ;;  %6609 = vmatpush.bf16.msrb.mxu0 %v11618_v60 }
  0xf4   :  { %v12001_v54 = vld [vmem:[%s19493_s1 + $0x1fc0] sm:$0xf]  ;;  %6564 = vmatmul.bf16.vlgmr.msra.gmra.mxu0 %v1084_v53  ;;  %v13045_v14 = vld [vmem:[%s19493_s1 + $0x1fac] sm:$0xf0]  ;;  %6622 = vmatpush.bf16.msrb.mxu1 %v11746_v62  ;;  %v6371_v53 = vadd.f32 %v6370_v47, %v6358_v45 }
  0xf5   :  { %v1087_v58 = vld [vmem:[#allocation1 + $0x1b] sm:$0xff]  ;;  %v12002_v5 = vor.u32 %v13049_v55, %v12001_v54  ;;  %6635 = vmatpush.bf16.msrb.mxu2 %v11874_v63  ;;  %v12945_v23 = vld [vmem:[%s19493_s1 + $0x1c8c] sm:$0xf0] }
  0xf6   :  { %v11601_v3 = vld [vmem:[%s19493_s1 + $0x1ca0] sm:$0xf]  ;;  %6603 = vmatmul.bf16.vlgmr.msra.gmra.mxu3 %v1087_v58  ;;  %v12977_v33 = vld [vmem:[%s19493_s1 + $0x1d8c] sm:$0xf0] }
  0xf7   :  { %v11729_v59 = vld [vmem:[%s19493_s1 + $0x1da0] sm:$0xf]  ;;  %v11602_v15 = vor.u32 %v12949_v4, %v11601_v3  ;;  %6648 = vmatpush.bf16.msrb.mxu3 %v12002_v5  ;;  %v13009_v36 = vld [vmem:[%s19493_s1 + $0x1e8c] sm:$0xf0] }
  0xf8   :  { %v11857_v8 = vld [vmem:[%s19493_s1 + $0x1ea0] sm:$0xf]  ;;  %v11730_v19 = vor.u32 %v12981_v6, %v11729_v59  ;;  %v13041_v44 = vld [vmem:[%s19493_s1 + $0x1f8c] sm:$0xf0]  ;;  %v6383_v6 = vpop.f32.mrf.mxu2 }
  0xf9   :  { %v11985_v11 = vld [vmem:[%s19493_s1 + $0x1fa0] sm:$0xf]  ;;  %v11858_v20 = vor.u32 %v13013_v10, %v11857_v8  ;;  %6610 = vmatpush.bf16.msrb.mxu0 %v11602_v15  ;;  %v12941_v51 = vld [vmem:[%s19493_s1 + $0x1c6c] sm:$0xf0]  ;;  %v6396_v15 = vpop.f32.mrf.mxu3 }
  0xfa   :  { %v11585_v21 = vld [vmem:[%s19493_s1 + $0x1c80] sm:$0xf]  ;;  %v11986_v26 = vor.u32 %v13045_v14, %v11985_v11  ;;  %6623 = vmatpush.bf16.msrb.mxu1 %v11730_v19  ;;  %v12973_v54 = vld [vmem:[%s19493_s1 + $0x1d6c] sm:$0xf0]  ;;  %v6384_v14 = vadd.f32 %v6383_v6, %v6371_v53 }
  0xfb   :  { %v11713_v25 = vld [vmem:[%s19493_s1 + $0x1d80] sm:$0xf]  ;;  %v11586_v46 = vor.u32 %v12945_v23, %v11585_v21  ;;  %6636 = vmatpush.bf16.msrb.mxu2 %v11858_v20  ;;  %v13005_v56 = vld [vmem:[%s19493_s1 + $0x1e6c] sm:$0xf0]  ;;  %v6359_v21 = vpop.f32.mrf.mxu0 }
  0xfc   :  { %v11841_v35 = vld [vmem:[%s19493_s1 + $0x1e80] sm:$0xf]  ;;  %v11714_v48 = vor.u32 %v12977_v33, %v11713_v25  ;;  %6649 = vmatpush.bf16.msrb.mxu3 %v11986_v26  ;;  %v13037_v58 = vld [vmem:[%s19493_s1 + $0x1f6c] sm:$0xf0]  ;;  %v6372_v25 = vpop.f32.mrf.mxu1  ;;  %v14680_v26 = vadd.f32 %v6396_v15, %v6384_v14 }
  0xfd   :  { %v11969_v43 = vld [vmem:[%s19493_s1 + $0x1f80] sm:$0xf]  ;;  %v11842_v49 = vor.u32 %v13009_v36, %v11841_v35  ;;  %6611 = vmatpush.bf16.msrb.mxu0 %v11586_v46  ;;  %v12937_v4 = vld [vmem:[%s19493_s1 + $0x1c4c] sm:$0xf0] }
  0xfe   :  { %v11569_v50 = vld [vmem:[%s19493_s1 + $0x1c60] sm:$0xf]  ;;  %v11970_v39 = vor.u32 %v13041_v44, %v11969_v43  ;;  %6624 = vmatpush.bf16.msrb.mxu1 %v11714_v48  ;;  %v12969_v8 = vld [vmem:[%s19493_s1 + $0x1d4c] sm:$0xf0] }
  0xff   :  { %v11697_v52 = vld [vmem:[%s19493_s1 + $0x1d60] sm:$0xf]  ;;  %v11570_v60 = vor.u32 %v12941_v51, %v11569_v50  ;;  %6637 = vmatpush.bf16.msrb.mxu2 %v11842_v49  ;;  %v13001_v11 = vld [vmem:[%s19493_s1 + $0x1e4c] sm:$0xf0] }
 0x100   :  { %v11825_v55 = vld [vmem:[%s19493_s1 + $0x1e60] sm:$0xf]  ;;  %v11698_v62 = vor.u32 %v12973_v54, %v11697_v52  ;;  %6650 = vmatpush.bf16.msrb.mxu3 %v11970_v39  ;;  %v13033_v20 = vld [vmem:[%s19493_s1 + $0x1f4c] sm:$0xf0] }
 0x101   :  { %v11953_v57 = vld [vmem:[%s19493_s1 + $0x1f60] sm:$0xf]  ;;  %v11826_v63 = vor.u32 %v13005_v56, %v11825_v55  ;;  %6612 = vmatpush.bf16.msrb.mxu0 %v11570_v60  ;;  %v12933_v38 = vld [vmem:[%s19493_s1 + $0x1c2c] sm:$0xf0] }
 0x102   :  { %v11553_v3 = vld [vmem:[%s19493_s1 + $0x1c40] sm:$0xf]  ;;  %v11954_v5 = vor.u32 %v13037_v58, %v11953_v57  ;;  %6625 = vmatpush.bf16.msrb.mxu1 %v11698_v62  ;;  %v12965_v45 = vld [vmem:[%s19493_s1 + $0x1d2c] sm:$0xf0] }
 0x103   :  { %v11681_v59 = vld [vmem:[%s19493_s1 + $0x1d40] sm:$0xf]  ;;  %v11554_v23 = vor.u32 %v12937_v4, %v11553_v3  ;;  %6638 = vmatpush.bf16.msrb.mxu2 %v11826_v63  ;;  %v12997_v47 = vld [vmem:[%s19493_s1 + $0x1e2c] sm:$0xf0]  ;;  %v6385_v63 = vpop.f32.mrf.mxu2  ;;  %v12059_v3 = vld [vmem:[%s19493_s1 + $0xe4] sm:$0xf] }
 0x104   :  { %v11809_v10 = vld [vmem:[%s19493_s1 + $0x1e40] sm:$0xf]  ;;  %v11682_v33 = vor.u32 %v12969_v8, %v11681_v59  ;;  %6651 = vmatpush.bf16.msrb.mxu3 %v11954_v5  ;;  %v13029_v49 = vld [vmem:[%s19493_s1 + $0x1f2c] sm:$0xf0]  ;;  %v8051_v4 = vld [vmem:[%s19493_s1 + $0xf0] sm:$0xf0]  ;;  %v6398_v5 = vpop.f32.mrf.mxu3 }
 0x105   :  { %v11937_v19 = vld [vmem:[%s19493_s1 + $0x1f40] sm:$0xf]  ;;  %v11810_v35 = vor.u32 %v13001_v11, %v11809_v10  ;;  %6613 = vmatpush.bf16.msrb.mxu0 %v11554_v23  ;;  %v12929_v52 = vld [vmem:[%s19493_s1 + $0x1c0c] sm:$0xf0]  ;;  %v12091_v59 = vld [vmem:[%s19493_s1 + $0x1e4] sm:$0xf]  ;;  %v8054_v23 = vor.u32 %v12059_v3, %v8051_v4 }
 0x106   :  { %v11537_v36 = vld [vmem:[%s19493_s1 + $0x1c20] sm:$0xf]  ;;  %v11938_v44 = vor.u32 %v13033_v20, %v11937_v19  ;;  %6626 = vmatpush.bf16.msrb.mxu1 %v11682_v33  ;;  %v12961_v55 = vld [vmem:[%s19493_s1 + $0x1d0c] sm:$0xf0]  ;;  %v8179_v8 = vld [vmem:[%s19493_s1 + $0x1f0] sm:$0xf0] }
 0x107   :  { %v11665_v43 = vld [vmem:[%s19493_s1 + $0x1d20] sm:$0xf]  ;;  %v11538_v50 = vor.u32 %v12933_v38, %v11537_v36  ;;  %6639 = vmatpush.bf16.msrb.mxu2 %v11810_v35  ;;  %v12993_v58 = vld [vmem:[%s19493_s1 + $0x1e0c] sm:$0xf0]  ;;  %v12123_v10 = vld [vmem:[%s19493_s1 + $0x2e4] sm:$0xf]  ;;  %v8182_v25 = vor.u32 %v12091_v59, %v8179_v8 }
 0x108   :  { %v11793_v46 = vld [vmem:[%s19493_s1 + $0x1e20] sm:$0xf]  ;;  %v11666_v39 = vor.u32 %v12965_v45, %v11665_v43  ;;  %6652 = vmatpush.bf16.msrb.mxu3 %v11938_v44  ;;  %v13025_v62 = vld [vmem:[%s19493_s1 + $0x1f0c] sm:$0xf0]  ;;  %v8307_v11 = vld [vmem:[%s19493_s1 + $0x2f0] sm:$0xf0] }
 0x109   :  { %v11921_v48 = vld [vmem:[%s19493_s1 + $0x1f20] sm:$0xf]  ;;  %v11794_v53 = vor.u32 %v12997_v47, %v11793_v46  ;;  %6614 = vmatpush.bf16.msrb.mxu0 %v11538_v50  ;;  %v12155_v19 = vld [vmem:[%s19493_s1 + $0x3e4] sm:$0xf]  ;;  %v8435_v20 = vld [vmem:[%s19493_s1 + $0x3f0] sm:$0xf0]  ;;  %v8310_v33 = vor.u32 %v12123_v10, %v8307_v11 }
 0x10a   :  { %v11521_v51 = vld [vmem:[%s19493_s1 + $0x1c00] sm:$0xf]  ;;  %v11922_v57 = vor.u32 %v13029_v49, %v11921_v48  ;;  %6627 = vmatpush.bf16.msrb.mxu1 %v11666_v39  ;;  %v12055_v35 = vld [vmem:[%s19493_s1 + $0xc4] sm:$0xf]  ;;  %v8035_v36 = vld [vmem:[%s19493_s1 + $0xd0] sm:$0xf0]  ;;  %v8438_v43 = vor.u32 %v12155_v19, %v8435_v20 }
 0x10b   :  { %v11649_v54 = vld [vmem:[%s19493_s1 + $0x1d00] sm:$0xf]  ;;  %v11522_v6 = vor.u32 %v12929_v52, %v11521_v51  ;;  %6640 = vmatpush.bf16.msrb.mxu2 %v11794_v53  ;;  %v12087_v38 = vld [vmem:[%s19493_s1 + $0x1c4] sm:$0xf]  ;;  %v8163_v44 = vld [vmem:[%s19493_s1 + $0x1d0] sm:$0xf0]  ;;  %v8038_v39 = vor.u32 %v12055_v35, %v8035_v36  ;;  %v6422_v36 = vpop.f32.mrf.mxu1 }
 0x10c   :  { %v11777_v56 = vld [vmem:[%s19493_s1 + $0x1e00] sm:$0xf]  ;;  %v11650_v14 = vor.u32 %v12961_v55, %v11649_v54  ;;  %6653 = vmatpush.bf16.msrb.mxu3 %v11922_v57  ;;  %v12119_v45 = vld [vmem:[%s19493_s1 + $0x2c4] sm:$0xf]  ;;  %v8291_v46 = vld [vmem:[%s19493_s1 + $0x2d0] sm:$0xf0]  ;;  %v8166_v53 = vor.u32 %v12087_v38, %v8163_v44 }
 0x10d   :  { %v11905_v60 = vld [vmem:[%s19493_s1 + $0x1f00] sm:$0xf]  ;;  %v11778_v15 = vor.u32 %v12993_v58, %v11777_v56  ;;  %6615 = vmatpush.bf16.msrb.mxu0 %v11522_v6  ;;  %v1088_v47 = vld [vmem:[#allocation1 + $0x24] sm:$0xff]  ;;  %v8419_v49 = vld [vmem:[%s19493_s1 + $0x3d0] sm:$0xf0]  ;;  %v8294_v54 = vor.u32 %v12119_v45, %v8291_v46 }
 0x10e   :  { %v11906_v21 = vor.u32 %v13025_v62, %v11905_v60  ;;  %6628 = vmatpush.bf16.msrb.mxu1 %v11650_v14  ;;  %v12151_v48 = vld [vmem:[%s19493_s1 + $0x3c4] sm:$0xf]  ;;  %v1090_v50 = vld [vmem:[#allocation1 + $0x36] sm:$0xff]  ;;  %v1089_v51 = vld [vmem:[#allocation1 + $0x2d] sm:$0xff] }
 0x10f   :  { %6641 = vmatpush.bf16.msrb.mxu2 %v11778_v15  ;;  %v1091_v52 = vld [vmem:[#allocation1 + $0x3f] sm:$0xff]  ;;  %v8019_v56 = vld [vmem:[%s19493_s1 + $0xb0] sm:$0xf0]  ;;  %v8422_v58 = vor.u32 %v12151_v48, %v8419_v49 }
 0x110   :  { %6654 = vmatpush.bf16.msrb.mxu3 %v11906_v21  ;;  %v12051_v55 = vld [vmem:[%s19493_s1 + $0xa4] sm:$0xf]  ;;  %6616 = vmatmul.bf16.vlgmr.msrb.gmra.mxu0 %v1088_v47  ;;  %v8147_v60 = vld [vmem:[%s19493_s1 + $0x1b0] sm:$0xf0]  ;;  %v6409_v21 = vpop.f32.mrf.mxu0 }
 0x111   :  { %6660 = vmatpush.bf16.msra.mxu0 %v8054_v23  ;;  %v12083_v57 = vld [vmem:[%s19493_s1 + $0x1a4] sm:$0xf]  ;;  %v8275_v63 = vld [vmem:[%s19493_s1 + $0x2b0] sm:$0xf0]  ;;  %6629 = vmatmul.bf16.vlgmr.msrb.gmra.mxu1 %v1089_v51  ;;  %v8022_v59 = vor.u32 %v12051_v55, %v8019_v56 }
 0x112   :  { %6673 = vmatpush.bf16.msra.mxu1 %v8182_v25  ;;  %v12115_v62 = vld [vmem:[%s19493_s1 + $0x2a4] sm:$0xf]  ;;  %6642 = vmatmul.bf16.vlgmr.msrb.gmra.mxu2 %v1090_v50  ;;  %v8403_v4 = vld [vmem:[%s19493_s1 + $0x3b0] sm:$0xf0]  ;;  %v8150_v5 = vor.u32 %v12083_v57, %v8147_v60  ;;  %v6435_v60 = vpop.f32.mrf.mxu2 }
 0x113   :  { %6686 = vmatpush.bf16.msra.mxu2 %v8310_v33  ;;  %v12147_v3 = vld [vmem:[%s19493_s1 + $0x3a4] sm:$0xf]  ;;  %6655 = vmatmul.bf16.vlgmr.msrb.gmra.mxu3 %v1091_v52  ;;  %v8278_v6 = vor.u32 %v12115_v62, %v8275_v63  ;;  %v8003_v10 = vld [vmem:[%s19493_s1 + $0x90] sm:$0xf0]  ;;  %v6410_v33 = vadd.f32 %v6409_v21, %v14680_v26 }
 0x114   :  { %6699 = vmatpush.bf16.msra.mxu3 %v8438_v43  ;;  %v12047_v8 = vld [vmem:[%s19493_s1 + $0x84] sm:$0xf]  ;;  %v8406_v14 = vor.u32 %v12147_v3, %v8403_v4  ;;  %v8131_v15 = vld [vmem:[%s19493_s1 + $0x190] sm:$0xf0] }
 0x115   :  { %6661 = vmatpush.bf16.msra.mxu0 %v8038_v39  ;;  %v12079_v11 = vld [vmem:[%s19493_s1 + $0x184] sm:$0xf]  ;;  %v8259_v20 = vld [vmem:[%s19493_s1 + $0x290] sm:$0xf0]  ;;  %v8006_v35 = vor.u32 %v12047_v8, %v8003_v10  ;;  %v6423_v47 = vadd.f32 %v6422_v36, %v6410_v33 }
 0x116   :  { %6674 = vmatpush.bf16.msra.mxu1 %v8166_v53  ;;  %v12111_v19 = vld [vmem:[%s19493_s1 + $0x284] sm:$0xf]  ;;  %v8387_v25 = vld [vmem:[%s19493_s1 + $0x390] sm:$0xf0]  ;;  %v8134_v38 = vor.u32 %v12079_v11, %v8131_v15  ;;  %v6424_v11 = vpop.f32.mrf.mxu1 }
 0x117   :  { %6687 = vmatpush.bf16.msra.mxu2 %v8294_v54  ;;  %v12143_v23 = vld [vmem:[%s19493_s1 + $0x384] sm:$0xf]  ;;  %v8262_v43 = vor.u32 %v12111_v19, %v8259_v20  ;;  %v7987_v45 = vld [vmem:[%s19493_s1 + $0x70] sm:$0xf0]  ;;  %v6436_v4 = vadd.f32 %v6435_v60, %v6423_v47 }
 0x118   :  { %6700 = vmatpush.bf16.msra.mxu3 %v8422_v58  ;;  %v12043_v44 = vld [vmem:[%s19493_s1 + $0x64] sm:$0xf]  ;;  %v8390_v26 = vor.u32 %v12143_v23, %v8387_v25  ;;  %v8115_v48 = vld [vmem:[%s19493_s1 + $0x170] sm:$0xf0]  ;;  %v6411_v8 = vpop.f32.mrf.mxu0 }
 0x119   :  { %6662 = vmatpush.bf16.msra.mxu0 %v8022_v59  ;;  %v12075_v46 = vld [vmem:[%s19493_s1 + $0x164] sm:$0xf]  ;;  %v8243_v50 = vld [vmem:[%s19493_s1 + $0x270] sm:$0xf0]  ;;  %v7990_v39 = vor.u32 %v12043_v44, %v7987_v45  ;;  %v6448_v59 = vpop.f32.mrf.mxu3 }
 0x11a   :  { %6675 = vmatpush.bf16.msra.mxu1 %v8150_v5  ;;  %v12107_v49 = vld [vmem:[%s19493_s1 + $0x264] sm:$0xf]  ;;  %v8371_v52 = vld [vmem:[%s19493_s1 + $0x370] sm:$0xf0]  ;;  %v8118_v53 = vor.u32 %v12075_v46, %v8115_v48 }
 0x11b   :  { %6688 = vmatpush.bf16.msra.mxu2 %v8278_v6  ;;  %v12139_v51 = vld [vmem:[%s19493_s1 + $0x364] sm:$0xf]  ;;  %v8246_v54 = vor.u32 %v12107_v49, %v8243_v50  ;;  %v7971_v56 = vld [vmem:[%s19493_s1 + $0x50] sm:$0xf0] }
 0x11c   :  { %6701 = vmatpush.bf16.msra.mxu3 %v8406_v14  ;;  %v12039_v55 = vld [vmem:[%s19493_s1 + $0x44] sm:$0xf]  ;;  %v8374_v58 = vor.u32 %v12139_v51, %v8371_v52  ;;  %v8099_v62 = vld [vmem:[%s19493_s1 + $0x150] sm:$0xf0]  ;;  %v14875_v14 = vadd.f32 %v6448_v59, %v6436_v4 }
 0x11d   :  { %6663 = vmatpush.bf16.msra.mxu0 %v8006_v35  ;;  %v12071_v57 = vld [vmem:[%s19493_s1 + $0x144] sm:$0xf]  ;;  %v8227_v3 = vld [vmem:[%s19493_s1 + $0x250] sm:$0xf0]  ;;  %v7974_v10 = vor.u32 %v12039_v55, %v7971_v56 }
 0x11e   :  { %6676 = vmatpush.bf16.msra.mxu1 %v8134_v38  ;;  %v12103_v63 = vld [vmem:[%s19493_s1 + $0x244] sm:$0xf]  ;;  %v8355_v6 = vld [vmem:[%s19493_s1 + $0x350] sm:$0xf0]  ;;  %v8102_v15 = vor.u32 %v12071_v57, %v8099_v62 }
 0x11f   :  { %6689 = vmatpush.bf16.msra.mxu2 %v8262_v43  ;;  %v12135_v5 = vld [vmem:[%s19493_s1 + $0x344] sm:$0xf]  ;;  %v8230_v19 = vor.u32 %v12103_v63, %v8227_v3  ;;  %v7955_v21 = vld [vmem:[%s19493_s1 + $0x30] sm:$0xf0] }
 0x120   :  { %6702 = vmatpush.bf16.msra.mxu3 %v8390_v26  ;;  %v12035_v20 = vld [vmem:[%s19493_s1 + $0x24] sm:$0xf]  ;;  %v8358_v25 = vor.u32 %v12135_v5, %v8355_v6  ;;  %v8083_v33 = vld [vmem:[%s19493_s1 + $0x130] sm:$0xf0] }
 0x121   :  { %6664 = vmatpush.bf16.msra.mxu0 %v7990_v39  ;;  %v12067_v23 = vld [vmem:[%s19493_s1 + $0x124] sm:$0xf]  ;;  %v8211_v36 = vld [vmem:[%s19493_s1 + $0x230] sm:$0xf0]  ;;  %v7958_v44 = vor.u32 %v12035_v20, %v7955_v21 }
 0x122   :  { %6677 = vmatpush.bf16.msra.mxu1 %v8118_v53  ;;  %v12099_v35 = vld [vmem:[%s19493_s1 + $0x224] sm:$0xf]  ;;  %v8339_v43 = vld [vmem:[%s19493_s1 + $0x330] sm:$0xf0]  ;;  %v8086_v26 = vor.u32 %v12067_v23, %v8083_v33 }
 0x123   :  { %6690 = vmatpush.bf16.msra.mxu2 %v8246_v54  ;;  %v12131_v38 = vld [vmem:[%s19493_s1 + $0x324] sm:$0xf]  ;;  %v7939_v46 = vld [vmem:[%s19493_s1 + $0x10] sm:$0xf0]  ;;  %v8214_v47 = vor.u32 %v12099_v35, %v8211_v36  ;;  %v6437_v54 = vpop.f32.mrf.mxu2 }
 0x124   :  { %6703 = vmatpush.bf16.msra.mxu3 %v8374_v58  ;;  %v12031_v45 = vld [vmem:[%s19493_s1 + $0x4] sm:$0xf]  ;;  %v8067_v49 = vld [vmem:[%s19493_s1 + $0x110] sm:$0xf0]  ;;  %v8342_v51 = vor.u32 %v12131_v38, %v8339_v43  ;;  %v6450_v58 = vpop.f32.mrf.mxu3 }
 0x125   :  { %6665 = vmatpush.bf16.msra.mxu0 %v7974_v10  ;;  %v12063_v48 = vld [vmem:[%s19493_s1 + $0x104] sm:$0xf]  ;;  %v8195_v52 = vld [vmem:[%s19493_s1 + $0x210] sm:$0xf0]  ;;  %v7942_v60 = vor.u32 %v12031_v45, %v7939_v46 }
 0x126   :  { %6678 = vmatpush.bf16.msra.mxu1 %v8102_v15  ;;  %v12095_v50 = vld [vmem:[%s19493_s1 + $0x204] sm:$0xf]  ;;  %v8323_v53 = vld [vmem:[%s19493_s1 + $0x310] sm:$0xf0]  ;;  %v8070_v4 = vor.u32 %v12063_v48, %v8067_v49 }
 0x127   :  { %6691 = vmatpush.bf16.msra.mxu2 %v8230_v19  ;;  %v12127_v39 = vld [vmem:[%s19493_s1 + $0x304] sm:$0xf]  ;;  %v8563_v56 = vld [vmem:[%s19493_s1 + $0x4f0] sm:$0xf0]  ;;  %v8198_v59 = vor.u32 %v12095_v50, %v8195_v52 }
 0x128   :  { %6704 = vmatpush.bf16.msra.mxu3 %v8358_v25  ;;  %v12187_v55 = vld [vmem:[%s19493_s1 + $0x4e4] sm:$0xf]  ;;  %v8691_v62 = vld [vmem:[%s19493_s1 + $0x5f0] sm:$0xf0]  ;;  %v8326_v8 = vor.u32 %v12127_v39, %v8323_v53 }
 0x129   :  { %v12219_v57 = vld [vmem:[%s19493_s1 + $0x5e4] sm:$0xf]  ;;  %6666 = vmatpush.bf16.msra.mxu0 %v7958_v44  ;;  %v8819_v3 = vld [vmem:[%s19493_s1 + $0x6f0] sm:$0xf0]  ;;  %v8566_v10 = vor.u32 %v12187_v55, %v8563_v56 }
 0x12a   :  { %v12251_v63 = vld [vmem:[%s19493_s1 + $0x6e4] sm:$0xf]  ;;  %6679 = vmatpush.bf16.msra.mxu1 %v8086_v26  ;;  %v8947_v6 = vld [vmem:[%s19493_s1 + $0x7f0] sm:$0xf0]  ;;  %v8694_v11 = vor.u32 %v12219_v57, %v8691_v62 }
 0x12b   :  { %6692 = vmatpush.bf16.msra.mxu2 %v8214_v47  ;;  %v12283_v5 = vld [vmem:[%s19493_s1 + $0x7e4] sm:$0xf]  ;;  %v8822_v15 = vor.u32 %v12251_v63, %v8819_v3  ;;  %v8547_v20 = vld [vmem:[%s19493_s1 + $0x4d0] sm:$0xf0] }
 0x12c   :  { %6705 = vmatpush.bf16.msra.mxu3 %v8342_v51  ;;  %v12183_v19 = vld [vmem:[%s19493_s1 + $0x4c4] sm:$0xf]  ;;  %v8950_v23 = vor.u32 %v12283_v5, %v8947_v6  ;;  %v8675_v25 = vld [vmem:[%s19493_s1 + $0x5d0] sm:$0xf0] }
 0x12d   :  { %v12215_v21 = vld [vmem:[%s19493_s1 + $0x5c4] sm:$0xf]  ;;  %6667 = vmatpush.bf16.msra.mxu0 %v7942_v60  ;;  %v8803_v35 = vld [vmem:[%s19493_s1 + $0x6d0] sm:$0xf0]  ;;  %v8550_v43 = vor.u32 %v12183_v19, %v8547_v20 }
 0x12e   :  { %v12247_v33 = vld [vmem:[%s19493_s1 + $0x6c4] sm:$0xf]  ;;  %6680 = vmatpush.bf16.msra.mxu1 %v8070_v4  ;;  %v8931_v38 = vld [vmem:[%s19493_s1 + $0x7d0] sm:$0xf0]  ;;  %v8678_v44 = vor.u32 %v12215_v21, %v8675_v25  ;;  %v6461_v4 = vpop.f32.mrf.mxu0 }
 0x12f   :  { %6693 = vmatpush.bf16.msra.mxu2 %v8198_v59  ;;  %v12279_v36 = vld [vmem:[%s19493_s1 + $0x7c4] sm:$0xf]  ;;  %v8806_v45 = vor.u32 %v12247_v33, %v8803_v35  ;;  %v8531_v26 = vld [vmem:[%s19493_s1 + $0x4b0] sm:$0xf0]  ;;  %v6462_v6 = vadd.f32 %v6461_v4, %v14875_v14 }
 0x130   :  { %6706 = vmatpush.bf16.msra.mxu3 %v8326_v8  ;;  %v12179_v46 = vld [vmem:[%s19493_s1 + $0x4a4] sm:$0xf]  ;;  %v8934_v48 = vor.u32 %v12279_v36, %v8931_v38  ;;  %v8659_v49 = vld [vmem:[%s19493_s1 + $0x5b0] sm:$0xf0]  ;;  %6668 = vmatmul.bf16.vlgmr.msra.gmra.mxu0 %v13422_v28 }
 0x131   :  { %6712 = vmatpush.bf16.msrb.mxu0 %v8566_v10  ;;  %v12211_v47 = vld [vmem:[%s19493_s1 + $0x5a4] sm:$0xf]  ;;  %v8787_v51 = vld [vmem:[%s19493_s1 + $0x6b0] sm:$0xf0]  ;;  %v8534_v53 = vor.u32 %v12179_v46, %v8531_v26  ;;  %6681 = vmatmul.bf16.vlgmr.msra.gmra.mxu1 %v13432_v34  ;;  %v6474_v10 = vpop.f32.mrf.mxu1 }
 0x132   :  { %6725 = vmatpush.bf16.msrb.mxu1 %v8694_v11  ;;  %v12243_v50 = vld [vmem:[%s19493_s1 + $0x6a4] sm:$0xf]  ;;  %6694 = vmatmul.bf16.vlgmr.msra.gmra.mxu2 %v13420_v27  ;;  %v8915_v39 = vld [vmem:[%s19493_s1 + $0x7b0] sm:$0xf0]  ;;  %v8662_v54 = vor.u32 %v12211_v47, %v8659_v49  ;;  %v6487_v49 = vpop.f32.mrf.mxu2 }
 0x133   :  { %6738 = vmatpush.bf16.msrb.mxu2 %v8822_v15  ;;  %v12275_v52 = vld [vmem:[%s19493_s1 + $0x7a4] sm:$0xf]  ;;  %6707 = vmatmul.bf16.vlgmr.msra.gmra.mxu3 %v13424_v29  ;;  %v8790_v55 = vor.u32 %v12243_v50, %v8787_v51  ;;  %v8515_v57 = vld [vmem:[%s19493_s1 + $0x490] sm:$0xf0] }
 0x134   :  { %6751 = vmatpush.bf16.msrb.mxu3 %v8950_v23  ;;  %v12175_v56 = vld [vmem:[%s19493_s1 + $0x484] sm:$0xf]  ;;  %v8918_v60 = vor.u32 %v12275_v52, %v8915_v39  ;;  %v8643_v62 = vld [vmem:[%s19493_s1 + $0x590] sm:$0xf0]  ;;  %v6475_v23 = vadd.f32 %v6474_v10, %v6462_v6 }
 0x135   :  { %6713 = vmatpush.bf16.msrb.mxu0 %v8550_v43  ;;  %v12207_v58 = vld [vmem:[%s19493_s1 + $0x584] sm:$0xf]  ;;  %v8771_v3 = vld [vmem:[%s19493_s1 + $0x690] sm:$0xf0]  ;;  %v8518_v8 = vor.u32 %v12175_v56, %v8515_v57 }
 0x136   :  { %6726 = vmatpush.bf16.msrb.mxu1 %v8678_v44  ;;  %v12239_v63 = vld [vmem:[%s19493_s1 + $0x684] sm:$0xf]  ;;  %v8899_v5 = vld [vmem:[%s19493_s1 + $0x790] sm:$0xf0]  ;;  %v8646_v11 = vor.u32 %v12207_v58, %v8643_v62  ;;  %v6488_v39 = vadd.f32 %v6487_v49, %v6475_v23  ;;  %v6463_v56 = vpop.f32.mrf.mxu0 }
 0x137   :  { %6739 = vmatpush.bf16.msrb.mxu2 %v8806_v45  ;;  %v12271_v59 = vld [vmem:[%s19493_s1 + $0x784] sm:$0xf]  ;;  %v8774_v15 = vor.u32 %v12239_v63, %v8771_v3  ;;  %v8499_v20 = vld [vmem:[%s19493_s1 + $0x470] sm:$0xf0] }
 0x138   :  { %6752 = vmatpush.bf16.msrb.mxu3 %v8934_v48  ;;  %v12171_v19 = vld [vmem:[%s19493_s1 + $0x464] sm:$0xf]  ;;  %v8902_v14 = vor.u32 %v12271_v59, %v8899_v5  ;;  %v8627_v25 = vld [vmem:[%s19493_s1 + $0x570] sm:$0xf0] }
 0x139   :  { %6714 = vmatpush.bf16.msrb.mxu0 %v8534_v53  ;;  %v12203_v21 = vld [vmem:[%s19493_s1 + $0x564] sm:$0xf]  ;;  %v8755_v35 = vld [vmem:[%s19493_s1 + $0x670] sm:$0xf0]  ;;  %v8502_v43 = vor.u32 %v12171_v19, %v8499_v20  ;;  %v6500_v53 = vpop.f32.mrf.mxu3  ;;  %v6476_v58 = vpop.f32.mrf.mxu1 }
 0x13a   :  { %6727 = vmatpush.bf16.msrb.mxu1 %v8662_v54  ;;  %v12235_v33 = vld [vmem:[%s19493_s1 + $0x664] sm:$0xf]  ;;  %v8883_v38 = vld [vmem:[%s19493_s1 + $0x770] sm:$0xf0]  ;;  %v8630_v44 = vor.u32 %v12203_v21, %v8627_v25 }
 0x13b   :  { %6740 = vmatpush.bf16.msrb.mxu2 %v8790_v55  ;;  %v12267_v36 = vld [vmem:[%s19493_s1 + $0x764] sm:$0xf]  ;;  %v8758_v45 = vor.u32 %v12235_v33, %v8755_v35  ;;  %v8483_v26 = vld [vmem:[%s19493_s1 + $0x450] sm:$0xf0] }
 0x13c   :  { %6753 = vmatpush.bf16.msrb.mxu3 %v8918_v60  ;;  %v12167_v46 = vld [vmem:[%s19493_s1 + $0x444] sm:$0xf]  ;;  %v8886_v48 = vor.u32 %v12267_v36, %v8883_v38  ;;  %v8611_v50 = vld [vmem:[%s19493_s1 + $0x550] sm:$0xf0]  ;;  %v15074_v60 = vadd.f32 %v6500_v53, %v6488_v39 }
 0x13d   :  { %6715 = vmatpush.bf16.msrb.mxu0 %v8518_v8  ;;  %v12199_v47 = vld [vmem:[%s19493_s1 + $0x544] sm:$0xf]  ;;  %v8739_v52 = vld [vmem:[%s19493_s1 + $0x650] sm:$0xf0]  ;;  %v8486_v57 = vor.u32 %v12167_v46, %v8483_v26 }
 0x13e   :  { %6728 = vmatpush.bf16.msrb.mxu1 %v8646_v11  ;;  %v12231_v51 = vld [vmem:[%s19493_s1 + $0x644] sm:$0xf]  ;;  %v8867_v55 = vld [vmem:[%s19493_s1 + $0x750] sm:$0xf0]  ;;  %v8614_v62 = vor.u32 %v12199_v47, %v8611_v50 }
 0x13f   :  { %6741 = vmatpush.bf16.msrb.mxu2 %v8774_v15  ;;  %v12263_v54 = vld [vmem:[%s19493_s1 + $0x744] sm:$0xf]  ;;  %v8742_v63 = vor.u32 %v12231_v51, %v8739_v52  ;;  %v8467_v4 = vld [vmem:[%s19493_s1 + $0x430] sm:$0xf0] }
 0x140   :  { %6754 = vmatpush.bf16.msrb.mxu3 %v8902_v14  ;;  %v12163_v3 = vld [vmem:[%s19493_s1 + $0x424] sm:$0xf]  ;;  %v8870_v5 = vor.u32 %v12263_v54, %v8867_v55  ;;  %v8595_v6 = vld [vmem:[%s19493_s1 + $0x530] sm:$0xf0] }
 0x141   :  { %6716 = vmatpush.bf16.msrb.mxu0 %v8502_v43  ;;  %v12195_v59 = vld [vmem:[%s19493_s1 + $0x524] sm:$0xf]  ;;  %v8723_v10 = vld [vmem:[%s19493_s1 + $0x630] sm:$0xf0]  ;;  %v8470_v19 = vor.u32 %v12163_v3, %v8467_v4 }
 0x142   :  { %6729 = vmatpush.bf16.msrb.mxu1 %v8630_v44  ;;  %v12227_v8 = vld [vmem:[%s19493_s1 + $0x624] sm:$0xf]  ;;  %v8851_v15 = vld [vmem:[%s19493_s1 + $0x730] sm:$0xf0]  ;;  %v8598_v14 = vor.u32 %v12195_v59, %v8595_v6 }
 0x143   :  { %6742 = vmatpush.bf16.msrb.mxu2 %v8758_v45  ;;  %v12259_v11 = vld [vmem:[%s19493_s1 + $0x724] sm:$0xf]  ;;  %v8451_v21 = vld [vmem:[%s19493_s1 + $0x410] sm:$0xf0]  ;;  %v8726_v23 = vor.u32 %v12227_v8, %v8723_v10  ;;  %v6489_v45 = vpop.f32.mrf.mxu2 }
 0x144   :  { %6755 = vmatpush.bf16.msrb.mxu3 %v8886_v48  ;;  %v12159_v20 = vld [vmem:[%s19493_s1 + $0x404] sm:$0xf]  ;;  %v8579_v33 = vld [vmem:[%s19493_s1 + $0x510] sm:$0xf0]  ;;  %v8854_v36 = vor.u32 %v12259_v11, %v8851_v15  ;;  %v6502_v48 = vpop.f32.mrf.mxu3 }
 0x145   :  { %6717 = vmatpush.bf16.msrb.mxu0 %v8486_v57  ;;  %v12191_v25 = vld [vmem:[%s19493_s1 + $0x504] sm:$0xf]  ;;  %v8707_v38 = vld [vmem:[%s19493_s1 + $0x610] sm:$0xf0]  ;;  %v8454_v49 = vor.u32 %v12159_v20, %v8451_v21 }
 0x146   :  { %6730 = vmatpush.bf16.msrb.mxu1 %v8614_v62  ;;  %v12223_v35 = vld [vmem:[%s19493_s1 + $0x604] sm:$0xf]  ;;  %v8835_v44 = vld [vmem:[%s19493_s1 + $0x710] sm:$0xf0]  ;;  %v8582_v39 = vor.u32 %v12191_v25, %v8579_v33 }
 0x147   :  { %6743 = vmatpush.bf16.msrb.mxu2 %v8742_v63  ;;  %v12255_v43 = vld [vmem:[%s19493_s1 + $0x704] sm:$0xf]  ;;  %v9075_v26 = vld [vmem:[%s19493_s1 + $0x8f0] sm:$0xf0]  ;;  %v8710_v53 = vor.u32 %v12223_v35, %v8707_v38 }
 0x148   :  { %6756 = vmatpush.bf16.msrb.mxu3 %v8870_v5  ;;  %v12315_v46 = vld [vmem:[%s19493_s1 + $0x8e4] sm:$0xf]  ;;  %v9203_v50 = vld [vmem:[%s19493_s1 + $0x9f0] sm:$0xf0]  ;;  %v8838_v56 = vor.u32 %v12255_v43, %v8835_v44 }
 0x149   :  { %v12347_v47 = vld [vmem:[%s19493_s1 + $0x9e4] sm:$0xf]  ;;  %6718 = vmatpush.bf16.msrb.mxu0 %v8470_v19  ;;  %v9331_v52 = vld [vmem:[%s19493_s1 + $0xaf0] sm:$0xf0]  ;;  %v9078_v57 = vor.u32 %v12315_v46, %v9075_v26 }
 0x14a   :  { %v12379_v51 = vld [vmem:[%s19493_s1 + $0xae4] sm:$0xf]  ;;  %6731 = vmatpush.bf16.msrb.mxu1 %v8598_v14  ;;  %v9459_v55 = vld [vmem:[%s19493_s1 + $0xbf0] sm:$0xf0]  ;;  %v9206_v58 = vor.u32 %v12347_v47, %v9203_v50 }
 0x14b   :  { %6744 = vmatpush.bf16.msrb.mxu2 %v8726_v23  ;;  %v12411_v54 = vld [vmem:[%s19493_s1 + $0xbe4] sm:$0xf]  ;;  %v9334_v62 = vor.u32 %v12379_v51, %v9331_v52  ;;  %v9059_v3 = vld [vmem:[%s19493_s1 + $0x8d0] sm:$0xf0] }
 0x14c   :  { %6757 = vmatpush.bf16.msrb.mxu3 %v8854_v36  ;;  %v12311_v63 = vld [vmem:[%s19493_s1 + $0x8c4] sm:$0xf]  ;;  %v9462_v59 = vor.u32 %v12411_v54, %v9459_v55  ;;  %v9187_v5 = vld [vmem:[%s19493_s1 + $0x9d0] sm:$0xf0] }
 0x14d   :  { %v12343_v4 = vld [vmem:[%s19493_s1 + $0x9c4] sm:$0xf]  ;;  %6719 = vmatpush.bf16.msrb.mxu0 %v8454_v49  ;;  %v9315_v8 = vld [vmem:[%s19493_s1 + $0xad0] sm:$0xf0]  ;;  %v9062_v15 = vor.u32 %v12311_v63, %v9059_v3 }
 0x14e   :  { %v12375_v6 = vld [vmem:[%s19493_s1 + $0xac4] sm:$0xf]  ;;  %6732 = vmatpush.bf16.msrb.mxu1 %v8582_v39  ;;  %v9443_v11 = vld [vmem:[%s19493_s1 + $0xbd0] sm:$0xf0]  ;;  %v9190_v19 = vor.u32 %v12343_v4, %v9187_v5  ;;  %v6513_v39 = vpop.f32.mrf.mxu0 }
 0x14f   :  { %6745 = vmatpush.bf16.msrb.mxu2 %v8710_v53  ;;  %v12407_v10 = vld [vmem:[%s19493_s1 + $0xbc4] sm:$0xf]  ;;  %v9318_v20 = vor.u32 %v12375_v6, %v9315_v8  ;;  %v9043_v14 = vld [vmem:[%s19493_s1 + $0x8b0] sm:$0xf0]  ;;  %v6514_v55 = vadd.f32 %v6513_v39, %v15074_v60 }
 0x150   :  { %6758 = vmatpush.bf16.msrb.mxu3 %v8838_v56  ;;  %v12307_v21 = vld [vmem:[%s19493_s1 + $0x8a4] sm:$0xf]  ;;  %v9446_v25 = vor.u32 %v12407_v10, %v9443_v11  ;;  %v9171_v33 = vld [vmem:[%s19493_s1 + $0x9b0] sm:$0xf0]  ;;  %6720 = vmatmul.bf16.vlgmr.msrb.gmra.mxu0 %v13500_v0 }
 0x151   :  { %6764 = vmatpush.bf16.msra.mxu0 %v9078_v57  ;;  %v12339_v23 = vld [vmem:[%s19493_s1 + $0x9a4] sm:$0xf]  ;;  %v9299_v36 = vld [vmem:[%s19493_s1 + $0xab0] sm:$0xf0]  ;;  %v9046_v44 = vor.u32 %v12307_v21, %v9043_v14  ;;  %6733 = vmatmul.bf16.vlgmr.msrb.gmra.mxu1 %v13504_v2  ;;  %v6526_v57 = vpop.f32.mrf.mxu1 }
 0x152   :  { %6777 = vmatpush.bf16.msra.mxu1 %v9206_v58  ;;  %6746 = vmatmul.bf16.vlgmr.msrb.gmra.mxu2 %v13498_v61  ;;  %v12371_v35 = vld [vmem:[%s19493_s1 + $0xaa4] sm:$0xf]  ;;  %v9427_v43 = vld [vmem:[%s19493_s1 + $0xbb0] sm:$0xf0]  ;;  %v9174_v45 = vor.u32 %v12339_v23, %v9171_v33 }
 0x153   :  { %6790 = vmatpush.bf16.msra.mxu2 %v9334_v62  ;;  %v12403_v38 = vld [vmem:[%s19493_s1 + $0xba4] sm:$0xf]  ;;  %6759 = vmatmul.bf16.vlgmr.msrb.gmra.mxu3 %v13502_v1  ;;  %v9302_v46 = vor.u32 %v12371_v35, %v9299_v36  ;;  %v9027_v47 = vld [vmem:[%s19493_s1 + $0x890] sm:$0xf0]  ;;  %v6539_v33 = vpop.f32.mrf.mxu2 }
 0x154   :  { %6803 = vmatpush.bf16.msra.mxu3 %v9462_v59  ;;  %v12303_v26 = vld [vmem:[%s19493_s1 + $0x884] sm:$0xf]  ;;  %v9430_v49 = vor.u32 %v12403_v38, %v9427_v43  ;;  %v9155_v50 = vld [vmem:[%s19493_s1 + $0x990] sm:$0xf0]  ;;  %v6527_v59 = vadd.f32 %v6526_v57, %v6514_v55 }
 0x155   :  { %6765 = vmatpush.bf16.msra.mxu0 %v9062_v15  ;;  %v12335_v48 = vld [vmem:[%s19493_s1 + $0x984] sm:$0xf]  ;;  %v9283_v52 = vld [vmem:[%s19493_s1 + $0xa90] sm:$0xf0]  ;;  %v9030_v56 = vor.u32 %v12303_v26, %v9027_v47 }
 0x156   :  { %6778 = vmatpush.bf16.msra.mxu1 %v9190_v19  ;;  %v12367_v51 = vld [vmem:[%s19493_s1 + $0xa84] sm:$0xf]  ;;  %v9411_v54 = vld [vmem:[%s19493_s1 + $0xb90] sm:$0xf0]  ;;  %v9158_v58 = vor.u32 %v12335_v48, %v9155_v50  ;;  %v6540_v43 = vadd.f32 %v6539_v33, %v6527_v59  ;;  %v6515_v26 = vpop.f32.mrf.mxu0 }
 0x157   :  { %6791 = vmatpush.bf16.msra.mxu2 %v9318_v20  ;;  %v12399_v53 = vld [vmem:[%s19493_s1 + $0xb84] sm:$0xf]  ;;  %v9286_v62 = vor.u32 %v12367_v51, %v9283_v52  ;;  %v9011_v3 = vld [vmem:[%s19493_s1 + $0x870] sm:$0xf0] }
 0x158   :  { %6804 = vmatpush.bf16.msra.mxu3 %v9446_v25  ;;  %v12299_v63 = vld [vmem:[%s19493_s1 + $0x864] sm:$0xf]  ;;  %v9414_v60 = vor.u32 %v12399_v53, %v9411_v54  ;;  %v9139_v5 = vld [vmem:[%s19493_s1 + $0x970] sm:$0xf0] }
 0x159   :  { %6766 = vmatpush.bf16.msra.mxu0 %v9046_v44  ;;  %v12331_v4 = vld [vmem:[%s19493_s1 + $0x964] sm:$0xf]  ;;  %v9267_v8 = vld [vmem:[%s19493_s1 + $0xa70] sm:$0xf0]  ;;  %v9014_v15 = vor.u32 %v12299_v63, %v9011_v3  ;;  %v6552_v44 = vpop.f32.mrf.mxu3  ;;  %v6528_v48 = vpop.f32.mrf.mxu1 }
 0x15a   :  { %6779 = vmatpush.bf16.msra.mxu1 %v9174_v45  ;;  %v12363_v6 = vld [vmem:[%s19493_s1 + $0xa64] sm:$0xf]  ;;  %v9395_v11 = vld [vmem:[%s19493_s1 + $0xb70] sm:$0xf0]  ;;  %v9142_v19 = vor.u32 %v12331_v4, %v9139_v5 }
 0x15b   :  { %6792 = vmatpush.bf16.msra.mxu2 %v9302_v46  ;;  %v12395_v10 = vld [vmem:[%s19493_s1 + $0xb64] sm:$0xf]  ;;  %v9270_v20 = vor.u32 %v12363_v6, %v9267_v8  ;;  %v8995_v14 = vld [vmem:[%s19493_s1 + $0x850] sm:$0xf0] }
 0x15c   :  { %6805 = vmatpush.bf16.msra.mxu3 %v9430_v49  ;;  %v12295_v21 = vld [vmem:[%s19493_s1 + $0x844] sm:$0xf]  ;;  %v9398_v25 = vor.u32 %v12395_v10, %v9395_v11  ;;  %v9123_v35 = vld [vmem:[%s19493_s1 + $0x950] sm:$0xf0]  ;;  %v15273_v49 = vadd.f32 %v6552_v44, %v6540_v43 }
 0x15d   :  { %6767 = vmatpush.bf16.msra.mxu0 %v9030_v56  ;;  %v12327_v23 = vld [vmem:[%s19493_s1 + $0x944] sm:$0xf]  ;;  %v9251_v38 = vld [vmem:[%s19493_s1 + $0xa50] sm:$0xf0]  ;;  %v8998_v47 = vor.u32 %v12295_v21, %v8995_v14 }
 0x15e   :  { %6780 = vmatpush.bf16.msra.mxu1 %v9158_v58  ;;  %v12359_v36 = vld [vmem:[%s19493_s1 + $0xa44] sm:$0xf]  ;;  %v9379_v46 = vld [vmem:[%s19493_s1 + $0xb50] sm:$0xf0]  ;;  %v9126_v50 = vor.u32 %v12327_v23, %v9123_v35 }
 0x15f   :  { %6793 = vmatpush.bf16.msra.mxu2 %v9286_v62  ;;  %v12391_v45 = vld [vmem:[%s19493_s1 + $0xb44] sm:$0xf]  ;;  %v9254_v51 = vor.u32 %v12359_v36, %v9251_v38  ;;  %v8979_v39 = vld [vmem:[%s19493_s1 + $0x830] sm:$0xf0] }
 0x160   :  { %6806 = vmatpush.bf16.msra.mxu3 %v9414_v60  ;;  %v12291_v52 = vld [vmem:[%s19493_s1 + $0x824] sm:$0xf]  ;;  %v9382_v54 = vor.u32 %v12391_v45, %v9379_v46  ;;  %v9107_v55 = vld [vmem:[%s19493_s1 + $0x930] sm:$0xf0] }
 0x161   :  { %6768 = vmatpush.bf16.msra.mxu0 %v9014_v15  ;;  %v12323_v53 = vld [vmem:[%s19493_s1 + $0x924] sm:$0xf]  ;;  %v9235_v57 = vld [vmem:[%s19493_s1 + $0xa30] sm:$0xf0]  ;;  %v8982_v63 = vor.u32 %v12291_v52, %v8979_v39 }
 0x162   :  { %6781 = vmatpush.bf16.msra.mxu1 %v9142_v19  ;;  %v12355_v56 = vld [vmem:[%s19493_s1 + $0xa24] sm:$0xf]  ;;  %v9363_v62 = vld [vmem:[%s19493_s1 + $0xb30] sm:$0xf0]  ;;  %v9110_v60 = vor.u32 %v12323_v53, %v9107_v55 }
 0x163   :  { %6794 = vmatpush.bf16.msra.mxu2 %v9270_v20  ;;  %v12387_v58 = vld [vmem:[%s19493_s1 + $0xb24] sm:$0xf]  ;;  %v8963_v4 = vld [vmem:[%s19493_s1 + $0x810] sm:$0xf0]  ;;  %v9238_v59 = vor.u32 %v12355_v56, %v9235_v57  ;;  %v6541_v20 = vpop.f32.mrf.mxu2 }
 0x164   :  { %6807 = vmatpush.bf16.msra.mxu3 %v9398_v25  ;;  %v12287_v3 = vld [vmem:[%s19493_s1 + $0x804] sm:$0xf]  ;;  %v9091_v6 = vld [vmem:[%s19493_s1 + $0x910] sm:$0xf0]  ;;  %v9366_v10 = vor.u32 %v12387_v58, %v9363_v62  ;;  %v6554_v25 = vpop.f32.mrf.mxu3 }
 0x165   :  { %6769 = vmatpush.bf16.msra.mxu0 %v8998_v47  ;;  %v12319_v5 = vld [vmem:[%s19493_s1 + $0x904] sm:$0xf]  ;;  %v9219_v11 = vld [vmem:[%s19493_s1 + $0xa10] sm:$0xf0]  ;;  %v8966_v33 = vor.u32 %v12287_v3, %v8963_v4 }
 0x166   :  { %6782 = vmatpush.bf16.msra.mxu1 %v9126_v50  ;;  %v12351_v8 = vld [vmem:[%s19493_s1 + $0xa04] sm:$0xf]  ;;  %v9347_v19 = vld [vmem:[%s19493_s1 + $0xb10] sm:$0xf0]  ;;  %v9094_v43 = vor.u32 %v12319_v5, %v9091_v6 }
 0x167   :  { %6795 = vmatpush.bf16.msra.mxu2 %v9254_v51  ;;  %v12383_v15 = vld [vmem:[%s19493_s1 + $0xb04] sm:$0xf]  ;;  %v9587_v14 = vld [vmem:[%s19493_s1 + $0xcf0] sm:$0xf0]  ;;  %v9222_v44 = vor.u32 %v12351_v8, %v9219_v11 }
 0x168   :  { %6808 = vmatpush.bf16.msra.mxu3 %v9382_v54  ;;  %v12443_v21 = vld [vmem:[%s19493_s1 + $0xce4] sm:$0xf]  ;;  %v9715_v35 = vld [vmem:[%s19493_s1 + $0xdf0] sm:$0xf0]  ;;  %v9350_v26 = vor.u32 %v12383_v15, %v9347_v19 }
 0x169   :  { %v12475_v23 = vld [vmem:[%s19493_s1 + $0xde4] sm:$0xf]  ;;  %6770 = vmatpush.bf16.msra.mxu0 %v8982_v63  ;;  %v9843_v38 = vld [vmem:[%s19493_s1 + $0xef0] sm:$0xf0]  ;;  %v9590_v47 = vor.u32 %v12443_v21, %v9587_v14 }
 0x16a   :  { %v12507_v36 = vld [vmem:[%s19493_s1 + $0xee4] sm:$0xf]  ;;  %6783 = vmatpush.bf16.msra.mxu1 %v9110_v60  ;;  %v9971_v46 = vld [vmem:[%s19493_s1 + $0xff0] sm:$0xf0]  ;;  %v9718_v48 = vor.u32 %v12475_v23, %v9715_v35 }
 0x16b   :  { %6796 = vmatpush.bf16.msra.mxu2 %v9238_v59  ;;  %v12539_v45 = vld [vmem:[%s19493_s1 + $0xfe4] sm:$0xf]  ;;  %v9846_v50 = vor.u32 %v12507_v36, %v9843_v38  ;;  %v9571_v52 = vld [vmem:[%s19493_s1 + $0xcd0] sm:$0xf0] }
 0x16c   :  { %6809 = vmatpush.bf16.msra.mxu3 %v9366_v10  ;;  %v12439_v51 = vld [vmem:[%s19493_s1 + $0xcc4] sm:$0xf]  ;;  %v9974_v53 = vor.u32 %v12539_v45, %v9971_v46  ;;  %v9699_v54 = vld [vmem:[%s19493_s1 + $0xdd0] sm:$0xf0] }
 0x16d   :  { %v12471_v39 = vld [vmem:[%s19493_s1 + $0xdc4] sm:$0xf]  ;;  %6771 = vmatpush.bf16.msra.mxu0 %v8966_v33  ;;  %v9827_v56 = vld [vmem:[%s19493_s1 + $0xed0] sm:$0xf0]  ;;  %v9574_v62 = vor.u32 %v12439_v51, %v9571_v52 }
 0x16e   :  { %v12503_v55 = vld [vmem:[%s19493_s1 + $0xec4] sm:$0xf]  ;;  %6784 = vmatpush.bf16.msra.mxu1 %v9094_v43  ;;  %v9955_v58 = vld [vmem:[%s19493_s1 + $0xfd0] sm:$0xf0]  ;;  %v9702_v63 = vor.u32 %v12471_v39, %v9699_v54 }
 0x16f   :  { %6797 = vmatpush.bf16.msra.mxu2 %v9222_v44  ;;  %v12535_v57 = vld [vmem:[%s19493_s1 + $0xfc4] sm:$0xf]  ;;  %v9830_v3 = vor.u32 %v12503_v55, %v9827_v56  ;;  %v9555_v60 = vld [vmem:[%s19493_s1 + $0xcb0] sm:$0xf0] }
 0x170   :  { %6810 = vmatpush.bf16.msra.mxu3 %v9350_v26  ;;  %v12435_v4 = vld [vmem:[%s19493_s1 + $0xca4] sm:$0xf]  ;;  %6772 = vmatmul.bf16.vlgmr.msra.gmra.mxu0 %v13738_v7  ;;  %v9958_v5 = vor.u32 %v12535_v57, %v9955_v58  ;;  %v9683_v6 = vld [vmem:[%s19493_s1 + $0xdb0] sm:$0xf0] }
 0x171   :  { %6816 = vmatpush.bf16.msrb.mxu0 %v9590_v47  ;;  %v12467_v59 = vld [vmem:[%s19493_s1 + $0xda4] sm:$0xf]  ;;  %v9811_v10 = vld [vmem:[%s19493_s1 + $0xeb0] sm:$0xf0]  ;;  %6785 = vmatmul.bf16.vlgmr.msra.gmra.mxu1 %v13751_v13  ;;  %v9558_v19 = vor.u32 %v12435_v4, %v9555_v60  ;;  %v6565_v43 = vpop.f32.mrf.mxu0  ;;  %v6578_v47 = vpop.f32.mrf.mxu1 }
 0x172   :  { %6829 = vmatpush.bf16.msrb.mxu1 %v9718_v48  ;;  %v12499_v8 = vld [vmem:[%s19493_s1 + $0xea4] sm:$0xf]  ;;  %6798 = vmatmul.bf16.vlgmr.msra.gmra.mxu2 %v13749_v12  ;;  %v9939_v15 = vld [vmem:[%s19493_s1 + $0xfb0] sm:$0xf0]  ;;  %v9686_v20 = vor.u32 %v12467_v59, %v9683_v6  ;;  %v6566_v46 = vadd.f32 %v6565_v43, %v15273_v49 }
 0x173   :  { %6842 = vmatpush.bf16.msrb.mxu2 %v9846_v50  ;;  %v12531_v11 = vld [vmem:[%s19493_s1 + $0xfa4] sm:$0xf]  ;;  %6811 = vmatmul.bf16.vlgmr.msra.gmra.mxu3 %v13762_v17  ;;  %v9814_v21 = vor.u32 %v12499_v8, %v9811_v10  ;;  %v9539_v23 = vld [vmem:[%s19493_s1 + $0xc90] sm:$0xf0] }
 0x174   :  { %6855 = vmatpush.bf16.msrb.mxu3 %v9974_v53  ;;  %v12431_v14 = vld [vmem:[%s19493_s1 + $0xc84] sm:$0xf]  ;;  %v9942_v33 = vor.u32 %v12531_v11, %v9939_v15  ;;  %v9667_v35 = vld [vmem:[%s19493_s1 + $0xd90] sm:$0xf0]  ;;  %v6579_v53 = vadd.f32 %v6578_v47, %v6566_v46 }
 0x175   :  { %6817 = vmatpush.bf16.msrb.mxu0 %v9574_v62  ;;  %v12463_v25 = vld [vmem:[%s19493_s1 + $0xd84] sm:$0xf]  ;;  %v9795_v38 = vld [vmem:[%s19493_s1 + $0xe90] sm:$0xf0]  ;;  %v9542_v26 = vor.u32 %v12431_v14, %v9539_v23  ;;  %v6591_v6 = vpop.f32.mrf.mxu2 }
 0x176   :  { %6830 = vmatpush.bf16.msrb.mxu1 %v9702_v63  ;;  %v12495_v36 = vld [vmem:[%s19493_s1 + $0xe84] sm:$0xf]  ;;  %v9923_v45 = vld [vmem:[%s19493_s1 + $0xf90] sm:$0xf0]  ;;  %v9670_v48 = vor.u32 %v12463_v25, %v9667_v35  ;;  %v6592_v15 = vadd.f32 %v6591_v6, %v6579_v53 }
 0x177   :  { %6843 = vmatpush.bf16.msrb.mxu2 %v9830_v3  ;;  %v12527_v44 = vld [vmem:[%s19493_s1 + $0xf84] sm:$0xf]  ;;  %v9798_v50 = vor.u32 %v12495_v36, %v9795_v38  ;;  %v9523_v52 = vld [vmem:[%s19493_s1 + $0xc70] sm:$0xf0] }
 0x178   :  { %6856 = vmatpush.bf16.msrb.mxu3 %v9958_v5  ;;  %v12427_v51 = vld [vmem:[%s19493_s1 + $0xc64] sm:$0xf]  ;;  %v9926_v49 = vor.u32 %v12527_v44, %v9923_v45  ;;  %v9651_v54 = vld [vmem:[%s19493_s1 + $0xd70] sm:$0xf0] }
 0x179   :  { %6818 = vmatpush.bf16.msrb.mxu0 %v9558_v19  ;;  %v12459_v39 = vld [vmem:[%s19493_s1 + $0xd64] sm:$0xf]  ;;  %v9779_v56 = vld [vmem:[%s19493_s1 + $0xe70] sm:$0xf0]  ;;  %v9526_v62 = vor.u32 %v12427_v51, %v9523_v52  ;;  %v6604_v19 = vpop.f32.mrf.mxu3  ;;  %v6567_v14 = vpop.f32.mrf.mxu0 }
 0x17a   :  { %6831 = vmatpush.bf16.msrb.mxu1 %v9686_v20  ;;  %v12491_v55 = vld [vmem:[%s19493_s1 + $0xe64] sm:$0xf]  ;;  %v9907_v58 = vld [vmem:[%s19493_s1 + $0xf70] sm:$0xf0]  ;;  %v9654_v63 = vor.u32 %v12459_v39, %v9651_v54  ;;  %v6580_v25 = vpop.f32.mrf.mxu1 }
 0x17b   :  { %6844 = vmatpush.bf16.msrb.mxu2 %v9814_v21  ;;  %v12523_v57 = vld [vmem:[%s19493_s1 + $0xf64] sm:$0xf]  ;;  %v9782_v3 = vor.u32 %v12491_v55, %v9779_v56  ;;  %v9507_v60 = vld [vmem:[%s19493_s1 + $0xc50] sm:$0xf0] }
 0x17c   :  { %6857 = vmatpush.bf16.msrb.mxu3 %v9942_v33  ;;  %v12423_v4 = vld [vmem:[%s19493_s1 + $0xc44] sm:$0xf]  ;;  %v9910_v5 = vor.u32 %v12523_v57, %v9907_v58  ;;  %v9635_v8 = vld [vmem:[%s19493_s1 + $0xd50] sm:$0xf0]  ;;  %v15472_v33 = vadd.f32 %v6604_v19, %v6592_v15 }
 0x17d   :  { %6819 = vmatpush.bf16.msrb.mxu0 %v9542_v26  ;;  %v12455_v59 = vld [vmem:[%s19493_s1 + $0xd44] sm:$0xf]  ;;  %v9763_v11 = vld [vmem:[%s19493_s1 + $0xe50] sm:$0xf0]  ;;  %v9510_v23 = vor.u32 %v12423_v4, %v9507_v60 }
 0x17e   :  { %6832 = vmatpush.bf16.msrb.mxu1 %v9670_v48  ;;  %v12487_v10 = vld [vmem:[%s19493_s1 + $0xe44] sm:$0xf]  ;;  %v9891_v21 = vld [vmem:[%s19493_s1 + $0xf50] sm:$0xf0]  ;;  %v9638_v35 = vor.u32 %v12455_v59, %v9635_v8 }
 0x17f   :  { %6845 = vmatpush.bf16.msrb.mxu2 %v9798_v50  ;;  %v12519_v20 = vld [vmem:[%s19493_s1 + $0xf44] sm:$0xf]  ;;  %v9766_v36 = vor.u32 %v12487_v10, %v9763_v11  ;;  %v9491_v43 = vld [vmem:[%s19493_s1 + $0xc30] sm:$0xf0] }
 0x180   :  { %6858 = vmatpush.bf16.msrb.mxu3 %v9926_v49  ;;  %v12419_v38 = vld [vmem:[%s19493_s1 + $0xc24] sm:$0xf]  ;;  %v9894_v45 = vor.u32 %v12519_v20, %v9891_v21  ;;  %v9619_v46 = vld [vmem:[%s19493_s1 + $0xd30] sm:$0xf0] }
 0x181   :  { %6820 = vmatpush.bf16.msrb.mxu0 %v9526_v62  ;;  %v12451_v44 = vld [vmem:[%s19493_s1 + $0xd24] sm:$0xf]  ;;  %v9747_v47 = vld [vmem:[%s19493_s1 + $0xe30] sm:$0xf0]  ;;  %v9494_v51 = vor.u32 %v12419_v38, %v9491_v43 }
 0x182   :  { %6833 = vmatpush.bf16.msrb.mxu1 %v9654_v63  ;;  %v12483_v26 = vld [vmem:[%s19493_s1 + $0xe24] sm:$0xf]  ;;  %v9875_v50 = vld [vmem:[%s19493_s1 + $0xf30] sm:$0xf0]  ;;  %v9622_v49 = vor.u32 %v12451_v44, %v9619_v46 }
 0x183   :  { %6846 = vmatpush.bf16.msrb.mxu2 %v9782_v3  ;;  %v12515_v48 = vld [vmem:[%s19493_s1 + $0xf24] sm:$0xf]  ;;  %v9475_v39 = vld [vmem:[%s19493_s1 + $0xc10] sm:$0xf0]  ;;  %v9750_v53 = vor.u32 %v12483_v26, %v9747_v47  ;;  %v6593_v3 = vpop.f32.mrf.mxu2 }
 0x184   :  { %6859 = vmatpush.bf16.msrb.mxu3 %v9910_v5  ;;  %v12415_v52 = vld [vmem:[%s19493_s1 + $0xc04] sm:$0xf]  ;;  %v9603_v55 = vld [vmem:[%s19493_s1 + $0xd10] sm:$0xf0]  ;;  %v9878_v57 = vor.u32 %v12515_v48, %v9875_v50  ;;  %v6606_v5 = vpop.f32.mrf.mxu3 }
 0x185   :  { %6821 = vmatpush.bf16.msrb.mxu0 %v9510_v23  ;;  %v12447_v54 = vld [vmem:[%s19493_s1 + $0xd04] sm:$0xf]  ;;  %v9731_v58 = vld [vmem:[%s19493_s1 + $0xe10] sm:$0xf0]  ;;  %v9478_v6 = vor.u32 %v12415_v52, %v9475_v39 }
 0x186   :  { %6834 = vmatpush.bf16.msrb.mxu1 %v9638_v35  ;;  %v12479_v56 = vld [vmem:[%s19493_s1 + $0xe04] sm:$0xf]  ;;  %v9859_v63 = vld [vmem:[%s19493_s1 + $0xf10] sm:$0xf0]  ;;  %v9606_v15 = vor.u32 %v12447_v54, %v9603_v55 }
 0x187   :  { %6847 = vmatpush.bf16.msrb.mxu2 %v9766_v36  ;;  %v12511_v62 = vld [vmem:[%s19493_s1 + $0xf04] sm:$0xf]  ;;  %v10099_v60 = vld [vmem:[%s19493_s1 + $0x10f0] sm:$0xf0]  ;;  %v9734_v19 = vor.u32 %v12479_v56, %v9731_v58 }
 0x188   :  { %6860 = vmatpush.bf16.msrb.mxu3 %v9894_v45  ;;  %v12571_v4 = vld [vmem:[%s19493_s1 + $0x10e4] sm:$0xf]  ;;  %v10227_v8 = vld [vmem:[%s19493_s1 + $0x11f0] sm:$0xf0]  ;;  %v9862_v14 = vor.u32 %v12511_v62, %v9859_v63 }
 0x189   :  { %v12603_v59 = vld [vmem:[%s19493_s1 + $0x11e4] sm:$0xf]  ;;  %6822 = vmatpush.bf16.msrb.mxu0 %v9494_v51  ;;  %v10355_v11 = vld [vmem:[%s19493_s1 + $0x12f0] sm:$0xf0]  ;;  %v10102_v23 = vor.u32 %v12571_v4, %v10099_v60 }
 0x18a   :  { %v12635_v10 = vld [vmem:[%s19493_s1 + $0x12e4] sm:$0xf]  ;;  %6835 = vmatpush.bf16.msrb.mxu1 %v9622_v49  ;;  %v10483_v21 = vld [vmem:[%s19493_s1 + $0x13f0] sm:$0xf0]  ;;  %v10230_v25 = vor.u32 %v12603_v59, %v10227_v8 }
 0x18b   :  { %6848 = vmatpush.bf16.msrb.mxu2 %v9750_v53  ;;  %v12667_v20 = vld [vmem:[%s19493_s1 + $0x13e4] sm:$0xf]  ;;  %v10358_v35 = vor.u32 %v12635_v10, %v10355_v11  ;;  %v10083_v38 = vld [vmem:[%s19493_s1 + $0x10d0] sm:$0xf0] }
 0x18c   :  { %6861 = vmatpush.bf16.msrb.mxu3 %v9878_v57  ;;  %v12567_v36 = vld [vmem:[%s19493_s1 + $0x10c4] sm:$0xf]  ;;  %v10486_v44 = vor.u32 %v12667_v20, %v10483_v21  ;;  %v10211_v45 = vld [vmem:[%s19493_s1 + $0x11d0] sm:$0xf0] }
 0x18d   :  { %v12599_v43 = vld [vmem:[%s19493_s1 + $0x11c4] sm:$0xf]  ;;  %6823 = vmatpush.bf16.msrb.mxu0 %v9478_v6  ;;  %v10339_v26 = vld [vmem:[%s19493_s1 + $0x12d0] sm:$0xf0]  ;;  %v10086_v50 = vor.u32 %v12567_v36, %v10083_v38 }
 0x18e   :  { %v12631_v46 = vld [vmem:[%s19493_s1 + $0x12c4] sm:$0xf]  ;;  %6836 = vmatpush.bf16.msrb.mxu1 %v9606_v15  ;;  %v10467_v48 = vld [vmem:[%s19493_s1 + $0x13d0] sm:$0xf0]  ;;  %v10214_v51 = vor.u32 %v12599_v43, %v10211_v45  ;;  %v6617_v15 = vpop.f32.mrf.mxu0 }
 0x18f   :  { %6849 = vmatpush.bf16.msrb.mxu2 %v9734_v19  ;;  %v12663_v47 = vld [vmem:[%s19493_s1 + $0x13c4] sm:$0xf]  ;;  %v10342_v52 = vor.u32 %v12631_v46, %v10339_v26  ;;  %v10067_v49 = vld [vmem:[%s19493_s1 + $0x10b0] sm:$0xf0]  ;;  %v6618_v21 = vadd.f32 %v6617_v15, %v15472_v33 }
 0x190   :  { %6862 = vmatpush.bf16.msrb.mxu3 %v9862_v14  ;;  %v12563_v39 = vld [vmem:[%s19493_s1 + $0x10a4] sm:$0xf]  ;;  %6824 = vmatmul.bf16.vlgmr.msrb.gmra.mxu0 %v13779_v24  ;;  %v10470_v54 = vor.u32 %v12663_v47, %v10467_v48  ;;  %v10195_v55 = vld [vmem:[%s19493_s1 + $0x11b0] sm:$0xf0] }
 0x191   :  { %6868 = vmatpush.bf16.msra.mxu0 %v10102_v23  ;;  %v12595_v53 = vld [vmem:[%s19493_s1 + $0x11a4] sm:$0xf]  ;;  %v10323_v57 = vld [vmem:[%s19493_s1 + $0x12b0] sm:$0xf0]  ;;  %6837 = vmatmul.bf16.vlgmr.msrb.gmra.mxu1 %v13783_v31  ;;  %v10070_v63 = vor.u32 %v12563_v39, %v10067_v49  ;;  %v6630_v23 = vpop.f32.mrf.mxu1 }
 0x192   :  { %6881 = vmatpush.bf16.msra.mxu1 %v10230_v25  ;;  %v12627_v56 = vld [vmem:[%s19493_s1 + $0x12a4] sm:$0xf]  ;;  %6850 = vmatmul.bf16.vlgmr.msrb.gmra.mxu2 %v13781_v30  ;;  %v10451_v62 = vld [vmem:[%s19493_s1 + $0x13b0] sm:$0xf0]  ;;  %v10198_v3 = vor.u32 %v12595_v53, %v10195_v55 }
 0x193   :  { %6894 = vmatpush.bf16.msra.mxu2 %v10358_v35  ;;  %v12659_v58 = vld [vmem:[%s19493_s1 + $0x13a4] sm:$0xf]  ;;  %6863 = vmatmul.bf16.vlgmr.msrb.gmra.mxu3 %v13785_v32  ;;  %v10326_v4 = vor.u32 %v12627_v56, %v10323_v57  ;;  %v10051_v59 = vld [vmem:[%s19493_s1 + $0x1090] sm:$0xf0] }
 0x194   :  { %6907 = vmatpush.bf16.msra.mxu3 %v10486_v44  ;;  %v12559_v60 = vld [vmem:[%s19493_s1 + $0x1084] sm:$0xf]  ;;  %v10454_v6 = vor.u32 %v12659_v58, %v10451_v62  ;;  %v10179_v8 = vld [vmem:[%s19493_s1 + $0x1190] sm:$0xf0]  ;;  %v6631_v44 = vadd.f32 %v6630_v23, %v6618_v21 }
 0x195   :  { %6869 = vmatpush.bf16.msra.mxu0 %v10086_v50  ;;  %v12591_v5 = vld [vmem:[%s19493_s1 + $0x1184] sm:$0xf]  ;;  %v10307_v11 = vld [vmem:[%s19493_s1 + $0x1290] sm:$0xf0]  ;;  %v10054_v14 = vor.u32 %v12559_v60, %v10051_v59  ;;  %v6643_v55 = vpop.f32.mrf.mxu2 }
 0x196   :  { %6882 = vmatpush.bf16.msra.mxu1 %v10214_v51  ;;  %v12623_v10 = vld [vmem:[%s19493_s1 + $0x1284] sm:$0xf]  ;;  %v10435_v20 = vld [vmem:[%s19493_s1 + $0x1390] sm:$0xf0]  ;;  %v10182_v25 = vor.u32 %v12591_v5, %v10179_v8  ;;  %v6644_v62 = vadd.f32 %v6643_v55, %v6631_v44  ;;  %v6619_v60 = vpop.f32.mrf.mxu0 }
 0x197   :  { %6895 = vmatpush.bf16.msra.mxu2 %v10342_v52  ;;  %v12655_v19 = vld [vmem:[%s19493_s1 + $0x1384] sm:$0xf]  ;;  %v10310_v35 = vor.u32 %v12623_v10, %v10307_v11  ;;  %v10035_v38 = vld [vmem:[%s19493_s1 + $0x1070] sm:$0xf0] }
 0x198   :  { %6908 = vmatpush.bf16.msra.mxu3 %v10470_v54  ;;  %v12555_v36 = vld [vmem:[%s19493_s1 + $0x1064] sm:$0xf]  ;;  %v10438_v33 = vor.u32 %v12655_v19, %v10435_v20  ;;  %v10163_v45 = vld [vmem:[%s19493_s1 + $0x1170] sm:$0xf0] }
 0x199   :  { %6870 = vmatpush.bf16.msra.mxu0 %v10070_v63  ;;  %v12587_v43 = vld [vmem:[%s19493_s1 + $0x1164] sm:$0xf]  ;;  %v10291_v26 = vld [vmem:[%s19493_s1 + $0x1270] sm:$0xf0]  ;;  %v10038_v50 = vor.u32 %v12555_v36, %v10035_v38  ;;  %v6656_v63 = vpop.f32.mrf.mxu3  ;;  %v6632_v5 = vpop.f32.mrf.mxu1 }
 0x19a   :  { %6883 = vmatpush.bf16.msra.mxu1 %v10198_v3  ;;  %v12619_v46 = vld [vmem:[%s19493_s1 + $0x1264] sm:$0xf]  ;;  %v10419_v48 = vld [vmem:[%s19493_s1 + $0x1370] sm:$0xf0]  ;;  %v10166_v51 = vor.u32 %v12587_v43, %v10163_v45 }
 0x19b   :  { %6896 = vmatpush.bf16.msra.mxu2 %v10326_v4  ;;  %v12651_v47 = vld [vmem:[%s19493_s1 + $0x1364] sm:$0xf]  ;;  %v10294_v52 = vor.u32 %v12619_v46, %v10291_v26  ;;  %v10019_v49 = vld [vmem:[%s19493_s1 + $0x1050] sm:$0xf0] }
 0x19c   :  { %6909 = vmatpush.bf16.msra.mxu3 %v10454_v6  ;;  %v12551_v39 = vld [vmem:[%s19493_s1 + $0x1044] sm:$0xf]  ;;  %v10422_v54 = vor.u32 %v12651_v47, %v10419_v48  ;;  %v10147_v56 = vld [vmem:[%s19493_s1 + $0x1150] sm:$0xf0]  ;;  %v15671_v6 = vadd.f32 %v6656_v63, %v6644_v62 }
 0x19d   :  { %6871 = vmatpush.bf16.msra.mxu0 %v10054_v14  ;;  %v12583_v53 = vld [vmem:[%s19493_s1 + $0x1144] sm:$0xf]  ;;  %v10275_v58 = vld [vmem:[%s19493_s1 + $0x1250] sm:$0xf0]  ;;  %v10022_v59 = vor.u32 %v12551_v39, %v10019_v49 }
 0x19e   :  { %6884 = vmatpush.bf16.msra.mxu1 %v10182_v25  ;;  %v12615_v57 = vld [vmem:[%s19493_s1 + $0x1244] sm:$0xf]  ;;  %v10403_v4 = vld [vmem:[%s19493_s1 + $0x1350] sm:$0xf0]  ;;  %v10150_v8 = vor.u32 %v12583_v53, %v10147_v56 }
 0x19f   :  { %6897 = vmatpush.bf16.msra.mxu2 %v10310_v35  ;;  %v12647_v3 = vld [vmem:[%s19493_s1 + $0x1344] sm:$0xf]  ;;  %v10278_v10 = vor.u32 %v12615_v57, %v10275_v58  ;;  %v10003_v15 = vld [vmem:[%s19493_s1 + $0x1030] sm:$0xf0] }
 0x1a0   :  { %6910 = vmatpush.bf16.msra.mxu3 %v10438_v33  ;;  %v12547_v11 = vld [vmem:[%s19493_s1 + $0x1024] sm:$0xf]  ;;  %v10406_v20 = vor.u32 %v12647_v3, %v10403_v4  ;;  %v10131_v21 = vld [vmem:[%s19493_s1 + $0x1130] sm:$0xf0] }
 0x1a1   :  { %6872 = vmatpush.bf16.msra.mxu0 %v10038_v50  ;;  %v12579_v19 = vld [vmem:[%s19493_s1 + $0x1124] sm:$0xf]  ;;  %v10259_v23 = vld [vmem:[%s19493_s1 + $0x1230] sm:$0xf0]  ;;  %v10006_v36 = vor.u32 %v12547_v11, %v10003_v15 }
 0x1a2   :  { %6885 = vmatpush.bf16.msra.mxu1 %v10166_v51  ;;  %v12611_v14 = vld [vmem:[%s19493_s1 + $0x1224] sm:$0xf]  ;;  %v10387_v35 = vld [vmem:[%s19493_s1 + $0x1330] sm:$0xf0]  ;;  %v10134_v33 = vor.u32 %v12579_v19, %v10131_v21 }
 0x1a3   :  { %6898 = vmatpush.bf16.msra.mxu2 %v10294_v52  ;;  %v12643_v25 = vld [vmem:[%s19493_s1 + $0x1324] sm:$0xf]  ;;  %v9987_v43 = vld [vmem:[%s19493_s1 + $0x1010] sm:$0xf0]  ;;  %v10262_v44 = vor.u32 %v12611_v14, %v10259_v23  ;;  %v6645_v52 = vpop.f32.mrf.mxu2 }
 0x1a4   :  { %6911 = vmatpush.bf16.msra.mxu3 %v10422_v54  ;;  %v12543_v38 = vld [vmem:[%s19493_s1 + $0x1004] sm:$0xf]  ;;  %v10115_v46 = vld [vmem:[%s19493_s1 + $0x1110] sm:$0xf0]  ;;  %v10390_v47 = vor.u32 %v12643_v25, %v10387_v35  ;;  %v6658_v54 = vpop.f32.mrf.mxu3 }
 0x1a5   :  { %6873 = vmatpush.bf16.msra.mxu0 %v10022_v59  ;;  %v12575_v45 = vld [vmem:[%s19493_s1 + $0x1104] sm:$0xf]  ;;  %v10243_v48 = vld [vmem:[%s19493_s1 + $0x1210] sm:$0xf0]  ;;  %v9990_v55 = vor.u32 %v12543_v38, %v9987_v43 }
 0x1a6   :  { %6886 = vmatpush.bf16.msra.mxu1 %v10150_v8  ;;  %v12607_v26 = vld [vmem:[%s19493_s1 + $0x1204] sm:$0xf]  ;;  %v10371_v51 = vld [vmem:[%s19493_s1 + $0x1310] sm:$0xf0]  ;;  %v10118_v62 = vor.u32 %v12575_v45, %v10115_v46 }
 0x1a7   :  { %6899 = vmatpush.bf16.msra.mxu2 %v10278_v10  ;;  %v12639_v50 = vld [vmem:[%s19493_s1 + $0x1304] sm:$0xf]  ;;  %v10611_v49 = vld [vmem:[%s19493_s1 + $0x14f0] sm:$0xf0]  ;;  %v10246_v63 = vor.u32 %v12607_v26, %v10243_v48 }
 0x1a8   :  { %6912 = vmatpush.bf16.msra.mxu3 %v10406_v20  ;;  %v12699_v39 = vld [vmem:[%s19493_s1 + $0x14e4] sm:$0xf]  ;;  %v10739_v56 = vld [vmem:[%s19493_s1 + $0x15f0] sm:$0xf0]  ;;  %v10374_v60 = vor.u32 %v12639_v50, %v10371_v51 }
 0x1a9   :  { %v12731_v53 = vld [vmem:[%s19493_s1 + $0x15e4] sm:$0xf]  ;;  %6874 = vmatpush.bf16.msra.mxu0 %v10006_v36  ;;  %v10867_v58 = vld [vmem:[%s19493_s1 + $0x16f0] sm:$0xf0]  ;;  %v10614_v59 = vor.u32 %v12699_v39, %v10611_v49 }
 0x1aa   :  { %v12763_v57 = vld [vmem:[%s19493_s1 + $0x16e4] sm:$0xf]  ;;  %6887 = vmatpush.bf16.msra.mxu1 %v10134_v33  ;;  %v10995_v4 = vld [vmem:[%s19493_s1 + $0x17f0] sm:$0xf0]  ;;  %v10742_v5 = vor.u32 %v12731_v53, %v10739_v56 }
 0x1ab   :  { %6900 = vmatpush.bf16.msra.mxu2 %v10262_v44  ;;  %v12795_v3 = vld [vmem:[%s19493_s1 + $0x17e4] sm:$0xf]  ;;  %v10870_v8 = vor.u32 %v12763_v57, %v10867_v58  ;;  %v10595_v11 = vld [vmem:[%s19493_s1 + $0x14d0] sm:$0xf0] }
 0x1ac   :  { %6913 = vmatpush.bf16.msra.mxu3 %v10390_v47  ;;  %v12695_v10 = vld [vmem:[%s19493_s1 + $0x14c4] sm:$0xf]  ;;  %v10998_v19 = vor.u32 %v12795_v3, %v10995_v4  ;;  %v10723_v20 = vld [vmem:[%s19493_s1 + $0x15d0] sm:$0xf0] }
 0x1ad   :  { %v12727_v15 = vld [vmem:[%s19493_s1 + $0x15c4] sm:$0xf]  ;;  %6875 = vmatpush.bf16.msra.mxu0 %v9990_v55  ;;  %v10851_v14 = vld [vmem:[%s19493_s1 + $0x16d0] sm:$0xf0]  ;;  %v10598_v35 = vor.u32 %v12695_v10, %v10595_v11  ;;  %v13055_v55 = vld [vmem:[%s19495_s2] sm:$0xf] }
 0x1ae   :  { %v12759_v21 = vld [vmem:[%s19493_s1 + $0x16c4] sm:$0xf]  ;;  %6888 = vmatpush.bf16.msra.mxu1 %v10118_v62  ;;  %v10979_v25 = vld [vmem:[%s19493_s1 + $0x17d0] sm:$0xf0]  ;;  %v10726_v36 = vor.u32 %v12727_v15, %v10723_v20  ;;  %v1045_v56 = vperm.slane %v13055_v55, 1  ;;  %v6682_v20 = vpop.f32.mrf.mxu1 }
 0x1af   :  { %6901 = vmatpush.bf16.msra.mxu2 %v10246_v63  ;;  %v12791_v23 = vld [vmem:[%s19493_s1 + $0x17c4] sm:$0xf]  ;;  %v10854_v38 = vor.u32 %v12759_v21, %v10851_v14  ;;  %v10579_v33 = vld [vmem:[%s19493_s1 + $0x14b0] sm:$0xf0] }
 0x1b0   :  { %6914 = vmatpush.bf16.msra.mxu3 %v10374_v60  ;;  %v12691_v43 = vld [vmem:[%s19493_s1 + $0x14a4] sm:$0xf]  ;;  %6876 = vmatmul.bf16.vlgmr.msra.gmra.mxu0 %v14149_v9  ;;  %v10982_v45 = vor.u32 %v12791_v23, %v10979_v25  ;;  %v10707_v46 = vld [vmem:[%s19493_s1 + $0x15b0] sm:$0xf0] }
 0x1b1   :  { %6920 = vmatpush.bf16.msrb.mxu0 %v10614_v59  ;;  %v12723_v44 = vld [vmem:[%s19493_s1 + $0x15a4] sm:$0xf]  ;;  %v10835_v47 = vld [vmem:[%s19493_s1 + $0x16b0] sm:$0xf0]  ;;  %6889 = vmatmul.bf16.vlgmr.msra.gmra.mxu1 %v14162_v18  ;;  %v10582_v51 = vor.u32 %v12691_v43, %v10579_v33  ;;  %v6669_v59 = vpop.f32.mrf.mxu0 }
 0x1b2   :  { %6933 = vmatpush.bf16.msrb.mxu1 %v10742_v5  ;;  %v12755_v26 = vld [vmem:[%s19493_s1 + $0x16a4] sm:$0xf]  ;;  %6902 = vmatmul.bf16.vlgmr.msra.gmra.mxu2 %v14160_v16  ;;  %v10963_v50 = vld [vmem:[%s19493_s1 + $0x17b0] sm:$0xf0]  ;;  %v10710_v39 = vor.u32 %v12723_v44, %v10707_v46 }
 0x1b3   :  { %6946 = vmatpush.bf16.msrb.mxu2 %v10870_v8  ;;  %v12787_v48 = vld [vmem:[%s19493_s1 + $0x17a4] sm:$0xf]  ;;  %6915 = vmatmul.bf16.vlgmr.msra.gmra.mxu3 %v14173_v22  ;;  %v10838_v49 = vor.u32 %v12755_v26, %v10835_v47  ;;  %v10563_v53 = vld [vmem:[%s19493_s1 + $0x1490] sm:$0xf0] }
 0x1b4   :  { %6959 = vmatpush.bf16.msrb.mxu3 %v10998_v19  ;;  %v12687_v52 = vld [vmem:[%s19493_s1 + $0x1484] sm:$0xf]  ;;  %v10966_v57 = vor.u32 %v12787_v48, %v10963_v50  ;;  %v10691_v58 = vld [vmem:[%s19493_s1 + $0x1590] sm:$0xf0]  ;;  %v6670_v19 = vadd.f32 %v6669_v59, %v1045_v56 }
 0x1b5   :  { %6921 = vmatpush.bf16.msrb.mxu0 %v10598_v35  ;;  %v12719_v54 = vld [vmem:[%s19493_s1 + $0x1584] sm:$0xf]  ;;  %v10819_v63 = vld [vmem:[%s19493_s1 + $0x1690] sm:$0xf0]  ;;  %v10566_v60 = vor.u32 %v12687_v52, %v10563_v53  ;;  %v6695_v47 = vpop.f32.mrf.mxu2 }
 0x1b6   :  { %6934 = vmatpush.bf16.msrb.mxu1 %v10726_v36  ;;  %v12751_v62 = vld [vmem:[%s19493_s1 + $0x1684] sm:$0xf]  ;;  %v10947_v4 = vld [vmem:[%s19493_s1 + $0x1790] sm:$0xf0]  ;;  %v10694_v5 = vor.u32 %v12719_v54, %v10691_v58 }
 0x1b7   :  { %6947 = vmatpush.bf16.msrb.mxu2 %v10854_v38  ;;  %v12783_v3 = vld [vmem:[%s19493_s1 + $0x1784] sm:$0xf]  ;;  %v10822_v8 = vor.u32 %v12751_v62, %v10819_v63  ;;  %v10547_v11 = vld [vmem:[%s19493_s1 + $0x1470] sm:$0xf0]  ;;  %v6683_v38 = vadd.f32 %v6682_v20, %v6670_v19 }
 0x1b8   :  { %6960 = vmatpush.bf16.msrb.mxu3 %v10982_v45  ;;  %v12683_v10 = vld [vmem:[%s19493_s1 + $0x1464] sm:$0xf]  ;;  %v10950_v21 = vor.u32 %v12783_v3, %v10947_v4  ;;  %v10675_v14 = vld [vmem:[%s19493_s1 + $0x1570] sm:$0xf0] }
 0x1b9   :  { %6922 = vmatpush.bf16.msrb.mxu0 %v10582_v51  ;;  %v12715_v15 = vld [vmem:[%s19493_s1 + $0x1564] sm:$0xf]  ;;  %v10803_v25 = vld [vmem:[%s19493_s1 + $0x1670] sm:$0xf0]  ;;  %v10550_v43 = vor.u32 %v12683_v10, %v10547_v11 }
 0x1ba   :  { %6935 = vmatpush.bf16.msrb.mxu1 %v10710_v39  ;;  %v12747_v23 = vld [vmem:[%s19493_s1 + $0x1664] sm:$0xf]  ;;  %v10931_v36 = vld [vmem:[%s19493_s1 + $0x1770] sm:$0xf0]  ;;  %v10678_v33 = vor.u32 %v12715_v15, %v10675_v14  ;;  %v6696_v39 = vadd.f32 %v6695_v47, %v6683_v38 }
 0x1bb   :  { %6948 = vmatpush.bf16.msrb.mxu2 %v10838_v49  ;;  %v12779_v35 = vld [vmem:[%s19493_s1 + $0x1764] sm:$0xf]  ;;  %v10806_v44 = vor.u32 %v12747_v23, %v10803_v25  ;;  %v10531_v46 = vld [vmem:[%s19493_s1 + $0x1450] sm:$0xf0]  ;;  %v6708_v49 = vpop.f32.mrf.mxu3 }
 0x1bc   :  { %6961 = vmatpush.bf16.msrb.mxu3 %v10966_v57  ;;  %v12679_v45 = vld [vmem:[%s19493_s1 + $0x1444] sm:$0xf]  ;;  %v10934_v48 = vor.u32 %v12779_v35, %v10931_v36  ;;  %v10659_v50 = vld [vmem:[%s19493_s1 + $0x1550] sm:$0xf0]  ;;  %v15872_v56 = vadd.f32 %v6708_v49, %v6696_v39  ;;  %v6671_v57 = vpop.f32.mrf.mxu0 }
 0x1bd   :  { %6923 = vmatpush.bf16.msrb.mxu0 %v10566_v60  ;;  %v12711_v26 = vld [vmem:[%s19493_s1 + $0x1544] sm:$0xf]  ;;  %v10787_v52 = vld [vmem:[%s19493_s1 + $0x1650] sm:$0xf0]  ;;  %v10534_v55 = vor.u32 %v12679_v45, %v10531_v46  ;;  %v6684_v60 = vpop.f32.mrf.mxu1  ;;  %v6697_v38 = vpop.f32.mrf.mxu2 }
 0x1be   :  { %6936 = vmatpush.bf16.msrb.mxu1 %v10694_v5  ;;  %v12743_v51 = vld [vmem:[%s19493_s1 + $0x1644] sm:$0xf]  ;;  %v10915_v54 = vld [vmem:[%s19493_s1 + $0x1750] sm:$0xf0]  ;;  %v10662_v58 = vor.u32 %v12711_v26, %v10659_v50 }
 0x1bf   :  { %6949 = vmatpush.bf16.msrb.mxu2 %v10822_v8  ;;  %v12775_v53 = vld [vmem:[%s19493_s1 + $0x1744] sm:$0xf]  ;;  %v10790_v62 = vor.u32 %v12743_v51, %v10787_v52  ;;  %v10515_v3 = vld [vmem:[%s19493_s1 + $0x1430] sm:$0xf0] }
 0x1c0   :  { %6962 = vmatpush.bf16.msrb.mxu3 %v10950_v21  ;;  %v12675_v63 = vld [vmem:[%s19493_s1 + $0x1424] sm:$0xf]  ;;  %v10918_v59 = vor.u32 %v12775_v53, %v10915_v54  ;;  %v10643_v5 = vld [vmem:[%s19493_s1 + $0x1530] sm:$0xf0] }
 0x1c1   :  { %6924 = vmatpush.bf16.msrb.mxu0 %v10550_v43  ;;  %v12707_v4 = vld [vmem:[%s19493_s1 + $0x1524] sm:$0xf]  ;;  %v10771_v10 = vld [vmem:[%s19493_s1 + $0x1630] sm:$0xf0]  ;;  %v10518_v19 = vor.u32 %v12675_v63, %v10515_v3 }
 0x1c2   :  { %6937 = vmatpush.bf16.msrb.mxu1 %v10678_v33  ;;  %v12739_v8 = vld [vmem:[%s19493_s1 + $0x1624] sm:$0xf]  ;;  %v10899_v15 = vld [vmem:[%s19493_s1 + $0x1730] sm:$0xf0]  ;;  %v10646_v14 = vor.u32 %v12707_v4, %v10643_v5 }
 0x1c3   :  { %6950 = vmatpush.bf16.msrb.mxu2 %v10806_v44  ;;  %v12771_v11 = vld [vmem:[%s19493_s1 + $0x1724] sm:$0xf]  ;;  %v10499_v21 = vld [vmem:[%s19493_s1 + $0x1410] sm:$0xf0]  ;;  %v10774_v23 = vor.u32 %v12739_v8, %v10771_v10  ;;  %v6710_v46 = vpop.f32.mrf.mxu3 }
 0x1c4   :  { %6963 = vmatpush.bf16.msrb.mxu3 %v10934_v48  ;;  %v12671_v20 = vld [vmem:[%s19493_s1 + $0x1404] sm:$0xf]  ;;  %v10627_v35 = vld [vmem:[%s19493_s1 + $0x1510] sm:$0xf0]  ;;  %v10902_v43 = vor.u32 %v12771_v11, %v10899_v15 }
 0x1c5   :  { %6925 = vmatpush.bf16.msrb.mxu0 %v10534_v55  ;;  %v12703_v25 = vld [vmem:[%s19493_s1 + $0x1504] sm:$0xf]  ;;  %v10755_v33 = vld [vmem:[%s19493_s1 + $0x1610] sm:$0xf0]  ;;  %v10502_v50 = vor.u32 %v12671_v20, %v10499_v21 }
 0x1c6   :  { %6938 = vmatpush.bf16.msrb.mxu1 %v10662_v58  ;;  %v12735_v36 = vld [vmem:[%s19493_s1 + $0x1604] sm:$0xf]  ;;  %v10883_v45 = vld [vmem:[%s19493_s1 + $0x1710] sm:$0xf0]  ;;  %v10630_v49 = vor.u32 %v12703_v25, %v10627_v35 }
 0x1c7   :  { %6951 = vmatpush.bf16.msrb.mxu2 %v10790_v62  ;;  %v12767_v44 = vld [vmem:[%s19493_s1 + $0x1704] sm:$0xf]  ;;  %v11123_v47 = vld [vmem:[%s19493_s1 + $0x18f0] sm:$0xf0]  ;;  %v10758_v53 = vor.u32 %v12735_v36, %v10755_v33 }
 0x1c8   :  { %6964 = vmatpush.bf16.msrb.mxu3 %v10918_v59  ;;  %v12827_v26 = vld [vmem:[%s19493_s1 + $0x18e4] sm:$0xf]  ;;  %v11251_v51 = vld [vmem:[%s19493_s1 + $0x19f0] sm:$0xf0]  ;;  %v10886_v57 = vor.u32 %v12767_v44, %v10883_v45 }
 0x1c9   :  { %v12859_v48 = vld [vmem:[%s19493_s1 + $0x19e4] sm:$0xf]  ;;  %6926 = vmatpush.bf16.msrb.mxu0 %v10518_v19  ;;  %v11379_v39 = vld [vmem:[%s19493_s1 + $0x1af0] sm:$0xf0]  ;;  %v11126_v58 = vor.u32 %v12827_v26, %v11123_v47 }
 0x1ca   :  { %v12891_v52 = vld [vmem:[%s19493_s1 + $0x1ae4] sm:$0xf]  ;;  %6939 = vmatpush.bf16.msrb.mxu1 %v10646_v14  ;;  %v11507_v55 = vld [vmem:[%s19493_s1 + $0x1bf0] sm:$0xf0]  ;;  %v11254_v62 = vor.u32 %v12859_v48, %v11251_v51 }
 0x1cb   :  { %6952 = vmatpush.bf16.msrb.mxu2 %v10774_v23  ;;  %v12923_v54 = vld [vmem:[%s19493_s1 + $0x1be4] sm:$0xf]  ;;  %v11382_v63 = vor.u32 %v12891_v52, %v11379_v39  ;;  %v11107_v4 = vld [vmem:[%s19493_s1 + $0x18d0] sm:$0xf0] }
 0x1cc   :  { %6965 = vmatpush.bf16.msrb.mxu3 %v10902_v43  ;;  %v12823_v3 = vld [vmem:[%s19493_s1 + $0x18c4] sm:$0xf]  ;;  %v11510_v59 = vor.u32 %v12923_v54, %v11507_v55  ;;  %v11235_v5 = vld [vmem:[%s19493_s1 + $0x19d0] sm:$0xf0] }
 0x1cd   :  { %v12855_v60 = vld [vmem:[%s19493_s1 + $0x19c4] sm:$0xf]  ;;  %6927 = vmatpush.bf16.msrb.mxu0 %v10502_v50  ;;  %v11363_v10 = vld [vmem:[%s19493_s1 + $0x1ad0] sm:$0xf0]  ;;  %v11110_v19 = vor.u32 %v12823_v3, %v11107_v4 }
 0x1ce   :  { %v12887_v8 = vld [vmem:[%s19493_s1 + $0x1ac4] sm:$0xf]  ;;  %6940 = vmatpush.bf16.msrb.mxu1 %v10630_v49  ;;  %v11491_v15 = vld [vmem:[%s19493_s1 + $0x1bd0] sm:$0xf0]  ;;  %v11238_v20 = vor.u32 %v12855_v60, %v11235_v5 }
 0x1cf   :  { %6953 = vmatpush.bf16.msrb.mxu2 %v10758_v53  ;;  %v12919_v11 = vld [vmem:[%s19493_s1 + $0x1bc4] sm:$0xf]  ;;  %v11366_v21 = vor.u32 %v12887_v8, %v11363_v10  ;;  %v11091_v23 = vld [vmem:[%s19493_s1 + $0x18b0] sm:$0xf0] }
 0x1d0   :  { %6966 = vmatpush.bf16.msrb.mxu3 %v10886_v57  ;;  %v12819_v14 = vld [vmem:[%s19493_s1 + $0x18a4] sm:$0xf]  ;;  %6928 = vmatmul.bf16.vlgmr.msrb.gmra.mxu0 %v14190_v37  ;;  %v11494_v35 = vor.u32 %v12919_v11, %v11491_v15  ;;  %v11219_v36 = vld [vmem:[%s19493_s1 + $0x19b0] sm:$0xf0]  ;;  %v6721_v57 = vpop.f32.mrf.mxu0 }
 0x1d1   :  { %6972 = vmatpush.bf16.msra.mxu0 %v11126_v58  ;;  %v12851_v25 = vld [vmem:[%s19493_s1 + $0x19a4] sm:$0xf]  ;;  %v11347_v43 = vld [vmem:[%s19493_s1 + $0x1ab0] sm:$0xf0]  ;;  %6941 = vmatmul.bf16.vlgmr.msrb.gmra.mxu1 %v14194_v41  ;;  %v11094_v45 = vor.u32 %v12819_v14, %v11091_v23  ;;  %v6722_v60 = vadd.f32 %v6721_v57, %v15872_v56 }
 0x1d2   :  { %6985 = vmatpush.bf16.msra.mxu1 %v11254_v62  ;;  %v12883_v38 = vld [vmem:[%s19493_s1 + $0x1aa4] sm:$0xf]  ;;  %6954 = vmatmul.bf16.vlgmr.msrb.gmra.mxu2 %v14192_v40  ;;  %v11475_v44 = vld [vmem:[%s19493_s1 + $0x1bb0] sm:$0xf0]  ;;  %v11222_v46 = vor.u32 %v12851_v25, %v11219_v36 }
 0x1d3   :  { %6998 = vmatpush.bf16.msra.mxu2 %v11382_v63  ;;  %v12915_v33 = vld [vmem:[%s19493_s1 + $0x1ba4] sm:$0xf]  ;;  %6967 = vmatmul.bf16.vlgmr.msrb.gmra.mxu3 %v14196_v42  ;;  %v11350_v26 = vor.u32 %v12883_v38, %v11347_v43  ;;  %v11075_v48 = vld [vmem:[%s19493_s1 + $0x1890] sm:$0xf0] }
 0x1d4   :  { %7011 = vmatpush.bf16.msra.mxu3 %v11510_v59  ;;  %v12815_v47 = vld [vmem:[%s19493_s1 + $0x1884] sm:$0xf]  ;;  %v11478_v51 = vor.u32 %v12915_v33, %v11475_v44  ;;  %v11203_v52 = vld [vmem:[%s19493_s1 + $0x1990] sm:$0xf0]  ;;  %v6734_v59 = vpop.f32.mrf.mxu1 }
 0x1d5   :  { %6973 = vmatpush.bf16.msra.mxu0 %v11110_v19  ;;  %v12847_v50 = vld [vmem:[%s19493_s1 + $0x1984] sm:$0xf]  ;;  %v11331_v49 = vld [vmem:[%s19493_s1 + $0x1a90] sm:$0xf0]  ;;  %v11078_v55 = vor.u32 %v12815_v47, %v11075_v48  ;;  %v6735_v19 = vadd.f32 %v6734_v59, %v6722_v60  ;;  %v6747_v36 = vpop.f32.mrf.mxu2 }
 0x1d6   :  { %6986 = vmatpush.bf16.msra.mxu1 %v11238_v20  ;;  %v12879_v39 = vld [vmem:[%s19493_s1 + $0x1a84] sm:$0xf]  ;;  %v11459_v54 = vld [vmem:[%s19493_s1 + $0x1b90] sm:$0xf0]  ;;  %v11206_v58 = vor.u32 %v12847_v50, %v11203_v52 }
 0x1d7   :  { %6999 = vmatpush.bf16.msra.mxu2 %v11366_v21  ;;  %v12911_v53 = vld [vmem:[%s19493_s1 + $0x1b84] sm:$0xf]  ;;  %v11334_v62 = vor.u32 %v12879_v39, %v11331_v49  ;;  %v11059_v3 = vld [vmem:[%s19493_s1 + $0x1870] sm:$0xf0] }
 0x1d8   :  { %7012 = vmatpush.bf16.msra.mxu3 %v11494_v35  ;;  %v12811_v63 = vld [vmem:[%s19493_s1 + $0x1864] sm:$0xf]  ;;  %v11462_v5 = vor.u32 %v12911_v53, %v11459_v54  ;;  %v11187_v8 = vld [vmem:[%s19493_s1 + $0x1970] sm:$0xf0] }
 0x1d9   :  { %6974 = vmatpush.bf16.msra.mxu0 %v11094_v45  ;;  %v12843_v4 = vld [vmem:[%s19493_s1 + $0x1964] sm:$0xf]  ;;  %v11315_v11 = vld [vmem:[%s19493_s1 + $0x1a70] sm:$0xf0]  ;;  %v11062_v20 = vor.u32 %v12811_v63, %v11059_v3  ;;  %v6748_v45 = vadd.f32 %v6747_v36, %v6735_v19 }
 0x1da   :  { %6987 = vmatpush.bf16.msra.mxu1 %v11222_v46  ;;  %v12875_v10 = vld [vmem:[%s19493_s1 + $0x1a64] sm:$0xf]  ;;  %v11443_v56 = vld [vmem:[%s19493_s1 + $0x1b70] sm:$0xf0]  ;;  %v11190_v21 = vor.u32 %v12843_v4, %v11187_v8  ;;  %v6760_v46 = vpop.f32.mrf.mxu3 }
 0x1db   :  { %7000 = vmatpush.bf16.msra.mxu2 %v11350_v26  ;;  %v12907_v15 = vld [vmem:[%s19493_s1 + $0x1b64] sm:$0xf]  ;;  %v11318_v14 = vor.u32 %v12875_v10, %v11315_v11  ;;  %v11043_v25 = vld [vmem:[%s19493_s1 + $0x1850] sm:$0xf0]  ;;  %v16071_v50 = vadd.f32 %v6760_v46, %v6748_v45 }
 0x1dc   :  { %7013 = vmatpush.bf16.msra.mxu3 %v11478_v51  ;;  %v12807_v23 = vld [vmem:[%s19493_s1 + $0x1844] sm:$0xf]  ;;  %v11446_v38 = vor.u32 %v12907_v15, %v11443_v56  ;;  %v11171_v43 = vld [vmem:[%s19493_s1 + $0x1950] sm:$0xf0]  ;;  %v6723_v51 = vpop.f32.mrf.mxu0 }
 0x1dd   :  { %6975 = vmatpush.bf16.msra.mxu0 %v11078_v55  ;;  %v12839_v35 = vld [vmem:[%s19493_s1 + $0x1944] sm:$0xf]  ;;  %v11299_v44 = vld [vmem:[%s19493_s1 + $0x1a50] sm:$0xf0]  ;;  %v11046_v48 = vor.u32 %v12807_v23, %v11043_v25  ;;  %v6736_v55 = vpop.f32.mrf.mxu1  ;;  %v6749_v19 = vpop.f32.mrf.mxu2 }
 0x1de   :  { %6988 = vmatpush.bf16.msra.mxu1 %v11206_v58  ;;  %v12871_v33 = vld [vmem:[%s19493_s1 + $0x1a44] sm:$0xf]  ;;  %v11427_v47 = vld [vmem:[%s19493_s1 + $0x1b50] sm:$0xf0]  ;;  %v11174_v52 = vor.u32 %v12839_v35, %v11171_v43 }
 0x1df   :  { %7001 = vmatpush.bf16.msra.mxu2 %v11334_v62  ;;  %v12903_v26 = vld [vmem:[%s19493_s1 + $0x1b44] sm:$0xf]  ;;  %v11302_v39 = vor.u32 %v12871_v33, %v11299_v44  ;;  %v11027_v53 = vld [vmem:[%s19493_s1 + $0x1830] sm:$0xf0] }
 0x1e0   :  { %7014 = vmatpush.bf16.msra.mxu3 %v11462_v5  ;;  %v12803_v49 = vld [vmem:[%s19493_s1 + $0x1824] sm:$0xf]  ;;  %v11430_v57 = vor.u32 %v12903_v26, %v11427_v47  ;;  %v11155_v58 = vld [vmem:[%s19493_s1 + $0x1930] sm:$0xf0] }
 0x1e1   :  { %6976 = vmatpush.bf16.msra.mxu0 %v11062_v20  ;;  %v12835_v54 = vld [vmem:[%s19493_s1 + $0x1924] sm:$0xf]  ;;  %v11283_v63 = vld [vmem:[%s19493_s1 + $0x1a30] sm:$0xf0]  ;;  %v11030_v60 = vor.u32 %v12803_v49, %v11027_v53 }
 0x1e2   :  { %6989 = vmatpush.bf16.msra.mxu1 %v11190_v21  ;;  %v12867_v62 = vld [vmem:[%s19493_s1 + $0x1a24] sm:$0xf]  ;;  %v11411_v4 = vld [vmem:[%s19493_s1 + $0x1b30] sm:$0xf0]  ;;  %v11158_v8 = vor.u32 %v12835_v54, %v11155_v58  ;;  %v6762_v25 = vpop.f32.mrf.mxu3 }
 0x1e3   :  { %7002 = vmatpush.bf16.msra.mxu2 %v11318_v14  ;;  %v12899_v3 = vld [vmem:[%s19493_s1 + $0x1b24] sm:$0xf]  ;;  %v11011_v5 = vld [vmem:[%s19493_s1 + $0x1810] sm:$0xf0]  ;;  %v11286_v10 = vor.u32 %v12867_v62, %v11283_v63 }
 0x1e4   :  { %7015 = vmatpush.bf16.msra.mxu3 %v11446_v38  ;;  %v12799_v59 = vld [vmem:[%s19493_s1 + $0x1804] sm:$0xf]  ;;  %v11139_v15 = vld [vmem:[%s19493_s1 + $0x1910] sm:$0xf0]  ;;  %v11414_v20 = vor.u32 %v12899_v3, %v11411_v4 }
 0x1e5   :  { %6977 = vmatpush.bf16.msra.mxu0 %v11046_v48  ;;  %v12831_v11 = vld [vmem:[%s19493_s1 + $0x1904] sm:$0xf]  ;;  %v11267_v21 = vld [vmem:[%s19493_s1 + $0x1a10] sm:$0xf0]  ;;  %v11014_v43 = vor.u32 %v12799_v59, %v11011_v5 }
 0x1e6   :  { %6990 = vmatpush.bf16.msra.mxu1 %v11174_v52  ;;  %v12863_v56 = vld [vmem:[%s19493_s1 + $0x1a04] sm:$0xf]  ;;  %v11395_v23 = vld [vmem:[%s19493_s1 + $0x1b10] sm:$0xf0]  ;;  %v11142_v46 = vor.u32 %v12831_v11, %v11139_v15 }
 0x1e7   :  { %7003 = vmatpush.bf16.msra.mxu2 %v11302_v39  ;;  %v12895_v14 = vld [vmem:[%s19493_s1 + $0x1b04] sm:$0xf]  ;;  %v11635_v36 = vld [vmem:[%s19493_s1 + $0x1cf0] sm:$0xf0]  ;;  %v11270_v26 = vor.u32 %v12863_v56, %v11267_v21 }
 0x1e8   :  { %7016 = vmatpush.bf16.msra.mxu3 %v11430_v57  ;;  %v12955_v35 = vld [vmem:[%s19493_s1 + $0x1ce4] sm:$0xf]  ;;  %v11763_v33 = vld [vmem:[%s19493_s1 + $0x1df0] sm:$0xf0]  ;;  %v11398_v51 = vor.u32 %v12895_v14, %v11395_v23  ;;  %v13058_v23 = vld [vmem:[#allocation1 + $0x9] sm:$0xff] }
 0x1e9   :  { %v12987_v38 = vld [vmem:[%s19493_s1 + $0x1de4] sm:$0xf]  ;;  %6978 = vmatpush.bf16.msra.mxu0 %v11030_v60  ;;  %v11891_v45 = vld [vmem:[%s19493_s1 + $0x1ef0] sm:$0xf0]  ;;  %v11638_v52 = vor.u32 %v12955_v35, %v11635_v36  ;;  %v13059_v36 = vld [vmem:[#allocation1 + $0x1b] sm:$0xff] }
 0x1ea   :  { %v13019_v44 = vld [vmem:[%s19493_s1 + $0x1ee4] sm:$0xf]  ;;  %6991 = vmatpush.bf16.msra.mxu1 %v11158_v8  ;;  %v12019_v48 = vld [vmem:[%s19493_s1 + $0x1ff0] sm:$0xf0]  ;;  %v11766_v39 = vor.u32 %v12987_v38, %v11763_v33 }
 0x1eb   :  { %7004 = vmatpush.bf16.msra.mxu2 %v11286_v10  ;;  %v13051_v47 = vld [vmem:[%s19493_s1 + $0x1fe4] sm:$0xf]  ;;  %v11894_v49 = vor.u32 %v13019_v44, %v11891_v45  ;;  %v11619_v54 = vld [vmem:[%s19493_s1 + $0x1cd0] sm:$0xf0] }
 0x1ec   :  { %7017 = vmatpush.bf16.msra.mxu3 %v11414_v20  ;;  %v12951_v53 = vld [vmem:[%s19493_s1 + $0x1cc4] sm:$0xf]  ;;  %v12022_v57 = vor.u32 %v13051_v47, %v12019_v48  ;;  %v11747_v58 = vld [vmem:[%s19493_s1 + $0x1dd0] sm:$0xf0] }
 0x1ed   :  { %v12983_v55 = vld [vmem:[%s19493_s1 + $0x1dc4] sm:$0xf]  ;;  %6979 = vmatpush.bf16.msra.mxu0 %v11014_v43  ;;  %v11875_v63 = vld [vmem:[%s19493_s1 + $0x1ed0] sm:$0xf0]  ;;  %v11622_v60 = vor.u32 %v12951_v53, %v11619_v54 }
 0x1ee   :  { %v13015_v62 = vld [vmem:[%s19493_s1 + $0x1ec4] sm:$0xf]  ;;  %6992 = vmatpush.bf16.msra.mxu1 %v11142_v46  ;;  %v12003_v4 = vld [vmem:[%s19493_s1 + $0x1fd0] sm:$0xf0]  ;;  %v11750_v59 = vor.u32 %v12983_v55, %v11747_v58  ;;  %v6786_v55 = vpop.f32.mrf.mxu1 }
 0x1ef   :  { %7005 = vmatpush.bf16.msra.mxu2 %v11270_v26  ;;  %v13047_v3 = vld [vmem:[%s19493_s1 + $0x1fc4] sm:$0xf]  ;;  %v11878_v5 = vor.u32 %v13015_v62, %v11875_v63  ;;  %v11603_v10 = vld [vmem:[%s19493_s1 + $0x1cb0] sm:$0xf0] }
 0x1f0   :  { %7018 = vmatpush.bf16.msra.mxu3 %v11398_v51  ;;  %v12947_v8 = vld [vmem:[%s19493_s1 + $0x1ca4] sm:$0xf]  ;;  %v12006_v56 = vor.u32 %v13047_v3, %v12003_v4  ;;  %v11731_v19 = vld [vmem:[%s19493_s1 + $0x1db0] sm:$0xf0] }
 0x1f1   :  { %7024 = vmatpush.bf16.msrb.mxu0 %v11638_v52  ;;  %v12979_v11 = vld [vmem:[%s19493_s1 + $0x1da4] sm:$0xf]  ;;  %v11859_v21 = vld [vmem:[%s19493_s1 + $0x1eb0] sm:$0xf0]  ;;  %6993 = vmatmul.bf16.vlgmr.msra.gmra.mxu1 %v13058_v23  ;;  %v11606_v38 = vor.u32 %v12947_v8, %v11603_v10  ;;  %v6773_v52 = vpop.f32.mrf.mxu0 }
 0x1f2   :  { %7037 = vmatpush.bf16.msrb.mxu1 %v11766_v39  ;;  %v13056_v15 = vld [vmem:[#allocation1] sm:$0xff]  ;;  %v13057_v14 = vld [vmem:[#allocation1 + $0x12] sm:$0xff]  ;;  %v11734_v43 = vor.u32 %v12979_v11, %v11731_v19  ;;  %v6774_v53 = vadd.f32 %v6773_v52, %v16071_v50 }
 0x1f3   :  { %7050 = vmatpush.bf16.msrb.mxu2 %v11894_v49  ;;  %6980 = vmatmul.bf16.vlgmr.msra.gmra.mxu0 %v13056_v15  ;;  %v13011_v20 = vld [vmem:[%s19493_s1 + $0x1ea4] sm:$0xf]  ;;  %v11987_v35 = vld [vmem:[%s19493_s1 + $0x1fb0] sm:$0xf0] }
 0x1f4   :  { %7063 = vmatpush.bf16.msrb.mxu3 %v12022_v57  ;;  %7006 = vmatmul.bf16.vlgmr.msra.gmra.mxu2 %v13057_v14  ;;  %v13043_v25 = vld [vmem:[%s19493_s1 + $0x1fa4] sm:$0xf]  ;;  %v11862_v33 = vor.u32 %v13011_v20, %v11859_v21  ;;  %v11587_v45 = vld [vmem:[%s19493_s1 + $0x1c90] sm:$0xf0]  ;;  %v6787_v4 = vadd.f32 %v6786_v55, %v6774_v53 }
 0x1f5   :  { %7019 = vmatmul.bf16.vlgmr.msra.gmra.mxu3 %v13059_v36  ;;  %7025 = vmatpush.bf16.msrb.mxu0 %v11622_v60  ;;  %v12943_v44 = vld [vmem:[%s19493_s1 + $0x1c84] sm:$0xf]  ;;  %v11990_v26 = vor.u32 %v13043_v25, %v11987_v35  ;;  %v11715_v47 = vld [vmem:[%s19493_s1 + $0x1d90] sm:$0xf0]  ;;  %v6799_v23 = vpop.f32.mrf.mxu2 }
 0x1f6   :  { %7038 = vmatpush.bf16.msrb.mxu1 %v11750_v59  ;;  %v12975_v46 = vld [vmem:[%s19493_s1 + $0x1d84] sm:$0xf]  ;;  %v11843_v51 = vld [vmem:[%s19493_s1 + $0x1e90] sm:$0xf0]  ;;  %v11590_v54 = vor.u32 %v12943_v44, %v11587_v45 }
 0x1f7   :  { %7051 = vmatpush.bf16.msrb.mxu2 %v11878_v5  ;;  %v13007_v48 = vld [vmem:[%s19493_s1 + $0x1e84] sm:$0xf]  ;;  %v11971_v49 = vld [vmem:[%s19493_s1 + $0x1f90] sm:$0xf0]  ;;  %v11718_v57 = vor.u32 %v12975_v46, %v11715_v47 }
 0x1f8   :  { %7064 = vmatpush.bf16.msrb.mxu3 %v12006_v56  ;;  %v13039_v39 = vld [vmem:[%s19493_s1 + $0x1f84] sm:$0xf]  ;;  %v11846_v58 = vor.u32 %v13007_v48, %v11843_v51  ;;  %v11571_v63 = vld [vmem:[%s19493_s1 + $0x1c70] sm:$0xf0] }
 0x1f9   :  { %7026 = vmatpush.bf16.msrb.mxu0 %v11606_v38  ;;  %v12939_v62 = vld [vmem:[%s19493_s1 + $0x1c64] sm:$0xf]  ;;  %v11974_v50 = vor.u32 %v13039_v39, %v11971_v49  ;;  %v11699_v60 = vld [vmem:[%s19493_s1 + $0x1d70] sm:$0xf0]  ;;  %v6800_v38 = vadd.f32 %v6799_v23, %v6787_v4  ;;  %v6775_v45 = vpop.f32.mrf.mxu0 }
 0x1fa   :  { %7039 = vmatpush.bf16.msrb.mxu1 %v11734_v43  ;;  %v12971_v3 = vld [vmem:[%s19493_s1 + $0x1d64] sm:$0xf]  ;;  %v11827_v5 = vld [vmem:[%s19493_s1 + $0x1e70] sm:$0xf0]  ;;  %v11574_v11 = vor.u32 %v12939_v62, %v11571_v63  ;;  %v6812_v43 = vpop.f32.mrf.mxu3  ;;  %v12158_v45 = vld [vmem:[%s19493_s1 + $0x3f4] sm:$0xf0] }
 0x1fb   :  { %7052 = vmatpush.bf16.msrb.mxu2 %v11862_v33  ;;  %v13003_v59 = vld [vmem:[%s19493_s1 + $0x1e64] sm:$0xf]  ;;  %v11955_v10 = vld [vmem:[%s19493_s1 + $0x1f70] sm:$0xf0]  ;;  %v11702_v15 = vor.u32 %v12971_v3, %v11699_v60  ;;  %v16266_v47 = vadd.f32 %v6812_v43, %v6800_v38  ;;  %v12126_v38 = vld [vmem:[%s19493_s1 + $0x2f4] sm:$0xf0] }
 0x1fc   :  { %7065 = vmatpush.bf16.msrb.mxu3 %v11990_v26  ;;  %v13035_v8 = vld [vmem:[%s19493_s1 + $0x1f64] sm:$0xf]  ;;  %v11830_v56 = vor.u32 %v13003_v59, %v11827_v5  ;;  %v11555_v20 = vld [vmem:[%s19493_s1 + $0x1c50] sm:$0xf0]  ;;  %v6788_v26 = vpop.f32.mrf.mxu1 }
 0x1fd   :  { %7027 = vmatpush.bf16.msrb.mxu0 %v11590_v54  ;;  %v12935_v19 = vld [vmem:[%s19493_s1 + $0x1c44] sm:$0xf]  ;;  %v11958_v14 = vor.u32 %v13035_v8, %v11955_v10  ;;  %v11683_v25 = vld [vmem:[%s19493_s1 + $0x1d50] sm:$0xf0] }
 0x1fe   :  { %7040 = vmatpush.bf16.msrb.mxu1 %v11718_v57  ;;  %v12967_v21 = vld [vmem:[%s19493_s1 + $0x1d44] sm:$0xf]  ;;  %v11811_v36 = vld [vmem:[%s19493_s1 + $0x1e50] sm:$0xf0]  ;;  %v11558_v46 = vor.u32 %v12935_v19, %v11555_v20  ;;  %v6801_v19 = vpop.f32.mrf.mxu2  ;;  %v8057_v20 = vld [vmem:[%s19493_s1 + $0xe8] sm:$0xf] }
 0x1ff   :  { %7053 = vmatpush.bf16.msrb.mxu2 %v11846_v58  ;;  %v12999_v35 = vld [vmem:[%s19493_s1 + $0x1e44] sm:$0xf]  ;;  %v11939_v44 = vld [vmem:[%s19493_s1 + $0x1f50] sm:$0xf0]  ;;  %v11686_v48 = vor.u32 %v12967_v21, %v11683_v25  ;;  %v12062_v21 = vld [vmem:[%s19493_s1 + $0xf4] sm:$0xf0] }
 0x200   :  { %7066 = vmatpush.bf16.msrb.mxu3 %v11974_v50  ;;  %v13031_v33 = vld [vmem:[%s19493_s1 + $0x1f44] sm:$0xf]  ;;  %v11814_v51 = vor.u32 %v12999_v35, %v11811_v36  ;;  %v11539_v39 = vld [vmem:[%s19493_s1 + $0x1c30] sm:$0xf0]  ;;  %v12094_v35 = vld [vmem:[%s19493_s1 + $0x1f4] sm:$0xf0]  ;;  %v8058_v26 = vor.u32 %v12062_v21, %v8057_v20 }
 0x201   :  { %7028 = vmatpush.bf16.msrb.mxu0 %v11574_v11  ;;  %v12931_v52 = vld [vmem:[%s19493_s1 + $0x1c24] sm:$0xf]  ;;  %v11942_v53 = vor.u32 %v13031_v33, %v11939_v44  ;;  %v11667_v54 = vld [vmem:[%s19493_s1 + $0x1d30] sm:$0xf0]  ;;  %v8313_v36 = vld [vmem:[%s19493_s1 + $0x2e8] sm:$0xf] }
 0x202   :  { %7041 = vmatpush.bf16.msrb.mxu1 %v11702_v15  ;;  %v12963_v49 = vld [vmem:[%s19493_s1 + $0x1d24] sm:$0xf]  ;;  %v11795_v57 = vld [vmem:[%s19493_s1 + $0x1e30] sm:$0xf0]  ;;  %v11542_v63 = vor.u32 %v12931_v52, %v11539_v39  ;;  %v6814_v23 = vpop.f32.mrf.mxu3  ;;  %v8441_v44 = vld [vmem:[%s19493_s1 + $0x3e8] sm:$0xf] }
 0x203   :  { %7054 = vmatpush.bf16.msrb.mxu2 %v11830_v56  ;;  %v12995_v55 = vld [vmem:[%s19493_s1 + $0x1e24] sm:$0xf]  ;;  %v11923_v62 = vld [vmem:[%s19493_s1 + $0x1f30] sm:$0xf0]  ;;  %v11670_v4 = vor.u32 %v12963_v49, %v11667_v54  ;;  %v8041_v52 = vld [vmem:[%s19493_s1 + $0xc8] sm:$0xf] }
 0x204   :  { %7067 = vmatpush.bf16.msrb.mxu3 %v11958_v14  ;;  %v13027_v58 = vld [vmem:[%s19493_s1 + $0x1f24] sm:$0xf]  ;;  %v11523_v50 = vld [vmem:[%s19493_s1 + $0x1c10] sm:$0xf0]  ;;  %v11798_v60 = vor.u32 %v12995_v55, %v11795_v57  ;;  %v8185_v14 = vld [vmem:[%s19493_s1 + $0x1e8] sm:$0xf] }
 0x205   :  { %7029 = vmatpush.bf16.msrb.mxu0 %v11558_v46  ;;  %v12927_v3 = vld [vmem:[%s19493_s1 + $0x1c04] sm:$0xf]  ;;  %v11651_v5 = vld [vmem:[%s19493_s1 + $0x1d10] sm:$0xf0]  ;;  %v11926_v10 = vor.u32 %v13027_v58, %v11923_v62  ;;  %v12058_v39 = vld [vmem:[%s19493_s1 + $0xd4] sm:$0xf0] }
 0x206   :  { %7042 = vmatpush.bf16.msrb.mxu1 %v11686_v48  ;;  %v12959_v59 = vld [vmem:[%s19493_s1 + $0x1d04] sm:$0xf]  ;;  %v11779_v11 = vld [vmem:[%s19493_s1 + $0x1e10] sm:$0xf0]  ;;  %v11526_v25 = vor.u32 %v12927_v3, %v11523_v50  ;;  %v8186_v48 = vor.u32 %v12094_v35, %v8185_v14  ;;  %v8169_v49 = vld [vmem:[%s19493_s1 + $0x1c8] sm:$0xf] }
 0x207   :  { %7055 = vmatpush.bf16.msrb.mxu2 %v11814_v51  ;;  %v12991_v8 = vld [vmem:[%s19493_s1 + $0x1e04] sm:$0xf]  ;;  %v11907_v56 = vld [vmem:[%s19493_s1 + $0x1f10] sm:$0xf0]  ;;  %v11654_v43 = vor.u32 %v12959_v59, %v11651_v5  ;;  %v8314_v51 = vor.u32 %v12126_v38, %v8313_v36  ;;  %v12090_v54 = vld [vmem:[%s19493_s1 + $0x1d4] sm:$0xf0] }
 0x208   :  { %7068 = vmatpush.bf16.msrb.mxu3 %v11942_v53  ;;  %v13023_v15 = vld [vmem:[%s19493_s1 + $0x1f04] sm:$0xf]  ;;  %v11782_v33 = vor.u32 %v12991_v8, %v11779_v11  ;;  %v8442_v53 = vor.u32 %v12158_v45, %v8441_v44  ;;  %v8297_v55 = vld [vmem:[%s19493_s1 + $0x2c8] sm:$0xf]  ;;  %v12122_v57 = vld [vmem:[%s19493_s1 + $0x2d4] sm:$0xf0]  ;;  %v8170_v3 = vor.u32 %v12090_v54, %v8169_v49 }
 0x209   :  { %7030 = vmatpush.bf16.msrb.mxu0 %v11542_v63  ;;  %v11910_v46 = vor.u32 %v13023_v15, %v11907_v56  ;;  %v8425_v58 = vld [vmem:[%s19493_s1 + $0x3c8] sm:$0xf]  ;;  %v12154_v62 = vld [vmem:[%s19493_s1 + $0x3d4] sm:$0xf0]  ;;  %v8042_v63 = vor.u32 %v12058_v39, %v8041_v52  ;;  %v8298_v50 = vor.u32 %v12122_v57, %v8297_v55  ;;  %v13062_v19 = vld [vmem:[#allocation1 + $0x2d] sm:$0xff] }
 0x20a   :  { %7043 = vmatpush.bf16.msrb.mxu1 %v11670_v4  ;;  %v8025_v4 = vld [vmem:[%s19493_s1 + $0xa8] sm:$0xf]  ;;  %v8426_v8 = vor.u32 %v12154_v62, %v8425_v58  ;;  %v12118_v15 = vld [vmem:[%s19493_s1 + $0x2b4] sm:$0xf0]  ;;  %v13063_v14 = vld [vmem:[#allocation1 + $0x3f] sm:$0xff] }
 0x20b   :  { %7056 = vmatpush.bf16.msrb.mxu2 %v11798_v60  ;;  %v12054_v60 = vld [vmem:[%s19493_s1 + $0xb4] sm:$0xf0]  ;;  %v8153_v59 = vld [vmem:[%s19493_s1 + $0x1a8] sm:$0xf] }
 0x20c   :  { %7069 = vmatpush.bf16.msrb.mxu3 %v11926_v10  ;;  %v13060_v5 = vld [vmem:[#allocation1 + $0x24] sm:$0xff]  ;;  %v12086_v10 = vld [vmem:[%s19493_s1 + $0x1b4] sm:$0xf0]  ;;  %v8026_v23 = vor.u32 %v12054_v60, %v8025_v4 }
 0x20d   :  { %7031 = vmatpush.bf16.msrb.mxu0 %v11526_v25  ;;  %v8281_v11 = vld [vmem:[%s19493_s1 + $0x2a8] sm:$0xf]  ;;  %v13061_v56 = vld [vmem:[#allocation1 + $0x36] sm:$0xff]  ;;  %v8154_v25 = vor.u32 %v12086_v10, %v8153_v59 }
 0x20e   :  { %7044 = vmatpush.bf16.msrb.mxu1 %v11654_v43  ;;  %v8409_v20 = vld [vmem:[%s19493_s1 + $0x3a8] sm:$0xf]  ;;  %v12150_v21 = vld [vmem:[%s19493_s1 + $0x3b4] sm:$0xf0]  ;;  %v8282_v35 = vor.u32 %v12118_v15, %v8281_v11  ;;  %v6838_v49 = vpop.f32.mrf.mxu1 }
 0x20f   :  { %7057 = vmatpush.bf16.msrb.mxu2 %v11782_v33  ;;  %v8009_v36 = vld [vmem:[%s19493_s1 + $0x88] sm:$0xf]  ;;  %v12050_v38 = vld [vmem:[%s19493_s1 + $0x94] sm:$0xf0]  ;;  %v8410_v33 = vor.u32 %v12150_v21, %v8409_v20 }
 0x210   :  { %7070 = vmatpush.bf16.msrb.mxu3 %v11910_v46  ;;  %7032 = vmatmul.bf16.vlgmr.msrb.gmra.mxu0 %v13060_v5  ;;  %v8137_v43 = vld [vmem:[%s19493_s1 + $0x188] sm:$0xf]  ;;  %v12082_v44 = vld [vmem:[%s19493_s1 + $0x194] sm:$0xf0]  ;;  %v8010_v39 = vor.u32 %v12050_v38, %v8009_v36 }
 0x211   :  { %7076 = vmatpush.bf16.msra.mxu0 %v8058_v26  ;;  %7045 = vmatmul.bf16.vlgmr.msrb.gmra.mxu1 %v13062_v19  ;;  %v8265_v45 = vld [vmem:[%s19493_s1 + $0x288] sm:$0xf]  ;;  %v12114_v46 = vld [vmem:[%s19493_s1 + $0x294] sm:$0xf0]  ;;  %v6825_v26 = vpop.f32.mrf.mxu0 }
 0x212   :  { %7089 = vmatpush.bf16.msra.mxu1 %v8186_v48  ;;  %7058 = vmatmul.bf16.vlgmr.msrb.gmra.mxu2 %v13061_v56  ;;  %v8393_v48 = vld [vmem:[%s19493_s1 + $0x388] sm:$0xf]  ;;  %v6826_v52 = vadd.f32 %v6825_v26, %v16266_v47  ;;  %v8266_v54 = vor.u32 %v12114_v46, %v8265_v45  ;;  %v12046_v57 = vld [vmem:[%s19493_s1 + $0x74] sm:$0xf0] }
 0x213   :  { %7102 = vmatpush.bf16.msra.mxu2 %v8314_v51  ;;  %7071 = vmatmul.bf16.vlgmr.msrb.gmra.mxu3 %v13063_v14  ;;  %v12146_v51 = vld [vmem:[%s19493_s1 + $0x394] sm:$0xf0]  ;;  %v7993_v55 = vld [vmem:[%s19493_s1 + $0x68] sm:$0xf] }
 0x214   :  { %7115 = vmatpush.bf16.msra.mxu3 %v8442_v53  ;;  %v8138_v53 = vor.u32 %v12082_v44, %v8137_v43  ;;  %v8121_v58 = vld [vmem:[%s19493_s1 + $0x168] sm:$0xf]  ;;  %v8394_v47 = vor.u32 %v12146_v51, %v8393_v48  ;;  %v6839_v62 = vadd.f32 %v6838_v49, %v6826_v52  ;;  %v12142_v60 = vld [vmem:[%s19493_s1 + $0x374] sm:$0xf0]  ;;  %v7994_v59 = vor.u32 %v12046_v57, %v7993_v55 }
 0x215   :  { %7077 = vmatpush.bf16.msra.mxu0 %v8042_v63  ;;  %v12078_v63 = vld [vmem:[%s19493_s1 + $0x174] sm:$0xf0]  ;;  %v8377_v4 = vld [vmem:[%s19493_s1 + $0x368] sm:$0xf]  ;;  %v6851_v19 = vpop.f32.mrf.mxu2 }
 0x216   :  { %7090 = vmatpush.bf16.msra.mxu1 %v8170_v3  ;;  %v8249_v3 = vld [vmem:[%s19493_s1 + $0x268] sm:$0xf]  ;;  %v8122_v5 = vor.u32 %v12078_v63, %v8121_v58  ;;  %v12042_v11 = vld [vmem:[%s19493_s1 + $0x54] sm:$0xf0]  ;;  %v8378_v56 = vor.u32 %v12142_v60, %v8377_v4 }
 0x217   :  { %7103 = vmatpush.bf16.msra.mxu2 %v8298_v50  ;;  %v12110_v50 = vld [vmem:[%s19493_s1 + $0x274] sm:$0xf0]  ;;  %v7977_v10 = vld [vmem:[%s19493_s1 + $0x48] sm:$0xf] }
 0x218   :  { %7116 = vmatpush.bf16.msra.mxu3 %v8426_v8  ;;  %v8250_v8 = vor.u32 %v12110_v50, %v8249_v3  ;;  %v8105_v15 = vld [vmem:[%s19493_s1 + $0x148] sm:$0xf]  ;;  %v12074_v20 = vld [vmem:[%s19493_s1 + $0x154] sm:$0xf0]  ;;  %v7978_v43 = vor.u32 %v12042_v11, %v7977_v10 }
 0x219   :  { %7078 = vmatpush.bf16.msra.mxu0 %v8026_v23  ;;  %v8233_v21 = vld [vmem:[%s19493_s1 + $0x248] sm:$0xf]  ;;  %v12106_v14 = vld [vmem:[%s19493_s1 + $0x254] sm:$0xf0]  ;;  %v6852_v23 = vadd.f32 %v6851_v19, %v6839_v62  ;;  %v6827_v38 = vpop.f32.mrf.mxu0  ;;  %v8106_v45 = vor.u32 %v12074_v20, %v8105_v15 }
 0x21a   :  { %7091 = vmatpush.bf16.msra.mxu1 %v8154_v25  ;;  %v6864_v25 = vpop.f32.mrf.mxu3  ;;  %v12138_v36 = vld [vmem:[%s19493_s1 + $0x354] sm:$0xf0]  ;;  %v8234_v46 = vor.u32 %v12106_v14, %v8233_v21  ;;  %v7961_v26 = vld [vmem:[%s19493_s1 + $0x28] sm:$0xf] }
 0x21b   :  { %7104 = vmatpush.bf16.msra.mxu2 %v8282_v35  ;;  %v8361_v35 = vld [vmem:[%s19493_s1 + $0x348] sm:$0xf]  ;;  %v16461_v44 = vadd.f32 %v6864_v25, %v6852_v23  ;;  %v12038_v48 = vld [vmem:[%s19493_s1 + $0x34] sm:$0xf0] }
 0x21c   :  { %7117 = vmatpush.bf16.msra.mxu3 %v8410_v33  ;;  %v6840_v33 = vpop.f32.mrf.mxu1  ;;  %v8089_v51 = vld [vmem:[%s19493_s1 + $0x128] sm:$0xf]  ;;  %v8362_v52 = vor.u32 %v12138_v36, %v8361_v35  ;;  %v12134_v55 = vld [vmem:[%s19493_s1 + $0x334] sm:$0xf0]  ;;  %v7962_v57 = vor.u32 %v12038_v48, %v7961_v26 }
 0x21d   :  { %7079 = vmatpush.bf16.msra.mxu0 %v8010_v39  ;;  %v12070_v39 = vld [vmem:[%s19493_s1 + $0x134] sm:$0xf0]  ;;  %v8217_v49 = vld [vmem:[%s19493_s1 + $0x228] sm:$0xf]  ;;  %v6853_v10 = vpop.f32.mrf.mxu2 }
 0x21e   :  { %7092 = vmatpush.bf16.msra.mxu1 %v8138_v53  ;;  %v12102_v53 = vld [vmem:[%s19493_s1 + $0x234] sm:$0xf0]  ;;  %v7945_v58 = vld [vmem:[%s19493_s1 + $0x8] sm:$0xf]  ;;  %v8090_v62 = vor.u32 %v12070_v39, %v8089_v51 }
 0x21f   :  { %7105 = vmatpush.bf16.msra.mxu2 %v8266_v54  ;;  %v8345_v54 = vld [vmem:[%s19493_s1 + $0x328] sm:$0xf]  ;;  %v8218_v63 = vor.u32 %v12102_v53, %v8217_v49  ;;  %v12066_v50 = vld [vmem:[%s19493_s1 + $0x114] sm:$0xf0] }
 0x220   :  { %7118 = vmatpush.bf16.msra.mxu3 %v8394_v47  ;;  %v12034_v47 = vld [vmem:[%s19493_s1 + $0x14] sm:$0xf0]  ;;  %v8073_v3 = vld [vmem:[%s19493_s1 + $0x108] sm:$0xf]  ;;  %v8346_v60 = vor.u32 %v12134_v55, %v8345_v54 }
 0x221   :  { %7080 = vmatpush.bf16.msra.mxu0 %v7994_v59  ;;  %v8201_v4 = vld [vmem:[%s19493_s1 + $0x208] sm:$0xf]  ;;  %v12098_v59 = vld [vmem:[%s19493_s1 + $0x214] sm:$0xf0]  ;;  %v7946_v20 = vor.u32 %v12034_v47, %v7945_v58  ;;  %v8074_v25 = vor.u32 %v12066_v50, %v8073_v3 }
 0x222   :  { %7093 = vmatpush.bf16.msra.mxu1 %v8122_v5  ;;  %v8329_v5 = vld [vmem:[%s19493_s1 + $0x308] sm:$0xf]  ;;  %v12190_v15 = vld [vmem:[%s19493_s1 + $0x4f4] sm:$0xf0]  ;;  %v6866_v19 = vpop.f32.mrf.mxu3  ;;  %v8202_v35 = vor.u32 %v12098_v59, %v8201_v4 }
 0x223   :  { %7106 = vmatpush.bf16.msra.mxu2 %v8250_v8  ;;  %v12130_v8 = vld [vmem:[%s19493_s1 + $0x314] sm:$0xf0]  ;;  %v8569_v11 = vld [vmem:[%s19493_s1 + $0x4e8] sm:$0xf] }
 0x224   :  { %7119 = vmatpush.bf16.msra.mxu3 %v8378_v56  ;;  %v8697_v56 = vld [vmem:[%s19493_s1 + $0x5e8] sm:$0xf]  ;;  %v12222_v21 = vld [vmem:[%s19493_s1 + $0x5f4] sm:$0xf0]  ;;  %v8570_v33 = vor.u32 %v12190_v15, %v8569_v11 }
 0x225   :  { %7081 = vmatpush.bf16.msra.mxu0 %v7978_v43  ;;  %v8825_v14 = vld [vmem:[%s19493_s1 + $0x6e8] sm:$0xf]  ;;  %v12254_v23 = vld [vmem:[%s19493_s1 + $0x6f4] sm:$0xf0]  ;;  %v8330_v43 = vor.u32 %v12130_v8, %v8329_v5 }
 0x226   :  { %7094 = vmatpush.bf16.msra.mxu1 %v8106_v45  ;;  %v8953_v36 = vld [vmem:[%s19493_s1 + $0x7e8] sm:$0xf]  ;;  %v12286_v38 = vld [vmem:[%s19493_s1 + $0x7f4] sm:$0xf0]  ;;  %v8698_v45 = vor.u32 %v12222_v21, %v8697_v56 }
 0x227   :  { %7107 = vmatpush.bf16.msra.mxu2 %v8234_v46  ;;  %v8826_v46 = vor.u32 %v12254_v23, %v8825_v14  ;;  %v8553_v26 = vld [vmem:[%s19493_s1 + $0x4c8] sm:$0xf]  ;;  %v12186_v48 = vld [vmem:[%s19493_s1 + $0x4d4] sm:$0xf0] }
 0x228   :  { %7120 = vmatpush.bf16.msra.mxu3 %v8362_v52  ;;  %v8681_v51 = vld [vmem:[%s19493_s1 + $0x5c8] sm:$0xf]  ;;  %v8954_v52 = vor.u32 %v12286_v38, %v8953_v36  ;;  %v12218_v39 = vld [vmem:[%s19493_s1 + $0x5d4] sm:$0xf0] }
 0x229   :  { %7082 = vmatpush.bf16.msra.mxu0 %v7962_v57  ;;  %v8809_v49 = vld [vmem:[%s19493_s1 + $0x6c8] sm:$0xf]  ;;  %v12250_v53 = vld [vmem:[%s19493_s1 + $0x6d4] sm:$0xf0]  ;;  %v8554_v57 = vor.u32 %v12186_v48, %v8553_v26  ;;  %v8682_v58 = vor.u32 %v12218_v39, %v8681_v51 }
 0x22a   :  { %7095 = vmatpush.bf16.msra.mxu1 %v8090_v62  ;;  %v8937_v54 = vld [vmem:[%s19493_s1 + $0x7c8] sm:$0xf]  ;;  %v12282_v55 = vld [vmem:[%s19493_s1 + $0x7d4] sm:$0xf0]  ;;  %v8810_v47 = vor.u32 %v12250_v53, %v8809_v49 }
 0x22b   :  { %7108 = vmatpush.bf16.msra.mxu2 %v8218_v63  ;;  %v8537_v62 = vld [vmem:[%s19493_s1 + $0x4a8] sm:$0xf]  ;;  %v12182_v63 = vld [vmem:[%s19493_s1 + $0x4b4] sm:$0xf0]  ;;  %v8938_v50 = vor.u32 %v12282_v55, %v8937_v54 }
 0x22c   :  { %7121 = vmatpush.bf16.msra.mxu3 %v8346_v60  ;;  %v8665_v3 = vld [vmem:[%s19493_s1 + $0x5a8] sm:$0xf]  ;;  %v12214_v4 = vld [vmem:[%s19493_s1 + $0x5b4] sm:$0xf0]  ;;  %v8538_v10 = vor.u32 %v12182_v63, %v8537_v62 }
 0x22d   :  { %7083 = vmatpush.bf16.msra.mxu0 %v7946_v20  ;;  %v8793_v60 = vld [vmem:[%s19493_s1 + $0x6a8] sm:$0xf]  ;;  %v12246_v59 = vld [vmem:[%s19493_s1 + $0x6b4] sm:$0xf0]  ;;  %v8666_v11 = vor.u32 %v12214_v4, %v8665_v3 }
 0x22e   :  { %7096 = vmatpush.bf16.msra.mxu1 %v8074_v25  ;;  %v8921_v5 = vld [vmem:[%s19493_s1 + $0x7a8] sm:$0xf]  ;;  %v12278_v8 = vld [vmem:[%s19493_s1 + $0x7b4] sm:$0xf0]  ;;  %v8794_v15 = vor.u32 %v12246_v59, %v8793_v60 }
 0x22f   :  { %7109 = vmatpush.bf16.msra.mxu2 %v8202_v35  ;;  %v8521_v56 = vld [vmem:[%s19493_s1 + $0x488] sm:$0xf]  ;;  %v12178_v19 = vld [vmem:[%s19493_s1 + $0x494] sm:$0xf0]  ;;  %v8922_v21 = vor.u32 %v12278_v8, %v8921_v5  ;;  %v6877_v35 = vpop.f32.mrf.mxu0 }
 0x230   :  { %7122 = vmatpush.bf16.msra.mxu3 %v8330_v43  ;;  %7084 = vmatmul.bf16.vlgmr.msra.gmra.mxu0 %v13422_v28  ;;  %v8649_v20 = vld [vmem:[%s19493_s1 + $0x588] sm:$0xf]  ;;  %v12210_v14 = vld [vmem:[%s19493_s1 + $0x594] sm:$0xf0]  ;;  %v6878_v43 = vadd.f32 %v6877_v35, %v16461_v44 }
 0x231   :  { %7128 = vmatpush.bf16.msrb.mxu0 %v8570_v33  ;;  %7097 = vmatmul.bf16.vlgmr.msra.gmra.mxu1 %v13432_v34  ;;  %v8777_v23 = vld [vmem:[%s19493_s1 + $0x688] sm:$0xf]  ;;  %v12242_v25 = vld [vmem:[%s19493_s1 + $0x694] sm:$0xf0]  ;;  %v8522_v33 = vor.u32 %v12178_v19, %v8521_v56 }
 0x232   :  { %7141 = vmatpush.bf16.msrb.mxu1 %v8698_v45  ;;  %7110 = vmatmul.bf16.vlgmr.msra.gmra.mxu2 %v13420_v27  ;;  %v8905_v36 = vld [vmem:[%s19493_s1 + $0x788] sm:$0xf]  ;;  %v12274_v38 = vld [vmem:[%s19493_s1 + $0x794] sm:$0xf0]  ;;  %v6890_v45 = vpop.f32.mrf.mxu1  ;;  %v8778_v26 = vor.u32 %v12242_v25, %v8777_v23 }
 0x233   :  { %7154 = vmatpush.bf16.msrb.mxu2 %v8826_v46  ;;  %7123 = vmatmul.bf16.vlgmr.msra.gmra.mxu3 %v13424_v29  ;;  %v8650_v46 = vor.u32 %v12210_v14, %v8649_v20  ;;  %v8505_v48 = vld [vmem:[%s19493_s1 + $0x468] sm:$0xf]  ;;  %v12174_v51 = vld [vmem:[%s19493_s1 + $0x474] sm:$0xf0]  ;;  %v8906_v44 = vor.u32 %v12274_v38, %v8905_v36  ;;  %v6891_v39 = vadd.f32 %v6890_v45, %v6878_v43 }
 0x234   :  { %7167 = vmatpush.bf16.msrb.mxu3 %v8954_v52  ;;  %v8633_v52 = vld [vmem:[%s19493_s1 + $0x568] sm:$0xf]  ;;  %v12206_v49 = vld [vmem:[%s19493_s1 + $0x574] sm:$0xf0] }
 0x235   :  { %7129 = vmatpush.bf16.msrb.mxu0 %v8554_v57  ;;  %v8761_v53 = vld [vmem:[%s19493_s1 + $0x668] sm:$0xf]  ;;  %v12238_v54 = vld [vmem:[%s19493_s1 + $0x674] sm:$0xf0]  ;;  %v6903_v60 = vpop.f32.mrf.mxu2 }
 0x236   :  { %7142 = vmatpush.bf16.msrb.mxu1 %v8682_v58  ;;  %v8889_v55 = vld [vmem:[%s19493_s1 + $0x768] sm:$0xf]  ;;  %v12270_v57 = vld [vmem:[%s19493_s1 + $0x774] sm:$0xf0]  ;;  %v8506_v58 = vor.u32 %v12174_v51, %v8505_v48  ;;  %v8762_v62 = vor.u32 %v12238_v54, %v8761_v53 }
 0x237   :  { %7155 = vmatpush.bf16.msrb.mxu2 %v8810_v47  ;;  %v8634_v47 = vor.u32 %v12206_v49, %v8633_v52  ;;  %v8489_v63 = vld [vmem:[%s19493_s1 + $0x448] sm:$0xf]  ;;  %v12170_v3 = vld [vmem:[%s19493_s1 + $0x454] sm:$0xf0]  ;;  %v8890_v4 = vor.u32 %v12270_v57, %v8889_v55  ;;  %v6879_v19 = vpop.f32.mrf.mxu0 }
 0x238   :  { %7168 = vmatpush.bf16.msrb.mxu3 %v8938_v50  ;;  %v8617_v50 = vld [vmem:[%s19493_s1 + $0x548] sm:$0xf]  ;;  %v12202_v59 = vld [vmem:[%s19493_s1 + $0x554] sm:$0xf0]  ;;  %v8490_v20 = vor.u32 %v12170_v3, %v8489_v63 }
 0x239   :  { %7130 = vmatpush.bf16.msrb.mxu0 %v8538_v10  ;;  %v8745_v5 = vld [vmem:[%s19493_s1 + $0x648] sm:$0xf]  ;;  %v12234_v8 = vld [vmem:[%s19493_s1 + $0x654] sm:$0xf0]  ;;  %v6904_v10 = vadd.f32 %v6903_v60, %v6891_v39  ;;  %v8618_v23 = vor.u32 %v12202_v59, %v8617_v50 }
 0x23a   :  { %7143 = vmatpush.bf16.msrb.mxu1 %v8666_v11  ;;  %v6916_v11 = vpop.f32.mrf.mxu3  ;;  %v12266_v56 = vld [vmem:[%s19493_s1 + $0x754] sm:$0xf0]  ;;  %v8746_v25 = vor.u32 %v12234_v8, %v8745_v5  ;;  %v8473_v35 = vld [vmem:[%s19493_s1 + $0x428] sm:$0xf] }
 0x23b   :  { %7156 = vmatpush.bf16.msrb.mxu2 %v8794_v15  ;;  %v8873_v15 = vld [vmem:[%s19493_s1 + $0x748] sm:$0xf]  ;;  %v16660_v14 = vadd.f32 %v6916_v11, %v6904_v10  ;;  %v12166_v36 = vld [vmem:[%s19493_s1 + $0x434] sm:$0xf0] }
 0x23c   :  { %7169 = vmatpush.bf16.msrb.mxu3 %v8922_v21  ;;  %v6892_v21 = vpop.f32.mrf.mxu1  ;;  %v8601_v38 = vld [vmem:[%s19493_s1 + $0x528] sm:$0xf]  ;;  %v8874_v43 = vor.u32 %v12266_v56, %v8873_v15  ;;  %v12262_v48 = vld [vmem:[%s19493_s1 + $0x734] sm:$0xf0]  ;;  %v8474_v51 = vor.u32 %v12166_v36, %v8473_v35 }
 0x23d   :  { %7131 = vmatpush.bf16.msrb.mxu0 %v8522_v33  ;;  %v12198_v33 = vld [vmem:[%s19493_s1 + $0x534] sm:$0xf0]  ;;  %v8729_v45 = vld [vmem:[%s19493_s1 + $0x628] sm:$0xf]  ;;  %v6905_v63 = vpop.f32.mrf.mxu2 }
 0x23e   :  { %7144 = vmatpush.bf16.msrb.mxu1 %v8650_v46  ;;  %v12230_v46 = vld [vmem:[%s19493_s1 + $0x634] sm:$0xf0]  ;;  %v8457_v52 = vld [vmem:[%s19493_s1 + $0x408] sm:$0xf]  ;;  %v8602_v39 = vor.u32 %v12198_v33, %v8601_v38 }
 0x23f   :  { %7157 = vmatpush.bf16.msrb.mxu2 %v8778_v26  ;;  %v8857_v26 = vld [vmem:[%s19493_s1 + $0x728] sm:$0xf]  ;;  %v8730_v49 = vor.u32 %v12230_v46, %v8729_v45  ;;  %v12194_v54 = vld [vmem:[%s19493_s1 + $0x514] sm:$0xf0] }
 0x240   :  { %7170 = vmatpush.bf16.msrb.mxu3 %v8906_v44  ;;  %v12162_v44 = vld [vmem:[%s19493_s1 + $0x414] sm:$0xf0]  ;;  %v8585_v53 = vld [vmem:[%s19493_s1 + $0x508] sm:$0xf]  ;;  %v8858_v57 = vor.u32 %v12262_v48, %v8857_v26 }
 0x241   :  { %7132 = vmatpush.bf16.msrb.mxu0 %v8506_v58  ;;  %v8713_v55 = vld [vmem:[%s19493_s1 + $0x608] sm:$0xf]  ;;  %v12226_v58 = vld [vmem:[%s19493_s1 + $0x614] sm:$0xf0]  ;;  %v8458_v59 = vor.u32 %v12162_v44, %v8457_v52  ;;  %v8586_v11 = vor.u32 %v12194_v54, %v8585_v53 }
 0x242   :  { %7145 = vmatpush.bf16.msrb.mxu1 %v8634_v47  ;;  %v8841_v47 = vld [vmem:[%s19493_s1 + $0x708] sm:$0xf]  ;;  %v12318_v50 = vld [vmem:[%s19493_s1 + $0x8f4] sm:$0xf0]  ;;  %v6918_v60 = vpop.f32.mrf.mxu3  ;;  %v8714_v15 = vor.u32 %v12226_v58, %v8713_v55 }
 0x243   :  { %7158 = vmatpush.bf16.msrb.mxu2 %v8762_v62  ;;  %v12258_v62 = vld [vmem:[%s19493_s1 + $0x714] sm:$0xf0]  ;;  %v9081_v3 = vld [vmem:[%s19493_s1 + $0x8e8] sm:$0xf] }
 0x244   :  { %7171 = vmatpush.bf16.msrb.mxu3 %v8890_v4  ;;  %v9209_v4 = vld [vmem:[%s19493_s1 + $0x9e8] sm:$0xf]  ;;  %v12350_v5 = vld [vmem:[%s19493_s1 + $0x9f4] sm:$0xf0]  ;;  %v9082_v21 = vor.u32 %v12318_v50, %v9081_v3 }
 0x245   :  { %7133 = vmatpush.bf16.msrb.mxu0 %v8490_v20  ;;  %v9337_v8 = vld [vmem:[%s19493_s1 + $0xae8] sm:$0xf]  ;;  %v12382_v10 = vld [vmem:[%s19493_s1 + $0xaf4] sm:$0xf0]  ;;  %v8842_v20 = vor.u32 %v12258_v62, %v8841_v47 }
 0x246   :  { %7146 = vmatpush.bf16.msrb.mxu1 %v8618_v23  ;;  %v9465_v56 = vld [vmem:[%s19493_s1 + $0xbe8] sm:$0xf]  ;;  %v12414_v19 = vld [vmem:[%s19493_s1 + $0xbf4] sm:$0xf0]  ;;  %v9210_v23 = vor.u32 %v12350_v5, %v9209_v4 }
 0x247   :  { %7159 = vmatpush.bf16.msrb.mxu2 %v8746_v25  ;;  %v9338_v25 = vor.u32 %v12382_v10, %v9337_v8  ;;  %v9065_v35 = vld [vmem:[%s19493_s1 + $0x8c8] sm:$0xf]  ;;  %v12314_v36 = vld [vmem:[%s19493_s1 + $0x8d4] sm:$0xf0] }
 0x248   :  { %7172 = vmatpush.bf16.msrb.mxu3 %v8874_v43  ;;  %v9193_v38 = vld [vmem:[%s19493_s1 + $0x9c8] sm:$0xf]  ;;  %v9466_v43 = vor.u32 %v12414_v19, %v9465_v56  ;;  %v12346_v33 = vld [vmem:[%s19493_s1 + $0x9d4] sm:$0xf0] }
 0x249   :  { %7134 = vmatpush.bf16.msrb.mxu0 %v8474_v51  ;;  %v9321_v45 = vld [vmem:[%s19493_s1 + $0xac8] sm:$0xf]  ;;  %v12378_v46 = vld [vmem:[%s19493_s1 + $0xad4] sm:$0xf0]  ;;  %v9066_v51 = vor.u32 %v12314_v36, %v9065_v35  ;;  %v9194_v52 = vor.u32 %v12346_v33, %v9193_v38 }
 0x24a   :  { %7147 = vmatpush.bf16.msrb.mxu1 %v8602_v39  ;;  %v9449_v26 = vld [vmem:[%s19493_s1 + $0xbc8] sm:$0xf]  ;;  %v12410_v48 = vld [vmem:[%s19493_s1 + $0xbd4] sm:$0xf0]  ;;  %v9322_v44 = vor.u32 %v12378_v46, %v9321_v45 }
 0x24b   :  { %7160 = vmatpush.bf16.msrb.mxu2 %v8730_v49  ;;  %v9049_v39 = vld [vmem:[%s19493_s1 + $0x8a8] sm:$0xf]  ;;  %v12310_v49 = vld [vmem:[%s19493_s1 + $0x8b4] sm:$0xf0]  ;;  %v9450_v54 = vor.u32 %v12410_v48, %v9449_v26 }
 0x24c   :  { %7173 = vmatpush.bf16.msrb.mxu3 %v8858_v57  ;;  %v9177_v53 = vld [vmem:[%s19493_s1 + $0x9a8] sm:$0xf]  ;;  %v12342_v55 = vld [vmem:[%s19493_s1 + $0x9b4] sm:$0xf0]  ;;  %v9050_v63 = vor.u32 %v12310_v49, %v9049_v39 }
 0x24d   :  { %7135 = vmatpush.bf16.msrb.mxu0 %v8458_v59  ;;  %v9305_v57 = vld [vmem:[%s19493_s1 + $0xaa8] sm:$0xf]  ;;  %v12374_v58 = vld [vmem:[%s19493_s1 + $0xab4] sm:$0xf0]  ;;  %v9178_v3 = vor.u32 %v12342_v55, %v9177_v53 }
 0x24e   :  { %7148 = vmatpush.bf16.msrb.mxu1 %v8586_v11  ;;  %v9433_v47 = vld [vmem:[%s19493_s1 + $0xba8] sm:$0xf]  ;;  %v12406_v62 = vld [vmem:[%s19493_s1 + $0xbb4] sm:$0xf0]  ;;  %v9306_v50 = vor.u32 %v12374_v58, %v9305_v57 }
 0x24f   :  { %7161 = vmatpush.bf16.msrb.mxu2 %v8714_v15  ;;  %v9033_v4 = vld [vmem:[%s19493_s1 + $0x888] sm:$0xf]  ;;  %v12306_v60 = vld [vmem:[%s19493_s1 + $0x894] sm:$0xf0]  ;;  %v9434_v5 = vor.u32 %v12406_v62, %v9433_v47  ;;  %v6929_v15 = vpop.f32.mrf.mxu0 }
 0x250   :  { %7174 = vmatpush.bf16.msrb.mxu3 %v8842_v20  ;;  %7136 = vmatmul.bf16.vlgmr.msrb.gmra.mxu0 %v13500_v0  ;;  %v9161_v59 = vld [vmem:[%s19493_s1 + $0x988] sm:$0xf]  ;;  %v12338_v8 = vld [vmem:[%s19493_s1 + $0x994] sm:$0xf0]  ;;  %v6930_v20 = vadd.f32 %v6929_v15, %v16660_v14 }
 0x251   :  { %7180 = vmatpush.bf16.msra.mxu0 %v9082_v21  ;;  %7149 = vmatmul.bf16.vlgmr.msrb.gmra.mxu1 %v13504_v2  ;;  %v9289_v10 = vld [vmem:[%s19493_s1 + $0xa88] sm:$0xf]  ;;  %v12370_v11 = vld [vmem:[%s19493_s1 + $0xa94] sm:$0xf0]  ;;  %v9034_v21 = vor.u32 %v12306_v60, %v9033_v4 }
 0x252   :  { %7193 = vmatpush.bf16.msra.mxu1 %v9210_v23  ;;  %7162 = vmatmul.bf16.vlgmr.msrb.gmra.mxu2 %v13498_v61  ;;  %v9417_v56 = vld [vmem:[%s19493_s1 + $0xb88] sm:$0xf]  ;;  %v12402_v19 = vld [vmem:[%s19493_s1 + $0xb94] sm:$0xf0]  ;;  %v6942_v23 = vpop.f32.mrf.mxu1  ;;  %v9290_v35 = vor.u32 %v12370_v11, %v9289_v10 }
 0x253   :  { %7206 = vmatpush.bf16.msra.mxu2 %v9338_v25  ;;  %7175 = vmatmul.bf16.vlgmr.msrb.gmra.mxu3 %v13502_v1  ;;  %v9162_v25 = vor.u32 %v12338_v8, %v9161_v59  ;;  %v9017_v36 = vld [vmem:[%s19493_s1 + $0x868] sm:$0xf]  ;;  %v12302_v38 = vld [vmem:[%s19493_s1 + $0x874] sm:$0xf0]  ;;  %v9418_v14 = vor.u32 %v12402_v19, %v9417_v56  ;;  %v6943_v33 = vadd.f32 %v6942_v23, %v6930_v20 }
 0x254   :  { %7219 = vmatpush.bf16.msra.mxu3 %v9466_v43  ;;  %v9145_v43 = vld [vmem:[%s19493_s1 + $0x968] sm:$0xf]  ;;  %v12334_v45 = vld [vmem:[%s19493_s1 + $0x974] sm:$0xf0] }
 0x255   :  { %7181 = vmatpush.bf16.msra.mxu0 %v9066_v51  ;;  %v9273_v46 = vld [vmem:[%s19493_s1 + $0xa68] sm:$0xf]  ;;  %v12366_v26 = vld [vmem:[%s19493_s1 + $0xa74] sm:$0xf0]  ;;  %v6955_v57 = vpop.f32.mrf.mxu2 }
 0x256   :  { %7194 = vmatpush.bf16.msra.mxu1 %v9194_v52  ;;  %v9401_v48 = vld [vmem:[%s19493_s1 + $0xb68] sm:$0xf]  ;;  %v12398_v51 = vld [vmem:[%s19493_s1 + $0xb74] sm:$0xf0]  ;;  %v9018_v52 = vor.u32 %v12302_v38, %v9017_v36  ;;  %v9274_v39 = vor.u32 %v12366_v26, %v9273_v46 }
 0x257   :  { %7207 = vmatpush.bf16.msra.mxu2 %v9322_v44  ;;  %v9146_v44 = vor.u32 %v12334_v45, %v9145_v43  ;;  %v9001_v49 = vld [vmem:[%s19493_s1 + $0x848] sm:$0xf]  ;;  %v12298_v53 = vld [vmem:[%s19493_s1 + $0x854] sm:$0xf0]  ;;  %v9402_v55 = vor.u32 %v12398_v51, %v9401_v48  ;;  %v6931_v60 = vpop.f32.mrf.mxu0 }
 0x258   :  { %7220 = vmatpush.bf16.msra.mxu3 %v9450_v54  ;;  %v9129_v54 = vld [vmem:[%s19493_s1 + $0x948] sm:$0xf]  ;;  %v12330_v58 = vld [vmem:[%s19493_s1 + $0x954] sm:$0xf0]  ;;  %v9002_v59 = vor.u32 %v12298_v53, %v9001_v49 }
 0x259   :  { %7182 = vmatpush.bf16.msra.mxu0 %v9050_v63  ;;  %v9257_v47 = vld [vmem:[%s19493_s1 + $0xa48] sm:$0xf]  ;;  %v12362_v62 = vld [vmem:[%s19493_s1 + $0xa54] sm:$0xf0]  ;;  %v6956_v63 = vadd.f32 %v6955_v57, %v6943_v33  ;;  %v9130_v10 = vor.u32 %v12330_v58, %v9129_v54 }
 0x25a   :  { %7195 = vmatpush.bf16.msra.mxu1 %v9178_v3  ;;  %v6968_v3 = vpop.f32.mrf.mxu3  ;;  %v12394_v4 = vld [vmem:[%s19493_s1 + $0xb54] sm:$0xf0]  ;;  %v9258_v11 = vor.u32 %v12362_v62, %v9257_v47  ;;  %v8985_v15 = vld [vmem:[%s19493_s1 + $0x828] sm:$0xf] }
 0x25b   :  { %7208 = vmatpush.bf16.msra.mxu2 %v9306_v50  ;;  %v9385_v50 = vld [vmem:[%s19493_s1 + $0xb48] sm:$0xf]  ;;  %v16859_v8 = vadd.f32 %v6968_v3, %v6956_v63  ;;  %v12294_v56 = vld [vmem:[%s19493_s1 + $0x834] sm:$0xf0] }
 0x25c   :  { %7221 = vmatpush.bf16.msra.mxu3 %v9434_v5  ;;  %v6944_v5 = vpop.f32.mrf.mxu1  ;;  %v9113_v19 = vld [vmem:[%s19493_s1 + $0x928] sm:$0xf]  ;;  %v9386_v20 = vor.u32 %v12394_v4, %v9385_v50  ;;  %v12390_v36 = vld [vmem:[%s19493_s1 + $0xb34] sm:$0xf0]  ;;  %v8986_v38 = vor.u32 %v12294_v56, %v8985_v15 }
 0x25d   :  { %7183 = vmatpush.bf16.msra.mxu0 %v9034_v21  ;;  %v12326_v21 = vld [vmem:[%s19493_s1 + $0x934] sm:$0xf0]  ;;  %v9241_v23 = vld [vmem:[%s19493_s1 + $0xa28] sm:$0xf]  ;;  %v6957_v49 = vpop.f32.mrf.mxu2 }
 0x25e   :  { %7196 = vmatpush.bf16.msra.mxu1 %v9162_v25  ;;  %v12358_v25 = vld [vmem:[%s19493_s1 + $0xa34] sm:$0xf0]  ;;  %v8969_v43 = vld [vmem:[%s19493_s1 + $0x808] sm:$0xf]  ;;  %v9114_v33 = vor.u32 %v12326_v21, %v9113_v19 }
 0x25f   :  { %7209 = vmatpush.bf16.msra.mxu2 %v9290_v35  ;;  %v9369_v35 = vld [vmem:[%s19493_s1 + $0xb28] sm:$0xf]  ;;  %v9242_v45 = vor.u32 %v12358_v25, %v9241_v23  ;;  %v12322_v26 = vld [vmem:[%s19493_s1 + $0x914] sm:$0xf0] }
 0x260   :  { %7222 = vmatpush.bf16.msra.mxu3 %v9418_v14  ;;  %v12290_v14 = vld [vmem:[%s19493_s1 + $0x814] sm:$0xf0]  ;;  %v9097_v46 = vld [vmem:[%s19493_s1 + $0x908] sm:$0xf]  ;;  %v9370_v51 = vor.u32 %v12390_v36, %v9369_v35 }
 0x261   :  { %7184 = vmatpush.bf16.msra.mxu0 %v9018_v52  ;;  %v9225_v48 = vld [vmem:[%s19493_s1 + $0xa08] sm:$0xf]  ;;  %v12354_v52 = vld [vmem:[%s19493_s1 + $0xa14] sm:$0xf0]  ;;  %v8970_v58 = vor.u32 %v12290_v14, %v8969_v43  ;;  %v9098_v3 = vor.u32 %v12322_v26, %v9097_v46 }
 0x262   :  { %7197 = vmatpush.bf16.msra.mxu1 %v9146_v44  ;;  %v9353_v44 = vld [vmem:[%s19493_s1 + $0xb08] sm:$0xf]  ;;  %v12446_v54 = vld [vmem:[%s19493_s1 + $0xcf4] sm:$0xf0]  ;;  %v6970_v57 = vpop.f32.mrf.mxu3  ;;  %v9226_v50 = vor.u32 %v12354_v52, %v9225_v48 }
 0x263   :  { %7210 = vmatpush.bf16.msra.mxu2 %v9274_v39  ;;  %v12386_v39 = vld [vmem:[%s19493_s1 + $0xb14] sm:$0xf0]  ;;  %v9593_v53 = vld [vmem:[%s19493_s1 + $0xce8] sm:$0xf] }
 0x264   :  { %7223 = vmatpush.bf16.msra.mxu3 %v9402_v55  ;;  %v9721_v55 = vld [vmem:[%s19493_s1 + $0xde8] sm:$0xf]  ;;  %v12478_v47 = vld [vmem:[%s19493_s1 + $0xdf4] sm:$0xf0]  ;;  %v9594_v5 = vor.u32 %v12446_v54, %v9593_v53 }
 0x265   :  { %7185 = vmatpush.bf16.msra.mxu0 %v9002_v59  ;;  %v9849_v62 = vld [vmem:[%s19493_s1 + $0xee8] sm:$0xf]  ;;  %v12510_v63 = vld [vmem:[%s19493_s1 + $0xef4] sm:$0xf0]  ;;  %v9354_v59 = vor.u32 %v12386_v39, %v9353_v44 }
 0x266   :  { %7198 = vmatpush.bf16.msra.mxu1 %v9130_v10  ;;  %v9977_v4 = vld [vmem:[%s19493_s1 + $0xfe8] sm:$0xf]  ;;  %v12542_v60 = vld [vmem:[%s19493_s1 + $0xff4] sm:$0xf0]  ;;  %v9722_v10 = vor.u32 %v12478_v47, %v9721_v55 }
 0x267   :  { %7211 = vmatpush.bf16.msra.mxu2 %v9258_v11  ;;  %v9850_v11 = vor.u32 %v12510_v63, %v9849_v62  ;;  %v9577_v15 = vld [vmem:[%s19493_s1 + $0xcc8] sm:$0xf]  ;;  %v12442_v56 = vld [vmem:[%s19493_s1 + $0xcd4] sm:$0xf0] }
 0x268   :  { %7224 = vmatpush.bf16.msra.mxu3 %v9386_v20  ;;  %v9705_v19 = vld [vmem:[%s19493_s1 + $0xdc8] sm:$0xf]  ;;  %v9978_v20 = vor.u32 %v12542_v60, %v9977_v4  ;;  %v12474_v21 = vld [vmem:[%s19493_s1 + $0xdd4] sm:$0xf0] }
 0x269   :  { %7186 = vmatpush.bf16.msra.mxu0 %v8986_v38  ;;  %v9833_v23 = vld [vmem:[%s19493_s1 + $0xec8] sm:$0xf]  ;;  %v12506_v25 = vld [vmem:[%s19493_s1 + $0xed4] sm:$0xf0]  ;;  %v9578_v38 = vor.u32 %v12442_v56, %v9577_v15  ;;  %v9706_v43 = vor.u32 %v12474_v21, %v9705_v19 }
 0x26a   :  { %7199 = vmatpush.bf16.msra.mxu1 %v9114_v33  ;;  %v9961_v35 = vld [vmem:[%s19493_s1 + $0xfc8] sm:$0xf]  ;;  %v12538_v36 = vld [vmem:[%s19493_s1 + $0xfd4] sm:$0xf0]  ;;  %v9834_v14 = vor.u32 %v12506_v25, %v9833_v23 }
 0x26b   :  { %7212 = vmatpush.bf16.msra.mxu2 %v9242_v45  ;;  %v9561_v33 = vld [vmem:[%s19493_s1 + $0xca8] sm:$0xf]  ;;  %v12438_v45 = vld [vmem:[%s19493_s1 + $0xcb4] sm:$0xf0]  ;;  %v9962_v26 = vor.u32 %v12538_v36, %v9961_v35 }
 0x26c   :  { %7225 = vmatpush.bf16.msra.mxu3 %v9370_v51  ;;  %v9689_v46 = vld [vmem:[%s19493_s1 + $0xda8] sm:$0xf]  ;;  %v12470_v48 = vld [vmem:[%s19493_s1 + $0xdb4] sm:$0xf0]  ;;  %v9562_v49 = vor.u32 %v12438_v45, %v9561_v33 }
 0x26d   :  { %7187 = vmatpush.bf16.msra.mxu0 %v8970_v58  ;;  %v9817_v51 = vld [vmem:[%s19493_s1 + $0xea8] sm:$0xf]  ;;  %v12502_v52 = vld [vmem:[%s19493_s1 + $0xeb4] sm:$0xf0]  ;;  %v9690_v53 = vor.u32 %v12470_v48, %v9689_v46 }
 0x26e   :  { %7200 = vmatpush.bf16.msra.mxu1 %v9098_v3  ;;  %v9945_v44 = vld [vmem:[%s19493_s1 + $0xfa8] sm:$0xf]  ;;  %v12534_v39 = vld [vmem:[%s19493_s1 + $0xfb4] sm:$0xf0]  ;;  %v9818_v54 = vor.u32 %v12502_v52, %v9817_v51 }
 0x26f   :  { %7213 = vmatpush.bf16.msra.mxu2 %v9226_v50  ;;  %v9545_v55 = vld [vmem:[%s19493_s1 + $0xc88] sm:$0xf]  ;;  %v12434_v57 = vld [vmem:[%s19493_s1 + $0xc94] sm:$0xf0]  ;;  %v9946_v47 = vor.u32 %v12534_v39, %v9945_v44 }
 0x270   :  { %7226 = vmatpush.bf16.msra.mxu3 %v9354_v59  ;;  %7188 = vmatmul.bf16.vlgmr.msra.gmra.mxu0 %v13738_v7  ;;  %v9673_v58 = vld [vmem:[%s19493_s1 + $0xd88] sm:$0xf]  ;;  %v12466_v62 = vld [vmem:[%s19493_s1 + $0xd94] sm:$0xf0]  ;;  %v6981_v50 = vpop.f32.mrf.mxu0 }
 0x271   :  { %7232 = vmatpush.bf16.msrb.mxu0 %v9594_v5  ;;  %7201 = vmatmul.bf16.vlgmr.msra.gmra.mxu1 %v13751_v13  ;;  %v9801_v63 = vld [vmem:[%s19493_s1 + $0xe88] sm:$0xf]  ;;  %v12498_v3 = vld [vmem:[%s19493_s1 + $0xe94] sm:$0xf0]  ;;  %v6982_v59 = vadd.f32 %v6981_v50, %v16859_v8  ;;  %v9546_v5 = vor.u32 %v12434_v57, %v9545_v55 }
 0x272   :  { %7245 = vmatpush.bf16.msrb.mxu1 %v9722_v10  ;;  %7214 = vmatmul.bf16.vlgmr.msra.gmra.mxu2 %v13749_v12  ;;  %v9929_v4 = vld [vmem:[%s19493_s1 + $0xf88] sm:$0xf]  ;;  %v12530_v60 = vld [vmem:[%s19493_s1 + $0xf94] sm:$0xf0]  ;;  %v6994_v10 = vpop.f32.mrf.mxu1  ;;  %v9802_v15 = vor.u32 %v12498_v3, %v9801_v63 }
 0x273   :  { %7258 = vmatpush.bf16.msrb.mxu2 %v9850_v11  ;;  %7227 = vmatmul.bf16.vlgmr.msra.gmra.mxu3 %v13762_v17  ;;  %v9674_v11 = vor.u32 %v12466_v62, %v9673_v58  ;;  %v9529_v56 = vld [vmem:[%s19493_s1 + $0xc68] sm:$0xf]  ;;  %v12430_v19 = vld [vmem:[%s19493_s1 + $0xc74] sm:$0xf0]  ;;  %v9930_v8 = vor.u32 %v12530_v60, %v9929_v4  ;;  %v6995_v21 = vadd.f32 %v6994_v10, %v6982_v59 }
 0x274   :  { %7271 = vmatpush.bf16.msrb.mxu3 %v9978_v20  ;;  %v9657_v20 = vld [vmem:[%s19493_s1 + $0xd68] sm:$0xf]  ;;  %v12462_v23 = vld [vmem:[%s19493_s1 + $0xd74] sm:$0xf0] }
 0x275   :  { %7233 = vmatpush.bf16.msrb.mxu0 %v9578_v38  ;;  %v9785_v25 = vld [vmem:[%s19493_s1 + $0xe68] sm:$0xf]  ;;  %v12494_v35 = vld [vmem:[%s19493_s1 + $0xe74] sm:$0xf0] }
 0x276   :  { %7246 = vmatpush.bf16.msrb.mxu1 %v9706_v43  ;;  %v9913_v36 = vld [vmem:[%s19493_s1 + $0xf68] sm:$0xf]  ;;  %v12526_v38 = vld [vmem:[%s19493_s1 + $0xf74] sm:$0xf0]  ;;  %v9530_v43 = vor.u32 %v12430_v19, %v9529_v56  ;;  %v9786_v33 = vor.u32 %v12494_v35, %v9785_v25 }
 0x277   :  { %7259 = vmatpush.bf16.msrb.mxu2 %v9834_v14  ;;  %v9658_v14 = vor.u32 %v12462_v23, %v9657_v20  ;;  %v9513_v45 = vld [vmem:[%s19493_s1 + $0xc48] sm:$0xf]  ;;  %v12426_v46 = vld [vmem:[%s19493_s1 + $0xc54] sm:$0xf0]  ;;  %v9914_v48 = vor.u32 %v12526_v38, %v9913_v36  ;;  %v7007_v51 = vpop.f32.mrf.mxu2 }
 0x278   :  { %7272 = vmatpush.bf16.msrb.mxu3 %v9962_v26  ;;  %v9641_v26 = vld [vmem:[%s19493_s1 + $0xd48] sm:$0xf]  ;;  %v12458_v52 = vld [vmem:[%s19493_s1 + $0xd54] sm:$0xf0]  ;;  %v6983_v57 = vpop.f32.mrf.mxu0  ;;  %v9514_v58 = vor.u32 %v12426_v46, %v9513_v45 }
 0x279   :  { %7234 = vmatpush.bf16.msrb.mxu0 %v9562_v49  ;;  %v9769_v44 = vld [vmem:[%s19493_s1 + $0xe48] sm:$0xf]  ;;  %v12490_v39 = vld [vmem:[%s19493_s1 + $0xe54] sm:$0xf0]  ;;  %v7008_v49 = vadd.f32 %v7007_v51, %v6995_v21  ;;  %v9642_v63 = vor.u32 %v12458_v52, %v9641_v26 }
 0x27a   :  { %7247 = vmatpush.bf16.msrb.mxu1 %v9690_v53  ;;  %v7020_v53 = vpop.f32.mrf.mxu3  ;;  %v12522_v55 = vld [vmem:[%s19493_s1 + $0xf54] sm:$0xf0]  ;;  %v9770_v3 = vor.u32 %v12490_v39, %v9769_v44  ;;  %v9497_v50 = vld [vmem:[%s19493_s1 + $0xc28] sm:$0xf] }
 0x27b   :  { %7260 = vmatpush.bf16.msrb.mxu2 %v9818_v54  ;;  %v9897_v54 = vld [vmem:[%s19493_s1 + $0xf48] sm:$0xf]  ;;  %v17058_v62 = vadd.f32 %v7020_v53, %v7008_v49  ;;  %v12422_v4 = vld [vmem:[%s19493_s1 + $0xc34] sm:$0xf0] }
 0x27c   :  { %7273 = vmatpush.bf16.msrb.mxu3 %v9946_v47  ;;  %v6996_v47 = vpop.f32.mrf.mxu1  ;;  %v9625_v60 = vld [vmem:[%s19493_s1 + $0xd28] sm:$0xf]  ;;  %v9898_v59 = vor.u32 %v12522_v55, %v9897_v54  ;;  %v12518_v56 = vld [vmem:[%s19493_s1 + $0xf34] sm:$0xf0]  ;;  %v9498_v19 = vor.u32 %v12422_v4, %v9497_v50 }
 0x27d   :  { %7235 = vmatpush.bf16.msrb.mxu0 %v9546_v5  ;;  %v12454_v5 = vld [vmem:[%s19493_s1 + $0xd34] sm:$0xf0]  ;;  %v9753_v10 = vld [vmem:[%s19493_s1 + $0xe28] sm:$0xf] }
 0x27e   :  { %7248 = vmatpush.bf16.msrb.mxu1 %v9674_v11  ;;  %v12486_v11 = vld [vmem:[%s19493_s1 + $0xe34] sm:$0xf0]  ;;  %v9481_v20 = vld [vmem:[%s19493_s1 + $0xc08] sm:$0xf]  ;;  %v9626_v21 = vor.u32 %v12454_v5, %v9625_v60 }
 0x27f   :  { %7261 = vmatpush.bf16.msrb.mxu2 %v9802_v15  ;;  %v9881_v15 = vld [vmem:[%s19493_s1 + $0xf28] sm:$0xf]  ;;  %v9754_v23 = vor.u32 %v12486_v11, %v9753_v10  ;;  %v12450_v35 = vld [vmem:[%s19493_s1 + $0xd14] sm:$0xf0]  ;;  %v7009_v45 = vpop.f32.mrf.mxu2 }
 0x280   :  { %7274 = vmatpush.bf16.msrb.mxu3 %v9930_v8  ;;  %v12418_v8 = vld [vmem:[%s19493_s1 + $0xc14] sm:$0xf0]  ;;  %v9609_v25 = vld [vmem:[%s19493_s1 + $0xd08] sm:$0xf]  ;;  %v9882_v38 = vor.u32 %v12518_v56, %v9881_v15 }
 0x281   :  { %7236 = vmatpush.bf16.msrb.mxu0 %v9530_v43  ;;  %v9737_v36 = vld [vmem:[%s19493_s1 + $0xe08] sm:$0xf]  ;;  %v12482_v43 = vld [vmem:[%s19493_s1 + $0xe14] sm:$0xf0]  ;;  %v9482_v52 = vor.u32 %v12418_v8, %v9481_v20  ;;  %v9610_v53 = vor.u32 %v12450_v35, %v9609_v25 }
 0x282   :  { %7249 = vmatpush.bf16.msrb.mxu1 %v9658_v14  ;;  %v9865_v14 = vld [vmem:[%s19493_s1 + $0xf08] sm:$0xf]  ;;  %v12574_v26 = vld [vmem:[%s19493_s1 + $0x10f4] sm:$0xf0]  ;;  %v7022_v51 = vpop.f32.mrf.mxu3  ;;  %v9738_v54 = vor.u32 %v12482_v43, %v9737_v36 }
 0x283   :  { %7262 = vmatpush.bf16.msrb.mxu2 %v9786_v33  ;;  %v12514_v33 = vld [vmem:[%s19493_s1 + $0xf14] sm:$0xf0]  ;;  %v10105_v46 = vld [vmem:[%s19493_s1 + $0x10e8] sm:$0xf] }
 0x284   :  { %7275 = vmatpush.bf16.msrb.mxu3 %v9914_v48  ;;  %v10233_v48 = vld [vmem:[%s19493_s1 + $0x11e8] sm:$0xf]  ;;  %v12606_v44 = vld [vmem:[%s19493_s1 + $0x11f4] sm:$0xf0]  ;;  %v10106_v47 = vor.u32 %v12574_v26, %v10105_v46 }
 0x285   :  { %7237 = vmatpush.bf16.msrb.mxu0 %v9514_v58  ;;  %v10361_v39 = vld [vmem:[%s19493_s1 + $0x12e8] sm:$0xf]  ;;  %v12638_v49 = vld [vmem:[%s19493_s1 + $0x12f4] sm:$0xf0]  ;;  %v9866_v58 = vor.u32 %v12514_v33, %v9865_v14 }
 0x286   :  { %7250 = vmatpush.bf16.msrb.mxu1 %v9642_v63  ;;  %v10489_v55 = vld [vmem:[%s19493_s1 + $0x13e8] sm:$0xf]  ;;  %v12670_v57 = vld [vmem:[%s19493_s1 + $0x13f4] sm:$0xf0]  ;;  %v10234_v63 = vor.u32 %v12606_v44, %v10233_v48 }
 0x287   :  { %7263 = vmatpush.bf16.msrb.mxu2 %v9770_v3  ;;  %v10362_v3 = vor.u32 %v12638_v49, %v10361_v39  ;;  %v10089_v50 = vld [vmem:[%s19493_s1 + $0x10c8] sm:$0xf]  ;;  %v12570_v4 = vld [vmem:[%s19493_s1 + $0x10d4] sm:$0xf0] }
 0x288   :  { %7276 = vmatpush.bf16.msrb.mxu3 %v9898_v59  ;;  %v10217_v60 = vld [vmem:[%s19493_s1 + $0x11c8] sm:$0xf]  ;;  %v10490_v59 = vor.u32 %v12670_v57, %v10489_v55  ;;  %v12602_v5 = vld [vmem:[%s19493_s1 + $0x11d4] sm:$0xf0] }
 0x289   :  { %7238 = vmatpush.bf16.msrb.mxu0 %v9498_v19  ;;  %v10345_v10 = vld [vmem:[%s19493_s1 + $0x12c8] sm:$0xf]  ;;  %v12634_v11 = vld [vmem:[%s19493_s1 + $0x12d4] sm:$0xf0]  ;;  %v10090_v19 = vor.u32 %v12570_v4, %v10089_v50  ;;  %v10218_v20 = vor.u32 %v12602_v5, %v10217_v60 }
 0x28a   :  { %7251 = vmatpush.bf16.msrb.mxu1 %v9626_v21  ;;  %v10473_v15 = vld [vmem:[%s19493_s1 + $0x13c8] sm:$0xf]  ;;  %v12666_v56 = vld [vmem:[%s19493_s1 + $0x13d4] sm:$0xf0]  ;;  %v10346_v8 = vor.u32 %v12634_v11, %v10345_v10 }
 0x28b   :  { %7264 = vmatpush.bf16.msrb.mxu2 %v9754_v23  ;;  %v10073_v21 = vld [vmem:[%s19493_s1 + $0x10a8] sm:$0xf]  ;;  %v12566_v23 = vld [vmem:[%s19493_s1 + $0x10b4] sm:$0xf0]  ;;  %v10474_v35 = vor.u32 %v12666_v56, %v10473_v15 }
 0x28c   :  { %7277 = vmatpush.bf16.msrb.mxu3 %v9882_v38  ;;  %v10201_v25 = vld [vmem:[%s19493_s1 + $0x11a8] sm:$0xf]  ;;  %v12598_v36 = vld [vmem:[%s19493_s1 + $0x11b4] sm:$0xf0]  ;;  %v10074_v45 = vor.u32 %v12566_v23, %v10073_v21 }
 0x28d   :  { %7239 = vmatpush.bf16.msrb.mxu0 %v9482_v52  ;;  %v10329_v38 = vld [vmem:[%s19493_s1 + $0x12a8] sm:$0xf]  ;;  %v12630_v43 = vld [vmem:[%s19493_s1 + $0x12b4] sm:$0xf0]  ;;  %v10202_v46 = vor.u32 %v12598_v36, %v10201_v25 }
 0x28e   :  { %7252 = vmatpush.bf16.msrb.mxu1 %v9610_v53  ;;  %v10457_v14 = vld [vmem:[%s19493_s1 + $0x13a8] sm:$0xf]  ;;  %v12662_v33 = vld [vmem:[%s19493_s1 + $0x13b4] sm:$0xf0]  ;;  %v10330_v26 = vor.u32 %v12630_v43, %v10329_v38 }
 0x28f   :  { %7265 = vmatpush.bf16.msrb.mxu2 %v9738_v54  ;;  %v10057_v48 = vld [vmem:[%s19493_s1 + $0x1088] sm:$0xf]  ;;  %v12562_v51 = vld [vmem:[%s19493_s1 + $0x1094] sm:$0xf0]  ;;  %v10458_v44 = vor.u32 %v12662_v33, %v10457_v14  ;;  %v7033_v54 = vpop.f32.mrf.mxu0 }
 0x290   :  { %7278 = vmatpush.bf16.msrb.mxu3 %v9866_v58  ;;  %7240 = vmatmul.bf16.vlgmr.msrb.gmra.mxu0 %v13779_v24  ;;  %v10185_v52 = vld [vmem:[%s19493_s1 + $0x1188] sm:$0xf]  ;;  %v12594_v39 = vld [vmem:[%s19493_s1 + $0x1194] sm:$0xf0]  ;;  %v7034_v58 = vadd.f32 %v7033_v54, %v17058_v62 }
 0x291   :  { %7284 = vmatpush.bf16.msra.mxu0 %v10106_v47  ;;  %7253 = vmatmul.bf16.vlgmr.msrb.gmra.mxu1 %v13783_v31  ;;  %v10313_v49 = vld [vmem:[%s19493_s1 + $0x1288] sm:$0xf]  ;;  %v12626_v53 = vld [vmem:[%s19493_s1 + $0x1294] sm:$0xf0]  ;;  %v10058_v47 = vor.u32 %v12562_v51, %v10057_v48 }
 0x292   :  { %7297 = vmatpush.bf16.msra.mxu1 %v10234_v63  ;;  %7266 = vmatmul.bf16.vlgmr.msrb.gmra.mxu2 %v13781_v30  ;;  %v10441_v55 = vld [vmem:[%s19493_s1 + $0x1388] sm:$0xf]  ;;  %v12658_v57 = vld [vmem:[%s19493_s1 + $0x1394] sm:$0xf0]  ;;  %v7046_v63 = vpop.f32.mrf.mxu1  ;;  %v10314_v50 = vor.u32 %v12626_v53, %v10313_v49 }
 0x293   :  { %7310 = vmatpush.bf16.msra.mxu2 %v10362_v3  ;;  %7279 = vmatmul.bf16.vlgmr.msrb.gmra.mxu3 %v13785_v32  ;;  %v10186_v3 = vor.u32 %v12594_v39, %v10185_v52  ;;  %v10041_v4 = vld [vmem:[%s19493_s1 + $0x1068] sm:$0xf]  ;;  %v12558_v60 = vld [vmem:[%s19493_s1 + $0x1074] sm:$0xf0]  ;;  %v10442_v62 = vor.u32 %v12658_v57, %v10441_v55  ;;  %v7047_v5 = vadd.f32 %v7046_v63, %v7034_v58 }
 0x294   :  { %7323 = vmatpush.bf16.msra.mxu3 %v10490_v59  ;;  %v10169_v59 = vld [vmem:[%s19493_s1 + $0x1168] sm:$0xf]  ;;  %v12590_v10 = vld [vmem:[%s19493_s1 + $0x1174] sm:$0xf0] }
 0x295   :  { %7285 = vmatpush.bf16.msra.mxu0 %v10090_v19  ;;  %v10297_v11 = vld [vmem:[%s19493_s1 + $0x1268] sm:$0xf]  ;;  %v12622_v15 = vld [vmem:[%s19493_s1 + $0x1274] sm:$0xf0]  ;;  %v7059_v38 = vpop.f32.mrf.mxu2 }
 0x296   :  { %7298 = vmatpush.bf16.msra.mxu1 %v10218_v20  ;;  %v10425_v56 = vld [vmem:[%s19493_s1 + $0x1368] sm:$0xf]  ;;  %v12654_v19 = vld [vmem:[%s19493_s1 + $0x1374] sm:$0xf0]  ;;  %v10042_v20 = vor.u32 %v12558_v60, %v10041_v4  ;;  %v10298_v21 = vor.u32 %v12622_v15, %v10297_v11 }
 0x297   :  { %7311 = vmatpush.bf16.msra.mxu2 %v10346_v8  ;;  %v10170_v8 = vor.u32 %v12590_v10, %v10169_v59  ;;  %v10025_v23 = vld [vmem:[%s19493_s1 + $0x1048] sm:$0xf]  ;;  %v12554_v25 = vld [vmem:[%s19493_s1 + $0x1054] sm:$0xf0]  ;;  %v10426_v36 = vor.u32 %v12654_v19, %v10425_v56  ;;  %v7035_v51 = vpop.f32.mrf.mxu0 }
 0x298   :  { %7324 = vmatpush.bf16.msra.mxu3 %v10474_v35  ;;  %v10153_v35 = vld [vmem:[%s19493_s1 + $0x1148] sm:$0xf]  ;;  %v12586_v43 = vld [vmem:[%s19493_s1 + $0x1154] sm:$0xf0]  ;;  %v10026_v52 = vor.u32 %v12554_v25, %v10025_v23 }
 0x299   :  { %7286 = vmatpush.bf16.msra.mxu0 %v10074_v45  ;;  %v10281_v14 = vld [vmem:[%s19493_s1 + $0x1248] sm:$0xf]  ;;  %v12618_v33 = vld [vmem:[%s19493_s1 + $0x1254] sm:$0xf0]  ;;  %v7060_v45 = vadd.f32 %v7059_v38, %v7047_v5  ;;  %v10154_v49 = vor.u32 %v12586_v43, %v10153_v35 }
 0x29a   :  { %7299 = vmatpush.bf16.msra.mxu1 %v10202_v46  ;;  %v7072_v46 = vpop.f32.mrf.mxu3  ;;  %v12650_v48 = vld [vmem:[%s19493_s1 + $0x1354] sm:$0xf0]  ;;  %v10282_v53 = vor.u32 %v12618_v33, %v10281_v14  ;;  %v10009_v54 = vld [vmem:[%s19493_s1 + $0x1028] sm:$0xf] }
 0x29b   :  { %7312 = vmatpush.bf16.msra.mxu2 %v10330_v26  ;;  %v10409_v26 = vld [vmem:[%s19493_s1 + $0x1348] sm:$0xf]  ;;  %v7073_v39 = vadd.f32 %v7072_v46, %v7060_v45  ;;  %v12550_v55 = vld [vmem:[%s19493_s1 + $0x1034] sm:$0xf0] }
 0x29c   :  { %7325 = vmatpush.bf16.msra.mxu3 %v10458_v44  ;;  %v7048_v44 = vpop.f32.mrf.mxu1  ;;  %v10137_v57 = vld [vmem:[%s19493_s1 + $0x1128] sm:$0xf]  ;;  %v10410_v58 = vor.u32 %v12650_v48, %v10409_v26  ;;  %v12646_v59 = vld [vmem:[%s19493_s1 + $0x1334] sm:$0xf0] }
 0x29d   :  { %7287 = vmatpush.bf16.msra.mxu0 %v10058_v47  ;;  %v12582_v47 = vld [vmem:[%s19493_s1 + $0x1134] sm:$0xf0]  ;;  %v10265_v63 = vld [vmem:[%s19493_s1 + $0x1228] sm:$0xf]  ;;  %v7909_v4 = vmax.f32 %v7073_v39, 0.0  ;;  %v7061_v35 = vpop.f32.mrf.mxu2 }
 0x29e   :  { %7300 = vmatpush.bf16.msra.mxu1 %v10186_v3  ;;  %v12614_v3 = vld [vmem:[%s19493_s1 + $0x1234] sm:$0xf0]  ;;  %v10393_v60 = vld [vmem:[%s19493_s1 + $0x1328] sm:$0xf]  ;;  %v10138_v11 = vor.u32 %v12582_v47, %v10137_v57 }
 0x29f   :  { %7313 = vmatpush.bf16.msra.mxu2 %v10314_v50  ;;  %v7908_v50 = vmax.f32 %v15671_v6, 0.0  ;;  %v9993_v5 = vld [vmem:[%s19493_s1 + $0x1008] sm:$0xf]  ;;  %v12546_v10 = vld [vmem:[%s19493_s1 + $0x1014] sm:$0xf0]  ;;  %v10266_v15 = vor.u32 %v12614_v3, %v10265_v63 }
 0x2a0   :  { %7326 = vmatpush.bf16.msra.mxu3 %v10442_v62  ;;  %v10010_v62 = vor.u32 %v12550_v55, %v10009_v54  ;;  %v10121_v56 = vld [vmem:[%s19493_s1 + $0x1108] sm:$0xf]  ;;  %v12578_v19 = vld [vmem:[%s19493_s1 + $0x1114] sm:$0xf0]  ;;  %v9994_v33 = vor.u32 %v12546_v10, %v9993_v5 }
 0x2a1   :  { %7288 = vmatpush.bf16.msra.mxu0 %v10042_v20  ;;  %v17288_v6 = vpack.c.bf16 %v7909_v4, %v7908_v50  ;;  %v10249_v20 = vld [vmem:[%s19493_s1 + $0x1208] sm:$0xf]  ;;  %v12642_v25 = vld [vmem:[%s19493_s1 + $0x1314] sm:$0xf0]  ;;  %v10122_v48 = vor.u32 %v12578_v19, %v10121_v56 }
 0x2a2   :  { %7301 = vmatpush.bf16.msra.mxu1 %v10170_v8  ;;  %v10394_v8 = vor.u32 %v12646_v59, %v10393_v60  ;;  %v10377_v23 = vld [vmem:[%s19493_s1 + $0x1308] sm:$0xf]  ;;  %v12702_v38 = vld [vmem:[%s19493_s1 + $0x14f4] sm:$0xf0]  ;;  %v7074_v14 = vpop.f32.mrf.mxu3 }
 0x2a3   :  { %7314 = vmatpush.bf16.msra.mxu2 %v10298_v21  ;;  %v12610_v21 = vld [vmem:[%s19493_s1 + $0x1214] sm:$0xf0]  ;;  %v10745_v43 = vld [vmem:[%s19493_s1 + $0x15e8] sm:$0xf]  ;;  %v10378_v39 = vor.u32 %v12642_v25, %v10377_v23 }
 0x2a4   :  { %7327 = vmatpush.bf16.msra.mxu3 %v10426_v36  ;;  %v10617_v36 = vld [vmem:[%s19493_s1 + $0x14e8] sm:$0xf]  ;;  %v12734_v45 = vld [vmem:[%s19493_s1 + $0x15f4] sm:$0xf0]  ;;  %v10250_v51 = vor.u32 %v12610_v21, %v10249_v20 }
 0x2a5   :  { %7289 = vmatpush.bf16.msra.mxu0 %v10026_v52  ;;  %v10873_v46 = vld [vmem:[%s19493_s1 + $0x16e8] sm:$0xf]  ;;  %v12766_v26 = vld [vmem:[%s19493_s1 + $0x16f4] sm:$0xf0] }
 0x2a6   :  { %7302 = vmatpush.bf16.msra.mxu1 %v10154_v49  ;;  %v11001_v52 = vld [vmem:[%s19493_s1 + $0x17e8] sm:$0xf]  ;;  %v12798_v44 = vld [vmem:[%s19493_s1 + $0x17f4] sm:$0xf0]  ;;  %v10618_v49 = vor.u32 %v12702_v38, %v10617_v36  ;;  %v10874_v54 = vor.u32 %v12766_v26, %v10873_v46 }
 0x2a7   :  { %7315 = vmatpush.bf16.msra.mxu2 %v10282_v53  ;;  %v10746_v53 = vor.u32 %v12734_v45, %v10745_v43  ;;  %v10601_v55 = vld [vmem:[%s19493_s1 + $0x14c8] sm:$0xf]  ;;  %v12698_v57 = vld [vmem:[%s19493_s1 + $0x14d4] sm:$0xf0]  ;;  %v11002_v47 = vor.u32 %v12798_v44, %v11001_v52 }
 0x2a8   :  { %7328 = vmatpush.bf16.msra.mxu3 %v10410_v58  ;;  %v10729_v58 = vld [vmem:[%s19493_s1 + $0x15c8] sm:$0xf]  ;;  %v12730_v63 = vld [vmem:[%s19493_s1 + $0x15d4] sm:$0xf0]  ;;  %v10602_v59 = vor.u32 %v12698_v57, %v10601_v55 }
 0x2a9   :  { %7290 = vmatpush.bf16.msra.mxu0 %v10010_v62  ;;  %v10857_v3 = vld [vmem:[%s19493_s1 + $0x16c8] sm:$0xf]  ;;  %v12762_v50 = vld [vmem:[%s19493_s1 + $0x16d4] sm:$0xf0]  ;;  %v10730_v62 = vor.u32 %v12730_v63, %v10729_v58 }
 0x2aa   :  { %7303 = vmatpush.bf16.msra.mxu1 %v10138_v11  ;;  %v10985_v4 = vld [vmem:[%s19493_s1 + $0x17c8] sm:$0xf]  ;;  %v12794_v60 = vld [vmem:[%s19493_s1 + $0x17d4] sm:$0xf0]  ;;  %v10858_v5 = vor.u32 %v12762_v50, %v10857_v3 }
 0x2ab   :  { %7316 = vmatpush.bf16.msra.mxu2 %v10266_v15  ;;  %v10585_v10 = vld [vmem:[%s19493_s1 + $0x14a8] sm:$0xf]  ;;  %v12694_v11 = vld [vmem:[%s19493_s1 + $0x14b4] sm:$0xf0]  ;;  %v10986_v56 = vor.u32 %v12794_v60, %v10985_v4 }
 0x2ac   :  { %7329 = vmatpush.bf16.msra.mxu3 %v10394_v8  ;;  %v10713_v15 = vld [vmem:[%s19493_s1 + $0x15a8] sm:$0xf]  ;;  %v12726_v19 = vld [vmem:[%s19493_s1 + $0x15b4] sm:$0xf0]  ;;  %v10586_v25 = vor.u32 %v12694_v11, %v10585_v10 }
 0x2ad   :  { %7291 = vmatpush.bf16.msra.mxu0 %v9994_v33  ;;  %v10841_v20 = vld [vmem:[%s19493_s1 + $0x16a8] sm:$0xf]  ;;  %v12758_v8 = vld [vmem:[%s19493_s1 + $0x16b4] sm:$0xf0]  ;;  %v10714_v36 = vor.u32 %v12726_v19, %v10713_v15  ;;  %v13064_v33 = vld [vmem:[%s19495_s2] sm:$0xf] }
 0x2ae   :  { %7304 = vmatpush.bf16.msra.mxu1 %v10122_v48  ;;  %v10969_v21 = vld [vmem:[%s19493_s1 + $0x17a8] sm:$0xf]  ;;  %v12790_v23 = vld [vmem:[%s19493_s1 + $0x17b4] sm:$0xf0]  ;;  %v10842_v38 = vor.u32 %v12758_v8, %v10841_v20  ;;  %v1046_v45 = vperm.slane %v13064_v33, 2  ;;  %v7098_v63 = vpop.f32.mrf.mxu1 }
 0x2af   :  { %7317 = vmatpush.bf16.msra.mxu2 %v10250_v51  ;;  %v10569_v35 = vld [vmem:[%s19493_s1 + $0x1488] sm:$0xf]  ;;  %v12690_v43 = vld [vmem:[%s19493_s1 + $0x1494] sm:$0xf0]  ;;  %v10970_v46 = vor.u32 %v12790_v23, %v10969_v21 }
 0x2b0   :  { %7330 = vmatpush.bf16.msra.mxu3 %v10378_v39  ;;  %7292 = vmatmul.bf16.vlgmr.msra.gmra.mxu0 %v14149_v9  ;;  %v10697_v14 = vld [vmem:[%s19493_s1 + $0x1588] sm:$0xf]  ;;  %v12722_v26 = vld [vmem:[%s19493_s1 + $0x1594] sm:$0xf0]  ;;  %v10570_v39 = vor.u32 %v12690_v43, %v10569_v35 }
 0x2b1   :  { %7336 = vmatpush.bf16.msrb.mxu0 %v10618_v49  ;;  %7305 = vmatmul.bf16.vlgmr.msra.gmra.mxu1 %v14162_v18  ;;  %v10825_v48 = vld [vmem:[%s19493_s1 + $0x1688] sm:$0xf]  ;;  %v12754_v51 = vld [vmem:[%s19493_s1 + $0x1694] sm:$0xf0]  ;;  %v7085_v49 = vpop.f32.mrf.mxu0 }
 0x2b2   :  { %7349 = vmatpush.bf16.msrb.mxu1 %v10746_v53  ;;  %7318 = vmatmul.bf16.vlgmr.msra.gmra.mxu2 %v14160_v16  ;;  %v10953_v52 = vld [vmem:[%s19493_s1 + $0x1788] sm:$0xf]  ;;  %v12786_v44 = vld [vmem:[%s19493_s1 + $0x1794] sm:$0xf0]  ;;  %v10698_v53 = vor.u32 %v12722_v26, %v10697_v14 }
 0x2b3   :  { %7362 = vmatpush.bf16.msrb.mxu2 %v10874_v54  ;;  %7331 = vmatmul.bf16.vlgmr.msra.gmra.mxu3 %v14173_v22  ;;  %v10826_v54 = vor.u32 %v12754_v51, %v10825_v48  ;;  %v10553_v55 = vld [vmem:[%s19493_s1 + $0x1468] sm:$0xf]  ;;  %v12686_v57 = vld [vmem:[%s19493_s1 + $0x1474] sm:$0xf0]  ;;  %v10954_v3 = vor.u32 %v12786_v44, %v10953_v52 }
 0x2b4   :  { %7375 = vmatpush.bf16.msrb.mxu3 %v11002_v47  ;;  %v10681_v58 = vld [vmem:[%s19493_s1 + $0x1568] sm:$0xf]  ;;  %v7086_v47 = vadd.f32 %v7085_v49, %v1046_v45  ;;  %v12718_v50 = vld [vmem:[%s19493_s1 + $0x1574] sm:$0xf0]  ;;  %v10554_v10 = vor.u32 %v12686_v57, %v10553_v55 }
 0x2b5   :  { %7337 = vmatpush.bf16.msrb.mxu0 %v10602_v59  ;;  %v10809_v4 = vld [vmem:[%s19493_s1 + $0x1668] sm:$0xf]  ;;  %v12750_v60 = vld [vmem:[%s19493_s1 + $0x1674] sm:$0xf0]  ;;  %v10682_v11 = vor.u32 %v12718_v50, %v10681_v58  ;;  %v7111_v8 = vpop.f32.mrf.mxu2 }
 0x2b6   :  { %7350 = vmatpush.bf16.msrb.mxu1 %v10730_v62  ;;  %v10937_v59 = vld [vmem:[%s19493_s1 + $0x1768] sm:$0xf]  ;;  %v12782_v62 = vld [vmem:[%s19493_s1 + $0x1774] sm:$0xf0]  ;;  %v10810_v15 = vor.u32 %v12750_v60, %v10809_v4 }
 0x2b7   :  { %7363 = vmatpush.bf16.msrb.mxu2 %v10858_v5  ;;  %v7099_v5 = vadd.f32 %v7098_v63, %v7086_v47  ;;  %v12682_v19 = vld [vmem:[%s19493_s1 + $0x1454] sm:$0xf0]  ;;  %v10665_v20 = vld [vmem:[%s19493_s1 + $0x1548] sm:$0xf]  ;;  %v10938_v21 = vor.u32 %v12782_v62, %v10937_v59 }
 0x2b8   :  { %7376 = vmatpush.bf16.msrb.mxu3 %v10986_v56  ;;  %v10537_v56 = vld [vmem:[%s19493_s1 + $0x1448] sm:$0xf]  ;;  %v12714_v23 = vld [vmem:[%s19493_s1 + $0x1554] sm:$0xf0] }
 0x2b9   :  { %7338 = vmatpush.bf16.msrb.mxu0 %v10586_v25  ;;  %v10793_v25 = vld [vmem:[%s19493_s1 + $0x1648] sm:$0xf]  ;;  %v12746_v35 = vld [vmem:[%s19493_s1 + $0x1654] sm:$0xf0]  ;;  %v10538_v33 = vor.u32 %v12682_v19, %v10537_v56  ;;  %v10666_v26 = vor.u32 %v12714_v23, %v10665_v20 }
 0x2ba   :  { %7351 = vmatpush.bf16.msrb.mxu1 %v10714_v36  ;;  %v7112_v36 = vadd.f32 %v7111_v8, %v7099_v5  ;;  %v10921_v43 = vld [vmem:[%s19493_s1 + $0x1748] sm:$0xf]  ;;  %v12778_v14 = vld [vmem:[%s19493_s1 + $0x1754] sm:$0xf0]  ;;  %v10794_v48 = vor.u32 %v12746_v35, %v10793_v25 }
 0x2bb   :  { %7364 = vmatpush.bf16.msrb.mxu2 %v10842_v38  ;;  %v7124_v38 = vpop.f32.mrf.mxu3  ;;  %v10521_v51 = vld [vmem:[%s19493_s1 + $0x1428] sm:$0xf]  ;;  %v12678_v52 = vld [vmem:[%s19493_s1 + $0x1434] sm:$0xf0]  ;;  %v10922_v49 = vor.u32 %v12778_v14, %v10921_v43 }
 0x2bc   :  { %7377 = vmatpush.bf16.msrb.mxu3 %v10970_v46  ;;  %v17459_v45 = vadd.f32 %v7124_v38, %v7112_v36  ;;  %v7087_v46 = vpop.f32.mrf.mxu0  ;;  %v10649_v44 = vld [vmem:[%s19493_s1 + $0x1528] sm:$0xf]  ;;  %v12742_v55 = vld [vmem:[%s19493_s1 + $0x1634] sm:$0xf0]  ;;  %v10522_v47 = vor.u32 %v12678_v52, %v10521_v51 }
 0x2bd   :  { %7339 = vmatpush.bf16.msrb.mxu0 %v10570_v39  ;;  %v7100_v39 = vpop.f32.mrf.mxu1  ;;  %v10905_v57 = vld [vmem:[%s19493_s1 + $0x1728] sm:$0xf]  ;;  %v12774_v58 = vld [vmem:[%s19493_s1 + $0x1734] sm:$0xf0]  ;;  %v7113_v5 = vpop.f32.mrf.mxu2 }
 0x2be   :  { %7352 = vmatpush.bf16.msrb.mxu1 %v10698_v53  ;;  %v12710_v53 = vld [vmem:[%s19493_s1 + $0x1534] sm:$0xf0]  ;;  %v10505_v63 = vld [vmem:[%s19493_s1 + $0x1408] sm:$0xf] }
 0x2bf   :  { %7365 = vmatpush.bf16.msrb.mxu2 %v10826_v54  ;;  %v10777_v54 = vld [vmem:[%s19493_s1 + $0x1628] sm:$0xf]  ;;  %v10650_v50 = vor.u32 %v12710_v53, %v10649_v44  ;;  %v12706_v59 = vld [vmem:[%s19493_s1 + $0x1514] sm:$0xf0] }
 0x2c0   :  { %7378 = vmatpush.bf16.msrb.mxu3 %v10954_v3  ;;  %v12674_v3 = vld [vmem:[%s19493_s1 + $0x1414] sm:$0xf0]  ;;  %v10778_v4 = vor.u32 %v12742_v55, %v10777_v54  ;;  %v10633_v60 = vld [vmem:[%s19493_s1 + $0x1508] sm:$0xf] }
 0x2c1   :  { %7340 = vmatpush.bf16.msrb.mxu0 %v10554_v10  ;;  %v10761_v62 = vld [vmem:[%s19493_s1 + $0x1608] sm:$0xf]  ;;  %v10906_v10 = vor.u32 %v12774_v58, %v10905_v57  ;;  %v12770_v56 = vld [vmem:[%s19493_s1 + $0x1714] sm:$0xf0]  ;;  %v10506_v23 = vor.u32 %v12674_v3, %v10505_v63  ;;  %v10634_v38 = vor.u32 %v12706_v59, %v10633_v60 }
 0x2c2   :  { %7353 = vmatpush.bf16.msrb.mxu1 %v10682_v11  ;;  %v12738_v11 = vld [vmem:[%s19493_s1 + $0x1614] sm:$0xf0]  ;;  %v11129_v20 = vld [vmem:[%s19493_s1 + $0x18e8] sm:$0xf] }
 0x2c3   :  { %7366 = vmatpush.bf16.msrb.mxu2 %v10810_v15  ;;  %v10889_v15 = vld [vmem:[%s19493_s1 + $0x1708] sm:$0xf]  ;;  %v7126_v19 = vpop.f32.mrf.mxu3  ;;  %v12830_v8 = vld [vmem:[%s19493_s1 + $0x18f4] sm:$0xf0]  ;;  %v10762_v43 = vor.u32 %v12738_v11, %v10761_v62 }
 0x2c4   :  { %7379 = vmatpush.bf16.msrb.mxu3 %v10938_v21  ;;  %v11257_v21 = vld [vmem:[%s19493_s1 + $0x19e8] sm:$0xf]  ;;  %v12862_v25 = vld [vmem:[%s19493_s1 + $0x19f4] sm:$0xf0]  ;;  %v10890_v46 = vor.u32 %v12770_v56, %v10889_v15 }
 0x2c5   :  { %7341 = vmatpush.bf16.msrb.mxu0 %v10538_v33  ;;  %v11385_v35 = vld [vmem:[%s19493_s1 + $0x1ae8] sm:$0xf]  ;;  %v12894_v36 = vld [vmem:[%s19493_s1 + $0x1af4] sm:$0xf0] }
 0x2c6   :  { %7354 = vmatpush.bf16.msrb.mxu1 %v10666_v26  ;;  %v11513_v14 = vld [vmem:[%s19493_s1 + $0x1be8] sm:$0xf]  ;;  %v12926_v33 = vld [vmem:[%s19493_s1 + $0x1bf4] sm:$0xf0]  ;;  %v11130_v26 = vor.u32 %v12830_v8, %v11129_v20  ;;  %v11386_v51 = vor.u32 %v12894_v36, %v11385_v35 }
 0x2c7   :  { %7367 = vmatpush.bf16.msrb.mxu2 %v10794_v48  ;;  %v11258_v48 = vor.u32 %v12862_v25, %v11257_v21  ;;  %v11113_v52 = vld [vmem:[%s19493_s1 + $0x18c8] sm:$0xf]  ;;  %v12826_v44 = vld [vmem:[%s19493_s1 + $0x18d4] sm:$0xf0] }
 0x2c8   :  { %7380 = vmatpush.bf16.msrb.mxu3 %v10922_v49  ;;  %v11241_v39 = vld [vmem:[%s19493_s1 + $0x19c8] sm:$0xf]  ;;  %v11514_v49 = vor.u32 %v12926_v33, %v11513_v14  ;;  %v12858_v53 = vld [vmem:[%s19493_s1 + $0x19d4] sm:$0xf0] }
 0x2c9   :  { %7342 = vmatpush.bf16.msrb.mxu0 %v10522_v47  ;;  %v11369_v54 = vld [vmem:[%s19493_s1 + $0x1ac8] sm:$0xf]  ;;  %v12890_v55 = vld [vmem:[%s19493_s1 + $0x1ad4] sm:$0xf0]  ;;  %v11114_v47 = vor.u32 %v12826_v44, %v11113_v52  ;;  %v11242_v63 = vor.u32 %v12858_v53, %v11241_v39 }
 0x2ca   :  { %7355 = vmatpush.bf16.msrb.mxu1 %v10650_v50  ;;  %v11497_v57 = vld [vmem:[%s19493_s1 + $0x1bc8] sm:$0xf]  ;;  %v12922_v58 = vld [vmem:[%s19493_s1 + $0x1bd4] sm:$0xf0]  ;;  %v11370_v3 = vor.u32 %v12890_v55, %v11369_v54 }
 0x2cb   :  { %7368 = vmatpush.bf16.msrb.mxu2 %v10778_v4  ;;  %v11097_v50 = vld [vmem:[%s19493_s1 + $0x18a8] sm:$0xf]  ;;  %v12822_v4 = vld [vmem:[%s19493_s1 + $0x18b4] sm:$0xf0]  ;;  %v11498_v59 = vor.u32 %v12922_v58, %v11497_v57 }
 0x2cc   :  { %7381 = vmatpush.bf16.msrb.mxu3 %v10906_v10  ;;  %v11225_v60 = vld [vmem:[%s19493_s1 + $0x19a8] sm:$0xf]  ;;  %v12854_v62 = vld [vmem:[%s19493_s1 + $0x19b4] sm:$0xf0]  ;;  %v11098_v56 = vor.u32 %v12822_v4, %v11097_v50 }
 0x2cd   :  { %7343 = vmatpush.bf16.msrb.mxu0 %v10506_v23  ;;  %v11353_v5 = vld [vmem:[%s19493_s1 + $0x1aa8] sm:$0xf]  ;;  %v12886_v10 = vld [vmem:[%s19493_s1 + $0x1ab4] sm:$0xf0]  ;;  %v11226_v19 = vor.u32 %v12854_v62, %v11225_v60 }
 0x2ce   :  { %7356 = vmatpush.bf16.msrb.mxu1 %v10634_v38  ;;  %v11481_v11 = vld [vmem:[%s19493_s1 + $0x1ba8] sm:$0xf]  ;;  %v12918_v15 = vld [vmem:[%s19493_s1 + $0x1bb4] sm:$0xf0]  ;;  %v11354_v20 = vor.u32 %v12886_v10, %v11353_v5 }
 0x2cf   :  { %7369 = vmatpush.bf16.msrb.mxu2 %v10762_v43  ;;  %v11081_v8 = vld [vmem:[%s19493_s1 + $0x1888] sm:$0xf]  ;;  %v12818_v21 = vld [vmem:[%s19493_s1 + $0x1894] sm:$0xf0]  ;;  %v11482_v25 = vor.u32 %v12918_v15, %v11481_v11 }
 0x2d0   :  { %7382 = vmatpush.bf16.msrb.mxu3 %v10890_v46  ;;  %7344 = vmatmul.bf16.vlgmr.msrb.gmra.mxu0 %v14190_v37  ;;  %v11209_v23 = vld [vmem:[%s19493_s1 + $0x1988] sm:$0xf]  ;;  %v12850_v35 = vld [vmem:[%s19493_s1 + $0x1994] sm:$0xf0]  ;;  %v11082_v33 = vor.u32 %v12818_v21, %v11081_v8  ;;  %v7137_v46 = vpop.f32.mrf.mxu0 }
 0x2d1   :  { %7388 = vmatpush.bf16.msra.mxu0 %v11130_v26  ;;  %7357 = vmatmul.bf16.vlgmr.msrb.gmra.mxu1 %v14194_v41  ;;  %v11337_v36 = vld [vmem:[%s19493_s1 + $0x1a88] sm:$0xf]  ;;  %v12882_v38 = vld [vmem:[%s19493_s1 + $0x1a94] sm:$0xf0]  ;;  %v11210_v26 = vor.u32 %v12850_v35, %v11209_v23  ;;  %v7138_v39 = vadd.f32 %v7137_v46, %v17459_v45 }
 0x2d2   :  { %7401 = vmatpush.bf16.msra.mxu1 %v11258_v48  ;;  %7370 = vmatmul.bf16.vlgmr.msrb.gmra.mxu2 %v14192_v40  ;;  %v11465_v43 = vld [vmem:[%s19493_s1 + $0x1b88] sm:$0xf]  ;;  %v12914_v14 = vld [vmem:[%s19493_s1 + $0x1b94] sm:$0xf0]  ;;  %v11338_v48 = vor.u32 %v12882_v38, %v11337_v36 }
 0x2d3   :  { %7414 = vmatpush.bf16.msra.mxu2 %v11386_v51  ;;  %7383 = vmatmul.bf16.vlgmr.msrb.gmra.mxu3 %v14196_v42  ;;  %v11065_v51 = vld [vmem:[%s19493_s1 + $0x1868] sm:$0xf]  ;;  %v12814_v52 = vld [vmem:[%s19493_s1 + $0x1874] sm:$0xf0]  ;;  %v11466_v53 = vor.u32 %v12914_v14, %v11465_v43 }
 0x2d4   :  { %7427 = vmatpush.bf16.msra.mxu3 %v11514_v49  ;;  %v11193_v44 = vld [vmem:[%s19493_s1 + $0x1968] sm:$0xf]  ;;  %v7150_v49 = vpop.f32.mrf.mxu1  ;;  %v12846_v54 = vld [vmem:[%s19493_s1 + $0x1974] sm:$0xf0] }
 0x2d5   :  { %7389 = vmatpush.bf16.msra.mxu0 %v11114_v47  ;;  %v11321_v55 = vld [vmem:[%s19493_s1 + $0x1a68] sm:$0xf]  ;;  %v12878_v57 = vld [vmem:[%s19493_s1 + $0x1a74] sm:$0xf0]  ;;  %v7151_v47 = vadd.f32 %v7150_v49, %v7138_v39  ;;  %v7163_v62 = vpop.f32.mrf.mxu2 }
 0x2d6   :  { %7402 = vmatpush.bf16.msra.mxu1 %v11242_v63  ;;  %v11449_v58 = vld [vmem:[%s19493_s1 + $0x1b68] sm:$0xf]  ;;  %v12910_v45 = vld [vmem:[%s19493_s1 + $0x1b74] sm:$0xf0]  ;;  %v11066_v63 = vor.u32 %v12814_v52, %v11065_v51  ;;  %v11322_v50 = vor.u32 %v12878_v57, %v11321_v55 }
 0x2d7   :  { %7415 = vmatpush.bf16.msra.mxu2 %v11370_v3  ;;  %v11194_v3 = vor.u32 %v12846_v54, %v11193_v44  ;;  %v11049_v4 = vld [vmem:[%s19493_s1 + $0x1848] sm:$0xf]  ;;  %v12810_v60 = vld [vmem:[%s19493_s1 + $0x1854] sm:$0xf0]  ;;  %v11450_v5 = vor.u32 %v12910_v45, %v11449_v58 }
 0x2d8   :  { %7428 = vmatpush.bf16.msra.mxu3 %v11498_v59  ;;  %v11177_v59 = vld [vmem:[%s19493_s1 + $0x1948] sm:$0xf]  ;;  %v12842_v10 = vld [vmem:[%s19493_s1 + $0x1954] sm:$0xf0]  ;;  %v11050_v21 = vor.u32 %v12810_v60, %v11049_v4 }
 0x2d9   :  { %7390 = vmatpush.bf16.msra.mxu0 %v11098_v56  ;;  %v11305_v11 = vld [vmem:[%s19493_s1 + $0x1a48] sm:$0xf]  ;;  %v12874_v15 = vld [vmem:[%s19493_s1 + $0x1a54] sm:$0xf0]  ;;  %v7164_v56 = vadd.f32 %v7163_v62, %v7151_v47  ;;  %v11178_v35 = vor.u32 %v12842_v10, %v11177_v59 }
 0x2da   :  { %7403 = vmatpush.bf16.msra.mxu1 %v11226_v19  ;;  %v7176_v19 = vpop.f32.mrf.mxu3  ;;  %v12906_v8 = vld [vmem:[%s19493_s1 + $0x1b54] sm:$0xf0]  ;;  %v11306_v36 = vor.u32 %v12874_v15, %v11305_v11  ;;  %v11033_v38 = vld [vmem:[%s19493_s1 + $0x1828] sm:$0xf] }
 0x2db   :  { %7416 = vmatpush.bf16.msra.mxu2 %v11354_v20  ;;  %v11433_v20 = vld [vmem:[%s19493_s1 + $0x1b48] sm:$0xf]  ;;  %v17658_v23 = vadd.f32 %v7176_v19, %v7164_v56  ;;  %v12806_v43 = vld [vmem:[%s19493_s1 + $0x1834] sm:$0xf0] }
 0x2dc   :  { %7429 = vmatpush.bf16.msra.mxu3 %v11482_v25  ;;  %v7139_v25 = vpop.f32.mrf.mxu0  ;;  %v11161_v14 = vld [vmem:[%s19493_s1 + $0x1928] sm:$0xf]  ;;  %v11434_v46 = vor.u32 %v12906_v8, %v11433_v20  ;;  %v12870_v51 = vld [vmem:[%s19493_s1 + $0x1a34] sm:$0xf0]  ;;  %v11034_v39 = vor.u32 %v12806_v43, %v11033_v38 }
 0x2dd   :  { %7391 = vmatpush.bf16.msra.mxu0 %v11082_v33  ;;  %v7152_v33 = vpop.f32.mrf.mxu1  ;;  %v11417_v52 = vld [vmem:[%s19493_s1 + $0x1b28] sm:$0xf]  ;;  %v12902_v44 = vld [vmem:[%s19493_s1 + $0x1b34] sm:$0xf0]  ;;  %v7165_v47 = vpop.f32.mrf.mxu2 }
 0x2de   :  { %7404 = vmatpush.bf16.msra.mxu1 %v11210_v26  ;;  %v12838_v26 = vld [vmem:[%s19493_s1 + $0x1934] sm:$0xf0]  ;;  %v11017_v49 = vld [vmem:[%s19493_s1 + $0x1808] sm:$0xf] }
 0x2df   :  { %7417 = vmatpush.bf16.msra.mxu2 %v11338_v48  ;;  %v11289_v48 = vld [vmem:[%s19493_s1 + $0x1a28] sm:$0xf]  ;;  %v11162_v54 = vor.u32 %v12838_v26, %v11161_v14  ;;  %v12834_v58 = vld [vmem:[%s19493_s1 + $0x1914] sm:$0xf0] }
 0x2e0   :  { %7430 = vmatpush.bf16.msra.mxu3 %v11466_v53  ;;  %v12802_v53 = vld [vmem:[%s19493_s1 + $0x1814] sm:$0xf0]  ;;  %v11290_v55 = vor.u32 %v12870_v51, %v11289_v48  ;;  %v11145_v57 = vld [vmem:[%s19493_s1 + $0x1908] sm:$0xf] }
 0x2e1   :  { %7392 = vmatpush.bf16.msra.mxu0 %v11066_v63  ;;  %v11273_v45 = vld [vmem:[%s19493_s1 + $0x1a08] sm:$0xf]  ;;  %v11418_v63 = vor.u32 %v12902_v44, %v11417_v52  ;;  %v12898_v4 = vld [vmem:[%s19493_s1 + $0x1b14] sm:$0xf0]  ;;  %v11018_v10 = vor.u32 %v12802_v53, %v11017_v49  ;;  %v11146_v19 = vor.u32 %v12834_v58, %v11145_v57  ;;  %v13065_v58 = vld [vmem:[#allocation1] sm:$0xff] }
 0x2e2   :  { %7405 = vmatpush.bf16.msra.mxu1 %v11194_v3  ;;  %v12866_v3 = vld [vmem:[%s19493_s1 + $0x1a14] sm:$0xf0]  ;;  %v7178_v60 = vpop.f32.mrf.mxu3  ;;  %v11641_v59 = vld [vmem:[%s19493_s1 + $0x1ce8] sm:$0xf] }
 0x2e3   :  { %7418 = vmatpush.bf16.msra.mxu2 %v11322_v50  ;;  %v11401_v50 = vld [vmem:[%s19493_s1 + $0x1b08] sm:$0xf]  ;;  %v12958_v62 = vld [vmem:[%s19493_s1 + $0x1cf4] sm:$0xf0]  ;;  %v11274_v20 = vor.u32 %v12866_v3, %v11273_v45 }
 0x2e4   :  { %7431 = vmatpush.bf16.msra.mxu3 %v11450_v5  ;;  %v11769_v5 = vld [vmem:[%s19493_s1 + $0x1de8] sm:$0xf]  ;;  %v12990_v11 = vld [vmem:[%s19493_s1 + $0x1df4] sm:$0xf0]  ;;  %v11402_v25 = vor.u32 %v12898_v4, %v11401_v50 }
 0x2e5   :  { %7393 = vmatpush.bf16.msra.mxu0 %v11050_v21  ;;  %v11897_v15 = vld [vmem:[%s19493_s1 + $0x1ee8] sm:$0xf]  ;;  %v13022_v56 = vld [vmem:[%s19493_s1 + $0x1ef4] sm:$0xf0] }
 0x2e6   :  { %7406 = vmatpush.bf16.msra.mxu1 %v11178_v35  ;;  %v12025_v8 = vld [vmem:[%s19493_s1 + $0x1fe8] sm:$0xf]  ;;  %v13054_v21 = vld [vmem:[%s19493_s1 + $0x1ff4] sm:$0xf0]  ;;  %v11642_v35 = vor.u32 %v12958_v62, %v11641_v59  ;;  %v11898_v38 = vor.u32 %v13022_v56, %v11897_v15 }
 0x2e7   :  { %7419 = vmatpush.bf16.msra.mxu2 %v11306_v36  ;;  %v11770_v36 = vor.u32 %v12990_v11, %v11769_v5  ;;  %v11625_v43 = vld [vmem:[%s19493_s1 + $0x1cc8] sm:$0xf]  ;;  %v12954_v14 = vld [vmem:[%s19493_s1 + $0x1cd4] sm:$0xf0] }
 0x2e8   :  { %7432 = vmatpush.bf16.msra.mxu3 %v11434_v46  ;;  %v11753_v33 = vld [vmem:[%s19493_s1 + $0x1dc8] sm:$0xf]  ;;  %v12026_v46 = vor.u32 %v13054_v21, %v12025_v8  ;;  %v12986_v26 = vld [vmem:[%s19493_s1 + $0x1dd4] sm:$0xf0] }
 0x2e9   :  { %7394 = vmatpush.bf16.msra.mxu0 %v11034_v39  ;;  %v11881_v48 = vld [vmem:[%s19493_s1 + $0x1ec8] sm:$0xf]  ;;  %v13018_v51 = vld [vmem:[%s19493_s1 + $0x1ed4] sm:$0xf0]  ;;  %v11626_v39 = vor.u32 %v12954_v14, %v11625_v43  ;;  %v11754_v49 = vor.u32 %v12986_v26, %v11753_v33 }
 0x2ea   :  { %7407 = vmatpush.bf16.msra.mxu1 %v11162_v54  ;;  %v12009_v52 = vld [vmem:[%s19493_s1 + $0x1fc8] sm:$0xf]  ;;  %v13050_v44 = vld [vmem:[%s19493_s1 + $0x1fd4] sm:$0xf0]  ;;  %v11882_v53 = vor.u32 %v13018_v51, %v11881_v48 }
 0x2eb   :  { %7420 = vmatpush.bf16.msra.mxu2 %v11290_v55  ;;  %v11609_v54 = vld [vmem:[%s19493_s1 + $0x1ca8] sm:$0xf]  ;;  %v12950_v55 = vld [vmem:[%s19493_s1 + $0x1cb4] sm:$0xf0]  ;;  %v12010_v45 = vor.u32 %v13050_v44, %v12009_v52 }
 0x2ec   :  { %7433 = vmatpush.bf16.msra.mxu3 %v11418_v63  ;;  %v11737_v57 = vld [vmem:[%s19493_s1 + $0x1da8] sm:$0xf]  ;;  %v12982_v47 = vld [vmem:[%s19493_s1 + $0x1db4] sm:$0xf0]  ;;  %v11610_v5 = vor.u32 %v12950_v55, %v11609_v54 }
 0x2ed   :  { %7395 = vmatpush.bf16.msra.mxu0 %v11018_v10  ;;  %v11865_v63 = vld [vmem:[%s19493_s1 + $0x1ea8] sm:$0xf]  ;;  %v13014_v3 = vld [vmem:[%s19493_s1 + $0x1eb4] sm:$0xf0]  ;;  %v11738_v10 = vor.u32 %v12982_v47, %v11737_v57 }
 0x2ee   :  { %7408 = vmatpush.bf16.msra.mxu1 %v11146_v19  ;;  %v13066_v50 = vld [vmem:[#allocation1 + $0x12] sm:$0xff]  ;;  %v13067_v4 = vld [vmem:[#allocation1 + $0x9] sm:$0xff]  ;;  %v13068_v62 = vld [vmem:[#allocation1 + $0x1b] sm:$0xff]  ;;  %v11866_v11 = vor.u32 %v13014_v3, %v11865_v63  ;;  %v7202_v33 = vpop.f32.mrf.mxu1 }
 0x2ef   :  { %7421 = vmatpush.bf16.msra.mxu2 %v11274_v20  ;;  %v11993_v60 = vld [vmem:[%s19493_s1 + $0x1fa8] sm:$0xf]  ;;  %v13046_v59 = vld [vmem:[%s19493_s1 + $0x1fb4] sm:$0xf0] }
 0x2f0   :  { %7434 = vmatpush.bf16.msra.mxu3 %v11402_v25  ;;  %7396 = vmatmul.bf16.vlgmr.msra.gmra.mxu0 %v13065_v58  ;;  %v11593_v15 = vld [vmem:[%s19493_s1 + $0x1c88] sm:$0xf]  ;;  %v12946_v56 = vld [vmem:[%s19493_s1 + $0x1c94] sm:$0xf0]  ;;  %v11994_v20 = vor.u32 %v13046_v59, %v11993_v60 }
 0x2f1   :  { %7440 = vmatpush.bf16.msrb.mxu0 %v11642_v35  ;;  %7409 = vmatmul.bf16.vlgmr.msra.gmra.mxu1 %v13067_v4  ;;  %v11721_v19 = vld [vmem:[%s19493_s1 + $0x1d88] sm:$0xf]  ;;  %v12978_v8 = vld [vmem:[%s19493_s1 + $0x1d94] sm:$0xf0]  ;;  %v7189_v35 = vpop.f32.mrf.mxu0  ;;  %v11594_v14 = vor.u32 %v12946_v56, %v11593_v15 }
 0x2f2   :  { %7453 = vmatpush.bf16.msrb.mxu1 %v11770_v36  ;;  %7422 = vmatmul.bf16.vlgmr.msra.gmra.mxu2 %v13066_v50  ;;  %v11849_v21 = vld [vmem:[%s19493_s1 + $0x1e88] sm:$0xf]  ;;  %v13010_v25 = vld [vmem:[%s19493_s1 + $0x1e94] sm:$0xf0]  ;;  %v7190_v43 = vadd.f32 %v7189_v35, %v17658_v23 }
 0x2f3   :  { %7466 = vmatpush.bf16.msrb.mxu2 %v11898_v38  ;;  %7435 = vmatmul.bf16.vlgmr.msra.gmra.mxu3 %v13068_v62  ;;  %v11977_v36 = vld [vmem:[%s19493_s1 + $0x1f88] sm:$0xf]  ;;  %v13042_v38 = vld [vmem:[%s19493_s1 + $0x1f94] sm:$0xf0]  ;;  %v11850_v26 = vor.u32 %v13010_v25, %v11849_v21 }
 0x2f4   :  { %7479 = vmatpush.bf16.msrb.mxu3 %v12026_v46  ;;  %v11722_v46 = vor.u32 %v12978_v8, %v11721_v19  ;;  %v11577_v48 = vld [vmem:[%s19493_s1 + $0x1c68] sm:$0xf]  ;;  %v12942_v51 = vld [vmem:[%s19493_s1 + $0x1c74] sm:$0xf0]  ;;  %v11978_v23 = vor.u32 %v13042_v38, %v11977_v36  ;;  %v7203_v44 = vadd.f32 %v7202_v33, %v7190_v43 }
 0x2f5   :  { %7441 = vmatpush.bf16.msrb.mxu0 %v11626_v39  ;;  %v11705_v52 = vld [vmem:[%s19493_s1 + $0x1d68] sm:$0xf]  ;;  %v12974_v39 = vld [vmem:[%s19493_s1 + $0x1d74] sm:$0xf0]  ;;  %v11578_v57 = vor.u32 %v12942_v51, %v11577_v48  ;;  %v7215_v4 = vpop.f32.mrf.mxu2 }
 0x2f6   :  { %7454 = vmatpush.bf16.msrb.mxu1 %v11754_v49  ;;  %v11833_v49 = vld [vmem:[%s19493_s1 + $0x1e68] sm:$0xf]  ;;  %v13038_v55 = vld [vmem:[%s19493_s1 + $0x1f74] sm:$0xf0]  ;;  %v11706_v58 = vor.u32 %v12974_v39, %v11705_v52 }
 0x2f7   :  { %7467 = vmatpush.bf16.msrb.mxu2 %v11882_v53  ;;  %v13006_v53 = vld [vmem:[%s19493_s1 + $0x1e74] sm:$0xf0]  ;;  %v11961_v54 = vld [vmem:[%s19493_s1 + $0x1f68] sm:$0xf] }
 0x2f8   :  { %7480 = vmatpush.bf16.msrb.mxu3 %v12010_v45  ;;  %v11834_v45 = vor.u32 %v13006_v53, %v11833_v49  ;;  %v11561_v47 = vld [vmem:[%s19493_s1 + $0x1c48] sm:$0xf]  ;;  %v12938_v63 = vld [vmem:[%s19493_s1 + $0x1c54] sm:$0xf0]  ;;  %v11962_v50 = vor.u32 %v13038_v55, %v11961_v54 }
 0x2f9   :  { %7442 = vmatpush.bf16.msrb.mxu0 %v11610_v5  ;;  %v11689_v3 = vld [vmem:[%s19493_s1 + $0x1d48] sm:$0xf]  ;;  %v12970_v60 = vld [vmem:[%s19493_s1 + $0x1d54] sm:$0xf0]  ;;  %v7216_v5 = vadd.f32 %v7215_v4, %v7203_v44  ;;  %v7191_v56 = vpop.f32.mrf.mxu0  ;;  %v11562_v19 = vor.u32 %v12938_v63, %v11561_v47  ;;  %v12060_v63 = vld [vmem:[%s19493_s1 + $0xec] sm:$0xf] }
 0x2fa   :  { %7455 = vmatpush.bf16.msrb.mxu1 %v11738_v10  ;;  %v11817_v59 = vld [vmem:[%s19493_s1 + $0x1e48] sm:$0xf]  ;;  %v13002_v62 = vld [vmem:[%s19493_s1 + $0x1e54] sm:$0xf0]  ;;  %v7228_v10 = vpop.f32.mrf.mxu3  ;;  %v11690_v21 = vor.u32 %v12970_v60, %v11689_v3  ;;  %v8059_v3 = vld [vmem:[%s19493_s1 + $0xf8] sm:$0xf0] }
 0x2fb   :  { %7468 = vmatpush.bf16.msrb.mxu2 %v11866_v11  ;;  %v11945_v11 = vld [vmem:[%s19493_s1 + $0x1f48] sm:$0xf]  ;;  %v13034_v15 = vld [vmem:[%s19493_s1 + $0x1f54] sm:$0xf0]  ;;  %v17853_v8 = vadd.f32 %v7228_v10, %v7216_v5  ;;  %v11818_v25 = vor.u32 %v13002_v62, %v11817_v59  ;;  %v8187_v59 = vld [vmem:[%s19493_s1 + $0x1f8] sm:$0xf0] }
 0x2fc   :  { %7481 = vmatpush.bf16.msrb.mxu3 %v11994_v20  ;;  %v7204_v20 = vpop.f32.mrf.mxu1  ;;  %v11545_v35 = vld [vmem:[%s19493_s1 + $0x1c28] sm:$0xf]  ;;  %v12934_v36 = vld [vmem:[%s19493_s1 + $0x1c34] sm:$0xf0]  ;;  %v11946_v43 = vor.u32 %v13034_v15, %v11945_v11  ;;  %v12124_v62 = vld [vmem:[%s19493_s1 + $0x2ec] sm:$0xf] }
 0x2fd   :  { %7443 = vmatpush.bf16.msrb.mxu0 %v11594_v14  ;;  %v11673_v38 = vld [vmem:[%s19493_s1 + $0x1d28] sm:$0xf]  ;;  %v12966_v14 = vld [vmem:[%s19493_s1 + $0x1d34] sm:$0xf0]  ;;  %v11546_v51 = vor.u32 %v12934_v36, %v11545_v35  ;;  %v7217_v47 = vpop.f32.mrf.mxu2  ;;  %v8315_v5 = vld [vmem:[%s19493_s1 + $0x2f8] sm:$0xf0]  ;;  %v8062_v20 = vor.u32 %v12060_v63, %v8059_v3 }
 0x2fe   :  { %7456 = vmatpush.bf16.msrb.mxu1 %v11722_v46  ;;  %v11801_v33 = vld [vmem:[%s19493_s1 + $0x1e28] sm:$0xf]  ;;  %v12998_v46 = vld [vmem:[%s19493_s1 + $0x1e34] sm:$0xf0]  ;;  %v11674_v44 = vor.u32 %v12966_v14, %v11673_v38  ;;  %v12156_v15 = vld [vmem:[%s19493_s1 + $0x3ec] sm:$0xf] }
 0x2ff   :  { %7469 = vmatpush.bf16.msrb.mxu2 %v11850_v26  ;;  %v11929_v26 = vld [vmem:[%s19493_s1 + $0x1f28] sm:$0xf]  ;;  %v13030_v48 = vld [vmem:[%s19493_s1 + $0x1f34] sm:$0xf0]  ;;  %v11802_v39 = vor.u32 %v12998_v46, %v11801_v33  ;;  %v8443_v56 = vld [vmem:[%s19493_s1 + $0x3f8] sm:$0xf0] }
 0x300   :  { %7482 = vmatpush.bf16.msrb.mxu3 %v11978_v23  ;;  %v11529_v52 = vld [vmem:[%s19493_s1 + $0x1c08] sm:$0xf]  ;;  %v12930_v23 = vld [vmem:[%s19493_s1 + $0x1c14] sm:$0xf0]  ;;  %v11930_v55 = vor.u32 %v13030_v48, %v11929_v26  ;;  %v12056_v35 = vld [vmem:[%s19493_s1 + $0xcc] sm:$0xf] }
 0x301   :  { %7444 = vmatpush.bf16.msrb.mxu0 %v11578_v57  ;;  %v11657_v49 = vld [vmem:[%s19493_s1 + $0x1d08] sm:$0xf]  ;;  %v12962_v53 = vld [vmem:[%s19493_s1 + $0x1d14] sm:$0xf0]  ;;  %v11530_v60 = vor.u32 %v12930_v23, %v11529_v52  ;;  %v8043_v36 = vld [vmem:[%s19493_s1 + $0xd8] sm:$0xf0] }
 0x302   :  { %7457 = vmatpush.bf16.msrb.mxu1 %v11706_v58  ;;  %v11785_v54 = vld [vmem:[%s19493_s1 + $0x1e08] sm:$0xf]  ;;  %v12994_v57 = vld [vmem:[%s19493_s1 + $0x1e14] sm:$0xf0]  ;;  %v7230_v4 = vpop.f32.mrf.mxu3  ;;  %v11658_v10 = vor.u32 %v12962_v53, %v11657_v49  ;;  %v12088_v38 = vld [vmem:[%s19493_s1 + $0x1cc] sm:$0xf] }
 0x303   :  { %7470 = vmatpush.bf16.msrb.mxu2 %v11834_v45  ;;  %v11913_v58 = vld [vmem:[%s19493_s1 + $0x1f08] sm:$0xf]  ;;  %v13026_v45 = vld [vmem:[%s19493_s1 + $0x1f14] sm:$0xf0]  ;;  %v11786_v11 = vor.u32 %v12994_v57, %v11785_v54  ;;  %v8171_v14 = vld [vmem:[%s19493_s1 + $0x1d8] sm:$0xf0] }
 0x304   :  { %7483 = vmatpush.bf16.msrb.mxu3 %v11962_v50  ;;  %v12092_v50 = vld [vmem:[%s19493_s1 + $0x1ec] sm:$0xf]  ;;  %v8299_v46 = vld [vmem:[%s19493_s1 + $0x2d8] sm:$0xf0]  ;;  %v8174_v52 = vor.u32 %v12088_v38, %v8171_v14  ;;  %v13069_v53 = vld [vmem:[#allocation1 + $0x24] sm:$0xff] }
 0x305   :  { %7445 = vmatpush.bf16.msrb.mxu0 %v11562_v19  ;;  %v11914_v19 = vor.u32 %v13026_v45, %v11913_v58  ;;  %v12120_v33 = vld [vmem:[%s19493_s1 + $0x2cc] sm:$0xf]  ;;  %v8427_v48 = vld [vmem:[%s19493_s1 + $0x3d8] sm:$0xf0] }
 0x306   :  { %7458 = vmatpush.bf16.msrb.mxu1 %v11690_v21  ;;  %v8190_v21 = vor.u32 %v12092_v50, %v8187_v59  ;;  %v12152_v26 = vld [vmem:[%s19493_s1 + $0x3cc] sm:$0xf]  ;;  %v8302_v23 = vor.u32 %v12120_v33, %v8299_v46  ;;  %v8283_v58 = vld [vmem:[%s19493_s1 + $0x2b8] sm:$0xf0] }
 0x307   :  { %7471 = vmatpush.bf16.msrb.mxu2 %v11818_v25  ;;  %v8318_v25 = vor.u32 %v12124_v62, %v8315_v5  ;;  %v12084_v49 = vld [vmem:[%s19493_s1 + $0x1ac] sm:$0xf]  ;;  %v8430_v54 = vor.u32 %v12152_v26, %v8427_v48  ;;  %v13070_v45 = vld [vmem:[#allocation1 + $0x36] sm:$0xff]  ;;  %v13072_v50 = vld [vmem:[#allocation1 + $0x3f] sm:$0xff] }
 0x308   :  { %7484 = vmatpush.bf16.msrb.mxu3 %v11946_v43  ;;  %v8446_v43 = vor.u32 %v12156_v15, %v8443_v56  ;;  %v12116_v57 = vld [vmem:[%s19493_s1 + $0x2ac] sm:$0xf]  ;;  %v8411_v3 = vld [vmem:[%s19493_s1 + $0x3b8] sm:$0xf0] }
 0x309   :  { %7446 = vmatpush.bf16.msrb.mxu0 %v11546_v51  ;;  %v8046_v51 = vor.u32 %v12056_v35, %v8043_v36  ;;  %v13071_v47 = vld [vmem:[#allocation1 + $0x2d] sm:$0xff]  ;;  %v8286_v59 = vor.u32 %v12116_v57, %v8283_v58  ;;  %v8011_v5 = vld [vmem:[%s19493_s1 + $0x98] sm:$0xf0] }
 0x30a   :  { %7459 = vmatpush.bf16.msrb.mxu1 %v11674_v44  ;;  %v12052_v44 = vld [vmem:[%s19493_s1 + $0xac] sm:$0xf]  ;;  %v8139_v15 = vld [vmem:[%s19493_s1 + $0x198] sm:$0xf0] }
 0x30b   :  { %7472 = vmatpush.bf16.msrb.mxu2 %v11802_v39  ;;  %v8027_v39 = vld [vmem:[%s19493_s1 + $0xb8] sm:$0xf0]  ;;  %v12148_v63 = vld [vmem:[%s19493_s1 + $0x3ac] sm:$0xf] }
 0x30c   :  { %7485 = vmatpush.bf16.msrb.mxu3 %v11930_v55  ;;  %v8155_v55 = vld [vmem:[%s19493_s1 + $0x1b8] sm:$0xf0]  ;;  %v8030_v4 = vor.u32 %v12052_v44, %v8027_v39  ;;  %v12048_v62 = vld [vmem:[%s19493_s1 + $0x8c] sm:$0xf] }
 0x30d   :  { %7447 = vmatpush.bf16.msrb.mxu0 %v11530_v60  ;;  %v8158_v60 = vor.u32 %v12084_v49, %v8155_v55  ;;  %v12112_v56 = vld [vmem:[%s19493_s1 + $0x28c] sm:$0xf]  ;;  %v8014_v36 = vor.u32 %v12048_v62, %v8011_v5  ;;  %v7995_v46 = vld [vmem:[%s19493_s1 + $0x78] sm:$0xf0] }
 0x30e   :  { %7460 = vmatpush.bf16.msrb.mxu1 %v11658_v10  ;;  %v12080_v10 = vld [vmem:[%s19493_s1 + $0x18c] sm:$0xf]  ;;  %v7254_v38 = vpop.f32.mrf.mxu1  ;;  %v8379_v39 = vld [vmem:[%s19493_s1 + $0x378] sm:$0xf0] }
 0x30f   :  { %7473 = vmatpush.bf16.msrb.mxu2 %v11786_v11  ;;  %v8414_v11 = vor.u32 %v12148_v63, %v8411_v3  ;;  %v12044_v33 = vld [vmem:[%s19493_s1 + $0x6c] sm:$0xf]  ;;  %v7979_v57 = vld [vmem:[%s19493_s1 + $0x58] sm:$0xf0] }
 0x310   :  { %7486 = vmatpush.bf16.msrb.mxu3 %v11914_v19  ;;  %7448 = vmatmul.bf16.vlgmr.msrb.gmra.mxu0 %v13069_v53  ;;  %v8267_v19 = vld [vmem:[%s19493_s1 + $0x298] sm:$0xf0]  ;;  %v12076_v26 = vld [vmem:[%s19493_s1 + $0x16c] sm:$0xf]  ;;  %v7998_v49 = vor.u32 %v12044_v33, %v7995_v46 }
 0x311   :  { %7492 = vmatpush.bf16.msra.mxu0 %v8062_v20  ;;  %7461 = vmatmul.bf16.vlgmr.msrb.gmra.mxu1 %v13071_v47  ;;  %v7241_v20 = vpop.f32.mrf.mxu0  ;;  %v8270_v14 = vor.u32 %v12112_v56, %v8267_v19  ;;  %v12140_v44 = vld [vmem:[%s19493_s1 + $0x36c] sm:$0xf]  ;;  %v8107_v63 = vld [vmem:[%s19493_s1 + $0x158] sm:$0xf0] }
 0x312   :  { %7505 = vmatpush.bf16.msra.mxu1 %v8190_v21  ;;  %7474 = vmatmul.bf16.vlgmr.msrb.gmra.mxu2 %v13070_v45  ;;  %v12144_v21 = vld [vmem:[%s19493_s1 + $0x38c] sm:$0xf]  ;;  %v7242_v35 = vadd.f32 %v7241_v20, %v17853_v8  ;;  %v8382_v45 = vor.u32 %v12140_v44, %v8379_v39  ;;  %v8363_v62 = vld [vmem:[%s19493_s1 + $0x358] sm:$0xf0] }
 0x313   :  { %7518 = vmatpush.bf16.msra.mxu2 %v8318_v25  ;;  %7487 = vmatmul.bf16.vlgmr.msrb.gmra.mxu3 %v13072_v50  ;;  %v8395_v25 = vld [vmem:[%s19493_s1 + $0x398] sm:$0xf0]  ;;  %v12040_v55 = vld [vmem:[%s19493_s1 + $0x4c] sm:$0xf] }
 0x314   :  { %7531 = vmatpush.bf16.msra.mxu3 %v8446_v43  ;;  %v8142_v43 = vor.u32 %v12080_v10, %v8139_v15  ;;  %v8398_v8 = vor.u32 %v12144_v21, %v8395_v25  ;;  %v7255_v48 = vadd.f32 %v7254_v38, %v7242_v35  ;;  %v12072_v58 = vld [vmem:[%s19493_s1 + $0x14c] sm:$0xf]  ;;  %v8235_v50 = vld [vmem:[%s19493_s1 + $0x258] sm:$0xf0]  ;;  %v7982_v10 = vor.u32 %v12040_v55, %v7979_v57 }
 0x315   :  { %7493 = vmatpush.bf16.msra.mxu0 %v8046_v51  ;;  %v8123_v51 = vld [vmem:[%s19493_s1 + $0x178] sm:$0xf0]  ;;  %v7267_v47 = vpop.f32.mrf.mxu2  ;;  %v12104_v3 = vld [vmem:[%s19493_s1 + $0x24c] sm:$0xf]  ;;  %v8110_v56 = vor.u32 %v12072_v58, %v8107_v63 }
 0x316   :  { %7506 = vmatpush.bf16.msra.mxu1 %v8174_v52  ;;  %v12108_v52 = vld [vmem:[%s19493_s1 + $0x26c] sm:$0xf]  ;;  %v8126_v53 = vor.u32 %v12076_v26, %v8123_v51  ;;  %v8238_v19 = vor.u32 %v12104_v3, %v8235_v50  ;;  %v7963_v21 = vld [vmem:[%s19493_s1 + $0x38] sm:$0xf0] }
 0x317   :  { %7519 = vmatpush.bf16.msra.mxu2 %v8302_v23  ;;  %v8251_v23 = vld [vmem:[%s19493_s1 + $0x278] sm:$0xf0]  ;;  %v12036_v20 = vld [vmem:[%s19493_s1 + $0x2c] sm:$0xf] }
 0x318   :  { %7532 = vmatpush.bf16.msra.mxu3 %v8430_v54  ;;  %v8254_v54 = vor.u32 %v12108_v52, %v8251_v23  ;;  %v12068_v25 = vld [vmem:[%s19493_s1 + $0x12c] sm:$0xf]  ;;  %v8347_v33 = vld [vmem:[%s19493_s1 + $0x338] sm:$0xf0]  ;;  %v7966_v46 = vor.u32 %v12036_v20, %v7963_v21 }
 0x319   :  { %7494 = vmatpush.bf16.msra.mxu0 %v8030_v4  ;;  %v7268_v4 = vadd.f32 %v7267_v47, %v7255_v48  ;;  %v7243_v5 = vpop.f32.mrf.mxu0  ;;  %v12100_v38 = vld [vmem:[%s19493_s1 + $0x22c] sm:$0xf]  ;;  %v8075_v23 = vld [vmem:[%s19493_s1 + $0x118] sm:$0xf0] }
 0x31a   :  { %7507 = vmatpush.bf16.msra.mxu1 %v8158_v60  ;;  %v7280_v60 = vpop.f32.mrf.mxu3  ;;  %v12032_v26 = vld [vmem:[%s19493_s1 + $0xc] sm:$0xf]  ;;  %v8571_v58 = vld [vmem:[%s19493_s1 + $0x4f8] sm:$0xf0] }
 0x31b   :  { %7520 = vmatpush.bf16.msra.mxu2 %v8286_v59  ;;  %v12136_v59 = vld [vmem:[%s19493_s1 + $0x34c] sm:$0xf]  ;;  %v18048_v15 = vadd.f32 %v7280_v60, %v7268_v4  ;;  %v8699_v3 = vld [vmem:[%s19493_s1 + $0x5f8] sm:$0xf0] }
 0x31c   :  { %7533 = vmatpush.bf16.msra.mxu3 %v8414_v11  ;;  %v7256_v11 = vpop.f32.mrf.mxu1  ;;  %v8366_v35 = vor.u32 %v12136_v59, %v8363_v62  ;;  %v12064_v52 = vld [vmem:[%s19493_s1 + $0x10c] sm:$0xf]  ;;  %v8827_v4 = vld [vmem:[%s19493_s1 + $0x6f8] sm:$0xf0] }
 0x31d   :  { %7495 = vmatpush.bf16.msra.mxu0 %v8014_v36  ;;  %v8091_v36 = vld [vmem:[%s19493_s1 + $0x138] sm:$0xf0]  ;;  %v12096_v44 = vld [vmem:[%s19493_s1 + $0x20c] sm:$0xf]  ;;  %v7269_v55 = vpop.f32.mrf.mxu2  ;;  %v8078_v60 = vor.u32 %v12064_v52, %v8075_v23 }
 0x31e   :  { %7508 = vmatpush.bf16.msra.mxu1 %v8142_v43  ;;  %v8219_v43 = vld [vmem:[%s19493_s1 + $0x238] sm:$0xf0]  ;;  %v8094_v48 = vor.u32 %v12068_v25, %v8091_v36  ;;  %v12188_v57 = vld [vmem:[%s19493_s1 + $0x4ec] sm:$0xf] }
 0x31f   :  { %7521 = vmatpush.bf16.msra.mxu2 %v8270_v14  ;;  %v12132_v14 = vld [vmem:[%s19493_s1 + $0x32c] sm:$0xf]  ;;  %v8222_v51 = vor.u32 %v12100_v38, %v8219_v43  ;;  %v8955_v5 = vld [vmem:[%s19493_s1 + $0x7f8] sm:$0xf0]  ;;  %v8574_v11 = vor.u32 %v12188_v57, %v8571_v58 }
 0x320   :  { %7534 = vmatpush.bf16.msra.mxu3 %v8398_v8  ;;  %v7947_v8 = vld [vmem:[%s19493_s1 + $0x18] sm:$0xf0]  ;;  %v8350_v39 = vor.u32 %v12132_v14, %v8347_v33  ;;  %v12252_v50 = vld [vmem:[%s19493_s1 + $0x6ec] sm:$0xf] }
 0x321   :  { %7496 = vmatpush.bf16.msra.mxu0 %v7998_v49  ;;  %v8203_v49 = vld [vmem:[%s19493_s1 + $0x218] sm:$0xf0]  ;;  %v7950_v63 = vor.u32 %v12032_v26, %v7947_v8  ;;  %v12284_v62 = vld [vmem:[%s19493_s1 + $0x7ec] sm:$0xf] }
 0x322   :  { %7509 = vmatpush.bf16.msra.mxu1 %v8126_v53  ;;  %v12128_v53 = vld [vmem:[%s19493_s1 + $0x30c] sm:$0xf]  ;;  %v7282_v47 = vpop.f32.mrf.mxu3  ;;  %v8206_v59 = vor.u32 %v12096_v44, %v8203_v49  ;;  %v8555_v21 = vld [vmem:[%s19493_s1 + $0x4d8] sm:$0xf0] }
 0x323   :  { %7522 = vmatpush.bf16.msra.mxu2 %v8254_v54  ;;  %v8331_v54 = vld [vmem:[%s19493_s1 + $0x318] sm:$0xf0]  ;;  %v12184_v20 = vld [vmem:[%s19493_s1 + $0x4cc] sm:$0xf] }
 0x324   :  { %7535 = vmatpush.bf16.msra.mxu3 %v8382_v45  ;;  %v12220_v45 = vld [vmem:[%s19493_s1 + $0x5ec] sm:$0xf]  ;;  %v8683_v36 = vld [vmem:[%s19493_s1 + $0x5d8] sm:$0xf0] }
 0x325   :  { %7497 = vmatpush.bf16.msra.mxu0 %v7982_v10  ;;  %v8334_v10 = vor.u32 %v12128_v53, %v8331_v54  ;;  %v12216_v25 = vld [vmem:[%s19493_s1 + $0x5cc] sm:$0xf]  ;;  %v8811_v43 = vld [vmem:[%s19493_s1 + $0x6d8] sm:$0xf0] }
 0x326   :  { %7510 = vmatpush.bf16.msra.mxu1 %v8110_v56  ;;  %v8702_v56 = vor.u32 %v12220_v45, %v8699_v3  ;;  %v12248_v38 = vld [vmem:[%s19493_s1 + $0x6cc] sm:$0xf]  ;;  %v8939_v33 = vld [vmem:[%s19493_s1 + $0x7d8] sm:$0xf0]  ;;  %v8686_v26 = vor.u32 %v12216_v25, %v8683_v36 }
 0x327   :  { %7523 = vmatpush.bf16.msra.mxu2 %v8238_v19  ;;  %v8830_v19 = vor.u32 %v12252_v50, %v8827_v4  ;;  %v12280_v14 = vld [vmem:[%s19493_s1 + $0x7cc] sm:$0xf]  ;;  %v8814_v8 = vor.u32 %v12248_v38, %v8811_v43  ;;  %v8667_v44 = vld [vmem:[%s19493_s1 + $0x5b8] sm:$0xf0] }
 0x328   :  { %7536 = vmatpush.bf16.msra.mxu3 %v8366_v35  ;;  %v8958_v35 = vor.u32 %v12284_v62, %v8955_v5  ;;  %v12212_v52 = vld [vmem:[%s19493_s1 + $0x5ac] sm:$0xf]  ;;  %v8942_v23 = vor.u32 %v12280_v14, %v8939_v33  ;;  %v8795_v49 = vld [vmem:[%s19493_s1 + $0x6b8] sm:$0xf0] }
 0x329   :  { %7498 = vmatpush.bf16.msra.mxu0 %v7966_v46  ;;  %v8558_v46 = vor.u32 %v12184_v20, %v8555_v21  ;;  %v12276_v53 = vld [vmem:[%s19493_s1 + $0x7ac] sm:$0xf]  ;;  %v8923_v54 = vld [vmem:[%s19493_s1 + $0x7b8] sm:$0xf0]  ;;  %v8670_v57 = vor.u32 %v12212_v52, %v8667_v44 }
 0x32a   :  { %7511 = vmatpush.bf16.msra.mxu1 %v8094_v48  ;;  %v12180_v48 = vld [vmem:[%s19493_s1 + $0x4ac] sm:$0xf]  ;;  %v8523_v45 = vld [vmem:[%s19493_s1 + $0x498] sm:$0xf0] }
 0x32b   :  { %7524 = vmatpush.bf16.msra.mxu2 %v8222_v51  ;;  %v8539_v51 = vld [vmem:[%s19493_s1 + $0x4b8] sm:$0xf0]  ;;  %v12176_v58 = vld [vmem:[%s19493_s1 + $0x48c] sm:$0xf] }
 0x32c   :  { %7537 = vmatpush.bf16.msra.mxu3 %v8350_v39  ;;  %v12244_v39 = vld [vmem:[%s19493_s1 + $0x6ac] sm:$0xf]  ;;  %v8542_v55 = vor.u32 %v12180_v48, %v8539_v51  ;;  %v8907_v4 = vld [vmem:[%s19493_s1 + $0x798] sm:$0xf0] }
 0x32d   :  { %7499 = vmatpush.bf16.msra.mxu0 %v7950_v63  ;;  %v12240_v47 = vld [vmem:[%s19493_s1 + $0x68c] sm:$0xf]  ;;  %v8779_v63 = vld [vmem:[%s19493_s1 + $0x698] sm:$0xf0]  ;;  %v7293_v3 = vpop.f32.mrf.mxu0 }
 0x32e   :  { %7512 = vmatpush.bf16.msra.mxu1 %v8078_v60  ;;  %v12272_v50 = vld [vmem:[%s19493_s1 + $0x78c] sm:$0xf]  ;;  %v7294_v60 = vadd.f32 %v7293_v3, %v18048_v15  ;;  %v7306_v62 = vpop.f32.mrf.mxu1  ;;  %v8635_v21 = vld [vmem:[%s19493_s1 + $0x578] sm:$0xf0] }
 0x32f   :  { %7525 = vmatpush.bf16.msra.mxu2 %v8206_v59  ;;  %v8526_v59 = vor.u32 %v12176_v58, %v8523_v45  ;;  %v8910_v15 = vor.u32 %v12272_v50, %v8907_v4  ;;  %v12236_v25 = vld [vmem:[%s19493_s1 + $0x66c] sm:$0xf]  ;;  %v8891_v38 = vld [vmem:[%s19493_s1 + $0x778] sm:$0xf0] }
 0x330   :  { %7538 = vmatpush.bf16.msra.mxu3 %v8334_v10  ;;  %7500 = vmatmul.bf16.vlgmr.msra.gmra.mxu0 %v13422_v28  ;;  %v12208_v28 = vld [vmem:[%s19493_s1 + $0x58c] sm:$0xf]  ;;  %v8782_v10 = vor.u32 %v12240_v47, %v8779_v63  ;;  %v7307_v20 = vadd.f32 %v7306_v62, %v7294_v60  ;;  %v8619_v52 = vld [vmem:[%s19493_s1 + $0x558] sm:$0xf0] }
 0x331   :  { %7544 = vmatpush.bf16.msrb.mxu0 %v8574_v11  ;;  %7513 = vmatmul.bf16.vlgmr.msra.gmra.mxu1 %v13432_v34  ;;  %v8651_v34 = vld [vmem:[%s19493_s1 + $0x598] sm:$0xf0]  ;;  %v12172_v11 = vld [vmem:[%s19493_s1 + $0x46c] sm:$0xf] }
 0x332   :  { %7557 = vmatpush.bf16.msrb.mxu1 %v8702_v56  ;;  %7526 = vmatmul.bf16.vlgmr.msra.gmra.mxu2 %v13420_v27  ;;  %v8798_v27 = vor.u32 %v12244_v39, %v8795_v49  ;;  %v8654_v5 = vor.u32 %v12208_v28, %v8651_v34  ;;  %v8507_v56 = vld [vmem:[%s19493_s1 + $0x478] sm:$0xf0]  ;;  %v12268_v36 = vld [vmem:[%s19493_s1 + $0x76c] sm:$0xf] }
 0x333   :  { %7570 = vmatpush.bf16.msrb.mxu2 %v8830_v19  ;;  %7539 = vmatmul.bf16.vlgmr.msra.gmra.mxu3 %v13424_v29  ;;  %v8926_v29 = vor.u32 %v12276_v53, %v8923_v54  ;;  %v12204_v19 = vld [vmem:[%s19493_s1 + $0x56c] sm:$0xf]  ;;  %v8510_v43 = vor.u32 %v12172_v11, %v8507_v56  ;;  %v8894_v48 = vor.u32 %v12268_v36, %v8891_v38  ;;  %v8747_v44 = vld [vmem:[%s19493_s1 + $0x658] sm:$0xf0] }
 0x334   :  { %7583 = vmatpush.bf16.msrb.mxu3 %v8958_v35  ;;  %v8763_v35 = vld [vmem:[%s19493_s1 + $0x678] sm:$0xf0]  ;;  %v8638_v14 = vor.u32 %v12204_v19, %v8635_v21  ;;  %v12264_v53 = vld [vmem:[%s19493_s1 + $0x74c] sm:$0xf] }
 0x335   :  { %7545 = vmatpush.bf16.msrb.mxu0 %v8558_v46  ;;  %v8766_v33 = vor.u32 %v12236_v25, %v8763_v35  ;;  %v12168_v46 = vld [vmem:[%s19493_s1 + $0x44c] sm:$0xf]  ;;  %v7319_v51 = vpop.f32.mrf.mxu2  ;;  %v8875_v54 = vld [vmem:[%s19493_s1 + $0x758] sm:$0xf0] }
 0x336   :  { %7558 = vmatpush.bf16.msrb.mxu1 %v8686_v26  ;;  %v8491_v26 = vld [vmem:[%s19493_s1 + $0x458] sm:$0xf0]  ;;  %v7320_v39 = vadd.f32 %v7319_v51, %v7307_v20  ;;  %v7332_v49 = vpop.f32.mrf.mxu3  ;;  %v12196_v47 = vld [vmem:[%s19493_s1 + $0x52c] sm:$0xf]  ;;  %v8878_v63 = vor.u32 %v12264_v53, %v8875_v54 }
 0x337   :  { %7571 = vmatpush.bf16.msrb.mxu2 %v8814_v8  ;;  %v12200_v8 = vld [vmem:[%s19493_s1 + $0x54c] sm:$0xf]  ;;  %v8475_v34 = vld [vmem:[%s19493_s1 + $0x438] sm:$0xf0] }
 0x338   :  { %7584 = vmatpush.bf16.msrb.mxu3 %v8942_v23  ;;  %v12232_v23 = vld [vmem:[%s19493_s1 + $0x64c] sm:$0xf]  ;;  %v18247_v58 = vadd.f32 %v7332_v49, %v7320_v39  ;;  %v8622_v45 = vor.u32 %v12200_v8, %v8619_v52  ;;  %v8603_v3 = vld [vmem:[%s19493_s1 + $0x538] sm:$0xf0] }
 0x339   :  { %7546 = vmatpush.bf16.msrb.mxu0 %v8542_v55  ;;  %v7295_v55 = vpop.f32.mrf.mxu0  ;;  %v8750_v28 = vor.u32 %v12232_v23, %v8747_v44  ;;  %v12228_v50 = vld [vmem:[%s19493_s1 + $0x62c] sm:$0xf]  ;;  %v8731_v4 = vld [vmem:[%s19493_s1 + $0x638] sm:$0xf0]  ;;  %v8606_v11 = vor.u32 %v12196_v47, %v8603_v3 }
 0x33a   :  { %7559 = vmatpush.bf16.msrb.mxu1 %v8670_v57  ;;  %v8494_v57 = vor.u32 %v12168_v46, %v8491_v26  ;;  %v12260_v60 = vld [vmem:[%s19493_s1 + $0x72c] sm:$0xf]  ;;  %v8734_v56 = vor.u32 %v12228_v50, %v8731_v4  ;;  %v8715_v25 = vld [vmem:[%s19493_s1 + $0x618] sm:$0xf0] }
 0x33b   :  { %7572 = vmatpush.bf16.msrb.mxu2 %v8798_v27  ;;  %v7308_v27 = vpop.f32.mrf.mxu1  ;;  %v12192_v19 = vld [vmem:[%s19493_s1 + $0x50c] sm:$0xf]  ;;  %v8843_v36 = vld [vmem:[%s19493_s1 + $0x718] sm:$0xf0] }
 0x33c   :  { %7585 = vmatpush.bf16.msrb.mxu3 %v8926_v29  ;;  %v12164_v29 = vld [vmem:[%s19493_s1 + $0x42c] sm:$0xf]  ;;  %v9211_v8 = vld [vmem:[%s19493_s1 + $0x9f8] sm:$0xf0] }
 0x33d   :  { %7547 = vmatpush.bf16.msrb.mxu0 %v8526_v59  ;;  %v8859_v59 = vld [vmem:[%s19493_s1 + $0x738] sm:$0xf0]  ;;  %v8478_v62 = vor.u32 %v12164_v29, %v8475_v34  ;;  %v12224_v20 = vld [vmem:[%s19493_s1 + $0x60c] sm:$0xf]  ;;  %v7321_v38 = vpop.f32.mrf.mxu2 }
 0x33e   :  { %7560 = vmatpush.bf16.msrb.mxu1 %v8654_v5  ;;  %v12160_v5 = vld [vmem:[%s19493_s1 + $0x40c] sm:$0xf]  ;;  %v8862_v21 = vor.u32 %v12260_v60, %v8859_v59  ;;  %v7334_v46 = vpop.f32.mrf.mxu3  ;;  %v9339_v51 = vld [vmem:[%s19493_s1 + $0xaf8] sm:$0xf0]  ;;  %v8718_v23 = vor.u32 %v12224_v20, %v8715_v25 }
 0x33f   :  { %7573 = vmatpush.bf16.msrb.mxu2 %v8782_v10  ;;  %v8459_v10 = vld [vmem:[%s19493_s1 + $0x418] sm:$0xf0]  ;;  %v12256_v35 = vld [vmem:[%s19493_s1 + $0x70c] sm:$0xf] }
 0x340   :  { %7586 = vmatpush.bf16.msrb.mxu3 %v8910_v15  ;;  %v8587_v15 = vld [vmem:[%s19493_s1 + $0x518] sm:$0xf0]  ;;  %v8462_v26 = vor.u32 %v12160_v5, %v8459_v10  ;;  %v12412_v44 = vld [vmem:[%s19493_s1 + $0xbec] sm:$0xf]  ;;  %v8846_v49 = vor.u32 %v12256_v35, %v8843_v36 }
 0x341   :  { %7548 = vmatpush.bf16.msrb.mxu0 %v8510_v43  ;;  %v12316_v43 = vld [vmem:[%s19493_s1 + $0x8ec] sm:$0xf]  ;;  %v8590_v52 = vor.u32 %v12192_v19, %v8587_v15  ;;  %v9467_v39 = vld [vmem:[%s19493_s1 + $0xbf8] sm:$0xf0] }
 0x342   :  { %7561 = vmatpush.bf16.msrb.mxu1 %v8638_v14  ;;  %v9083_v14 = vld [vmem:[%s19493_s1 + $0x8f8] sm:$0xf0]  ;;  %v12376_v34 = vld [vmem:[%s19493_s1 + $0xacc] sm:$0xf] }
 0x343   :  { %7574 = vmatpush.bf16.msrb.mxu2 %v8766_v33  ;;  %v12348_v33 = vld [vmem:[%s19493_s1 + $0x9ec] sm:$0xf]  ;;  %v9086_v53 = vor.u32 %v12316_v43, %v9083_v14  ;;  %v9067_v27 = vld [vmem:[%s19493_s1 + $0x8d8] sm:$0xf0] }
 0x344   :  { %7587 = vmatpush.bf16.msrb.mxu3 %v8894_v48  ;;  %v12380_v48 = vld [vmem:[%s19493_s1 + $0xaec] sm:$0xf]  ;;  %v9214_v54 = vor.u32 %v12348_v33, %v9211_v8  ;;  %v9195_v29 = vld [vmem:[%s19493_s1 + $0x9d8] sm:$0xf0] }
 0x345   :  { %7549 = vmatpush.bf16.msrb.mxu0 %v8494_v57  ;;  %v9342_v55 = vor.u32 %v12380_v48, %v9339_v51  ;;  %v12312_v57 = vld [vmem:[%s19493_s1 + $0x8cc] sm:$0xf]  ;;  %v9323_v47 = vld [vmem:[%s19493_s1 + $0xad8] sm:$0xf0] }
 0x346   :  { %7562 = vmatpush.bf16.msrb.mxu1 %v8622_v45  ;;  %v12344_v45 = vld [vmem:[%s19493_s1 + $0x9cc] sm:$0xf]  ;;  %v9451_v3 = vld [vmem:[%s19493_s1 + $0xbd8] sm:$0xf0]  ;;  %v9070_v50 = vor.u32 %v12312_v57, %v9067_v27  ;;  %v9326_v60 = vor.u32 %v12376_v34, %v9323_v47 }
 0x347   :  { %7575 = vmatpush.bf16.msrb.mxu2 %v8750_v28  ;;  %v9470_v28 = vor.u32 %v12412_v44, %v9467_v39  ;;  %v9198_v4 = vor.u32 %v12344_v45, %v9195_v29  ;;  %v12308_v59 = vld [vmem:[%s19493_s1 + $0x8ac] sm:$0xf]  ;;  %v9307_v19 = vld [vmem:[%s19493_s1 + $0xab8] sm:$0xf0] }
 0x348   :  { %7588 = vmatpush.bf16.msrb.mxu3 %v8878_v63  ;;  %v12408_v63 = vld [vmem:[%s19493_s1 + $0xbcc] sm:$0xf]  ;;  %v9035_v36 = vld [vmem:[%s19493_s1 + $0x898] sm:$0xf0] }
 0x349   :  { %7550 = vmatpush.bf16.msrb.mxu0 %v8478_v62  ;;  %v9051_v62 = vld [vmem:[%s19493_s1 + $0x8b8] sm:$0xf0]  ;;  %v12340_v5 = vld [vmem:[%s19493_s1 + $0x9ac] sm:$0xf]  ;;  %v9454_v10 = vor.u32 %v12408_v63, %v9451_v3 }
 0x34a   :  { %7563 = vmatpush.bf16.msrb.mxu1 %v8606_v11  ;;  %v9179_v11 = vld [vmem:[%s19493_s1 + $0x9b8] sm:$0xf0]  ;;  %v12404_v15 = vld [vmem:[%s19493_s1 + $0xbac] sm:$0xf]  ;;  %v9054_v20 = vor.u32 %v12308_v59, %v9051_v62 }
 0x34b   :  { %7576 = vmatpush.bf16.msrb.mxu2 %v8734_v56  ;;  %v12372_v56 = vld [vmem:[%s19493_s1 + $0xaac] sm:$0xf]  ;;  %v9291_v43 = vld [vmem:[%s19493_s1 + $0xa98] sm:$0xf0] }
 0x34c   :  { %7589 = vmatpush.bf16.msrb.mxu3 %v8862_v21  ;;  %v9182_v21 = vor.u32 %v12340_v5, %v9179_v11  ;;  %v9310_v25 = vor.u32 %v12372_v56, %v9307_v19  ;;  %v12304_v35 = vld [vmem:[%s19493_s1 + $0x88c] sm:$0xf]  ;;  %v9419_v46 = vld [vmem:[%s19493_s1 + $0xb98] sm:$0xf0] }
 0x34d   :  { %7551 = vmatpush.bf16.msrb.mxu0 %v8462_v26  ;;  %v12368_v38 = vld [vmem:[%s19493_s1 + $0xa8c] sm:$0xf]  ;;  %v7345_v14 = vpop.f32.mrf.mxu0  ;;  %v9038_v8 = vor.u32 %v12304_v35, %v9035_v36  ;;  %v9019_v44 = vld [vmem:[%s19493_s1 + $0x878] sm:$0xf0] }
 0x34e   :  { %7564 = vmatpush.bf16.msrb.mxu1 %v8590_v52  ;;  %v12400_v33 = vld [vmem:[%s19493_s1 + $0xb8c] sm:$0xf]  ;;  %v7346_v26 = vadd.f32 %v7345_v14, %v18247_v58  ;;  %v7358_v48 = vpop.f32.mrf.mxu1  ;;  %v9294_v52 = vor.u32 %v12368_v38, %v9291_v43  ;;  %v9403_v27 = vld [vmem:[%s19493_s1 + $0xb78] sm:$0xf0] }
 0x34f   :  { %7577 = vmatpush.bf16.msrb.mxu2 %v8718_v23  ;;  %v12300_v23 = vld [vmem:[%s19493_s1 + $0x86c] sm:$0xf]  ;;  %v9422_v58 = vor.u32 %v12400_v33, %v9419_v46  ;;  %v9003_v47 = vld [vmem:[%s19493_s1 + $0x858] sm:$0xf0] }
 0x350   :  { %7590 = vmatpush.bf16.msrb.mxu3 %v8846_v49  ;;  %7552 = vmatmul.bf16.vlgmr.msrb.gmra.mxu0 %v13500_v0  ;;  %v12336_v0 = vld [vmem:[%s19493_s1 + $0x98c] sm:$0xf]  ;;  %v7359_v49 = vadd.f32 %v7358_v48, %v7346_v26  ;;  %v9022_v45 = vor.u32 %v12300_v23, %v9019_v44  ;;  %v9259_v59 = vld [vmem:[%s19493_s1 + $0xa58] sm:$0xf0] }
 0x351   :  { %7596 = vmatpush.bf16.msra.mxu0 %v9086_v53  ;;  %7565 = vmatmul.bf16.vlgmr.msrb.gmra.mxu1 %v13504_v2  ;;  %v9163_v2 = vld [vmem:[%s19493_s1 + $0x998] sm:$0xf0]  ;;  %v12332_v39 = vld [vmem:[%s19493_s1 + $0x96c] sm:$0xf] }
 0x352   :  { %7609 = vmatpush.bf16.msra.mxu1 %v9214_v54  ;;  %7578 = vmatmul.bf16.vlgmr.msrb.gmra.mxu2 %v13498_v61  ;;  %v9435_v61 = vld [vmem:[%s19493_s1 + $0xbb8] sm:$0xf0]  ;;  %v9166_v51 = vor.u32 %v12336_v0, %v9163_v2  ;;  %v12364_v54 = vld [vmem:[%s19493_s1 + $0xa6c] sm:$0xf] }
 0x353   :  { %7622 = vmatpush.bf16.msra.mxu2 %v9342_v55  ;;  %7591 = vmatmul.bf16.vlgmr.msrb.gmra.mxu3 %v13502_v1  ;;  %v9438_v1 = vor.u32 %v12404_v15, %v9435_v61  ;;  %v9147_v53 = vld [vmem:[%s19493_s1 + $0x978] sm:$0xf0]  ;;  %v12396_v57 = vld [vmem:[%s19493_s1 + $0xb6c] sm:$0xf] }
 0x354   :  { %7635 = vmatpush.bf16.msra.mxu3 %v9470_v28  ;;  %v9275_v55 = vld [vmem:[%s19493_s1 + $0xa78] sm:$0xf0]  ;;  %v9150_v28 = vor.u32 %v12332_v39, %v9147_v53  ;;  %v12296_v34 = vld [vmem:[%s19493_s1 + $0x84c] sm:$0xf]  ;;  %v9406_v3 = vor.u32 %v12396_v57, %v9403_v27 }
 0x355   :  { %7597 = vmatpush.bf16.msra.mxu0 %v9070_v50  ;;  %v9278_v29 = vor.u32 %v12364_v54, %v9275_v55  ;;  %v12328_v63 = vld [vmem:[%s19493_s1 + $0x94c] sm:$0xf]  ;;  %v7371_v50 = vpop.f32.mrf.mxu2  ;;  %v9387_v11 = vld [vmem:[%s19493_s1 + $0xb58] sm:$0xf0]  ;;  %v7347_v56 = vpop.f32.mrf.mxu0  ;;  %v9006_v19 = vor.u32 %v12296_v34, %v9003_v47 }
 0x356   :  { %7610 = vmatpush.bf16.msra.mxu1 %v9198_v4  ;;  %v9131_v4 = vld [vmem:[%s19493_s1 + $0x958] sm:$0xf0]  ;;  %v7372_v62 = vadd.f32 %v7371_v50, %v7359_v49  ;;  %v7384_v5 = vpop.f32.mrf.mxu3  ;;  %v7360_v15 = vpop.f32.mrf.mxu1  ;;  %v12324_v36 = vld [vmem:[%s19493_s1 + $0x92c] sm:$0xf] }
 0x357   :  { %7623 = vmatpush.bf16.msra.mxu2 %v9326_v60  ;;  %v12360_v60 = vld [vmem:[%s19493_s1 + $0xa4c] sm:$0xf]  ;;  %v8987_v35 = vld [vmem:[%s19493_s1 + $0x838] sm:$0xf0] }
 0x358   :  { %7636 = vmatpush.bf16.msra.mxu3 %v9454_v10  ;;  %v12392_v10 = vld [vmem:[%s19493_s1 + $0xb4c] sm:$0xf]  ;;  %v18446_v61 = vadd.f32 %v7384_v5, %v7372_v62  ;;  %v9243_v38 = vld [vmem:[%s19493_s1 + $0xa38] sm:$0xf0] }
 0x359   :  { %7598 = vmatpush.bf16.msra.mxu0 %v9054_v20  ;;  %v9134_v20 = vor.u32 %v12328_v63, %v9131_v4  ;;  %v9390_v0 = vor.u32 %v12392_v10, %v9387_v11  ;;  %v12356_v2 = vld [vmem:[%s19493_s1 + $0xa2c] sm:$0xf]  ;;  %v9371_v14 = vld [vmem:[%s19493_s1 + $0xb38] sm:$0xf0] }
 0x35a   :  { %7611 = vmatpush.bf16.msra.mxu1 %v9182_v21  ;;  %v9262_v21 = vor.u32 %v12360_v60, %v9259_v59  ;;  %v12388_v43 = vld [vmem:[%s19493_s1 + $0xb2c] sm:$0xf]  ;;  %v8971_v26 = vld [vmem:[%s19493_s1 + $0x818] sm:$0xf0]  ;;  %v9246_v48 = vor.u32 %v12356_v2, %v9243_v38 }
 0x35b   :  { %7624 = vmatpush.bf16.msra.mxu2 %v9310_v25  ;;  %v12292_v25 = vld [vmem:[%s19493_s1 + $0x82c] sm:$0xf]  ;;  %v9374_v44 = vor.u32 %v12388_v43, %v9371_v14  ;;  %v9227_v39 = vld [vmem:[%s19493_s1 + $0xa18] sm:$0xf0] }
 0x35c   :  { %7637 = vmatpush.bf16.msra.mxu3 %v9438_v1  ;;  %v9115_v1 = vld [vmem:[%s19493_s1 + $0x938] sm:$0xf0]  ;;  %v8990_v33 = vor.u32 %v12292_v25, %v8987_v35  ;;  %v12288_v46 = vld [vmem:[%s19493_s1 + $0x80c] sm:$0xf] }
 0x35d   :  { %7599 = vmatpush.bf16.msra.mxu0 %v9038_v8  ;;  %v9118_v8 = vor.u32 %v12324_v36, %v9115_v1  ;;  %v12352_v23 = vld [vmem:[%s19493_s1 + $0xa0c] sm:$0xf]  ;;  %v9355_v49 = vld [vmem:[%s19493_s1 + $0xb18] sm:$0xf0]  ;;  %v7373_v53 = vpop.f32.mrf.mxu2 }
 0x35e   :  { %7612 = vmatpush.bf16.msra.mxu1 %v9166_v51  ;;  %v12320_v51 = vld [vmem:[%s19493_s1 + $0x90c] sm:$0xf]  ;;  %v9595_v55 = vld [vmem:[%s19493_s1 + $0xcf8] sm:$0xf0]  ;;  %v7386_v27 = vpop.f32.mrf.mxu3  ;;  %v9230_v63 = vor.u32 %v12352_v23, %v9227_v39 }
 0x35f   :  { %7625 = vmatpush.bf16.msra.mxu2 %v9294_v52  ;;  %v9099_v52 = vld [vmem:[%s19493_s1 + $0x918] sm:$0xf0]  ;;  %v12444_v54 = vld [vmem:[%s19493_s1 + $0xcec] sm:$0xf] }
 0x360   :  { %7638 = vmatpush.bf16.msra.mxu3 %v9422_v58  ;;  %v12384_v58 = vld [vmem:[%s19493_s1 + $0xb0c] sm:$0xf]  ;;  %v9851_v34 = vld [vmem:[%s19493_s1 + $0xef8] sm:$0xf0]  ;;  %v9102_v47 = vor.u32 %v12320_v51, %v9099_v52  ;;  %v9598_v60 = vor.u32 %v12444_v54, %v9595_v55 }
 0x361   :  { %7600 = vmatpush.bf16.msra.mxu0 %v9022_v45  ;;  %v12476_v57 = vld [vmem:[%s19493_s1 + $0xdec] sm:$0xf]  ;;  %v8974_v45 = vor.u32 %v12288_v46, %v8971_v26  ;;  %v9979_v50 = vld [vmem:[%s19493_s1 + $0xff8] sm:$0xf0]  ;;  %v9358_v4 = vor.u32 %v12384_v58, %v9355_v49 }
 0x362   :  { %7613 = vmatpush.bf16.msra.mxu1 %v9150_v28  ;;  %v9723_v28 = vld [vmem:[%s19493_s1 + $0xdf8] sm:$0xf0]  ;;  %v12440_v5 = vld [vmem:[%s19493_s1 + $0xccc] sm:$0xf] }
 0x363   :  { %7626 = vmatpush.bf16.msra.mxu2 %v9278_v29  ;;  %v12508_v29 = vld [vmem:[%s19493_s1 + $0xeec] sm:$0xf]  ;;  %v9726_v59 = vor.u32 %v12476_v57, %v9723_v28  ;;  %v9579_v10 = vld [vmem:[%s19493_s1 + $0xcd8] sm:$0xf0] }
 0x364   :  { %7639 = vmatpush.bf16.msra.mxu3 %v9406_v3  ;;  %v12540_v3 = vld [vmem:[%s19493_s1 + $0xfec] sm:$0xf]  ;;  %v9854_v62 = vor.u32 %v12508_v29, %v9851_v34  ;;  %v9963_v25 = vld [vmem:[%s19493_s1 + $0xfd8] sm:$0xf0]  ;;  %v9582_v35 = vor.u32 %v12440_v5, %v9579_v10 }
 0x365   :  { %7601 = vmatpush.bf16.msra.mxu0 %v9006_v19  ;;  %v12472_v11 = vld [vmem:[%s19493_s1 + $0xdcc] sm:$0xf]  ;;  %v9982_v56 = vor.u32 %v12540_v3, %v9979_v50  ;;  %v9707_v19 = vld [vmem:[%s19493_s1 + $0xdd8] sm:$0xf0] }
 0x366   :  { %7614 = vmatpush.bf16.msra.mxu1 %v9134_v20  ;;  %v12504_v15 = vld [vmem:[%s19493_s1 + $0xecc] sm:$0xf]  ;;  %v9835_v20 = vld [vmem:[%s19493_s1 + $0xed8] sm:$0xf0]  ;;  %v9710_v36 = vor.u32 %v12472_v11, %v9707_v19 }
 0x367   :  { %7627 = vmatpush.bf16.msra.mxu2 %v9262_v21  ;;  %v12536_v21 = vld [vmem:[%s19493_s1 + $0xfcc] sm:$0xf]  ;;  %v9563_v2 = vld [vmem:[%s19493_s1 + $0xcb8] sm:$0xf0] }
 0x368   :  { %7640 = vmatpush.bf16.msra.mxu3 %v9390_v0  ;;  %v9838_v0 = vor.u32 %v12504_v15, %v9835_v20  ;;  %v12436_v1 = vld [vmem:[%s19493_s1 + $0xcac] sm:$0xf]  ;;  %v9966_v43 = vor.u32 %v12536_v21, %v9963_v25  ;;  %v9691_v14 = vld [vmem:[%s19493_s1 + $0xdb8] sm:$0xf0] }
 0x369   :  { %7602 = vmatpush.bf16.msra.mxu0 %v8990_v33  ;;  %v12468_v38 = vld [vmem:[%s19493_s1 + $0xdac] sm:$0xf]  ;;  %v9819_v46 = vld [vmem:[%s19493_s1 + $0xeb8] sm:$0xf0] }
 0x36a   :  { %7615 = vmatpush.bf16.msra.mxu1 %v9118_v8  ;;  %v12500_v33 = vld [vmem:[%s19493_s1 + $0xeac] sm:$0xf]  ;;  %v9947_v26 = vld [vmem:[%s19493_s1 + $0xfb8] sm:$0xf0]  ;;  %v9566_v8 = vor.u32 %v12436_v1, %v9563_v2 }
 0x36b   :  { %7628 = vmatpush.bf16.msra.mxu2 %v9246_v48  ;;  %v9694_v48 = vor.u32 %v12468_v38, %v9691_v14  ;;  %v9822_v51 = vor.u32 %v12500_v33, %v9819_v46  ;;  %v12464_v52 = vld [vmem:[%s19493_s1 + $0xd8c] sm:$0xf]  ;;  %v9675_v23 = vld [vmem:[%s19493_s1 + $0xd98] sm:$0xf0] }
 0x36c   :  { %7641 = vmatpush.bf16.msra.mxu3 %v9374_v44  ;;  %v12496_v44 = vld [vmem:[%s19493_s1 + $0xe8c] sm:$0xf]  ;;  %v9803_v39 = vld [vmem:[%s19493_s1 + $0xe98] sm:$0xf0]  ;;  %v9678_v27 = vor.u32 %v12464_v52, %v9675_v23 }
 0x36d   :  { %7603 = vmatpush.bf16.msra.mxu0 %v8974_v45  ;;  %v7397_v58 = vpop.f32.mrf.mxu0  ;;  %v12528_v49 = vld [vmem:[%s19493_s1 + $0xf8c] sm:$0xf]  ;;  %v9931_v53 = vld [vmem:[%s19493_s1 + $0xf98] sm:$0xf0]  ;;  %v9806_v45 = vor.u32 %v12496_v44, %v9803_v39 }
 0x36e   :  { %7616 = vmatpush.bf16.msra.mxu1 %v9102_v47  ;;  %v7398_v54 = vadd.f32 %v7397_v58, %v18446_v61  ;;  %v7410_v57 = vpop.f32.mrf.mxu1  ;;  %v12428_v28 = vld [vmem:[%s19493_s1 + $0xc6c] sm:$0xf]  ;;  %v9531_v29 = vld [vmem:[%s19493_s1 + $0xc78] sm:$0xf0]  ;;  %v9934_v61 = vor.u32 %v12528_v49, %v9931_v53 }
 0x36f   :  { %7629 = vmatpush.bf16.msra.mxu2 %v9230_v63  ;;  %v12460_v34 = vld [vmem:[%s19493_s1 + $0xd6c] sm:$0xf]  ;;  %v9659_v63 = vld [vmem:[%s19493_s1 + $0xd78] sm:$0xf0] }
 0x370   :  { %7642 = vmatpush.bf16.msra.mxu3 %v9358_v4  ;;  %7604 = vmatmul.bf16.vlgmr.msra.gmra.mxu0 %v13738_v7  ;;  %v12532_v7 = vld [vmem:[%s19493_s1 + $0xfac] sm:$0xf]  ;;  %v7411_v47 = vadd.f32 %v7410_v57, %v7398_v54  ;;  %v9787_v50 = vld [vmem:[%s19493_s1 + $0xe78] sm:$0xf0] }
 0x371   :  { %7648 = vmatpush.bf16.msrb.mxu0 %v9598_v60  ;;  %7617 = vmatmul.bf16.vlgmr.msra.gmra.mxu1 %v13751_v13  ;;  %v9547_v13 = vld [vmem:[%s19493_s1 + $0xc98] sm:$0xf0]  ;;  %v12492_v3 = vld [vmem:[%s19493_s1 + $0xe6c] sm:$0xf] }
 0x372   :  { %7661 = vmatpush.bf16.msrb.mxu1 %v9726_v59  ;;  %7630 = vmatmul.bf16.vlgmr.msra.gmra.mxu2 %v13749_v12  ;;  %v12432_v12 = vld [vmem:[%s19493_s1 + $0xc8c] sm:$0xf]  ;;  %v9915_v60 = vld [vmem:[%s19493_s1 + $0xf78] sm:$0xf0]  ;;  %v9534_v59 = vor.u32 %v12428_v28, %v9531_v29  ;;  %v9790_v5 = vor.u32 %v12492_v3, %v9787_v50 }
 0x373   :  { %7674 = vmatpush.bf16.msrb.mxu2 %v9854_v62  ;;  %7643 = vmatmul.bf16.vlgmr.msra.gmra.mxu3 %v13762_v17  ;;  %v9950_v17 = vor.u32 %v12532_v7, %v9947_v26  ;;  %v9550_v55 = vor.u32 %v12432_v12, %v9547_v13  ;;  %v12524_v4 = vld [vmem:[%s19493_s1 + $0xf6c] sm:$0xf]  ;;  %v9662_v62 = vor.u32 %v12460_v34, %v9659_v63  ;;  %v9515_v11 = vld [vmem:[%s19493_s1 + $0xc58] sm:$0xf0] }
 0x374   :  { %7687 = vmatpush.bf16.msrb.mxu3 %v9982_v56  ;;  %v12424_v10 = vld [vmem:[%s19493_s1 + $0xc4c] sm:$0xf]  ;;  %v9918_v19 = vor.u32 %v12524_v4, %v9915_v60  ;;  %v9643_v20 = vld [vmem:[%s19493_s1 + $0xd58] sm:$0xf0] }
 0x375   :  { %7649 = vmatpush.bf16.msrb.mxu0 %v9582_v35  ;;  %v12456_v56 = vld [vmem:[%s19493_s1 + $0xd4c] sm:$0xf]  ;;  %v7423_v15 = vpop.f32.mrf.mxu2  ;;  %v9771_v25 = vld [vmem:[%s19493_s1 + $0xe58] sm:$0xf0]  ;;  %v7399_v2 = vpop.f32.mrf.mxu0  ;;  %v9518_v38 = vor.u32 %v12424_v10, %v9515_v11 }
 0x376   :  { %7662 = vmatpush.bf16.msrb.mxu1 %v9710_v36  ;;  %v12488_v21 = vld [vmem:[%s19493_s1 + $0xe4c] sm:$0xf]  ;;  %v7424_v35 = vadd.f32 %v7423_v15, %v7411_v47  ;;  %v7436_v36 = vpop.f32.mrf.mxu3  ;;  %v9899_v1 = vld [vmem:[%s19493_s1 + $0xf58] sm:$0xf0]  ;;  %v9646_v33 = vor.u32 %v12456_v56, %v9643_v20 }
 0x377   :  { %7675 = vmatpush.bf16.msrb.mxu2 %v9838_v0  ;;  %v12520_v0 = vld [vmem:[%s19493_s1 + $0xf4c] sm:$0xf]  ;;  %v9774_v46 = vor.u32 %v12488_v21, %v9771_v25  ;;  %v9499_v26 = vld [vmem:[%s19493_s1 + $0xc38] sm:$0xf0] }
 0x378   :  { %7688 = vmatpush.bf16.msrb.mxu3 %v9966_v43  ;;  %v7412_v43 = vpop.f32.mrf.mxu1  ;;  %v18645_v14 = vadd.f32 %v7436_v36, %v7424_v35  ;;  %v12420_v7 = vld [vmem:[%s19493_s1 + $0xc2c] sm:$0xf]  ;;  %v9755_v13 = vld [vmem:[%s19493_s1 + $0xe38] sm:$0xf0] }
 0x379   :  { %7650 = vmatpush.bf16.msrb.mxu0 %v9566_v8  ;;  %v12452_v8 = vld [vmem:[%s19493_s1 + $0xd2c] sm:$0xf]  ;;  %v9502_v23 = vor.u32 %v12420_v7, %v9499_v26  ;;  %v9483_v39 = vld [vmem:[%s19493_s1 + $0xc18] sm:$0xf0] }
 0x37a   :  { %7663 = vmatpush.bf16.msrb.mxu1 %v9694_v48  ;;  %v9902_v48 = vor.u32 %v12520_v0, %v9899_v1  ;;  %v12484_v12 = vld [vmem:[%s19493_s1 + $0xe2c] sm:$0xf]  ;;  %v9611_v54 = vld [vmem:[%s19493_s1 + $0xd18] sm:$0xf0] }
 0x37b   :  { %7676 = vmatpush.bf16.msrb.mxu2 %v9822_v51  ;;  %v9627_v51 = vld [vmem:[%s19493_s1 + $0xd38] sm:$0xf0]  ;;  %v12516_v52 = vld [vmem:[%s19493_s1 + $0xf2c] sm:$0xf]  ;;  %v9758_v49 = vor.u32 %v12484_v12, %v9755_v13 }
 0x37c   :  { %7689 = vmatpush.bf16.msrb.mxu3 %v9950_v17  ;;  %v9883_v17 = vld [vmem:[%s19493_s1 + $0xf38] sm:$0xf0]  ;;  %v12416_v44 = vld [vmem:[%s19493_s1 + $0xc0c] sm:$0xf]  ;;  %v9630_v58 = vor.u32 %v12452_v8, %v9627_v51 }
 0x37d   :  { %7651 = vmatpush.bf16.msrb.mxu0 %v9550_v55  ;;  %v12448_v53 = vld [vmem:[%s19493_s1 + $0xd0c] sm:$0xf]  ;;  %v9886_v57 = vor.u32 %v12516_v52, %v9883_v17  ;;  %v9867_v28 = vld [vmem:[%s19493_s1 + $0xf18] sm:$0xf0]  ;;  %v7425_v29 = vpop.f32.mrf.mxu2  ;;  %v9486_v3 = vor.u32 %v12416_v44, %v9483_v39 }
 0x37e   :  { %7664 = vmatpush.bf16.msrb.mxu1 %v9678_v27  ;;  %v12480_v55 = vld [vmem:[%s19493_s1 + $0xe0c] sm:$0xf]  ;;  %v9739_v27 = vld [vmem:[%s19493_s1 + $0xe18] sm:$0xf0]  ;;  %v7438_v63 = vpop.f32.mrf.mxu3 }
 0x37f   :  { %7677 = vmatpush.bf16.msrb.mxu2 %v9806_v45  ;;  %v12512_v45 = vld [vmem:[%s19493_s1 + $0xf0c] sm:$0xf]  ;;  %v10235_v50 = vld [vmem:[%s19493_s1 + $0x11f8] sm:$0xf0] }
 0x380   :  { %7690 = vmatpush.bf16.msrb.mxu3 %v9934_v61  ;;  %v12572_v34 = vld [vmem:[%s19493_s1 + $0x10ec] sm:$0xf]  ;;  %v10107_v61 = vld [vmem:[%s19493_s1 + $0x10f8] sm:$0xf0]  ;;  %v9870_v11 = vor.u32 %v12512_v45, %v9867_v28 }
 0x381   :  { %7652 = vmatpush.bf16.msrb.mxu0 %v9534_v59  ;;  %v12604_v47 = vld [vmem:[%s19493_s1 + $0x11ec] sm:$0xf]  ;;  %v10363_v60 = vld [vmem:[%s19493_s1 + $0x12f8] sm:$0xf0]  ;;  %v9614_v59 = vor.u32 %v12448_v53, %v9611_v54  ;;  %v10110_v56 = vor.u32 %v12572_v34, %v10107_v61 }
 0x382   :  { %7665 = vmatpush.bf16.msrb.mxu1 %v9662_v62  ;;  %v12636_v4 = vld [vmem:[%s19493_s1 + $0x12ec] sm:$0xf]  ;;  %v9742_v62 = vor.u32 %v12480_v55, %v9739_v27  ;;  %v10491_v10 = vld [vmem:[%s19493_s1 + $0x13f8] sm:$0xf0] }
 0x383   :  { %7678 = vmatpush.bf16.msrb.mxu2 %v9790_v5  ;;  %v12668_v5 = vld [vmem:[%s19493_s1 + $0x13ec] sm:$0xf]  ;;  %v10366_v15 = vor.u32 %v12636_v4, %v10363_v60  ;;  %v10091_v21 = vld [vmem:[%s19493_s1 + $0x10d8] sm:$0xf0] }
 0x384   :  { %7691 = vmatpush.bf16.msrb.mxu3 %v9918_v19  ;;  %v10238_v19 = vor.u32 %v12604_v47, %v10235_v50  ;;  %v12568_v20 = vld [vmem:[%s19493_s1 + $0x10cc] sm:$0xf]  ;;  %v10494_v35 = vor.u32 %v12668_v5, %v10491_v10  ;;  %v10219_v36 = vld [vmem:[%s19493_s1 + $0x11d8] sm:$0xf0] }
 0x385   :  { %7653 = vmatpush.bf16.msrb.mxu0 %v9518_v38  ;;  %v12600_v25 = vld [vmem:[%s19493_s1 + $0x11cc] sm:$0xf]  ;;  %v10347_v1 = vld [vmem:[%s19493_s1 + $0x12d8] sm:$0xf0]  ;;  %v10094_v43 = vor.u32 %v12568_v20, %v10091_v21 }
 0x386   :  { %7666 = vmatpush.bf16.msrb.mxu1 %v9646_v33  ;;  %v12632_v0 = vld [vmem:[%s19493_s1 + $0x12cc] sm:$0xf]  ;;  %v10475_v38 = vld [vmem:[%s19493_s1 + $0x13d8] sm:$0xf0]  ;;  %v10222_v33 = vor.u32 %v12600_v25, %v10219_v36 }
 0x387   :  { %7679 = vmatpush.bf16.msrb.mxu2 %v9774_v46  ;;  %v12664_v2 = vld [vmem:[%s19493_s1 + $0x13cc] sm:$0xf]  ;;  %v10350_v46 = vor.u32 %v12632_v0, %v10347_v1  ;;  %v10075_v26 = vld [vmem:[%s19493_s1 + $0x10b8] sm:$0xf0] }
 0x388   :  { %7692 = vmatpush.bf16.msrb.mxu3 %v9902_v48  ;;  %v12564_v7 = vld [vmem:[%s19493_s1 + $0x10ac] sm:$0xf]  ;;  %v10478_v48 = vor.u32 %v12664_v2, %v10475_v38  ;;  %v10203_v51 = vld [vmem:[%s19493_s1 + $0x11b8] sm:$0xf0] }
 0x389   :  { %7654 = vmatpush.bf16.msrb.mxu0 %v9502_v23  ;;  %v12596_v8 = vld [vmem:[%s19493_s1 + $0x11ac] sm:$0xf]  ;;  %v10331_v13 = vld [vmem:[%s19493_s1 + $0x12b8] sm:$0xf0]  ;;  %v10078_v17 = vor.u32 %v12564_v7, %v10075_v26 }
 0x38a   :  { %7667 = vmatpush.bf16.msrb.mxu1 %v9630_v58  ;;  %v12628_v12 = vld [vmem:[%s19493_s1 + $0x12ac] sm:$0xf]  ;;  %v10459_v52 = vld [vmem:[%s19493_s1 + $0x13b8] sm:$0xf0]  ;;  %v10206_v23 = vor.u32 %v12596_v8, %v10203_v51 }
 0x38b   :  { %7680 = vmatpush.bf16.msrb.mxu2 %v9758_v49  ;;  %v10334_v44 = vor.u32 %v12628_v12, %v10331_v13  ;;  %v12592_v39 = vld [vmem:[%s19493_s1 + $0x118c] sm:$0xf]  ;;  %v10187_v58 = vld [vmem:[%s19493_s1 + $0x1198] sm:$0xf0] }
 0x38c   :  { %7693 = vmatpush.bf16.msrb.mxu3 %v9886_v57  ;;  %v12624_v49 = vld [vmem:[%s19493_s1 + $0x128c] sm:$0xf]  ;;  %v10315_v53 = vld [vmem:[%s19493_s1 + $0x1298] sm:$0xf0]  ;;  %v10190_v29 = vor.u32 %v12592_v39, %v10187_v58 }
 0x38d   :  { %7655 = vmatpush.bf16.msrb.mxu0 %v9486_v3  ;;  %v7449_v54 = vpop.f32.mrf.mxu0  ;;  %v12656_v55 = vld [vmem:[%s19493_s1 + $0x138c] sm:$0xf]  ;;  %v10443_v57 = vld [vmem:[%s19493_s1 + $0x1398] sm:$0xf0]  ;;  %v10318_v34 = vor.u32 %v12624_v49, %v10315_v53 }
 0x38e   :  { %7668 = vmatpush.bf16.msrb.mxu1 %v9614_v59  ;;  %v7450_v27 = vadd.f32 %v7449_v54, %v18645_v14  ;;  %v7462_v28 = vpop.f32.mrf.mxu1  ;;  %v12556_v61 = vld [vmem:[%s19493_s1 + $0x106c] sm:$0xf]  ;;  %v10043_v47 = vld [vmem:[%s19493_s1 + $0x1078] sm:$0xf0]  ;;  %v10446_v14 = vor.u32 %v12656_v55, %v10443_v57 }
 0x38f   :  { %7681 = vmatpush.bf16.msrb.mxu2 %v9742_v62  ;;  %v12588_v63 = vld [vmem:[%s19493_s1 + $0x116c] sm:$0xf]  ;;  %v10171_v50 = vld [vmem:[%s19493_s1 + $0x1178] sm:$0xf0]  ;;  %v10046_v5 = vor.u32 %v12556_v61, %v10043_v47 }
 0x390   :  { %7694 = vmatpush.bf16.msrb.mxu3 %v9870_v11  ;;  %7656 = vmatmul.bf16.vlgmr.msrb.gmra.mxu0 %v13779_v24  ;;  %v12660_v24 = vld [vmem:[%s19493_s1 + $0x13ac] sm:$0xf]  ;;  %v7463_v3 = vadd.f32 %v7462_v28, %v7450_v27  ;;  %v10299_v60 = vld [vmem:[%s19493_s1 + $0x1278] sm:$0xf0]  ;;  %v10174_v10 = vor.u32 %v12588_v63, %v10171_v50 }
 0x391   :  { %7700 = vmatpush.bf16.msra.mxu0 %v10110_v56  ;;  %7669 = vmatmul.bf16.vlgmr.msrb.gmra.mxu1 %v13783_v31  ;;  %v10059_v31 = vld [vmem:[%s19493_s1 + $0x1098] sm:$0xf0]  ;;  %v12620_v4 = vld [vmem:[%s19493_s1 + $0x126c] sm:$0xf] }
 0x392   :  { %7713 = vmatpush.bf16.msra.mxu1 %v10238_v19  ;;  %7682 = vmatmul.bf16.vlgmr.msrb.gmra.mxu2 %v13781_v30  ;;  %v12560_v30 = vld [vmem:[%s19493_s1 + $0x108c] sm:$0xf]  ;;  %v10427_v62 = vld [vmem:[%s19493_s1 + $0x1378] sm:$0xf0]  ;;  %v10302_v11 = vor.u32 %v12620_v4, %v10299_v60 }
 0x393   :  { %7726 = vmatpush.bf16.msra.mxu2 %v10366_v15  ;;  %7695 = vmatmul.bf16.vlgmr.msrb.gmra.mxu3 %v13785_v32  ;;  %v10462_v32 = vor.u32 %v12660_v24, %v10459_v52  ;;  %v10062_v45 = vor.u32 %v12560_v30, %v10059_v31  ;;  %v12652_v59 = vld [vmem:[%s19493_s1 + $0x136c] sm:$0xf]  ;;  %v10027_v19 = vld [vmem:[%s19493_s1 + $0x1058] sm:$0xf0] }
 0x394   :  { %7739 = vmatpush.bf16.msra.mxu3 %v10494_v35  ;;  %v12552_v56 = vld [vmem:[%s19493_s1 + $0x104c] sm:$0xf]  ;;  %v10430_v20 = vor.u32 %v12652_v59, %v10427_v62  ;;  %v10155_v25 = vld [vmem:[%s19493_s1 + $0x1158] sm:$0xf0] }
 0x395   :  { %7701 = vmatpush.bf16.msra.mxu0 %v10094_v43  ;;  %v12584_v15 = vld [vmem:[%s19493_s1 + $0x114c] sm:$0xf]  ;;  %v7475_v21 = vpop.f32.mrf.mxu2  ;;  %v10283_v36 = vld [vmem:[%s19493_s1 + $0x1258] sm:$0xf0]  ;;  %v7451_v43 = vpop.f32.mrf.mxu0 }
 0x396   :  { %7714 = vmatpush.bf16.msra.mxu1 %v10222_v33  ;;  %v12616_v35 = vld [vmem:[%s19493_s1 + $0x124c] sm:$0xf]  ;;  %v7476_v0 = vadd.f32 %v7475_v21, %v7463_v3  ;;  %v7488_v1 = vpop.f32.mrf.mxu3  ;;  %v10411_v38 = vld [vmem:[%s19493_s1 + $0x1358] sm:$0xf0]  ;;  %v10030_v33 = vor.u32 %v12552_v56, %v10027_v19  ;;  %v10158_v26 = vor.u32 %v12584_v15, %v10155_v25 }
 0x397   :  { %7727 = vmatpush.bf16.msra.mxu2 %v10350_v46  ;;  %v12648_v2 = vld [vmem:[%s19493_s1 + $0x134c] sm:$0xf]  ;;  %v7464_v46 = vpop.f32.mrf.mxu1  ;;  %v10286_v8 = vor.u32 %v12616_v35, %v10283_v36  ;;  %v10011_v51 = vld [vmem:[%s19493_s1 + $0x1038] sm:$0xf0] }
 0x398   :  { %7740 = vmatpush.bf16.msra.mxu3 %v10478_v48  ;;  %v18844_v7 = vadd.f32 %v7488_v1, %v7476_v0  ;;  %v12548_v48 = vld [vmem:[%s19493_s1 + $0x102c] sm:$0xf]  ;;  %v10414_v13 = vor.u32 %v12648_v2, %v10411_v38  ;;  %v10139_v24 = vld [vmem:[%s19493_s1 + $0x1138] sm:$0xf0] }
 0x399   :  { %7702 = vmatpush.bf16.msra.mxu0 %v10078_v17  ;;  %v12580_v12 = vld [vmem:[%s19493_s1 + $0x112c] sm:$0xf]  ;;  %v10267_v17 = vld [vmem:[%s19493_s1 + $0x1238] sm:$0xf0]  ;;  %v10014_v30 = vor.u32 %v12548_v48, %v10011_v51 }
 0x39a   :  { %7715 = vmatpush.bf16.msra.mxu1 %v10206_v23  ;;  %v12612_v52 = vld [vmem:[%s19493_s1 + $0x122c] sm:$0xf]  ;;  %v9995_v39 = vld [vmem:[%s19493_s1 + $0x1018] sm:$0xf0] }
 0x39b   :  { %7728 = vmatpush.bf16.msra.mxu2 %v10334_v44  ;;  %v12644_v23 = vld [vmem:[%s19493_s1 + $0x132c] sm:$0xf]  ;;  %v10395_v44 = vld [vmem:[%s19493_s1 + $0x1338] sm:$0xf0]  ;;  %v10270_v58 = vor.u32 %v12612_v52, %v10267_v17 }
 0x39c   :  { %7741 = vmatpush.bf16.msra.mxu3 %v10462_v32  ;;  %v12544_v31 = vld [vmem:[%s19493_s1 + $0x100c] sm:$0xf]  ;;  %v10142_v32 = vor.u32 %v12580_v12, %v10139_v24  ;;  %v10123_v53 = vld [vmem:[%s19493_s1 + $0x1118] sm:$0xf0]  ;;  %v10398_v55 = vor.u32 %v12644_v23, %v10395_v44 }
 0x39d   :  { %7703 = vmatpush.bf16.msra.mxu0 %v10062_v45  ;;  %v12576_v49 = vld [vmem:[%s19493_s1 + $0x110c] sm:$0xf]  ;;  %v10251_v57 = vld [vmem:[%s19493_s1 + $0x1218] sm:$0xf0]  ;;  %v7477_v28 = vpop.f32.mrf.mxu2  ;;  %v9998_v63 = vor.u32 %v12544_v31, %v9995_v39 }
 0x39e   :  { %7716 = vmatpush.bf16.msra.mxu1 %v10190_v29  ;;  %v12608_v54 = vld [vmem:[%s19493_s1 + $0x120c] sm:$0xf]  ;;  %v10379_v45 = vld [vmem:[%s19493_s1 + $0x1318] sm:$0xf0]  ;;  %v7490_v47 = vpop.f32.mrf.mxu3  ;;  %v10126_v4 = vor.u32 %v12576_v49, %v10123_v53 }
 0x39f   :  { %7729 = vmatpush.bf16.msra.mxu2 %v10318_v34  ;;  %v12640_v27 = vld [vmem:[%s19493_s1 + $0x130c] sm:$0xf]  ;;  %v10619_v34 = vld [vmem:[%s19493_s1 + $0x14f8] sm:$0xf0]  ;;  %v10254_v60 = vor.u32 %v12608_v54, %v10251_v57 }
 0x3a0   :  { %7742 = vmatpush.bf16.msra.mxu3 %v10446_v14  ;;  %v12700_v29 = vld [vmem:[%s19493_s1 + $0x14ec] sm:$0xf]  ;;  %v10747_v14 = vld [vmem:[%s19493_s1 + $0x15f8] sm:$0xf0] }
 0x3a1   :  { %7704 = vmatpush.bf16.msra.mxu0 %v10046_v5  ;;  %v12732_v61 = vld [vmem:[%s19493_s1 + $0x15ec] sm:$0xf]  ;;  %v10875_v50 = vld [vmem:[%s19493_s1 + $0x16f8] sm:$0xf0]  ;;  %v10382_v5 = vor.u32 %v12640_v27, %v10379_v45 }
 0x3a2   :  { %7717 = vmatpush.bf16.msra.mxu1 %v10174_v10  ;;  %v12764_v3 = vld [vmem:[%s19493_s1 + $0x16ec] sm:$0xf]  ;;  %v11003_v62 = vld [vmem:[%s19493_s1 + $0x17f8] sm:$0xf0]  ;;  %v10622_v10 = vor.u32 %v12700_v29, %v10619_v34 }
 0x3a3   :  { %7730 = vmatpush.bf16.msra.mxu2 %v10302_v11  ;;  %v12796_v59 = vld [vmem:[%s19493_s1 + $0x17ec] sm:$0xf]  ;;  %v10750_v11 = vor.u32 %v12732_v61, %v10747_v14  ;;  %v10878_v56 = vor.u32 %v12764_v3, %v10875_v50  ;;  %v10603_v15 = vld [vmem:[%s19493_s1 + $0x14d8] sm:$0xf0] }
 0x3a4   :  { %7743 = vmatpush.bf16.msra.mxu3 %v10430_v20  ;;  %v12696_v19 = vld [vmem:[%s19493_s1 + $0x14cc] sm:$0xf]  ;;  %v11006_v21 = vor.u32 %v12796_v59, %v11003_v62  ;;  %v10731_v25 = vld [vmem:[%s19493_s1 + $0x15d8] sm:$0xf0] }
 0x3a5   :  { %7705 = vmatpush.bf16.msra.mxu0 %v10030_v33  ;;  %v12728_v20 = vld [vmem:[%s19493_s1 + $0x15cc] sm:$0xf]  ;;  %v10859_v36 = vld [vmem:[%s19493_s1 + $0x16d8] sm:$0xf0]  ;;  %v10606_v2 = vor.u32 %v12696_v19, %v10603_v15 }
 0x3a6   :  { %7718 = vmatpush.bf16.msra.mxu1 %v10158_v26  ;;  %v12760_v35 = vld [vmem:[%s19493_s1 + $0x16cc] sm:$0xf]  ;;  %v10987_v1 = vld [vmem:[%s19493_s1 + $0x17d8] sm:$0xf0]  ;;  %v10734_v38 = vor.u32 %v12728_v20, %v10731_v25 }
 0x3a7   :  { %7731 = vmatpush.bf16.msra.mxu2 %v10286_v8  ;;  %v12792_v0 = vld [vmem:[%s19493_s1 + $0x17cc] sm:$0xf]  ;;  %v10862_v43 = vor.u32 %v12760_v35, %v10859_v36  ;;  %v10587_v46 = vld [vmem:[%s19493_s1 + $0x14b8] sm:$0xf0] }
 0x3a8   :  { %7744 = vmatpush.bf16.msra.mxu3 %v10414_v13  ;;  %v12692_v33 = vld [vmem:[%s19493_s1 + $0x14ac] sm:$0xf]  ;;  %v10990_v8 = vor.u32 %v12792_v0, %v10987_v1  ;;  %v10715_v48 = vld [vmem:[%s19493_s1 + $0x15b8] sm:$0xf0] }
 0x3a9   :  { %7706 = vmatpush.bf16.msra.mxu0 %v10014_v30  ;;  %v12724_v26 = vld [vmem:[%s19493_s1 + $0x15ac] sm:$0xf]  ;;  %v10843_v12 = vld [vmem:[%s19493_s1 + $0x16b8] sm:$0xf0]  ;;  %v10590_v24 = vor.u32 %v12692_v33, %v10587_v46 }
 0x3aa   :  { %7719 = vmatpush.bf16.msra.mxu1 %v10142_v32  ;;  %v12756_v51 = vld [vmem:[%s19493_s1 + $0x16ac] sm:$0xf]  ;;  %v10971_v13 = vld [vmem:[%s19493_s1 + $0x17b8] sm:$0xf0] }
 0x3ab   :  { %7732 = vmatpush.bf16.msra.mxu2 %v10270_v58  ;;  %v12688_v52 = vld [vmem:[%s19493_s1 + $0x148c] sm:$0xf]  ;;  %v10571_v17 = vld [vmem:[%s19493_s1 + $0x1498] sm:$0xf0] }
 0x3ac   :  { %7745 = vmatpush.bf16.msra.mxu3 %v10398_v55  ;;  %v12720_v23 = vld [vmem:[%s19493_s1 + $0x158c] sm:$0xf]  ;;  %v10699_v31 = vld [vmem:[%s19493_s1 + $0x1598] sm:$0xf0]  ;;  %v10574_v53 = vor.u32 %v12688_v52, %v10571_v17 }
 0x3ad   :  { %7707 = vmatpush.bf16.msra.mxu0 %v9998_v63  ;;  %v12752_v39 = vld [vmem:[%s19493_s1 + $0x168c] sm:$0xf]  ;;  %v10827_v32 = vld [vmem:[%s19493_s1 + $0x1698] sm:$0xf0]  ;;  %v7501_v54 = vpop.f32.mrf.mxu0  ;;  %v10702_v55 = vor.u32 %v12720_v23, %v10699_v31 }
 0x3ae   :  { %7720 = vmatpush.bf16.msra.mxu1 %v10126_v4  ;;  %v12784_v58 = vld [vmem:[%s19493_s1 + $0x178c] sm:$0xf]  ;;  %v10955_v49 = vld [vmem:[%s19493_s1 + $0x1798] sm:$0xf0]  ;;  %v10830_v57 = vor.u32 %v12752_v39, %v10827_v32  ;;  %v7514_v34 = vpop.f32.mrf.mxu1 }
 0x3af   :  { %7733 = vmatpush.bf16.msra.mxu2 %v10254_v60  ;;  %v12684_v27 = vld [vmem:[%s19493_s1 + $0x146c] sm:$0xf]  ;;  %v10555_v45 = vld [vmem:[%s19493_s1 + $0x1478] sm:$0xf0]  ;;  %v10958_v61 = vor.u32 %v12784_v58, %v10955_v49 }
 0x3b0   :  { %7746 = vmatpush.bf16.msra.mxu3 %v10382_v5  ;;  %7708 = vmatmul.bf16.vlgmr.msra.gmra.mxu0 %v14149_v9  ;;  %v12788_v9 = vld [vmem:[%s19493_s1 + $0x17ac] sm:$0xf]  ;;  %v10683_v47 = vld [vmem:[%s19493_s1 + $0x1578] sm:$0xf0]  ;;  %v10558_v60 = vor.u32 %v12684_v27, %v10555_v45 }
 0x3b1   :  { %7752 = vmatpush.bf16.msrb.mxu0 %v10622_v10  ;;  %7721 = vmatmul.bf16.vlgmr.msra.gmra.mxu1 %v14162_v18  ;;  %v10846_v18 = vor.u32 %v12756_v51, %v10843_v12  ;;  %v10974_v30 = vor.u32 %v12788_v9, %v10971_v13  ;;  %v12716_v28 = vld [vmem:[%s19493_s1 + $0x156c] sm:$0xf]  ;;  %v10811_v14 = vld [vmem:[%s19493_s1 + $0x1678] sm:$0xf0] }
 0x3b2   :  { %7765 = vmatpush.bf16.msrb.mxu1 %v10750_v11  ;;  %7734 = vmatmul.bf16.vlgmr.msra.gmra.mxu2 %v14160_v16  ;;  %v10718_v16 = vor.u32 %v12724_v26, %v10715_v48  ;;  %v12748_v63 = vld [vmem:[%s19493_s1 + $0x166c] sm:$0xf]  ;;  %v10939_v50 = vld [vmem:[%s19493_s1 + $0x1778] sm:$0xf0]  ;;  %v10686_v59 = vor.u32 %v12716_v28, %v10683_v47 }
 0x3b3   :  { %7778 = vmatpush.bf16.msrb.mxu2 %v10878_v56  ;;  %7747 = vmatmul.bf16.vlgmr.msra.gmra.mxu3 %v14173_v22  ;;  %v13073_v22 = vld [vmem:[%s19495_s2] sm:$0xf]  ;;  %v12780_v3 = vld [vmem:[%s19493_s1 + $0x176c] sm:$0xf]  ;;  %v10814_v62 = vor.u32 %v12748_v63, %v10811_v14  ;;  %v10539_v10 = vld [vmem:[%s19493_s1 + $0x1458] sm:$0xf0] }
 0x3b4   :  { %7791 = vmatpush.bf16.msrb.mxu3 %v11006_v21  ;;  %v1047_v44 = vperm.slane %v13073_v22, 3  ;;  %v12680_v5 = vld [vmem:[%s19493_s1 + $0x144c] sm:$0xf]  ;;  %v10942_v19 = vor.u32 %v12780_v3, %v10939_v50  ;;  %v10667_v15 = vld [vmem:[%s19493_s1 + $0x1558] sm:$0xf0] }
 0x3b5   :  { %7753 = vmatpush.bf16.msrb.mxu0 %v10606_v2  ;;  %v12712_v11 = vld [vmem:[%s19493_s1 + $0x154c] sm:$0xf]  ;;  %v7527_v56 = vpop.f32.mrf.mxu2  ;;  %v10795_v21 = vld [vmem:[%s19493_s1 + $0x1658] sm:$0xf0]  ;;  %v10542_v1 = vor.u32 %v12680_v5, %v10539_v10 }
 0x3b6   :  { %7766 = vmatpush.bf16.msrb.mxu1 %v10734_v38  ;;  %v7502_v29 = vadd.f32 %v7501_v54, %v1047_v44  ;;  %v12744_v20 = vld [vmem:[%s19493_s1 + $0x164c] sm:$0xf]  ;;  %v7540_v35 = vpop.f32.mrf.mxu3  ;;  %v10923_v0 = vld [vmem:[%s19493_s1 + $0x1758] sm:$0xf0]  ;;  %v7503_v38 = vpop.f32.mrf.mxu0 }
 0x3b7   :  { %7779 = vmatpush.bf16.msrb.mxu2 %v10862_v43  ;;  %v12776_v36 = vld [vmem:[%s19493_s1 + $0x174c] sm:$0xf]  ;;  %v10670_v43 = vor.u32 %v12712_v11, %v10667_v15  ;;  %v10798_v33 = vor.u32 %v12744_v20, %v10795_v21  ;;  %v10523_v26 = vld [vmem:[%s19493_s1 + $0x1438] sm:$0xf0]  ;;  %v7516_v48 = vpop.f32.mrf.mxu1 }
 0x3b8   :  { %7792 = vmatpush.bf16.msrb.mxu3 %v10990_v8  ;;  %v7515_v4 = vadd.f32 %v7514_v34, %v7502_v29  ;;  %v12676_v46 = vld [vmem:[%s19493_s1 + $0x142c] sm:$0xf]  ;;  %v10926_v51 = vor.u32 %v12776_v36, %v10923_v0  ;;  %v10651_v12 = vld [vmem:[%s19493_s1 + $0x1538] sm:$0xf0] }
 0x3b9   :  { %7754 = vmatpush.bf16.msrb.mxu0 %v10590_v24  ;;  %v12708_v8 = vld [vmem:[%s19493_s1 + $0x152c] sm:$0xf]  ;;  %v10779_v13 = vld [vmem:[%s19493_s1 + $0x1638] sm:$0xf0] }
 0x3ba   :  { %7767 = vmatpush.bf16.msrb.mxu1 %v10718_v16  ;;  %v7528_v25 = vadd.f32 %v7527_v56, %v7515_v4  ;;  %v12740_v9 = vld [vmem:[%s19493_s1 + $0x162c] sm:$0xf]  ;;  %v10907_v52 = vld [vmem:[%s19493_s1 + $0x1738] sm:$0xf0]  ;;  %v10526_v16 = vor.u32 %v12676_v46, %v10523_v26  ;;  %v10654_v23 = vor.u32 %v12708_v8, %v10651_v12 }
 0x3bb   :  { %7780 = vmatpush.bf16.msrb.mxu2 %v10846_v18  ;;  %v12772_v24 = vld [vmem:[%s19493_s1 + $0x172c] sm:$0xf]  ;;  %v10507_v17 = vld [vmem:[%s19493_s1 + $0x1418] sm:$0xf0]  ;;  %v10782_v22 = vor.u32 %v12740_v9, %v10779_v13 }
 0x3bc   :  { %7793 = vmatpush.bf16.msrb.mxu3 %v10974_v30  ;;  %v19045_v2 = vadd.f32 %v7540_v35, %v7528_v25  ;;  %v12672_v18 = vld [vmem:[%s19493_s1 + $0x140c] sm:$0xf]  ;;  %v10635_v30 = vld [vmem:[%s19493_s1 + $0x1518] sm:$0xf0]  ;;  %v10910_v32 = vor.u32 %v12772_v24, %v10907_v52 }
 0x3bd   :  { %7755 = vmatpush.bf16.msrb.mxu0 %v10574_v53  ;;  %v12704_v44 = vld [vmem:[%s19493_s1 + $0x150c] sm:$0xf]  ;;  %v7529_v39 = vpop.f32.mrf.mxu2  ;;  %v10763_v58 = vld [vmem:[%s19493_s1 + $0x1618] sm:$0xf0]  ;;  %v10510_v45 = vor.u32 %v12672_v18, %v10507_v17 }
 0x3be   :  { %7768 = vmatpush.bf16.msrb.mxu1 %v10702_v55  ;;  %v12736_v31 = vld [vmem:[%s19493_s1 + $0x160c] sm:$0xf]  ;;  %v10891_v53 = vld [vmem:[%s19493_s1 + $0x1718] sm:$0xf0]  ;;  %v7542_v54 = vpop.f32.mrf.mxu3 }
 0x3bf   :  { %7781 = vmatpush.bf16.msrb.mxu2 %v10830_v57  ;;  %v12768_v49 = vld [vmem:[%s19493_s1 + $0x170c] sm:$0xf]  ;;  %v11131_v57 = vld [vmem:[%s19493_s1 + $0x18f8] sm:$0xf0]  ;;  %v10766_v47 = vor.u32 %v12736_v31, %v10763_v58 }
 0x3c0   :  { %7794 = vmatpush.bf16.msrb.mxu3 %v10958_v61  ;;  %v12828_v55 = vld [vmem:[%s19493_s1 + $0x18ec] sm:$0xf]  ;;  %v11259_v28 = vld [vmem:[%s19493_s1 + $0x19f8] sm:$0xf0]  ;;  %v10638_v61 = vor.u32 %v12704_v44, %v10635_v30  ;;  %v10894_v3 = vor.u32 %v12768_v49, %v10891_v53 }
 0x3c1   :  { %7756 = vmatpush.bf16.msrb.mxu0 %v10558_v60  ;;  %v12860_v27 = vld [vmem:[%s19493_s1 + $0x19ec] sm:$0xf]  ;;  %v11387_v34 = vld [vmem:[%s19493_s1 + $0x1af8] sm:$0xf0]  ;;  %v11134_v50 = vor.u32 %v12828_v55, %v11131_v57 }
 0x3c2   :  { %7769 = vmatpush.bf16.msrb.mxu1 %v10686_v59  ;;  %v12892_v29 = vld [vmem:[%s19493_s1 + $0x1aec] sm:$0xf]  ;;  %v11515_v14 = vld [vmem:[%s19493_s1 + $0x1bf8] sm:$0xf0]  ;;  %v11262_v4 = vor.u32 %v12860_v27, %v11259_v28 }
 0x3c3   :  { %7782 = vmatpush.bf16.msrb.mxu2 %v10814_v62  ;;  %v12924_v63 = vld [vmem:[%s19493_s1 + $0x1bec] sm:$0xf]  ;;  %v11390_v60 = vor.u32 %v12892_v29, %v11387_v34  ;;  %v11115_v62 = vld [vmem:[%s19493_s1 + $0x18d8] sm:$0xf0] }
 0x3c4   :  { %7795 = vmatpush.bf16.msrb.mxu3 %v10942_v19  ;;  %v12824_v59 = vld [vmem:[%s19493_s1 + $0x18cc] sm:$0xf]  ;;  %v11518_v10 = vor.u32 %v12924_v63, %v11515_v14  ;;  %v11243_v11 = vld [vmem:[%s19493_s1 + $0x19d8] sm:$0xf0] }
 0x3c5   :  { %7757 = vmatpush.bf16.msrb.mxu0 %v10542_v1  ;;  %v12856_v5 = vld [vmem:[%s19493_s1 + $0x19cc] sm:$0xf]  ;;  %v11371_v19 = vld [vmem:[%s19493_s1 + $0x1ad8] sm:$0xf0]  ;;  %v11118_v21 = vor.u32 %v12824_v59, %v11115_v62 }
 0x3c6   :  { %7770 = vmatpush.bf16.msrb.mxu1 %v10670_v43  ;;  %v12888_v56 = vld [vmem:[%s19493_s1 + $0x1acc] sm:$0xf]  ;;  %v11499_v20 = vld [vmem:[%s19493_s1 + $0x1bd8] sm:$0xf0]  ;;  %v11246_v25 = vor.u32 %v12856_v5, %v11243_v11 }
 0x3c7   :  { %7783 = vmatpush.bf16.msrb.mxu2 %v10798_v33  ;;  %v12920_v15 = vld [vmem:[%s19493_s1 + $0x1bcc] sm:$0xf]  ;;  %v11374_v35 = vor.u32 %v12888_v56, %v11371_v19  ;;  %v11099_v0 = vld [vmem:[%s19493_s1 + $0x18b8] sm:$0xf0] }
 0x3c8   :  { %7796 = vmatpush.bf16.msrb.mxu3 %v10926_v51  ;;  %v12820_v36 = vld [vmem:[%s19493_s1 + $0x18ac] sm:$0xf]  ;;  %v11502_v38 = vor.u32 %v12920_v15, %v11499_v20  ;;  %v11227_v43 = vld [vmem:[%s19493_s1 + $0x19b8] sm:$0xf0] }
 0x3c9   :  { %7758 = vmatpush.bf16.msrb.mxu0 %v10526_v16  ;;  %v12852_v1 = vld [vmem:[%s19493_s1 + $0x19ac] sm:$0xf]  ;;  %v11355_v46 = vld [vmem:[%s19493_s1 + $0x1ab8] sm:$0xf0]  ;;  %v11102_v8 = vor.u32 %v12820_v36, %v11099_v0 }
 0x3ca   :  { %7771 = vmatpush.bf16.msrb.mxu1 %v10654_v23  ;;  %v12884_v33 = vld [vmem:[%s19493_s1 + $0x1aac] sm:$0xf]  ;;  %v11483_v26 = vld [vmem:[%s19493_s1 + $0x1bb8] sm:$0xf0]  ;;  %v11230_v48 = vor.u32 %v12852_v1, %v11227_v43 }
 0x3cb   :  { %7784 = vmatpush.bf16.msrb.mxu2 %v10782_v22  ;;  %v11358_v51 = vor.u32 %v12884_v33, %v11355_v46  ;;  %v12848_v12 = vld [vmem:[%s19493_s1 + $0x198c] sm:$0xf]  ;;  %v11211_v9 = vld [vmem:[%s19493_s1 + $0x1998] sm:$0xf0] }
 0x3cc   :  { %7797 = vmatpush.bf16.msrb.mxu3 %v10910_v32  ;;  %v12880_v13 = vld [vmem:[%s19493_s1 + $0x1a8c] sm:$0xf]  ;;  %v11339_v24 = vld [vmem:[%s19493_s1 + $0x1a98] sm:$0xf0]  ;;  %v11214_v23 = vor.u32 %v12848_v12, %v11211_v9 }
 0x3cd   :  { %7759 = vmatpush.bf16.msrb.mxu0 %v10510_v45  ;;  %v12912_v52 = vld [vmem:[%s19493_s1 + $0x1b8c] sm:$0xf]  ;;  %v11467_v16 = vld [vmem:[%s19493_s1 + $0x1b98] sm:$0xf0]  ;;  %v7553_v17 = vpop.f32.mrf.mxu0  ;;  %v11342_v22 = vor.u32 %v12880_v13, %v11339_v24 }
 0x3ce   :  { %7772 = vmatpush.bf16.msrb.mxu1 %v10638_v61  ;;  %v12812_v44 = vld [vmem:[%s19493_s1 + $0x186c] sm:$0xf]  ;;  %v11067_v30 = vld [vmem:[%s19493_s1 + $0x1878] sm:$0xf0]  ;;  %v7554_v39 = vadd.f32 %v7553_v17, %v19045_v2  ;;  %v7566_v32 = vpop.f32.mrf.mxu1  ;;  %v11470_v58 = vor.u32 %v12912_v52, %v11467_v16 }
 0x3cf   :  { %7785 = vmatpush.bf16.msrb.mxu2 %v10766_v47  ;;  %v12844_v31 = vld [vmem:[%s19493_s1 + $0x196c] sm:$0xf]  ;;  %v11195_v49 = vld [vmem:[%s19493_s1 + $0x1978] sm:$0xf0]  ;;  %v11070_v27 = vor.u32 %v12812_v44, %v11067_v30 }
 0x3d0   :  { %7798 = vmatpush.bf16.msrb.mxu3 %v10894_v3  ;;  %7760 = vmatmul.bf16.vlgmr.msrb.gmra.mxu0 %v14190_v37  ;;  %v12916_v37 = vld [vmem:[%s19493_s1 + $0x1bac] sm:$0xf]  ;;  %v11323_v54 = vld [vmem:[%s19493_s1 + $0x1a78] sm:$0xf0]  ;;  %v7567_v57 = vadd.f32 %v7566_v32, %v7554_v39  ;;  %v11198_v45 = vor.u32 %v12844_v31, %v11195_v49 }
 0x3d1   :  { %7804 = vmatpush.bf16.msra.mxu0 %v11134_v50  ;;  %7773 = vmatmul.bf16.vlgmr.msrb.gmra.mxu1 %v14194_v41  ;;  %v11083_v41 = vld [vmem:[%s19493_s1 + $0x1898] sm:$0xf0]  ;;  %v12876_v53 = vld [vmem:[%s19493_s1 + $0x1a6c] sm:$0xf] }
 0x3d2   :  { %7817 = vmatpush.bf16.msra.mxu1 %v11262_v4  ;;  %7786 = vmatmul.bf16.vlgmr.msrb.gmra.mxu2 %v14192_v40  ;;  %v12816_v40 = vld [vmem:[%s19493_s1 + $0x188c] sm:$0xf]  ;;  %v11451_v2 = vld [vmem:[%s19493_s1 + $0x1b78] sm:$0xf0]  ;;  %v11326_v28 = vor.u32 %v12876_v53, %v11323_v54 }
 0x3d3   :  { %7830 = vmatpush.bf16.msra.mxu2 %v11390_v60  ;;  %7799 = vmatmul.bf16.vlgmr.msrb.gmra.mxu3 %v14196_v42  ;;  %v11486_v42 = vor.u32 %v12916_v37, %v11483_v26  ;;  %v11086_v18 = vor.u32 %v12816_v40, %v11083_v41  ;;  %v12908_v55 = vld [vmem:[%s19493_s1 + $0x1b6c] sm:$0xf]  ;;  %v11051_v34 = vld [vmem:[%s19493_s1 + $0x1858] sm:$0xf0] }
 0x3d4   :  { %7843 = vmatpush.bf16.msra.mxu3 %v11518_v10  ;;  %v12808_v29 = vld [vmem:[%s19493_s1 + $0x184c] sm:$0xf]  ;;  %v11454_v63 = vor.u32 %v12908_v55, %v11451_v2  ;;  %v11179_v14 = vld [vmem:[%s19493_s1 + $0x1958] sm:$0xf0] }
 0x3d5   :  { %7805 = vmatpush.bf16.msra.mxu0 %v11118_v21  ;;  %v12840_v61 = vld [vmem:[%s19493_s1 + $0x194c] sm:$0xf]  ;;  %v7579_v47 = vpop.f32.mrf.mxu2  ;;  %v11307_v50 = vld [vmem:[%s19493_s1 + $0x1a58] sm:$0xf0]  ;;  %v11054_v5 = vor.u32 %v12808_v29, %v11051_v34  ;;  %v7555_v11 = vpop.f32.mrf.mxu0 }
 0x3d6   :  { %7818 = vmatpush.bf16.msra.mxu1 %v11246_v25  ;;  %v12872_v3 = vld [vmem:[%s19493_s1 + $0x1a4c] sm:$0xf]  ;;  %v7580_v4 = vadd.f32 %v7579_v47, %v7567_v57  ;;  %v7592_v60 = vpop.f32.mrf.mxu3  ;;  %v11435_v62 = vld [vmem:[%s19493_s1 + $0x1b58] sm:$0xf0]  ;;  %v11182_v56 = vor.u32 %v12840_v61, %v11179_v14  ;;  %v7568_v25 = vpop.f32.mrf.mxu1 }
 0x3d7   :  { %7831 = vmatpush.bf16.msra.mxu2 %v11374_v35  ;;  %v12904_v59 = vld [vmem:[%s19493_s1 + $0x1b4c] sm:$0xf]  ;;  %v11310_v19 = vor.u32 %v12872_v3, %v11307_v50  ;;  %v11035_v20 = vld [vmem:[%s19493_s1 + $0x1838] sm:$0xf0] }
 0x3d8   :  { %7844 = vmatpush.bf16.msra.mxu3 %v11502_v38  ;;  %v19244_v10 = vadd.f32 %v7592_v60, %v7580_v4  ;;  %v12804_v15 = vld [vmem:[%s19493_s1 + $0x182c] sm:$0xf]  ;;  %v11438_v35 = vor.u32 %v12904_v59, %v11435_v62  ;;  %v11163_v36 = vld [vmem:[%s19493_s1 + $0x1938] sm:$0xf0]  ;;  %v13074_v60 = vld [vmem:[#allocation1] sm:$0xff] }
 0x3d9   :  { %7806 = vmatpush.bf16.msra.mxu0 %v11102_v8  ;;  %v12836_v21 = vld [vmem:[%s19493_s1 + $0x192c] sm:$0xf]  ;;  %v11291_v1 = vld [vmem:[%s19493_s1 + $0x1a38] sm:$0xf0]  ;;  %v11038_v33 = vor.u32 %v12804_v15, %v11035_v20 }
 0x3da   :  { %7819 = vmatpush.bf16.msra.mxu1 %v11230_v48  ;;  %v12868_v0 = vld [vmem:[%s19493_s1 + $0x1a2c] sm:$0xf]  ;;  %v11419_v43 = vld [vmem:[%s19493_s1 + $0x1b38] sm:$0xf0]  ;;  %v11166_v26 = vor.u32 %v12836_v21, %v11163_v36 }
 0x3db   :  { %7832 = vmatpush.bf16.msra.mxu2 %v11358_v51  ;;  %v12900_v38 = vld [vmem:[%s19493_s1 + $0x1b2c] sm:$0xf]  ;;  %v11019_v37 = vld [vmem:[%s19493_s1 + $0x1818] sm:$0xf0]  ;;  %v11294_v8 = vor.u32 %v12868_v0, %v11291_v1 }
 0x3dc   :  { %7845 = vmatpush.bf16.msra.mxu3 %v11486_v42  ;;  %v12800_v46 = vld [vmem:[%s19493_s1 + $0x180c] sm:$0xf]  ;;  %v11147_v51 = vld [vmem:[%s19493_s1 + $0x1918] sm:$0xf0]  ;;  %v11422_v12 = vor.u32 %v12900_v38, %v11419_v43 }
 0x3dd   :  { %7807 = vmatpush.bf16.msra.mxu0 %v11086_v18  ;;  %v12832_v48 = vld [vmem:[%s19493_s1 + $0x190c] sm:$0xf]  ;;  %v7581_v41 = vpop.f32.mrf.mxu2  ;;  %v11275_v42 = vld [vmem:[%s19493_s1 + $0x1a18] sm:$0xf0]  ;;  %v11022_v17 = vor.u32 %v12800_v46, %v11019_v37 }
 0x3de   :  { %7820 = vmatpush.bf16.msra.mxu1 %v11214_v23  ;;  %v12864_v40 = vld [vmem:[%s19493_s1 + $0x1a0c] sm:$0xf]  ;;  %v11403_v13 = vld [vmem:[%s19493_s1 + $0x1b18] sm:$0xf0]  ;;  %v7594_v24 = vpop.f32.mrf.mxu3  ;;  %v11150_v30 = vor.u32 %v12832_v48, %v11147_v51 }
 0x3df   :  { %7833 = vmatpush.bf16.msra.mxu2 %v11342_v22  ;;  %v12896_v9 = vld [vmem:[%s19493_s1 + $0x1b0c] sm:$0xf]  ;;  %v11643_v16 = vld [vmem:[%s19493_s1 + $0x1cf8] sm:$0xf0]  ;;  %v11278_v31 = vor.u32 %v12864_v40, %v11275_v42 }
 0x3e0   :  { %7846 = vmatpush.bf16.msra.mxu3 %v11470_v58  ;;  %v12956_v52 = vld [vmem:[%s19493_s1 + $0x1cec] sm:$0xf]  ;;  %v11771_v23 = vld [vmem:[%s19493_s1 + $0x1df8] sm:$0xf0]  ;;  %v11406_v58 = vor.u32 %v12896_v9, %v11403_v13 }
 0x3e1   :  { %7808 = vmatpush.bf16.msra.mxu0 %v11070_v27  ;;  %v12988_v18 = vld [vmem:[%s19493_s1 + $0x1dec] sm:$0xf]  ;;  %v11899_v44 = vld [vmem:[%s19493_s1 + $0x1ef8] sm:$0xf0]  ;;  %v11646_v49 = vor.u32 %v12956_v52, %v11643_v16 }
 0x3e2   :  { %7821 = vmatpush.bf16.msra.mxu1 %v11198_v45  ;;  %v13020_v22 = vld [vmem:[%s19493_s1 + $0x1eec] sm:$0xf]  ;;  %v12027_v32 = vld [vmem:[%s19493_s1 + $0x1ff8] sm:$0xf0]  ;;  %v11774_v53 = vor.u32 %v12988_v18, %v11771_v23 }
 0x3e3   :  { %7834 = vmatpush.bf16.msra.mxu2 %v11326_v28  ;;  %v13052_v39 = vld [vmem:[%s19493_s1 + $0x1fec] sm:$0xf]  ;;  %v11902_v54 = vor.u32 %v13020_v22, %v11899_v44  ;;  %v11627_v2 = vld [vmem:[%s19493_s1 + $0x1cd8] sm:$0xf0] }
 0x3e4   :  { %7847 = vmatpush.bf16.msra.mxu3 %v11454_v63  ;;  %v12952_v55 = vld [vmem:[%s19493_s1 + $0x1ccc] sm:$0xf]  ;;  %v12030_v27 = vor.u32 %v13052_v39, %v12027_v32  ;;  %v11755_v45 = vld [vmem:[%s19493_s1 + $0x1dd8] sm:$0xf0] }
 0x3e5   :  { %7809 = vmatpush.bf16.msra.mxu0 %v11054_v5  ;;  %v12984_v57 = vld [vmem:[%s19493_s1 + $0x1dcc] sm:$0xf]  ;;  %v11883_v29 = vld [vmem:[%s19493_s1 + $0x1ed8] sm:$0xf0]  ;;  %v11630_v47 = vor.u32 %v12952_v55, %v11627_v2 }
 0x3e6   :  { %7822 = vmatpush.bf16.msra.mxu1 %v11182_v56  ;;  %v13016_v28 = vld [vmem:[%s19493_s1 + $0x1ecc] sm:$0xf]  ;;  %v12011_v61 = vld [vmem:[%s19493_s1 + $0x1fd8] sm:$0xf0]  ;;  %v11758_v63 = vor.u32 %v12984_v57, %v11755_v45  ;;  %v13075_v56 = vld [vmem:[#allocation1 + $0x12] sm:$0xff] }
 0x3e7   :  { %7835 = vmatpush.bf16.msra.mxu2 %v11310_v19  ;;  %v13048_v34 = vld [vmem:[%s19493_s1 + $0x1fcc] sm:$0xf]  ;;  %v11886_v14 = vor.u32 %v13016_v28, %v11883_v29  ;;  %v11611_v50 = vld [vmem:[%s19493_s1 + $0x1cb8] sm:$0xf0] }
 0x3e8   :  { %7848 = vmatpush.bf16.msra.mxu3 %v11438_v35  ;;  %v12948_v3 = vld [vmem:[%s19493_s1 + $0x1cac] sm:$0xf]  ;;  %v12014_v59 = vor.u32 %v13048_v34, %v12011_v61  ;;  %v11739_v62 = vld [vmem:[%s19493_s1 + $0x1db8] sm:$0xf0] }
 0x3e9   :  { %7810 = vmatpush.bf16.msra.mxu0 %v11038_v33  ;;  %v12980_v4 = vld [vmem:[%s19493_s1 + $0x1dac] sm:$0xf]  ;;  %v11867_v11 = vld [vmem:[%s19493_s1 + $0x1eb8] sm:$0xf0]  ;;  %v11614_v25 = vor.u32 %v12948_v3, %v11611_v50 }
 0x3ea   :  { %7823 = vmatpush.bf16.msra.mxu1 %v11166_v26  ;;  %v13012_v5 = vld [vmem:[%s19493_s1 + $0x1eac] sm:$0xf]  ;;  %v11995_v20 = vld [vmem:[%s19493_s1 + $0x1fb8] sm:$0xf0]  ;;  %v11742_v35 = vor.u32 %v12980_v4, %v11739_v62 }
 0x3eb   :  { %7836 = vmatpush.bf16.msra.mxu2 %v11294_v8  ;;  %v13076_v19 = vld [vmem:[#allocation1 + $0x9] sm:$0xff]  ;;  %v13077_v21 = vld [vmem:[#allocation1 + $0x1b] sm:$0xff]  ;;  %v11870_v36 = vor.u32 %v13012_v5, %v11867_v11 }
 0x3ec   :  { %7849 = vmatpush.bf16.msra.mxu3 %v11422_v12  ;;  %v13044_v15 = vld [vmem:[%s19493_s1 + $0x1fac] sm:$0xf]  ;;  %v11595_v1 = vld [vmem:[%s19493_s1 + $0x1c98] sm:$0xf0] }
 0x3ed   :  { %7811 = vmatpush.bf16.msra.mxu0 %v11022_v17  ;;  %v12944_v0 = vld [vmem:[%s19493_s1 + $0x1c8c] sm:$0xf]  ;;  %v11998_v43 = vor.u32 %v13044_v15, %v11995_v20  ;;  %v11723_v33 = vld [vmem:[%s19493_s1 + $0x1d98] sm:$0xf0]  ;;  %v7605_v26 = vpop.f32.mrf.mxu0 }
 0x3ee   :  { %7824 = vmatpush.bf16.msra.mxu1 %v11150_v30  ;;  %v12976_v38 = vld [vmem:[%s19493_s1 + $0x1d8c] sm:$0xf]  ;;  %v11851_v37 = vld [vmem:[%s19493_s1 + $0x1e98] sm:$0xf0]  ;;  %v7606_v51 = vadd.f32 %v7605_v26, %v19244_v10  ;;  %v11598_v40 = vor.u32 %v12944_v0, %v11595_v1  ;;  %v7618_v41 = vpop.f32.mrf.mxu1 }
 0x3ef   :  { %7837 = vmatpush.bf16.msra.mxu2 %v11278_v31  ;;  %v13008_v46 = vld [vmem:[%s19493_s1 + $0x1e8c] sm:$0xf]  ;;  %v11979_v48 = vld [vmem:[%s19493_s1 + $0x1f98] sm:$0xf0]  ;;  %v11726_v12 = vor.u32 %v12976_v38, %v11723_v33 }
 0x3f0   :  { %7850 = vmatpush.bf16.msra.mxu3 %v11406_v58  ;;  %7812 = vmatmul.bf16.vlgmr.msra.gmra.mxu0 %v13074_v60  ;;  %v13040_v8 = vld [vmem:[%s19493_s1 + $0x1f8c] sm:$0xf]  ;;  %v11854_v42 = vor.u32 %v13008_v46, %v11851_v37  ;;  %v11579_v13 = vld [vmem:[%s19493_s1 + $0x1c78] sm:$0xf0]  ;;  %v7619_v52 = vadd.f32 %v7618_v41, %v7606_v51 }
 0x3f1   :  { %7856 = vmatpush.bf16.msrb.mxu0 %v11646_v49  ;;  %7825 = vmatmul.bf16.vlgmr.msra.gmra.mxu1 %v13076_v19  ;;  %v12940_v9 = vld [vmem:[%s19493_s1 + $0x1c6c] sm:$0xf]  ;;  %v11982_v10 = vor.u32 %v13040_v8, %v11979_v48  ;;  %v11707_v16 = vld [vmem:[%s19493_s1 + $0x1d78] sm:$0xf0] }
 0x3f2   :  { %7869 = vmatpush.bf16.msrb.mxu1 %v11774_v53  ;;  %7838 = vmatmul.bf16.vlgmr.msra.gmra.mxu2 %v13075_v56  ;;  %v12972_v24 = vld [vmem:[%s19493_s1 + $0x1d6c] sm:$0xf]  ;;  %v11835_v17 = vld [vmem:[%s19493_s1 + $0x1e78] sm:$0xf0]  ;;  %v11582_v44 = vor.u32 %v12940_v9, %v11579_v13 }
 0x3f3   :  { %7882 = vmatpush.bf16.msrb.mxu2 %v11902_v54  ;;  %7851 = vmatmul.bf16.vlgmr.msra.gmra.mxu3 %v13077_v21  ;;  %v13004_v18 = vld [vmem:[%s19493_s1 + $0x1e6c] sm:$0xf]  ;;  %v11963_v22 = vld [vmem:[%s19493_s1 + $0x1f78] sm:$0xf0]  ;;  %v11710_v30 = vor.u32 %v12972_v24, %v11707_v16 }
 0x3f4   :  { %7895 = vmatpush.bf16.msrb.mxu3 %v12030_v27  ;;  %v13036_v23 = vld [vmem:[%s19493_s1 + $0x1f6c] sm:$0xf]  ;;  %v11838_v31 = vor.u32 %v13004_v18, %v11835_v17  ;;  %v11563_v32 = vld [vmem:[%s19493_s1 + $0x1c58] sm:$0xf0] }
 0x3f5   :  { %7857 = vmatpush.bf16.msrb.mxu0 %v11630_v47  ;;  %v12936_v39 = vld [vmem:[%s19493_s1 + $0x1c4c] sm:$0xf]  ;;  %v11966_v49 = vor.u32 %v13036_v23, %v11963_v22  ;;  %v7631_v53 = vpop.f32.mrf.mxu2  ;;  %v11691_v54 = vld [vmem:[%s19493_s1 + $0x1d58] sm:$0xf0]  ;;  %v7607_v29 = vpop.f32.mrf.mxu0 }
 0x3f6   :  { %7870 = vmatpush.bf16.msrb.mxu1 %v11758_v63  ;;  %v12968_v58 = vld [vmem:[%s19493_s1 + $0x1d4c] sm:$0xf]  ;;  %v11819_v2 = vld [vmem:[%s19493_s1 + $0x1e58] sm:$0xf0]  ;;  %v7632_v57 = vadd.f32 %v7631_v53, %v7619_v52  ;;  %v7644_v27 = vpop.f32.mrf.mxu3  ;;  %v11566_v34 = vor.u32 %v12936_v39, %v11563_v32  ;;  %v7620_v61 = vpop.f32.mrf.mxu1 }
 0x3f7   :  { %7883 = vmatpush.bf16.msrb.mxu2 %v11886_v14  ;;  %v13000_v55 = vld [vmem:[%s19493_s1 + $0x1e4c] sm:$0xf]  ;;  %v11947_v28 = vld [vmem:[%s19493_s1 + $0x1f58] sm:$0xf0]  ;;  %v11694_v63 = vor.u32 %v12968_v58, %v11691_v54 }
 0x3f8   :  { %7896 = vmatpush.bf16.msrb.mxu3 %v12014_v59  ;;  %v13032_v45 = vld [vmem:[%s19493_s1 + $0x1f4c] sm:$0xf]  ;;  %v7645_v47 = vadd.f32 %v7644_v27, %v7632_v57  ;;  %v11822_v14 = vor.u32 %v13000_v55, %v11819_v2  ;;  %v11547_v50 = vld [vmem:[%s19493_s1 + $0x1c38] sm:$0xf0] }
 0x3f9   :  { %7858 = vmatpush.bf16.msrb.mxu0 %v11614_v25  ;;  %v12932_v3 = vld [vmem:[%s19493_s1 + $0x1c2c] sm:$0xf]  ;;  %v11950_v60 = vor.u32 %v13032_v45, %v11947_v28  ;;  %v11675_v59 = vld [vmem:[%s19493_s1 + $0x1d38] sm:$0xf0] }
 0x3fa   :  { %7871 = vmatpush.bf16.msrb.mxu1 %v11742_v35  ;;  %v12964_v4 = vld [vmem:[%s19493_s1 + $0x1d2c] sm:$0xf]  ;;  %v11803_v5 = vld [vmem:[%s19493_s1 + $0x1e38] sm:$0xf0]  ;;  %v11550_v19 = vor.u32 %v12932_v3, %v11547_v50 }
 0x3fb   :  { %7884 = vmatpush.bf16.msrb.mxu2 %v11870_v36  ;;  %v12996_v62 = vld [vmem:[%s19493_s1 + $0x1e2c] sm:$0xf]  ;;  %v11931_v56 = vld [vmem:[%s19493_s1 + $0x1f38] sm:$0xf0]  ;;  %v11678_v15 = vor.u32 %v12964_v4, %v11675_v59 }
 0x3fc   :  { %7897 = vmatpush.bf16.msrb.mxu3 %v11998_v43  ;;  %v13028_v11 = vld [vmem:[%s19493_s1 + $0x1f2c] sm:$0xf]  ;;  %v11806_v20 = vor.u32 %v12996_v62, %v11803_v5  ;;  %v11531_v25 = vld [vmem:[%s19493_s1 + $0x1c18] sm:$0xf0] }
 0x3fd   :  { %7859 = vmatpush.bf16.msrb.mxu0 %v11598_v40  ;;  %v12928_v21 = vld [vmem:[%s19493_s1 + $0x1c0c] sm:$0xf]  ;;  %v11934_v36 = vor.u32 %v13028_v11, %v11931_v56  ;;  %v11659_v0 = vld [vmem:[%s19493_s1 + $0x1d18] sm:$0xf0]  ;;  %v7633_v43 = vpop.f32.mrf.mxu2  ;;  %v13078_v40 = vld [vmem:[#allocation1 + $0x24] sm:$0xff] }
 0x3fe   :  { %7872 = vmatpush.bf16.msrb.mxu1 %v11726_v12  ;;  %v12960_v35 = vld [vmem:[%s19493_s1 + $0x1d0c] sm:$0xf]  ;;  %v11787_v38 = vld [vmem:[%s19493_s1 + $0x1e18] sm:$0xf0]  ;;  %v7646_v37 = vpop.f32.mrf.mxu3  ;;  %v11534_v26 = vor.u32 %v12928_v21, %v11531_v25 }
 0x3ff   :  { %7885 = vmatpush.bf16.msrb.mxu2 %v11854_v42  ;;  %v12992_v1 = vld [vmem:[%s19493_s1 + $0x1e0c] sm:$0xf]  ;;  %v11915_v46 = vld [vmem:[%s19493_s1 + $0x1f18] sm:$0xf0]  ;;  %v11662_v8 = vor.u32 %v12960_v35, %v11659_v0 }
 0x400   :  { %7898 = vmatpush.bf16.msrb.mxu3 %v11982_v10  ;;  %v13024_v33 = vld [vmem:[%s19493_s1 + $0x1f0c] sm:$0xf]  ;;  %v11790_v48 = vor.u32 %v12992_v1, %v11787_v38  ;;  %v13080_v12 = vld [vmem:[#allocation1 + $0x36] sm:$0xff]  ;;  %v13081_v42 = vld [vmem:[#allocation1 + $0x3f] sm:$0xff] }
 0x401   :  { %7860 = vmatpush.bf16.msrb.mxu0 %v11582_v44  ;;  %v11918_v51 = vor.u32 %v13024_v33, %v11915_v46  ;;  %v13079_v41 = vld [vmem:[#allocation1 + $0x2d] sm:$0xff] }
 0x402   :  { %7873 = vmatpush.bf16.msrb.mxu1 %v11710_v30 }
 0x403   :  { %7886 = vmatpush.bf16.msrb.mxu2 %v11838_v31 }
 0x404   :  { %7899 = vmatpush.bf16.msrb.mxu3 %v11966_v49 }
 0x405   :  { %7861 = vmatpush.bf16.msrb.mxu0 %v11566_v34 }
 0x406   :  { %7874 = vmatpush.bf16.msrb.mxu1 %v11694_v63 }
 0x407   :  { %7887 = vmatpush.bf16.msrb.mxu2 %v11822_v14 }
 0x408   :  { %7900 = vmatpush.bf16.msrb.mxu3 %v11950_v60 }
 0x409   :  { %7862 = vmatpush.bf16.msrb.mxu0 %v11550_v19 }
 0x40a   :  { %7875 = vmatpush.bf16.msrb.mxu1 %v11678_v15 }
 0x40b   :  { %7888 = vmatpush.bf16.msrb.mxu2 %v11806_v20 }
 0x40c   :  { %7901 = vmatpush.bf16.msrb.mxu3 %v11934_v36 }
 0x40d   :  { %7863 = vmatpush.bf16.msrb.mxu0 %v11534_v26  ;;  %v7657_v9 = vpop.f32.mrf.mxu0 }
 0x40e   :  { %7876 = vmatpush.bf16.msrb.mxu1 %v11662_v8  ;;  %v7658_v13 = vadd.f32 %v7657_v9, %v7645_v47  ;;  %v7670_v24 = vpop.f32.mrf.mxu1 }
 0x40f   :  { %7889 = vmatpush.bf16.msrb.mxu2 %v11790_v48 }
 0x410   :  { %7902 = vmatpush.bf16.msrb.mxu3 %v11918_v51  ;;  %7864 = vmatmul.bf16.vlgmr.msrb.gmra.mxu0 %v13078_v40  ;;  %v7671_v10 = vadd.f32 %v7670_v24, %v7658_v13  ;;  %v7910_v40 = vmax.f32 %v18844_v7, 0.0 }
 0x411   :  { %7877 = vmatmul.bf16.vlgmr.msrb.gmra.mxu1 %v13079_v41 }
 0x412   :  { %7890 = vmatmul.bf16.vlgmr.msrb.gmra.mxu2 %v13080_v12  ;;  %v7916_v12 = vrot.slane %v17288_v6, 3 }
 0x413   :  { %7903 = vmatmul.bf16.vlgmr.msrb.gmra.mxu3 %v13081_v42 }
 0x415   :  { %v7683_v52 = vpop.f32.mrf.mxu2  ;;  %v7659_v17 = vpop.f32.mrf.mxu0 }
 0x416   :  { %v7684_v16 = vadd.f32 %v7683_v52, %v7671_v10  ;;  %v7696_v18 = vpop.f32.mrf.mxu3  ;;  %v7672_v23 = vpop.f32.mrf.mxu1  ;;  %v7922_v52 = vsel %vm7919_vm0, %v17288_v6, %v7916_v12 }
 0x418   :  { %v7697_v22 = vadd.f32 %v7696_v18, %v7684_v16 }
 0x41d   :  { %v7685_v44 = vpop.f32.mrf.mxu2 }
 0x41e   :  { %v7698_v30 = vpop.f32.mrf.mxu3 }
 0x42d   :  { %v7709_v31 = vpop.f32.mrf.mxu0 }
 0x42e   :  { %v7710_v39 = vadd.f32 %v7709_v31, %v7697_v22  ;;  %v7722_v32 = vpop.f32.mrf.mxu1 }
 0x430   :  { %v7723_v58 = vadd.f32 %v7722_v32, %v7710_v39 }
 0x435   :  { %v7735_v49 = vpop.f32.mrf.mxu2  ;;  %v7711_v55 = vpop.f32.mrf.mxu0 }
 0x436   :  { %v7736_v53 = vadd.f32 %v7735_v49, %v7723_v58  ;;  %v7748_v54 = vpop.f32.mrf.mxu3  ;;  %v7724_v2 = vpop.f32.mrf.mxu1 }
 0x438   :  { %v7749_v57 = vadd.f32 %v7748_v54, %v7736_v53 }
 0x43d   :  { %v7737_v27 = vpop.f32.mrf.mxu2 }
 0x43e   :  { %v7750_v45 = vpop.f32.mrf.mxu3 }
 0x44d   :  { %v7761_v28 = vpop.f32.mrf.mxu0 }
 0x44e   :  { %v7774_v29 = vpop.f32.mrf.mxu1  ;;  %v7762_v60 = vadd.f32 %v7761_v28, %v7749_v57 }
 0x450   :  { %v7775_v56 = vadd.f32 %v7774_v29, %v7762_v60 }
 0x455   :  { %v7787_v34 = vpop.f32.mrf.mxu2  ;;  %v7763_v47 = vpop.f32.mrf.mxu0 }
 0x456   :  { %v7800_v61 = vpop.f32.mrf.mxu3  ;;  %v7776_v63 = vpop.f32.mrf.mxu1  ;;  %v7788_v19 = vadd.f32 %v7787_v34, %v7775_v56 }
 0x458   :  { %v7801_v21 = vadd.f32 %v7800_v61, %v7788_v19 }
 0x45d   :  { %v7789_v14 = vpop.f32.mrf.mxu2 }
 0x45e   :  { %v7802_v3 = vpop.f32.mrf.mxu3 }
 0x46d   :  { %v7813_v50 = vpop.f32.mrf.mxu0 }
 0x46e   :  { %v7826_v4 = vpop.f32.mrf.mxu1  ;;  %v7814_v25 = vadd.f32 %v7813_v50, %v7801_v21 }
 0x470   :  { %v7827_v35 = vadd.f32 %v7826_v4, %v7814_v25 }
 0x475   :  { %v7839_v59 = vpop.f32.mrf.mxu2  ;;  %v7815_v5 = vpop.f32.mrf.mxu0 }
 0x476   :  { %v7852_v62 = vpop.f32.mrf.mxu3  ;;  %v7828_v11 = vpop.f32.mrf.mxu1  ;;  %v7840_v36 = vadd.f32 %v7839_v59, %v7827_v35 }
 0x478   :  { %v7853_v0 = vadd.f32 %v7852_v62, %v7840_v36 }
 0x47d   :  { %v7841_v15 = vpop.f32.mrf.mxu2 }
 0x47e   :  { %v7854_v20 = vpop.f32.mrf.mxu3 }
 0x48d   :  { %v7865_v1 = vpop.f32.mrf.mxu0 }
 0x48e   :  { %v7878_v38 = vpop.f32.mrf.mxu1  ;;  %v7866_v43 = vadd.f32 %v7865_v1, %v7853_v0 }
 0x490   :  { %v7879_v33 = vadd.f32 %v7878_v38, %v7866_v43 }
 0x495   :  { %v7891_v46 = vpop.f32.mrf.mxu2  ;;  %v7867_v8 = vpop.f32.mrf.mxu0 }
 0x496   :  { %v7892_v37 = vadd.f32 %v7891_v46, %v7879_v33  ;;  %v7904_v26 = vpop.f32.mrf.mxu3  ;;  %v7880_v48 = vpop.f32.mrf.mxu1 }
 0x498   :  { %v7905_v51 = vadd.f32 %v7904_v26, %v7892_v37 }
 0x49a   :  { %v7911_v41 = vmax.f32 %v7905_v51, 0.0 }
 0x49c   :  { %v7913_v42 = vpack.c.bf16 %v7911_v41, %v7910_v40 }
 0x49d   :  { %v7893_v9 = vpop.f32.mrf.mxu2 }
 0x49e   :  { %v7917_v13 = vrot.slane %v7913_v42, 6  ;;  %v7918_v24 = vrot.slane %v7913_v42, 1  ;;  %v7906_v10 = vpop.f32.mrf.mxu3 }
 0x4a0   :  { %v7926_v16 = vsel %vm7923_vm1, %v7917_v13, %v7918_v24 }
 0x4a1   :  { %v7928_v18 = vsel %vm7927_vm2, %v7922_v52, %v7926_v16 }
 0x4a2   :  { %7930 = vst [vmem:[%s19496_s3] sm:$0xf] %v7928_v18 }

</bundles_post_ra>
